<compile_context>
chip_gen: v6e
topology: v6e:2x2x1
jax: 0.10.0
libtpu: 0.0.40
codegen_flags: <defaults>
</compile_context>

<pallas_src>
import jax
import jax.numpy as jnp
import numpy as np
from jax import lax
from jax.experimental import pallas as pl
from jax.experimental.pallas import tpu as pltpu

DOF = 2
HIDDEN = 100
HP = 128        # hidden padded to lane width
SUBLANE = 8     # f32 sublane count


def _make_kernel(T, Bp, Hp):
    """Kernel closure over static T (sequence length), Bp (padded batch), Hp."""

    def kernel(x_ref,
               wih1_ref, whh1_ref, b1_ref,
               wih2_ref, whh2_ref, b2_ref,
               wih3_ref, whh3_ref, b3_ref,
               wd_ref, bd_ref,
               out_ref,
               pre_scr, seq_scr):

        unroll = True if T <= 16 else 4

        def run_layer(in_ref, wih_ref, whh_ref, b_ref):
            # Hoisted input projection: one (T*Bp)-row matmul (good MXU fill)
            # instead of T tiny matmuls on the serial critical path.
            pre_scr[...] = (jnp.dot(in_ref[...], wih_ref[...],
                                    preferred_element_type=jnp.float32)
                            + b_ref[...])
            whh = whh_ref[...]                             # (Hp, 4*Hp)

            def step(t, carry):
                h, c = carry                               # (Bp, Hp) each, in vregs
                row = pl.multiple_of(t * Bp, Bp)
                gates = pre_scr[pl.ds(row, Bp), :] + jnp.dot(
                    h, whh, preferred_element_type=jnp.float32)
                i_g = jax.nn.sigmoid(gates[:, 0 * Hp:1 * Hp])
                f_g = jax.nn.sigmoid(gates[:, 1 * Hp:2 * Hp])
                g_g = jnp.tanh(gates[:, 2 * Hp:3 * Hp])
                o_g = jax.nn.sigmoid(gates[:, 3 * Hp:4 * Hp])
                c_new = f_g * c + i_g * g_g
                h_new = o_g * jnp.tanh(c_new)
                # ReLU on the layer *output* fed forward (matches PyTorch),
                # not on the recurrent state.
                seq_scr[pl.ds(row, Bp), :] = jnp.maximum(h_new, 0.0)
                return h_new, c_new

            h0 = jnp.zeros((Bp, Hp), jnp.float32)
            c0 = jnp.zeros((Bp, Hp), jnp.float32)
            lax.fori_loop(0, T, step, (h0, c0), unroll=unroll)

        # Layer 1 reads x; layers 2/3 read seq_scr. Safe in-place reuse: the
        # hoisted projection consumes the WHOLE previous-layer output into
        # pre_scr before the new layer's recurrence overwrites seq_scr.
        run_layer(x_ref, wih1_ref, whh1_ref, b1_ref)
        run_layer(seq_scr, wih2_ref, whh2_ref, b2_ref)
        run_layer(seq_scr, wih3_ref, whh3_ref, b3_ref)

        # Fused dense1∘dense2 head as a single matmul over the whole sequence.
        out_ref[...] = (jnp.dot(seq_scr[...], wd_ref[...],
                                preferred_element_type=jnp.float32)
                        + bd_ref[...])

    return kernel


def init_params(key, dof=DOF, hidden=HIDDEN):
    """Deterministic init mimicking PyTorch's uniform(-1/sqrt(H), 1/sqrt(H))."""
    bound = 1.0 / np.sqrt(hidden)
    keys = iter(jax.random.split(key, 16))
    params = {}
    in_sizes = [3 * dof, hidden, hidden]
    for l, din in enumerate(in_sizes, start=1):
        params[f"w_ih{l}"] = jax.random.uniform(next(keys), (4 * hidden, din),
                                                jnp.float32, -bound, bound)
        params[f"w_hh{l}"] = jax.random.uniform(next(keys), (4 * hidden, hidden),
                                                jnp.float32, -bound, bound)
        params[f"b_ih{l}"] = jax.random.uniform(next(keys), (4 * hidden,),
                                                jnp.float32, -bound, bound)
        params[f"b_hh{l}"] = jax.random.uniform(next(keys), (4 * hidden,),
                                                jnp.float32, -bound, bound)
    params["w_d1"] = jax.random.uniform(next(keys), (hidden, hidden),
                                        jnp.float32, -bound, bound)
    params["b_d1"] = jax.random.uniform(next(keys), (hidden,),
                                        jnp.float32, -bound, bound)
    params["w_d2"] = jax.random.uniform(next(keys), (dof, hidden),
                                        jnp.float32, -bound, bound)
    params["b_d2"] = jax.random.uniform(next(keys), (dof,),
                                        jnp.float32, -bound, bound)
    return params


def _pad_lstm(w_ih, w_hh, b_ih, b_hh, Hp, pad_in):
    """Transpose + zero-pad per-gate so gate k occupies lanes [k*Hp, k*Hp+H)."""
    fourH, din = w_ih.shape
    H = fourH // 4
    din_p = Hp if pad_in else din
    wih = jnp.zeros((4, Hp, din_p), jnp.float32).at[:, :H, :din].set(
        w_ih.reshape(4, H, din))
    wih = wih.reshape(4 * Hp, din_p).T                       # (din_p, 4*Hp)
    whh = jnp.zeros((4, Hp, Hp), jnp.float32).at[:, :H, :H].set(
        w_hh.reshape(4, H, H))
    whh = whh.reshape(4 * Hp, Hp).T                          # (Hp, 4*Hp)
    b = jnp.zeros((4, Hp), jnp.float32).at[:, :H].set(
        (b_ih + b_hh).reshape(4, H))
    return wih, whh, b.reshape(1, 4 * Hp)


def lstm_model_forward(x, params, hidden=HIDDEN, dof=DOF):
    """x: (B, T, 3*dof) batch-first, like PyTorch. Returns (B, T, dof)."""
    B, T, Din = x.shape
    H = hidden
    Hp = HP
    Bp = max(SUBLANE, ((B + SUBLANE - 1) // SUBLANE) * SUBLANE)

    # Zero-pad batch to full sublanes, go time-major, flatten to (T*Bp, Din).
    x_p = jnp.zeros((Bp, T, Din), jnp.float32).at[:B].set(x.astype(jnp.float32))
    x_flat = jnp.transpose(x_p, (1, 0, 2)).reshape(T * Bp, Din)

    args = [x_flat]
    for l, pad_in in ((1, False), (2, True), (3, True)):
        args.extend(_pad_lstm(params[f"w_ih{l}"], params[f"w_hh{l}"],
                              params[f"b_ih{l}"], params[f"b_hh{l}"],
                              Hp, pad_in))

    # dense1 -> dense2 is purely linear (no activation in between): fuse.
    w_fused = params["w_d1"].T @ params["w_d2"].T            # (H, dof)
    b_fused = params["b_d1"] @ params["w_d2"].T + params["b_d2"]
    wd = jnp.zeros((Hp, dof), jnp.float32).at[:H].set(w_fused)
    args.extend([wd, b_fused[None, :]])

    # TODO(synk): for large T*B on v7x (64 MiB VMEM/TC), chunk T via a grid axis
    # marked "arbitrary" (h/c persisting in scratch) and split batch over the 2
    # TensorCores with a "parallel" grid axis; not needed at these shapes
    # (total scratch ~0.16 MiB).
    out_flat = pl.pallas_call(
        _make_kernel(T, Bp, Hp),
        out_shape=jax.ShapeDtypeStruct((T * Bp, dof), jnp.float32),
        in_specs=[pl.BlockSpec(memory_space=pltpu.MemorySpace.VMEM)] * len(args),
        out_specs=pl.BlockSpec(memory_space=pltpu.MemorySpace.VMEM),
        scratch_shapes=[
            pltpu.VMEM((T * Bp, 4 * Hp), jnp.float32),   # hoisted pre-gates
            pltpu.VMEM((T * Bp, Hp), jnp.float32),       # inter-layer sequence
        ],
    )(*args)

    out_tm = out_flat.reshape(T, Bp, dof)[:, :B, :]          # drop batch padding
    return jnp.transpose(out_tm, (1, 0, 2))                  # -> (B, T, dof)


def reference_forward(x, params, hidden=HIDDEN, dof=DOF):
    """Pure-JAX reference with identical semantics to the PyTorch module."""
    H = hidden

    def lstm(seq, w_ih, w_hh, b_ih, b_hh):
        B, T, _ = seq.shape
        h = jnp.zeros((B, H), jnp.float32)
        c = jnp.zeros((B, H), jnp.float32)
        outs = []
        for t in range(T):
            g = seq[:, t, :] @ w_ih.T + b_ih + h @ w_hh.T + b_hh
            i = jax.nn.sigmoid(g[:, :H])
            f = jax.nn.sigmoid(g[:, H:2 * H])
            gg = jnp.tanh(g[:, 2 * H:3 * H])
            o = jax.nn.sigmoid(g[:, 3 * H:])
            c = f * c + i * gg
            h = o * jnp.tanh(c)
            outs.append(h)
        return jnp.stack(outs, axis=1)

    y = x
    for l in (1, 2, 3):
        y = lstm(y, params[f"w_ih{l}"], params[f"w_hh{l}"],
                 params[f"b_ih{l}"], params[f"b_hh{l}"])
        y = jnp.maximum(y, 0.0)
    y = y @ params["w_d1"].T + params["b_d1"]
    y = y @ params["w_d2"].T + params["b_d2"]
    return y


if __name__ == "__main__":
    key = jax.random.PRNGKey(0)
    pkey, xkey = jax.random.split(key)
    params = init_params(pkey)

    B, T = 2, 8
    x = jax.random.normal(xkey, (B, T, 3 * DOF), jnp.float32)

    out = jax.jit(lambda xx: lstm_model_forward(xx, params))(x)
    out = jax.block_until_ready(out)

    ref = reference_forward(x, params)
    assert out.shape == (B, T, DOF)
    np.testing.assert_allclose(np.asarray(out), np.asarray(ref),
                               rtol=1e-4, atol=1e-4)
    print("KERNEL_OK")
</pallas_src>

<mosaic_0001>
module attributes {stable_mosaic.version = 11 : i64} {
  func.func @kernel(%arg0: memref<64x6xf32, #tpu.memory_space<vmem>>, %arg1: memref<6x512xf32, #tpu.memory_space<vmem>>, %arg2: memref<128x512xf32, #tpu.memory_space<vmem>>, %arg3: memref<1x512xf32, #tpu.memory_space<vmem>>, %arg4: memref<128x512xf32, #tpu.memory_space<vmem>>, %arg5: memref<128x512xf32, #tpu.memory_space<vmem>>, %arg6: memref<1x512xf32, #tpu.memory_space<vmem>>, %arg7: memref<128x512xf32, #tpu.memory_space<vmem>>, %arg8: memref<128x512xf32, #tpu.memory_space<vmem>>, %arg9: memref<1x512xf32, #tpu.memory_space<vmem>>, %arg10: memref<128x2xf32, #tpu.memory_space<vmem>>, %arg11: memref<1x2xf32, #tpu.memory_space<vmem>>, %arg12: memref<64x2xf32, #tpu.memory_space<vmem>>, %arg13: memref<64x512xf32, #tpu.memory_space<vmem>>, %arg14: memref<64x128xf32, #tpu.memory_space<vmem>>) attributes {dimension_semantics = [], scalar_prefetch = 0 : i64, scratch_operands = 2 : i64, tpu.core_type = #tpu.core_type<tc>} {
    %c0 = arith.constant 0 : index
    %c0_0 = arith.constant 0 : index
    %0 = vector.load %arg0[%c0, %c0_0] : memref<64x6xf32, #tpu.memory_space<vmem>>, vector<64x6xf32>
    %c0_1 = arith.constant 0 : index
    %c0_2 = arith.constant 0 : index
    %1 = vector.load %arg1[%c0_1, %c0_2] : memref<6x512xf32, #tpu.memory_space<vmem>>, vector<6x512xf32>
    %cst = arith.constant dense<0.000000e+00> : vector<64x512xf32>
    %2 = tpu.matmul %0, %1, %cst {dimension_numbers = #tpu.dot_dimension_numbers<[1], [0], [0], [1], [0, 0, 1, 1], [], []>} : vector<64x6xf32>, vector<6x512xf32>, vector<64x512xf32> -> vector<64x512xf32>
    %c0_3 = arith.constant 0 : index
    %c0_4 = arith.constant 0 : index
    %3 = vector.load %arg3[%c0_3, %c0_4] : memref<1x512xf32, #tpu.memory_space<vmem>>, vector<1x512xf32>
    %4 = vector.broadcast %3 : vector<1x512xf32> to vector<64x512xf32>
    %5 = arith.addf %2, %4 : vector<64x512xf32>
    %c0_5 = arith.constant 0 : index
    %c0_6 = arith.constant 0 : index
    %6 = vector.load %arg13[%c0_5, %c0_6] : memref<64x512xf32, #tpu.memory_space<vmem>>, vector<64x512xf32>
    tpu.vector_store %arg13[%c0_5, %c0_6], %5 {strides = array<i32>} : memref<64x512xf32, #tpu.memory_space<vmem>>, vector<64x512xf32>,
    %c0_7 = arith.constant 0 : index
    %c0_8 = arith.constant 0 : index
    %7 = vector.load %arg2[%c0_7, %c0_8] : memref<128x512xf32, #tpu.memory_space<vmem>>, vector<128x512xf32>
    %cst_9 = arith.constant 0.000000e+00 : f32
    %8 = vector.broadcast %cst_9 : f32 to vector<8x128xf32>
    %cst_10 = arith.constant 0.000000e+00 : f32
    %9 = vector.broadcast %cst_10 : f32 to vector<8x128xf32>
    %c0_i32 = arith.constant 0 : i32
    %c8_i32 = arith.constant 8 : i32
    %10 = arith.muli %c0_i32, %c8_i32 : i32
    %11 = tpu.assume_multiple %10, 8 : i32
    %12 = arith.index_cast %11 : i32 to index
    %c0_11 = arith.constant 0 : index
    %13 = vector.load %arg13[%12, %c0_11] : memref<64x512xf32, #tpu.memory_space<vmem>>, vector<8x512xf32>
    %cst_12 = arith.constant dense<0.000000e+00> : vector<8x512xf32>
    %14 = tpu.matmul %8, %7, %cst_12 {dimension_numbers = #tpu.dot_dimension_numbers<[1], [0], [0], [1], [0, 0, 1, 1], [], []>} : vector<8x128xf32>, vector<128x512xf32>, vector<8x512xf32> -> vector<8x512xf32>
    %15 = arith.addf %13, %14 : vector<8x512xf32>
    %16 = vector.extract_strided_slice %15 {offsets = [0, 0], sizes = [8, 128], strides = [1, 1]} : vector<8x512xf32> to vector<8x128xf32>
    %17 = arith.negf %16 : vector<8x128xf32>
    %18 = math.exp %17 : vector<8x128xf32>
    %cst_13 = arith.constant 1.000000e+00 : f32
    %19 = vector.broadcast %cst_13 : f32 to vector<8x128xf32>
    %20 = arith.addf %19, %18 : vector<8x128xf32>
    %21 = arith.divf %19, %20 : vector<8x128xf32>
    %22 = vector.extract_strided_slice %15 {offsets = [0, 128], sizes = [8, 128], strides = [1, 1]} : vector<8x512xf32> to vector<8x128xf32>
    %23 = arith.negf %22 : vector<8x128xf32>
    %24 = math.exp %23 : vector<8x128xf32>
    %cst_14 = arith.constant 1.000000e+00 : f32
    %25 = vector.broadcast %cst_14 : f32 to vector<8x128xf32>
    %26 = arith.addf %25, %24 : vector<8x128xf32>
    %27 = arith.divf %25, %26 : vector<8x128xf32>
    %28 = vector.extract_strided_slice %15 {offsets = [0, 256], sizes = [8, 128], strides = [1, 1]} : vector<8x512xf32> to vector<8x128xf32>
    %29 = math.tanh %28 : vector<8x128xf32>
    %30 = vector.extract_strided_slice %15 {offsets = [0, 384], sizes = [8, 128], strides = [1, 1]} : vector<8x512xf32> to vector<8x128xf32>
    %31 = arith.negf %30 : vector<8x128xf32>
    %32 = math.exp %31 : vector<8x128xf32>
    %cst_15 = arith.constant 1.000000e+00 : f32
    %33 = vector.broadcast %cst_15 : f32 to vector<8x128xf32>
    %34 = arith.addf %33, %32 : vector<8x128xf32>
    %35 = arith.divf %33, %34 : vector<8x128xf32>
    %36 = arith.mulf %27, %9 : vector<8x128xf32>
    %37 = arith.mulf %21, %29 : vector<8x128xf32>
    %38 = arith.addf %36, %37 : vector<8x128xf32>
    %39 = math.tanh %38 : vector<8x128xf32>
    %40 = arith.mulf %35, %39 : vector<8x128xf32>
    %cst_16 = arith.constant 0.000000e+00 : f32
    %41 = vector.broadcast %cst_16 : f32 to vector<8x128xf32>
    %42 = arith.maximumf %40, %41 : vector<8x128xf32>
    %43 = arith.index_cast %11 : i32 to index
    %c0_17 = arith.constant 0 : index
    %44 = vector.load %arg14[%43, %c0_17] : memref<64x128xf32, #tpu.memory_space<vmem>>, vector<8x128xf32>
    tpu.vector_store %arg14[%43, %c0_17], %42 {strides = array<i32>} : memref<64x128xf32, #tpu.memory_space<vmem>>, vector<8x128xf32>,
    %c1_i32 = arith.constant 1 : i32
    %c8_i32_18 = arith.constant 8 : i32
    %45 = arith.muli %c1_i32, %c8_i32_18 : i32
    %46 = tpu.assume_multiple %45, 8 : i32
    %47 = arith.index_cast %46 : i32 to index
    %c0_19 = arith.constant 0 : index
    %48 = vector.load %arg13[%47, %c0_19] : memref<64x512xf32, #tpu.memory_space<vmem>>, vector<8x512xf32>
    %cst_20 = arith.constant dense<0.000000e+00> : vector<8x512xf32>
    %49 = tpu.matmul %40, %7, %cst_20 {dimension_numbers = #tpu.dot_dimension_numbers<[1], [0], [0], [1], [0, 0, 1, 1], [], []>} : vector<8x128xf32>, vector<128x512xf32>, vector<8x512xf32> -> vector<8x512xf32>
    %50 = arith.addf %48, %49 : vector<8x512xf32>
    %51 = vector.extract_strided_slice %50 {offsets = [0, 0], sizes = [8, 128], strides = [1, 1]} : vector<8x512xf32> to vector<8x128xf32>
    %52 = arith.negf %51 : vector<8x128xf32>
    %53 = math.exp %52 : vector<8x128xf32>
    %cst_21 = arith.constant 1.000000e+00 : f32
    %54 = vector.broadcast %cst_21 : f32 to vector<8x128xf32>
    %55 = arith.addf %54, %53 : vector<8x128xf32>
    %56 = arith.divf %54, %55 : vector<8x128xf32>
    %57 = vector.extract_strided_slice %50 {offsets = [0, 128], sizes = [8, 128], strides = [1, 1]} : vector<8x512xf32> to vector<8x128xf32>
    %58 = arith.negf %57 : vector<8x128xf32>
    %59 = math.exp %58 : vector<8x128xf32>
    %cst_22 = arith.constant 1.000000e+00 : f32
    %60 = vector.broadcast %cst_22 : f32 to vector<8x128xf32>
    %61 = arith.addf %60, %59 : vector<8x128xf32>
    %62 = arith.divf %60, %61 : vector<8x128xf32>
    %63 = vector.extract_strided_slice %50 {offsets = [0, 256], sizes = [8, 128], strides = [1, 1]} : vector<8x512xf32> to vector<8x128xf32>
    %64 = math.tanh %63 : vector<8x128xf32>
    %65 = vector.extract_strided_slice %50 {offsets = [0, 384], sizes = [8, 128], strides = [1, 1]} : vector<8x512xf32> to vector<8x128xf32>
    %66 = arith.negf %65 : vector<8x128xf32>
    %67 = math.exp %66 : vector<8x128xf32>
    %cst_23 = arith.constant 1.000000e+00 : f32
    %68 = vector.broadcast %cst_23 : f32 to vector<8x128xf32>
    %69 = arith.addf %68, %67 : vector<8x128xf32>
    %70 = arith.divf %68, %69 : vector<8x128xf32>
    %71 = arith.mulf %62, %38 : vector<8x128xf32>
    %72 = arith.mulf %56, %64 : vector<8x128xf32>
    %73 = arith.addf %71, %72 : vector<8x128xf32>
    %74 = math.tanh %73 : vector<8x128xf32>
    %75 = arith.mulf %70, %74 : vector<8x128xf32>
    %cst_24 = arith.constant 0.000000e+00 : f32
    %76 = vector.broadcast %cst_24 : f32 to vector<8x128xf32>
    %77 = arith.maximumf %75, %76 : vector<8x128xf32>
    %78 = arith.index_cast %46 : i32 to index
    %c0_25 = arith.constant 0 : index
    %79 = vector.load %arg14[%78, %c0_25] : memref<64x128xf32, #tpu.memory_space<vmem>>, vector<8x128xf32>
    tpu.vector_store %arg14[%78, %c0_25], %77 {strides = array<i32>} : memref<64x128xf32, #tpu.memory_space<vmem>>, vector<8x128xf32>,
    %c2_i32 = arith.constant 2 : i32
    %c8_i32_26 = arith.constant 8 : i32
    %80 = arith.muli %c2_i32, %c8_i32_26 : i32
    %81 = tpu.assume_multiple %80, 8 : i32
    %82 = arith.index_cast %81 : i32 to index
    %c0_27 = arith.constant 0 : index
    %83 = vector.load %arg13[%82, %c0_27] : memref<64x512xf32, #tpu.memory_space<vmem>>, vector<8x512xf32>
    %cst_28 = arith.constant dense<0.000000e+00> : vector<8x512xf32>
    %84 = tpu.matmul %75, %7, %cst_28 {dimension_numbers = #tpu.dot_dimension_numbers<[1], [0], [0], [1], [0, 0, 1, 1], [], []>} : vector<8x128xf32>, vector<128x512xf32>, vector<8x512xf32> -> vector<8x512xf32>
    %85 = arith.addf %83, %84 : vector<8x512xf32>
    %86 = vector.extract_strided_slice %85 {offsets = [0, 0], sizes = [8, 128], strides = [1, 1]} : vector<8x512xf32> to vector<8x128xf32>
    %87 = arith.negf %86 : vector<8x128xf32>
    %88 = math.exp %87 : vector<8x128xf32>
    %cst_29 = arith.constant 1.000000e+00 : f32
    %89 = vector.broadcast %cst_29 : f32 to vector<8x128xf32>
    %90 = arith.addf %89, %88 : vector<8x128xf32>
    %91 = arith.divf %89, %90 : vector<8x128xf32>
    %92 = vector.extract_strided_slice %85 {offsets = [0, 128], sizes = [8, 128], strides = [1, 1]} : vector<8x512xf32> to vector<8x128xf32>
    %93 = arith.negf %92 : vector<8x128xf32>
    %94 = math.exp %93 : vector<8x128xf32>
    %cst_30 = arith.constant 1.000000e+00 : f32
    %95 = vector.broadcast %cst_30 : f32 to vector<8x128xf32>
    %96 = arith.addf %95, %94 : vector<8x128xf32>
    %97 = arith.divf %95, %96 : vector<8x128xf32>
    %98 = vector.extract_strided_slice %85 {offsets = [0, 256], sizes = [8, 128], strides = [1, 1]} : vector<8x512xf32> to vector<8x128xf32>
    %99 = math.tanh %98 : vector<8x128xf32>
    %100 = vector.extract_strided_slice %85 {offsets = [0, 384], sizes = [8, 128], strides = [1, 1]} : vector<8x512xf32> to vector<8x128xf32>
    %101 = arith.negf %100 : vector<8x128xf32>
    %102 = math.exp %101 : vector<8x128xf32>
    %cst_31 = arith.constant 1.000000e+00 : f32
    %103 = vector.broadcast %cst_31 : f32 to vector<8x128xf32>
    %104 = arith.addf %103, %102 : vector<8x128xf32>
    %105 = arith.divf %103, %104 : vector<8x128xf32>
    %106 = arith.mulf %97, %73 : vector<8x128xf32>
    %107 = arith.mulf %91, %99 : vector<8x128xf32>
    %108 = arith.addf %106, %107 : vector<8x128xf32>
    %109 = math.tanh %108 : vector<8x128xf32>
    %110 = arith.mulf %105, %109 : vector<8x128xf32>
    %cst_32 = arith.constant 0.000000e+00 : f32
    %111 = vector.broadcast %cst_32 : f32 to vector<8x128xf32>
    %112 = arith.maximumf %110, %111 : vector<8x128xf32>
    %113 = arith.index_cast %81 : i32 to index
    %c0_33 = arith.constant 0 : index
    %114 = vector.load %arg14[%113, %c0_33] : memref<64x128xf32, #tpu.memory_space<vmem>>, vector<8x128xf32>
    tpu.vector_store %arg14[%113, %c0_33], %112 {strides = array<i32>} : memref<64x128xf32, #tpu.memory_space<vmem>>, vector<8x128xf32>,
    %c3_i32 = arith.constant 3 : i32
    %c8_i32_34 = arith.constant 8 : i32
    %115 = arith.muli %c3_i32, %c8_i32_34 : i32
    %116 = tpu.assume_multiple %115, 8 : i32
    %117 = arith.index_cast %116 : i32 to index
    %c0_35 = arith.constant 0 : index
    %118 = vector.load %arg13[%117, %c0_35] : memref<64x512xf32, #tpu.memory_space<vmem>>, vector<8x512xf32>
    %cst_36 = arith.constant dense<0.000000e+00> : vector<8x512xf32>
    %119 = tpu.matmul %110, %7, %cst_36 {dimension_numbers = #tpu.dot_dimension_numbers<[1], [0], [0], [1], [0, 0, 1, 1], [], []>} : vector<8x128xf32>, vector<128x512xf32>, vector<8x512xf32> -> vector<8x512xf32>
    %120 = arith.addf %118, %119 : vector<8x512xf32>
    %121 = vector.extract_strided_slice %120 {offsets = [0, 0], sizes = [8, 128], strides = [1, 1]} : vector<8x512xf32> to vector<8x128xf32>
    %122 = arith.negf %121 : vector<8x128xf32>
    %123 = math.exp %122 : vector<8x128xf32>
    %cst_37 = arith.constant 1.000000e+00 : f32
    %124 = vector.broadcast %cst_37 : f32 to vector<8x128xf32>
    %125 = arith.addf %124, %123 : vector<8x128xf32>
    %126 = arith.divf %124, %125 : vector<8x128xf32>
    %127 = vector.extract_strided_slice %120 {offsets = [0, 128], sizes = [8, 128], strides = [1, 1]} : vector<8x512xf32> to vector<8x128xf32>
    %128 = arith.negf %127 : vector<8x128xf32>
    %129 = math.exp %128 : vector<8x128xf32>
    %cst_38 = arith.constant 1.000000e+00 : f32
    %130 = vector.broadcast %cst_38 : f32 to vector<8x128xf32>
    %131 = arith.addf %130, %129 : vector<8x128xf32>
    %132 = arith.divf %130, %131 : vector<8x128xf32>
    %133 = vector.extract_strided_slice %120 {offsets = [0, 256], sizes = [8, 128], strides = [1, 1]} : vector<8x512xf32> to vector<8x128xf32>
    %134 = math.tanh %133 : vector<8x128xf32>
    %135 = vector.extract_strided_slice %120 {offsets = [0, 384], sizes = [8, 128], strides = [1, 1]} : vector<8x512xf32> to vector<8x128xf32>
    %136 = arith.negf %135 : vector<8x128xf32>
    %137 = math.exp %136 : vector<8x128xf32>
    %cst_39 = arith.constant 1.000000e+00 : f32
    %138 = vector.broadcast %cst_39 : f32 to vector<8x128xf32>
    %139 = arith.addf %138, %137 : vector<8x128xf32>
    %140 = arith.divf %138, %139 : vector<8x128xf32>
    %141 = arith.mulf %132, %108 : vector<8x128xf32>
    %142 = arith.mulf %126, %134 : vector<8x128xf32>
    %143 = arith.addf %141, %142 : vector<8x128xf32>
    %144 = math.tanh %143 : vector<8x128xf32>
    %145 = arith.mulf %140, %144 : vector<8x128xf32>
    %cst_40 = arith.constant 0.000000e+00 : f32
    %146 = vector.broadcast %cst_40 : f32 to vector<8x128xf32>
    %147 = arith.maximumf %145, %146 : vector<8x128xf32>
    %148 = arith.index_cast %116 : i32 to index
    %c0_41 = arith.constant 0 : index
    %149 = vector.load %arg14[%148, %c0_41] : memref<64x128xf32, #tpu.memory_space<vmem>>, vector<8x128xf32>
    tpu.vector_store %arg14[%148, %c0_41], %147 {strides = array<i32>} : memref<64x128xf32, #tpu.memory_space<vmem>>, vector<8x128xf32>,
    %c4_i32 = arith.constant 4 : i32
    %c8_i32_42 = arith.constant 8 : i32
    %150 = arith.muli %c4_i32, %c8_i32_42 : i32
    %151 = tpu.assume_multiple %150, 8 : i32
    %152 = arith.index_cast %151 : i32 to index
    %c0_43 = arith.constant 0 : index
    %153 = vector.load %arg13[%152, %c0_43] : memref<64x512xf32, #tpu.memory_space<vmem>>, vector<8x512xf32>
    %cst_44 = arith.constant dense<0.000000e+00> : vector<8x512xf32>
    %154 = tpu.matmul %145, %7, %cst_44 {dimension_numbers = #tpu.dot_dimension_numbers<[1], [0], [0], [1], [0, 0, 1, 1], [], []>} : vector<8x128xf32>, vector<128x512xf32>, vector<8x512xf32> -> vector<8x512xf32>
    %155 = arith.addf %153, %154 : vector<8x512xf32>
    %156 = vector.extract_strided_slice %155 {offsets = [0, 0], sizes = [8, 128], strides = [1, 1]} : vector<8x512xf32> to vector<8x128xf32>
    %157 = arith.negf %156 : vector<8x128xf32>
    %158 = math.exp %157 : vector<8x128xf32>
    %cst_45 = arith.constant 1.000000e+00 : f32
    %159 = vector.broadcast %cst_45 : f32 to vector<8x128xf32>
    %160 = arith.addf %159, %158 : vector<8x128xf32>
    %161 = arith.divf %159, %160 : vector<8x128xf32>
    %162 = vector.extract_strided_slice %155 {offsets = [0, 128], sizes = [8, 128], strides = [1, 1]} : vector<8x512xf32> to vector<8x128xf32>
    %163 = arith.negf %162 : vector<8x128xf32>
    %164 = math.exp %163 : vector<8x128xf32>
    %cst_46 = arith.constant 1.000000e+00 : f32
    %165 = vector.broadcast %cst_46 : f32 to vector<8x128xf32>
    %166 = arith.addf %165, %164 : vector<8x128xf32>
    %167 = arith.divf %165, %166 : vector<8x128xf32>
    %168 = vector.extract_strided_slice %155 {offsets = [0, 256], sizes = [8, 128], strides = [1, 1]} : vector<8x512xf32> to vector<8x128xf32>
    %169 = math.tanh %168 : vector<8x128xf32>
    %170 = vector.extract_strided_slice %155 {offsets = [0, 384], sizes = [8, 128], strides = [1, 1]} : vector<8x512xf32> to vector<8x128xf32>
    %171 = arith.negf %170 : vector<8x128xf32>
    %172 = math.exp %171 : vector<8x128xf32>
    %cst_47 = arith.constant 1.000000e+00 : f32
    %173 = vector.broadcast %cst_47 : f32 to vector<8x128xf32>
    %174 = arith.addf %173, %172 : vector<8x128xf32>
    %175 = arith.divf %173, %174 : vector<8x128xf32>
    %176 = arith.mulf %167, %143 : vector<8x128xf32>
    %177 = arith.mulf %161, %169 : vector<8x128xf32>
    %178 = arith.addf %176, %177 : vector<8x128xf32>
    %179 = math.tanh %178 : vector<8x128xf32>
    %180 = arith.mulf %175, %179 : vector<8x128xf32>
    %cst_48 = arith.constant 0.000000e+00 : f32
    %181 = vector.broadcast %cst_48 : f32 to vector<8x128xf32>
    %182 = arith.maximumf %180, %181 : vector<8x128xf32>
    %183 = arith.index_cast %151 : i32 to index
    %c0_49 = arith.constant 0 : index
    %184 = vector.load %arg14[%183, %c0_49] : memref<64x128xf32, #tpu.memory_space<vmem>>, vector<8x128xf32>
    tpu.vector_store %arg14[%183, %c0_49], %182 {strides = array<i32>} : memref<64x128xf32, #tpu.memory_space<vmem>>, vector<8x128xf32>,
    %c5_i32 = arith.constant 5 : i32
    %c8_i32_50 = arith.constant 8 : i32
    %185 = arith.muli %c5_i32, %c8_i32_50 : i32
    %186 = tpu.assume_multiple %185, 8 : i32
    %187 = arith.index_cast %186 : i32 to index
    %c0_51 = arith.constant 0 : index
    %188 = vector.load %arg13[%187, %c0_51] : memref<64x512xf32, #tpu.memory_space<vmem>>, vector<8x512xf32>
    %cst_52 = arith.constant dense<0.000000e+00> : vector<8x512xf32>
    %189 = tpu.matmul %180, %7, %cst_52 {dimension_numbers = #tpu.dot_dimension_numbers<[1], [0], [0], [1], [0, 0, 1, 1], [], []>} : vector<8x128xf32>, vector<128x512xf32>, vector<8x512xf32> -> vector<8x512xf32>
    %190 = arith.addf %188, %189 : vector<8x512xf32>
    %191 = vector.extract_strided_slice %190 {offsets = [0, 0], sizes = [8, 128], strides = [1, 1]} : vector<8x512xf32> to vector<8x128xf32>
    %192 = arith.negf %191 : vector<8x128xf32>
    %193 = math.exp %192 : vector<8x128xf32>
    %cst_53 = arith.constant 1.000000e+00 : f32
    %194 = vector.broadcast %cst_53 : f32 to vector<8x128xf32>
    %195 = arith.addf %194, %193 : vector<8x128xf32>
    %196 = arith.divf %194, %195 : vector<8x128xf32>
    %197 = vector.extract_strided_slice %190 {offsets = [0, 128], sizes = [8, 128], strides = [1, 1]} : vector<8x512xf32> to vector<8x128xf32>
    %198 = arith.negf %197 : vector<8x128xf32>
    %199 = math.exp %198 : vector<8x128xf32>
    %cst_54 = arith.constant 1.000000e+00 : f32
    %200 = vector.broadcast %cst_54 : f32 to vector<8x128xf32>
    %201 = arith.addf %200, %199 : vector<8x128xf32>
    %202 = arith.divf %200, %201 : vector<8x128xf32>
    %203 = vector.extract_strided_slice %190 {offsets = [0, 256], sizes = [8, 128], strides = [1, 1]} : vector<8x512xf32> to vector<8x128xf32>
    %204 = math.tanh %203 : vector<8x128xf32>
    %205 = vector.extract_strided_slice %190 {offsets = [0, 384], sizes = [8, 128], strides = [1, 1]} : vector<8x512xf32> to vector<8x128xf32>
    %206 = arith.negf %205 : vector<8x128xf32>
    %207 = math.exp %206 : vector<8x128xf32>
    %cst_55 = arith.constant 1.000000e+00 : f32
    %208 = vector.broadcast %cst_55 : f32 to vector<8x128xf32>
    %209 = arith.addf %208, %207 : vector<8x128xf32>
    %210 = arith.divf %208, %209 : vector<8x128xf32>
    %211 = arith.mulf %202, %178 : vector<8x128xf32>
    %212 = arith.mulf %196, %204 : vector<8x128xf32>
    %213 = arith.addf %211, %212 : vector<8x128xf32>
    %214 = math.tanh %213 : vector<8x128xf32>
    %215 = arith.mulf %210, %214 : vector<8x128xf32>
    %cst_56 = arith.constant 0.000000e+00 : f32
    %216 = vector.broadcast %cst_56 : f32 to vector<8x128xf32>
    %217 = arith.maximumf %215, %216 : vector<8x128xf32>
    %218 = arith.index_cast %186 : i32 to index
    %c0_57 = arith.constant 0 : index
    %219 = vector.load %arg14[%218, %c0_57] : memref<64x128xf32, #tpu.memory_space<vmem>>, vector<8x128xf32>
    tpu.vector_store %arg14[%218, %c0_57], %217 {strides = array<i32>} : memref<64x128xf32, #tpu.memory_space<vmem>>, vector<8x128xf32>,
    %c6_i32 = arith.constant 6 : i32
    %c8_i32_58 = arith.constant 8 : i32
    %220 = arith.muli %c6_i32, %c8_i32_58 : i32
    %221 = tpu.assume_multiple %220, 8 : i32
    %222 = arith.index_cast %221 : i32 to index
    %c0_59 = arith.constant 0 : index
    %223 = vector.load %arg13[%222, %c0_59] : memref<64x512xf32, #tpu.memory_space<vmem>>, vector<8x512xf32>
    %cst_60 = arith.constant dense<0.000000e+00> : vector<8x512xf32>
    %224 = tpu.matmul %215, %7, %cst_60 {dimension_numbers = #tpu.dot_dimension_numbers<[1], [0], [0], [1], [0, 0, 1, 1], [], []>} : vector<8x128xf32>, vector<128x512xf32>, vector<8x512xf32> -> vector<8x512xf32>
    %225 = arith.addf %223, %224 : vector<8x512xf32>
    %226 = vector.extract_strided_slice %225 {offsets = [0, 0], sizes = [8, 128], strides = [1, 1]} : vector<8x512xf32> to vector<8x128xf32>
    %227 = arith.negf %226 : vector<8x128xf32>
    %228 = math.exp %227 : vector<8x128xf32>
    %cst_61 = arith.constant 1.000000e+00 : f32
    %229 = vector.broadcast %cst_61 : f32 to vector<8x128xf32>
    %230 = arith.addf %229, %228 : vector<8x128xf32>
    %231 = arith.divf %229, %230 : vector<8x128xf32>
    %232 = vector.extract_strided_slice %225 {offsets = [0, 128], sizes = [8, 128], strides = [1, 1]} : vector<8x512xf32> to vector<8x128xf32>
    %233 = arith.negf %232 : vector<8x128xf32>
    %234 = math.exp %233 : vector<8x128xf32>
    %cst_62 = arith.constant 1.000000e+00 : f32
    %235 = vector.broadcast %cst_62 : f32 to vector<8x128xf32>
    %236 = arith.addf %235, %234 : vector<8x128xf32>
    %237 = arith.divf %235, %236 : vector<8x128xf32>
    %238 = vector.extract_strided_slice %225 {offsets = [0, 256], sizes = [8, 128], strides = [1, 1]} : vector<8x512xf32> to vector<8x128xf32>
    %239 = math.tanh %238 : vector<8x128xf32>
    %240 = vector.extract_strided_slice %225 {offsets = [0, 384], sizes = [8, 128], strides = [1, 1]} : vector<8x512xf32> to vector<8x128xf32>
    %241 = arith.negf %240 : vector<8x128xf32>
    %242 = math.exp %241 : vector<8x128xf32>
    %cst_63 = arith.constant 1.000000e+00 : f32
    %243 = vector.broadcast %cst_63 : f32 to vector<8x128xf32>
    %244 = arith.addf %243, %242 : vector<8x128xf32>
    %245 = arith.divf %243, %244 : vector<8x128xf32>
    %246 = arith.mulf %237, %213 : vector<8x128xf32>
    %247 = arith.mulf %231, %239 : vector<8x128xf32>
    %248 = arith.addf %246, %247 : vector<8x128xf32>
    %249 = math.tanh %248 : vector<8x128xf32>
    %250 = arith.mulf %245, %249 : vector<8x128xf32>
    %cst_64 = arith.constant 0.000000e+00 : f32
    %251 = vector.broadcast %cst_64 : f32 to vector<8x128xf32>
    %252 = arith.maximumf %250, %251 : vector<8x128xf32>
    %253 = arith.index_cast %221 : i32 to index
    %c0_65 = arith.constant 0 : index
    %254 = vector.load %arg14[%253, %c0_65] : memref<64x128xf32, #tpu.memory_space<vmem>>, vector<8x128xf32>
    tpu.vector_store %arg14[%253, %c0_65], %252 {strides = array<i32>} : memref<64x128xf32, #tpu.memory_space<vmem>>, vector<8x128xf32>,
    %c7_i32 = arith.constant 7 : i32
    %c8_i32_66 = arith.constant 8 : i32
    %255 = arith.muli %c7_i32, %c8_i32_66 : i32
    %256 = tpu.assume_multiple %255, 8 : i32
    %257 = arith.index_cast %256 : i32 to index
    %c0_67 = arith.constant 0 : index
    %258 = vector.load %arg13[%257, %c0_67] : memref<64x512xf32, #tpu.memory_space<vmem>>, vector<8x512xf32>
    %cst_68 = arith.constant dense<0.000000e+00> : vector<8x512xf32>
    %259 = tpu.matmul %250, %7, %cst_68 {dimension_numbers = #tpu.dot_dimension_numbers<[1], [0], [0], [1], [0, 0, 1, 1], [], []>} : vector<8x128xf32>, vector<128x512xf32>, vector<8x512xf32> -> vector<8x512xf32>
    %260 = arith.addf %258, %259 : vector<8x512xf32>
    %261 = vector.extract_strided_slice %260 {offsets = [0, 0], sizes = [8, 128], strides = [1, 1]} : vector<8x512xf32> to vector<8x128xf32>
    %262 = arith.negf %261 : vector<8x128xf32>
    %263 = math.exp %262 : vector<8x128xf32>
    %cst_69 = arith.constant 1.000000e+00 : f32
    %264 = vector.broadcast %cst_69 : f32 to vector<8x128xf32>
    %265 = arith.addf %264, %263 : vector<8x128xf32>
    %266 = arith.divf %264, %265 : vector<8x128xf32>
    %267 = vector.extract_strided_slice %260 {offsets = [0, 128], sizes = [8, 128], strides = [1, 1]} : vector<8x512xf32> to vector<8x128xf32>
    %268 = arith.negf %267 : vector<8x128xf32>
    %269 = math.exp %268 : vector<8x128xf32>
    %cst_70 = arith.constant 1.000000e+00 : f32
    %270 = vector.broadcast %cst_70 : f32 to vector<8x128xf32>
    %271 = arith.addf %270, %269 : vector<8x128xf32>
    %272 = arith.divf %270, %271 : vector<8x128xf32>
    %273 = vector.extract_strided_slice %260 {offsets = [0, 256], sizes = [8, 128], strides = [1, 1]} : vector<8x512xf32> to vector<8x128xf32>
    %274 = math.tanh %273 : vector<8x128xf32>
    %275 = vector.extract_strided_slice %260 {offsets = [0, 384], sizes = [8, 128], strides = [1, 1]} : vector<8x512xf32> to vector<8x128xf32>
    %276 = arith.negf %275 : vector<8x128xf32>
    %277 = math.exp %276 : vector<8x128xf32>
    %cst_71 = arith.constant 1.000000e+00 : f32
    %278 = vector.broadcast %cst_71 : f32 to vector<8x128xf32>
    %279 = arith.addf %278, %277 : vector<8x128xf32>
    %280 = arith.divf %278, %279 : vector<8x128xf32>
    %281 = arith.mulf %272, %248 : vector<8x128xf32>
    %282 = arith.mulf %266, %274 : vector<8x128xf32>
    %283 = arith.addf %281, %282 : vector<8x128xf32>
    %284 = math.tanh %283 : vector<8x128xf32>
    %285 = arith.mulf %280, %284 : vector<8x128xf32>
    %cst_72 = arith.constant 0.000000e+00 : f32
    %286 = vector.broadcast %cst_72 : f32 to vector<8x128xf32>
    %287 = arith.maximumf %285, %286 : vector<8x128xf32>
    %288 = arith.index_cast %256 : i32 to index
    %c0_73 = arith.constant 0 : index
    %289 = vector.load %arg14[%288, %c0_73] : memref<64x128xf32, #tpu.memory_space<vmem>>, vector<8x128xf32>
    tpu.vector_store %arg14[%288, %c0_73], %287 {strides = array<i32>} : memref<64x128xf32, #tpu.memory_space<vmem>>, vector<8x128xf32>,
    %c8_i32_74 = arith.constant 8 : i32
    %c0_75 = arith.constant 0 : index
    %c0_76 = arith.constant 0 : index
    %290 = vector.load %arg14[%c0_75, %c0_76] : memref<64x128xf32, #tpu.memory_space<vmem>>, vector<64x128xf32>
    %c0_77 = arith.constant 0 : index
    %c0_78 = arith.constant 0 : index
    %291 = vector.load %arg4[%c0_77, %c0_78] : memref<128x512xf32, #tpu.memory_space<vmem>>, vector<128x512xf32>
    %cst_79 = arith.constant dense<0.000000e+00> : vector<64x512xf32>
    %292 = tpu.matmul %290, %291, %cst_79 {dimension_numbers = #tpu.dot_dimension_numbers<[1], [0], [0], [1], [0, 0, 1, 1], [], []>} : vector<64x128xf32>, vector<128x512xf32>, vector<64x512xf32> -> vector<64x512xf32>
    %c0_80 = arith.constant 0 : index
    %c0_81 = arith.constant 0 : index
    %293 = vector.load %arg6[%c0_80, %c0_81] : memref<1x512xf32, #tpu.memory_space<vmem>>, vector<1x512xf32>
    %294 = vector.broadcast %293 : vector<1x512xf32> to vector<64x512xf32>
    %295 = arith.addf %292, %294 : vector<64x512xf32>
    %c0_82 = arith.constant 0 : index
    %c0_83 = arith.constant 0 : index
    %296 = vector.load %arg13[%c0_82, %c0_83] : memref<64x512xf32, #tpu.memory_space<vmem>>, vector<64x512xf32>
    tpu.vector_store %arg13[%c0_82, %c0_83], %295 {strides = array<i32>} : memref<64x512xf32, #tpu.memory_space<vmem>>, vector<64x512xf32>,
    %c0_84 = arith.constant 0 : index
    %c0_85 = arith.constant 0 : index
    %297 = vector.load %arg5[%c0_84, %c0_85] : memref<128x512xf32, #tpu.memory_space<vmem>>, vector<128x512xf32>
    %cst_86 = arith.constant 0.000000e+00 : f32
    %298 = vector.broadcast %cst_86 : f32 to vector<8x128xf32>
    %cst_87 = arith.constant 0.000000e+00 : f32
    %299 = vector.broadcast %cst_87 : f32 to vector<8x128xf32>
    %c0_i32_88 = arith.constant 0 : i32
    %c8_i32_89 = arith.constant 8 : i32
    %300 = arith.muli %c0_i32_88, %c8_i32_89 : i32
    %301 = tpu.assume_multiple %300, 8 : i32
    %302 = arith.index_cast %301 : i32 to index
    %c0_90 = arith.constant 0 : index
    %303 = vector.load %arg13[%302, %c0_90] : memref<64x512xf32, #tpu.memory_space<vmem>>, vector<8x512xf32>
    %cst_91 = arith.constant dense<0.000000e+00> : vector<8x512xf32>
    %304 = tpu.matmul %298, %297, %cst_91 {dimension_numbers = #tpu.dot_dimension_numbers<[1], [0], [0], [1], [0, 0, 1, 1], [], []>} : vector<8x128xf32>, vector<128x512xf32>, vector<8x512xf32> -> vector<8x512xf32>
    %305 = arith.addf %303, %304 : vector<8x512xf32>
    %306 = vector.extract_strided_slice %305 {offsets = [0, 0], sizes = [8, 128], strides = [1, 1]} : vector<8x512xf32> to vector<8x128xf32>
    %307 = arith.negf %306 : vector<8x128xf32>
    %308 = math.exp %307 : vector<8x128xf32>
    %cst_92 = arith.constant 1.000000e+00 : f32
    %309 = vector.broadcast %cst_92 : f32 to vector<8x128xf32>
    %310 = arith.addf %309, %308 : vector<8x128xf32>
    %311 = arith.divf %309, %310 : vector<8x128xf32>
    %312 = vector.extract_strided_slice %305 {offsets = [0, 128], sizes = [8, 128], strides = [1, 1]} : vector<8x512xf32> to vector<8x128xf32>
    %313 = arith.negf %312 : vector<8x128xf32>
    %314 = math.exp %313 : vector<8x128xf32>
    %cst_93 = arith.constant 1.000000e+00 : f32
    %315 = vector.broadcast %cst_93 : f32 to vector<8x128xf32>
    %316 = arith.addf %315, %314 : vector<8x128xf32>
    %317 = arith.divf %315, %316 : vector<8x128xf32>
    %318 = vector.extract_strided_slice %305 {offsets = [0, 256], sizes = [8, 128], strides = [1, 1]} : vector<8x512xf32> to vector<8x128xf32>
    %319 = math.tanh %318 : vector<8x128xf32>
    %320 = vector.extract_strided_slice %305 {offsets = [0, 384], sizes = [8, 128], strides = [1, 1]} : vector<8x512xf32> to vector<8x128xf32>
    %321 = arith.negf %320 : vector<8x128xf32>
    %322 = math.exp %321 : vector<8x128xf32>
    %cst_94 = arith.constant 1.000000e+00 : f32
    %323 = vector.broadcast %cst_94 : f32 to vector<8x128xf32>
    %324 = arith.addf %323, %322 : vector<8x128xf32>
    %325 = arith.divf %323, %324 : vector<8x128xf32>
    %326 = arith.mulf %317, %299 : vector<8x128xf32>
    %327 = arith.mulf %311, %319 : vector<8x128xf32>
    %328 = arith.addf %326, %327 : vector<8x128xf32>
    %329 = math.tanh %328 : vector<8x128xf32>
    %330 = arith.mulf %325, %329 : vector<8x128xf32>
    %cst_95 = arith.constant 0.000000e+00 : f32
    %331 = vector.broadcast %cst_95 : f32 to vector<8x128xf32>
    %332 = arith.maximumf %330, %331 : vector<8x128xf32>
    %333 = arith.index_cast %301 : i32 to index
    %c0_96 = arith.constant 0 : index
    %334 = vector.load %arg14[%333, %c0_96] : memref<64x128xf32, #tpu.memory_space<vmem>>, vector<8x128xf32>
    tpu.vector_store %arg14[%333, %c0_96], %332 {strides = array<i32>} : memref<64x128xf32, #tpu.memory_space<vmem>>, vector<8x128xf32>,
    %c1_i32_97 = arith.constant 1 : i32
    %c8_i32_98 = arith.constant 8 : i32
    %335 = arith.muli %c1_i32_97, %c8_i32_98 : i32
    %336 = tpu.assume_multiple %335, 8 : i32
    %337 = arith.index_cast %336 : i32 to index
    %c0_99 = arith.constant 0 : index
    %338 = vector.load %arg13[%337, %c0_99] : memref<64x512xf32, #tpu.memory_space<vmem>>, vector<8x512xf32>
    %cst_100 = arith.constant dense<0.000000e+00> : vector<8x512xf32>
    %339 = tpu.matmul %330, %297, %cst_100 {dimension_numbers = #tpu.dot_dimension_numbers<[1], [0], [0], [1], [0, 0, 1, 1], [], []>} : vector<8x128xf32>, vector<128x512xf32>, vector<8x512xf32> -> vector<8x512xf32>
    %340 = arith.addf %338, %339 : vector<8x512xf32>
    %341 = vector.extract_strided_slice %340 {offsets = [0, 0], sizes = [8, 128], strides = [1, 1]} : vector<8x512xf32> to vector<8x128xf32>
    %342 = arith.negf %341 : vector<8x128xf32>
    %343 = math.exp %342 : vector<8x128xf32>
    %cst_101 = arith.constant 1.000000e+00 : f32
    %344 = vector.broadcast %cst_101 : f32 to vector<8x128xf32>
    %345 = arith.addf %344, %343 : vector<8x128xf32>
    %346 = arith.divf %344, %345 : vector<8x128xf32>
    %347 = vector.extract_strided_slice %340 {offsets = [0, 128], sizes = [8, 128], strides = [1, 1]} : vector<8x512xf32> to vector<8x128xf32>
    %348 = arith.negf %347 : vector<8x128xf32>
    %349 = math.exp %348 : vector<8x128xf32>
    %cst_102 = arith.constant 1.000000e+00 : f32
    %350 = vector.broadcast %cst_102 : f32 to vector<8x128xf32>
    %351 = arith.addf %350, %349 : vector<8x128xf32>
    %352 = arith.divf %350, %351 : vector<8x128xf32>
    %353 = vector.extract_strided_slice %340 {offsets = [0, 256], sizes = [8, 128], strides = [1, 1]} : vector<8x512xf32> to vector<8x128xf32>
    %354 = math.tanh %353 : vector<8x128xf32>
    %355 = vector.extract_strided_slice %340 {offsets = [0, 384], sizes = [8, 128], strides = [1, 1]} : vector<8x512xf32> to vector<8x128xf32>
    %356 = arith.negf %355 : vector<8x128xf32>
    %357 = math.exp %356 : vector<8x128xf32>
    %cst_103 = arith.constant 1.000000e+00 : f32
    %358 = vector.broadcast %cst_103 : f32 to vector<8x128xf32>
    %359 = arith.addf %358, %357 : vector<8x128xf32>
    %360 = arith.divf %358, %359 : vector<8x128xf32>
    %361 = arith.mulf %352, %328 : vector<8x128xf32>
    %362 = arith.mulf %346, %354 : vector<8x128xf32>
    %363 = arith.addf %361, %362 : vector<8x128xf32>
    %364 = math.tanh %363 : vector<8x128xf32>
    %365 = arith.mulf %360, %364 : vector<8x128xf32>
    %cst_104 = arith.constant 0.000000e+00 : f32
    %366 = vector.broadcast %cst_104 : f32 to vector<8x128xf32>
    %367 = arith.maximumf %365, %366 : vector<8x128xf32>
    %368 = arith.index_cast %336 : i32 to index
    %c0_105 = arith.constant 0 : index
    %369 = vector.load %arg14[%368, %c0_105] : memref<64x128xf32, #tpu.memory_space<vmem>>, vector<8x128xf32>
    tpu.vector_store %arg14[%368, %c0_105], %367 {strides = array<i32>} : memref<64x128xf32, #tpu.memory_space<vmem>>, vector<8x128xf32>,
    %c2_i32_106 = arith.constant 2 : i32
    %c8_i32_107 = arith.constant 8 : i32
    %370 = arith.muli %c2_i32_106, %c8_i32_107 : i32
    %371 = tpu.assume_multiple %370, 8 : i32
    %372 = arith.index_cast %371 : i32 to index
    %c0_108 = arith.constant 0 : index
    %373 = vector.load %arg13[%372, %c0_108] : memref<64x512xf32, #tpu.memory_space<vmem>>, vector<8x512xf32>
    %cst_109 = arith.constant dense<0.000000e+00> : vector<8x512xf32>
    %374 = tpu.matmul %365, %297, %cst_109 {dimension_numbers = #tpu.dot_dimension_numbers<[1], [0], [0], [1], [0, 0, 1, 1], [], []>} : vector<8x128xf32>, vector<128x512xf32>, vector<8x512xf32> -> vector<8x512xf32>
    %375 = arith.addf %373, %374 : vector<8x512xf32>
    %376 = vector.extract_strided_slice %375 {offsets = [0, 0], sizes = [8, 128], strides = [1, 1]} : vector<8x512xf32> to vector<8x128xf32>
    %377 = arith.negf %376 : vector<8x128xf32>
    %378 = math.exp %377 : vector<8x128xf32>
    %cst_110 = arith.constant 1.000000e+00 : f32
    %379 = vector.broadcast %cst_110 : f32 to vector<8x128xf32>
    %380 = arith.addf %379, %378 : vector<8x128xf32>
    %381 = arith.divf %379, %380 : vector<8x128xf32>
    %382 = vector.extract_strided_slice %375 {offsets = [0, 128], sizes = [8, 128], strides = [1, 1]} : vector<8x512xf32> to vector<8x128xf32>
    %383 = arith.negf %382 : vector<8x128xf32>
    %384 = math.exp %383 : vector<8x128xf32>
    %cst_111 = arith.constant 1.000000e+00 : f32
    %385 = vector.broadcast %cst_111 : f32 to vector<8x128xf32>
    %386 = arith.addf %385, %384 : vector<8x128xf32>
    %387 = arith.divf %385, %386 : vector<8x128xf32>
    %388 = vector.extract_strided_slice %375 {offsets = [0, 256], sizes = [8, 128], strides = [1, 1]} : vector<8x512xf32> to vector<8x128xf32>
    %389 = math.tanh %388 : vector<8x128xf32>
    %390 = vector.extract_strided_slice %375 {offsets = [0, 384], sizes = [8, 128], strides = [1, 1]} : vector<8x512xf32> to vector<8x128xf32>
    %391 = arith.negf %390 : vector<8x128xf32>
    %392 = math.exp %391 : vector<8x128xf32>
    %cst_112 = arith.constant 1.000000e+00 : f32
    %393 = vector.broadcast %cst_112 : f32 to vector<8x128xf32>
    %394 = arith.addf %393, %392 : vector<8x128xf32>
    %395 = arith.divf %393, %394 : vector<8x128xf32>
    %396 = arith.mulf %387, %363 : vector<8x128xf32>
    %397 = arith.mulf %381, %389 : vector<8x128xf32>
    %398 = arith.addf %396, %397 : vector<8x128xf32>
    %399 = math.tanh %398 : vector<8x128xf32>
    %400 = arith.mulf %395, %399 : vector<8x128xf32>
    %cst_113 = arith.constant 0.000000e+00 : f32
    %401 = vector.broadcast %cst_113 : f32 to vector<8x128xf32>
    %402 = arith.maximumf %400, %401 : vector<8x128xf32>
    %403 = arith.index_cast %371 : i32 to index
    %c0_114 = arith.constant 0 : index
    %404 = vector.load %arg14[%403, %c0_114] : memref<64x128xf32, #tpu.memory_space<vmem>>, vector<8x128xf32>
    tpu.vector_store %arg14[%403, %c0_114], %402 {strides = array<i32>} : memref<64x128xf32, #tpu.memory_space<vmem>>, vector<8x128xf32>,
    %c3_i32_115 = arith.constant 3 : i32
    %c8_i32_116 = arith.constant 8 : i32
    %405 = arith.muli %c3_i32_115, %c8_i32_116 : i32
    %406 = tpu.assume_multiple %405, 8 : i32
    %407 = arith.index_cast %406 : i32 to index
    %c0_117 = arith.constant 0 : index
    %408 = vector.load %arg13[%407, %c0_117] : memref<64x512xf32, #tpu.memory_space<vmem>>, vector<8x512xf32>
    %cst_118 = arith.constant dense<0.000000e+00> : vector<8x512xf32>
    %409 = tpu.matmul %400, %297, %cst_118 {dimension_numbers = #tpu.dot_dimension_numbers<[1], [0], [0], [1], [0, 0, 1, 1], [], []>} : vector<8x128xf32>, vector<128x512xf32>, vector<8x512xf32> -> vector<8x512xf32>
    %410 = arith.addf %408, %409 : vector<8x512xf32>
    %411 = vector.extract_strided_slice %410 {offsets = [0, 0], sizes = [8, 128], strides = [1, 1]} : vector<8x512xf32> to vector<8x128xf32>
    %412 = arith.negf %411 : vector<8x128xf32>
    %413 = math.exp %412 : vector<8x128xf32>
    %cst_119 = arith.constant 1.000000e+00 : f32
    %414 = vector.broadcast %cst_119 : f32 to vector<8x128xf32>
    %415 = arith.addf %414, %413 : vector<8x128xf32>
    %416 = arith.divf %414, %415 : vector<8x128xf32>
    %417 = vector.extract_strided_slice %410 {offsets = [0, 128], sizes = [8, 128], strides = [1, 1]} : vector<8x512xf32> to vector<8x128xf32>
    %418 = arith.negf %417 : vector<8x128xf32>
    %419 = math.exp %418 : vector<8x128xf32>
    %cst_120 = arith.constant 1.000000e+00 : f32
    %420 = vector.broadcast %cst_120 : f32 to vector<8x128xf32>
    %421 = arith.addf %420, %419 : vector<8x128xf32>
    %422 = arith.divf %420, %421 : vector<8x128xf32>
    %423 = vector.extract_strided_slice %410 {offsets = [0, 256], sizes = [8, 128], strides = [1, 1]} : vector<8x512xf32> to vector<8x128xf32>
    %424 = math.tanh %423 : vector<8x128xf32>
    %425 = vector.extract_strided_slice %410 {offsets = [0, 384], sizes = [8, 128], strides = [1, 1]} : vector<8x512xf32> to vector<8x128xf32>
    %426 = arith.negf %425 : vector<8x128xf32>
    %427 = math.exp %426 : vector<8x128xf32>
    %cst_121 = arith.constant 1.000000e+00 : f32
    %428 = vector.broadcast %cst_121 : f32 to vector<8x128xf32>
    %429 = arith.addf %428, %427 : vector<8x128xf32>
    %430 = arith.divf %428, %429 : vector<8x128xf32>
    %431 = arith.mulf %422, %398 : vector<8x128xf32>
    %432 = arith.mulf %416, %424 : vector<8x128xf32>
    %433 = arith.addf %431, %432 : vector<8x128xf32>
    %434 = math.tanh %433 : vector<8x128xf32>
    %435 = arith.mulf %430, %434 : vector<8x128xf32>
    %cst_122 = arith.constant 0.000000e+00 : f32
    %436 = vector.broadcast %cst_122 : f32 to vector<8x128xf32>
    %437 = arith.maximumf %435, %436 : vector<8x128xf32>
    %438 = arith.index_cast %406 : i32 to index
    %c0_123 = arith.constant 0 : index
    %439 = vector.load %arg14[%438, %c0_123] : memref<64x128xf32, #tpu.memory_space<vmem>>, vector<8x128xf32>
    tpu.vector_store %arg14[%438, %c0_123], %437 {strides = array<i32>} : memref<64x128xf32, #tpu.memory_space<vmem>>, vector<8x128xf32>,
    %c4_i32_124 = arith.constant 4 : i32
    %c8_i32_125 = arith.constant 8 : i32
    %440 = arith.muli %c4_i32_124, %c8_i32_125 : i32
    %441 = tpu.assume_multiple %440, 8 : i32
    %442 = arith.index_cast %441 : i32 to index
    %c0_126 = arith.constant 0 : index
    %443 = vector.load %arg13[%442, %c0_126] : memref<64x512xf32, #tpu.memory_space<vmem>>, vector<8x512xf32>
    %cst_127 = arith.constant dense<0.000000e+00> : vector<8x512xf32>
    %444 = tpu.matmul %435, %297, %cst_127 {dimension_numbers = #tpu.dot_dimension_numbers<[1], [0], [0], [1], [0, 0, 1, 1], [], []>} : vector<8x128xf32>, vector<128x512xf32>, vector<8x512xf32> -> vector<8x512xf32>
    %445 = arith.addf %443, %444 : vector<8x512xf32>
    %446 = vector.extract_strided_slice %445 {offsets = [0, 0], sizes = [8, 128], strides = [1, 1]} : vector<8x512xf32> to vector<8x128xf32>
    %447 = arith.negf %446 : vector<8x128xf32>
    %448 = math.exp %447 : vector<8x128xf32>
    %cst_128 = arith.constant 1.000000e+00 : f32
    %449 = vector.broadcast %cst_128 : f32 to vector<8x128xf32>
    %450 = arith.addf %449, %448 : vector<8x128xf32>
    %451 = arith.divf %449, %450 : vector<8x128xf32>
    %452 = vector.extract_strided_slice %445 {offsets = [0, 128], sizes = [8, 128], strides = [1, 1]} : vector<8x512xf32> to vector<8x128xf32>
    %453 = arith.negf %452 : vector<8x128xf32>
    %454 = math.exp %453 : vector<8x128xf32>
    %cst_129 = arith.constant 1.000000e+00 : f32
    %455 = vector.broadcast %cst_129 : f32 to vector<8x128xf32>
    %456 = arith.addf %455, %454 : vector<8x128xf32>
    %457 = arith.divf %455, %456 : vector<8x128xf32>
    %458 = vector.extract_strided_slice %445 {offsets = [0, 256], sizes = [8, 128], strides = [1, 1]} : vector<8x512xf32> to vector<8x128xf32>
    %459 = math.tanh %458 : vector<8x128xf32>
    %460 = vector.extract_strided_slice %445 {offsets = [0, 384], sizes = [8, 128], strides = [1, 1]} : vector<8x512xf32> to vector<8x128xf32>
    %461 = arith.negf %460 : vector<8x128xf32>
    %462 = math.exp %461 : vector<8x128xf32>
    %cst_130 = arith.constant 1.000000e+00 : f32
    %463 = vector.broadcast %cst_130 : f32 to vector<8x128xf32>
    %464 = arith.addf %463, %462 : vector<8x128xf32>
    %465 = arith.divf %463, %464 : vector<8x128xf32>
    %466 = arith.mulf %457, %433 : vector<8x128xf32>
    %467 = arith.mulf %451, %459 : vector<8x128xf32>
    %468 = arith.addf %466, %467 : vector<8x128xf32>
    %469 = math.tanh %468 : vector<8x128xf32>
    %470 = arith.mulf %465, %469 : vector<8x128xf32>
    %cst_131 = arith.constant 0.000000e+00 : f32
    %471 = vector.broadcast %cst_131 : f32 to vector<8x128xf32>
    %472 = arith.maximumf %470, %471 : vector<8x128xf32>
    %473 = arith.index_cast %441 : i32 to index
    %c0_132 = arith.constant 0 : index
    %474 = vector.load %arg14[%473, %c0_132] : memref<64x128xf32, #tpu.memory_space<vmem>>, vector<8x128xf32>
    tpu.vector_store %arg14[%473, %c0_132], %472 {strides = array<i32>} : memref<64x128xf32, #tpu.memory_space<vmem>>, vector<8x128xf32>,
    %c5_i32_133 = arith.constant 5 : i32
    %c8_i32_134 = arith.constant 8 : i32
    %475 = arith.muli %c5_i32_133, %c8_i32_134 : i32
    %476 = tpu.assume_multiple %475, 8 : i32
    %477 = arith.index_cast %476 : i32 to index
    %c0_135 = arith.constant 0 : index
    %478 = vector.load %arg13[%477, %c0_135] : memref<64x512xf32, #tpu.memory_space<vmem>>, vector<8x512xf32>
    %cst_136 = arith.constant dense<0.000000e+00> : vector<8x512xf32>
    %479 = tpu.matmul %470, %297, %cst_136 {dimension_numbers = #tpu.dot_dimension_numbers<[1], [0], [0], [1], [0, 0, 1, 1], [], []>} : vector<8x128xf32>, vector<128x512xf32>, vector<8x512xf32> -> vector<8x512xf32>
    %480 = arith.addf %478, %479 : vector<8x512xf32>
    %481 = vector.extract_strided_slice %480 {offsets = [0, 0], sizes = [8, 128], strides = [1, 1]} : vector<8x512xf32> to vector<8x128xf32>
    %482 = arith.negf %481 : vector<8x128xf32>
    %483 = math.exp %482 : vector<8x128xf32>
    %cst_137 = arith.constant 1.000000e+00 : f32
    %484 = vector.broadcast %cst_137 : f32 to vector<8x128xf32>
    %485 = arith.addf %484, %483 : vector<8x128xf32>
    %486 = arith.divf %484, %485 : vector<8x128xf32>
    %487 = vector.extract_strided_slice %480 {offsets = [0, 128], sizes = [8, 128], strides = [1, 1]} : vector<8x512xf32> to vector<8x128xf32>
    %488 = arith.negf %487 : vector<8x128xf32>
    %489 = math.exp %488 : vector<8x128xf32>
    %cst_138 = arith.constant 1.000000e+00 : f32
    %490 = vector.broadcast %cst_138 : f32 to vector<8x128xf32>
    %491 = arith.addf %490, %489 : vector<8x128xf32>
    %492 = arith.divf %490, %491 : vector<8x128xf32>
    %493 = vector.extract_strided_slice %480 {offsets = [0, 256], sizes = [8, 128], strides = [1, 1]} : vector<8x512xf32> to vector<8x128xf32>
    %494 = math.tanh %493 : vector<8x128xf32>
    %495 = vector.extract_strided_slice %480 {offsets = [0, 384], sizes = [8, 128], strides = [1, 1]} : vector<8x512xf32> to vector<8x128xf32>
    %496 = arith.negf %495 : vector<8x128xf32>
    %497 = math.exp %496 : vector<8x128xf32>
    %cst_139 = arith.constant 1.000000e+00 : f32
    %498 = vector.broadcast %cst_139 : f32 to vector<8x128xf32>
    %499 = arith.addf %498, %497 : vector<8x128xf32>
    %500 = arith.divf %498, %499 : vector<8x128xf32>
    %501 = arith.mulf %492, %468 : vector<8x128xf32>
    %502 = arith.mulf %486, %494 : vector<8x128xf32>
    %503 = arith.addf %501, %502 : vector<8x128xf32>
    %504 = math.tanh %503 : vector<8x128xf32>
    %505 = arith.mulf %500, %504 : vector<8x128xf32>
    %cst_140 = arith.constant 0.000000e+00 : f32
    %506 = vector.broadcast %cst_140 : f32 to vector<8x128xf32>
    %507 = arith.maximumf %505, %506 : vector<8x128xf32>
    %508 = arith.index_cast %476 : i32 to index
    %c0_141 = arith.constant 0 : index
    %509 = vector.load %arg14[%508, %c0_141] : memref<64x128xf32, #tpu.memory_space<vmem>>, vector<8x128xf32>
    tpu.vector_store %arg14[%508, %c0_141], %507 {strides = array<i32>} : memref<64x128xf32, #tpu.memory_space<vmem>>, vector<8x128xf32>,
    %c6_i32_142 = arith.constant 6 : i32
    %c8_i32_143 = arith.constant 8 : i32
    %510 = arith.muli %c6_i32_142, %c8_i32_143 : i32
    %511 = tpu.assume_multiple %510, 8 : i32
    %512 = arith.index_cast %511 : i32 to index
    %c0_144 = arith.constant 0 : index
    %513 = vector.load %arg13[%512, %c0_144] : memref<64x512xf32, #tpu.memory_space<vmem>>, vector<8x512xf32>
    %cst_145 = arith.constant dense<0.000000e+00> : vector<8x512xf32>
    %514 = tpu.matmul %505, %297, %cst_145 {dimension_numbers = #tpu.dot_dimension_numbers<[1], [0], [0], [1], [0, 0, 1, 1], [], []>} : vector<8x128xf32>, vector<128x512xf32>, vector<8x512xf32> -> vector<8x512xf32>
    %515 = arith.addf %513, %514 : vector<8x512xf32>
    %516 = vector.extract_strided_slice %515 {offsets = [0, 0], sizes = [8, 128], strides = [1, 1]} : vector<8x512xf32> to vector<8x128xf32>
    %517 = arith.negf %516 : vector<8x128xf32>
    %518 = math.exp %517 : vector<8x128xf32>
    %cst_146 = arith.constant 1.000000e+00 : f32
    %519 = vector.broadcast %cst_146 : f32 to vector<8x128xf32>
    %520 = arith.addf %519, %518 : vector<8x128xf32>
    %521 = arith.divf %519, %520 : vector<8x128xf32>
    %522 = vector.extract_strided_slice %515 {offsets = [0, 128], sizes = [8, 128], strides = [1, 1]} : vector<8x512xf32> to vector<8x128xf32>
    %523 = arith.negf %522 : vector<8x128xf32>
    %524 = math.exp %523 : vector<8x128xf32>
    %cst_147 = arith.constant 1.000000e+00 : f32
    %525 = vector.broadcast %cst_147 : f32 to vector<8x128xf32>
    %526 = arith.addf %525, %524 : vector<8x128xf32>
    %527 = arith.divf %525, %526 : vector<8x128xf32>
    %528 = vector.extract_strided_slice %515 {offsets = [0, 256], sizes = [8, 128], strides = [1, 1]} : vector<8x512xf32> to vector<8x128xf32>
    %529 = math.tanh %528 : vector<8x128xf32>
    %530 = vector.extract_strided_slice %515 {offsets = [0, 384], sizes = [8, 128], strides = [1, 1]} : vector<8x512xf32> to vector<8x128xf32>
    %531 = arith.negf %530 : vector<8x128xf32>
    %532 = math.exp %531 : vector<8x128xf32>
    %cst_148 = arith.constant 1.000000e+00 : f32
    %533 = vector.broadcast %cst_148 : f32 to vector<8x128xf32>
    %534 = arith.addf %533, %532 : vector<8x128xf32>
    %535 = arith.divf %533, %534 : vector<8x128xf32>
    %536 = arith.mulf %527, %503 : vector<8x128xf32>
    %537 = arith.mulf %521, %529 : vector<8x128xf32>
    %538 = arith.addf %536, %537 : vector<8x128xf32>
    %539 = math.tanh %538 : vector<8x128xf32>
    %540 = arith.mulf %535, %539 : vector<8x128xf32>
    %cst_149 = arith.constant 0.000000e+00 : f32
    %541 = vector.broadcast %cst_149 : f32 to vector<8x128xf32>
    %542 = arith.maximumf %540, %541 : vector<8x128xf32>
    %543 = arith.index_cast %511 : i32 to index
    %c0_150 = arith.constant 0 : index
    %544 = vector.load %arg14[%543, %c0_150] : memref<64x128xf32, #tpu.memory_space<vmem>>, vector<8x128xf32>
    tpu.vector_store %arg14[%543, %c0_150], %542 {strides = array<i32>} : memref<64x128xf32, #tpu.memory_space<vmem>>, vector<8x128xf32>,
    %c7_i32_151 = arith.constant 7 : i32
    %c8_i32_152 = arith.constant 8 : i32
    %545 = arith.muli %c7_i32_151, %c8_i32_152 : i32
    %546 = tpu.assume_multiple %545, 8 : i32
    %547 = arith.index_cast %546 : i32 to index
    %c0_153 = arith.constant 0 : index
    %548 = vector.load %arg13[%547, %c0_153] : memref<64x512xf32, #tpu.memory_space<vmem>>, vector<8x512xf32>
    %cst_154 = arith.constant dense<0.000000e+00> : vector<8x512xf32>
    %549 = tpu.matmul %540, %297, %cst_154 {dimension_numbers = #tpu.dot_dimension_numbers<[1], [0], [0], [1], [0, 0, 1, 1], [], []>} : vector<8x128xf32>, vector<128x512xf32>, vector<8x512xf32> -> vector<8x512xf32>
    %550 = arith.addf %548, %549 : vector<8x512xf32>
    %551 = vector.extract_strided_slice %550 {offsets = [0, 0], sizes = [8, 128], strides = [1, 1]} : vector<8x512xf32> to vector<8x128xf32>
    %552 = arith.negf %551 : vector<8x128xf32>
    %553 = math.exp %552 : vector<8x128xf32>
    %cst_155 = arith.constant 1.000000e+00 : f32
    %554 = vector.broadcast %cst_155 : f32 to vector<8x128xf32>
    %555 = arith.addf %554, %553 : vector<8x128xf32>
    %556 = arith.divf %554, %555 : vector<8x128xf32>
    %557 = vector.extract_strided_slice %550 {offsets = [0, 128], sizes = [8, 128], strides = [1, 1]} : vector<8x512xf32> to vector<8x128xf32>
    %558 = arith.negf %557 : vector<8x128xf32>
    %559 = math.exp %558 : vector<8x128xf32>
    %cst_156 = arith.constant 1.000000e+00 : f32
    %560 = vector.broadcast %cst_156 : f32 to vector<8x128xf32>
    %561 = arith.addf %560, %559 : vector<8x128xf32>
    %562 = arith.divf %560, %561 : vector<8x128xf32>
    %563 = vector.extract_strided_slice %550 {offsets = [0, 256], sizes = [8, 128], strides = [1, 1]} : vector<8x512xf32> to vector<8x128xf32>
    %564 = math.tanh %563 : vector<8x128xf32>
    %565 = vector.extract_strided_slice %550 {offsets = [0, 384], sizes = [8, 128], strides = [1, 1]} : vector<8x512xf32> to vector<8x128xf32>
    %566 = arith.negf %565 : vector<8x128xf32>
    %567 = math.exp %566 : vector<8x128xf32>
    %cst_157 = arith.constant 1.000000e+00 : f32
    %568 = vector.broadcast %cst_157 : f32 to vector<8x128xf32>
    %569 = arith.addf %568, %567 : vector<8x128xf32>
    %570 = arith.divf %568, %569 : vector<8x128xf32>
    %571 = arith.mulf %562, %538 : vector<8x128xf32>
    %572 = arith.mulf %556, %564 : vector<8x128xf32>
    %573 = arith.addf %571, %572 : vector<8x128xf32>
    %574 = math.tanh %573 : vector<8x128xf32>
    %575 = arith.mulf %570, %574 : vector<8x128xf32>
    %cst_158 = arith.constant 0.000000e+00 : f32
    %576 = vector.broadcast %cst_158 : f32 to vector<8x128xf32>
    %577 = arith.maximumf %575, %576 : vector<8x128xf32>
    %578 = arith.index_cast %546 : i32 to index
    %c0_159 = arith.constant 0 : index
    %579 = vector.load %arg14[%578, %c0_159] : memref<64x128xf32, #tpu.memory_space<vmem>>, vector<8x128xf32>
    tpu.vector_store %arg14[%578, %c0_159], %577 {strides = array<i32>} : memref<64x128xf32, #tpu.memory_space<vmem>>, vector<8x128xf32>,
    %c8_i32_160 = arith.constant 8 : i32
    %c0_161 = arith.constant 0 : index
    %c0_162 = arith.constant 0 : index
    %580 = vector.load %arg14[%c0_161, %c0_162] : memref<64x128xf32, #tpu.memory_space<vmem>>, vector<64x128xf32>
    %c0_163 = arith.constant 0 : index
    %c0_164 = arith.constant 0 : index
    %581 = vector.load %arg7[%c0_163, %c0_164] : memref<128x512xf32, #tpu.memory_space<vmem>>, vector<128x512xf32>
    %cst_165 = arith.constant dense<0.000000e+00> : vector<64x512xf32>
    %582 = tpu.matmul %580, %581, %cst_165 {dimension_numbers = #tpu.dot_dimension_numbers<[1], [0], [0], [1], [0, 0, 1, 1], [], []>} : vector<64x128xf32>, vector<128x512xf32>, vector<64x512xf32> -> vector<64x512xf32>
    %c0_166 = arith.constant 0 : index
    %c0_167 = arith.constant 0 : index
    %583 = vector.load %arg9[%c0_166, %c0_167] : memref<1x512xf32, #tpu.memory_space<vmem>>, vector<1x512xf32>
    %584 = vector.broadcast %583 : vector<1x512xf32> to vector<64x512xf32>
    %585 = arith.addf %582, %584 : vector<64x512xf32>
    %c0_168 = arith.constant 0 : index
    %c0_169 = arith.constant 0 : index
    %586 = vector.load %arg13[%c0_168, %c0_169] : memref<64x512xf32, #tpu.memory_space<vmem>>, vector<64x512xf32>
    tpu.vector_store %arg13[%c0_168, %c0_169], %585 {strides = array<i32>} : memref<64x512xf32, #tpu.memory_space<vmem>>, vector<64x512xf32>,
    %c0_170 = arith.constant 0 : index
    %c0_171 = arith.constant 0 : index
    %587 = vector.load %arg8[%c0_170, %c0_171] : memref<128x512xf32, #tpu.memory_space<vmem>>, vector<128x512xf32>
    %cst_172 = arith.constant 0.000000e+00 : f32
    %588 = vector.broadcast %cst_172 : f32 to vector<8x128xf32>
    %cst_173 = arith.constant 0.000000e+00 : f32
    %589 = vector.broadcast %cst_173 : f32 to vector<8x128xf32>
    %c0_i32_174 = arith.constant 0 : i32
    %c8_i32_175 = arith.constant 8 : i32
    %590 = arith.muli %c0_i32_174, %c8_i32_175 : i32
    %591 = tpu.assume_multiple %590, 8 : i32
    %592 = arith.index_cast %591 : i32 to index
    %c0_176 = arith.constant 0 : index
    %593 = vector.load %arg13[%592, %c0_176] : memref<64x512xf32, #tpu.memory_space<vmem>>, vector<8x512xf32>
    %cst_177 = arith.constant dense<0.000000e+00> : vector<8x512xf32>
    %594 = tpu.matmul %588, %587, %cst_177 {dimension_numbers = #tpu.dot_dimension_numbers<[1], [0], [0], [1], [0, 0, 1, 1], [], []>} : vector<8x128xf32>, vector<128x512xf32>, vector<8x512xf32> -> vector<8x512xf32>
    %595 = arith.addf %593, %594 : vector<8x512xf32>
    %596 = vector.extract_strided_slice %595 {offsets = [0, 0], sizes = [8, 128], strides = [1, 1]} : vector<8x512xf32> to vector<8x128xf32>
    %597 = arith.negf %596 : vector<8x128xf32>
    %598 = math.exp %597 : vector<8x128xf32>
    %cst_178 = arith.constant 1.000000e+00 : f32
    %599 = vector.broadcast %cst_178 : f32 to vector<8x128xf32>
    %600 = arith.addf %599, %598 : vector<8x128xf32>
    %601 = arith.divf %599, %600 : vector<8x128xf32>
    %602 = vector.extract_strided_slice %595 {offsets = [0, 128], sizes = [8, 128], strides = [1, 1]} : vector<8x512xf32> to vector<8x128xf32>
    %603 = arith.negf %602 : vector<8x128xf32>
    %604 = math.exp %603 : vector<8x128xf32>
    %cst_179 = arith.constant 1.000000e+00 : f32
    %605 = vector.broadcast %cst_179 : f32 to vector<8x128xf32>
    %606 = arith.addf %605, %604 : vector<8x128xf32>
    %607 = arith.divf %605, %606 : vector<8x128xf32>
    %608 = vector.extract_strided_slice %595 {offsets = [0, 256], sizes = [8, 128], strides = [1, 1]} : vector<8x512xf32> to vector<8x128xf32>
    %609 = math.tanh %608 : vector<8x128xf32>
    %610 = vector.extract_strided_slice %595 {offsets = [0, 384], sizes = [8, 128], strides = [1, 1]} : vector<8x512xf32> to vector<8x128xf32>
    %611 = arith.negf %610 : vector<8x128xf32>
    %612 = math.exp %611 : vector<8x128xf32>
    %cst_180 = arith.constant 1.000000e+00 : f32
    %613 = vector.broadcast %cst_180 : f32 to vector<8x128xf32>
    %614 = arith.addf %613, %612 : vector<8x128xf32>
    %615 = arith.divf %613, %614 : vector<8x128xf32>
    %616 = arith.mulf %607, %589 : vector<8x128xf32>
    %617 = arith.mulf %601, %609 : vector<8x128xf32>
    %618 = arith.addf %616, %617 : vector<8x128xf32>
    %619 = math.tanh %618 : vector<8x128xf32>
    %620 = arith.mulf %615, %619 : vector<8x128xf32>
    %cst_181 = arith.constant 0.000000e+00 : f32
    %621 = vector.broadcast %cst_181 : f32 to vector<8x128xf32>
    %622 = arith.maximumf %620, %621 : vector<8x128xf32>
    %623 = arith.index_cast %591 : i32 to index
    %c0_182 = arith.constant 0 : index
    %624 = vector.load %arg14[%623, %c0_182] : memref<64x128xf32, #tpu.memory_space<vmem>>, vector<8x128xf32>
    tpu.vector_store %arg14[%623, %c0_182], %622 {strides = array<i32>} : memref<64x128xf32, #tpu.memory_space<vmem>>, vector<8x128xf32>,
    %c1_i32_183 = arith.constant 1 : i32
    %c8_i32_184 = arith.constant 8 : i32
    %625 = arith.muli %c1_i32_183, %c8_i32_184 : i32
    %626 = tpu.assume_multiple %625, 8 : i32
    %627 = arith.index_cast %626 : i32 to index
    %c0_185 = arith.constant 0 : index
    %628 = vector.load %arg13[%627, %c0_185] : memref<64x512xf32, #tpu.memory_space<vmem>>, vector<8x512xf32>
    %cst_186 = arith.constant dense<0.000000e+00> : vector<8x512xf32>
    %629 = tpu.matmul %620, %587, %cst_186 {dimension_numbers = #tpu.dot_dimension_numbers<[1], [0], [0], [1], [0, 0, 1, 1], [], []>} : vector<8x128xf32>, vector<128x512xf32>, vector<8x512xf32> -> vector<8x512xf32>
    %630 = arith.addf %628, %629 : vector<8x512xf32>
    %631 = vector.extract_strided_slice %630 {offsets = [0, 0], sizes = [8, 128], strides = [1, 1]} : vector<8x512xf32> to vector<8x128xf32>
    %632 = arith.negf %631 : vector<8x128xf32>
    %633 = math.exp %632 : vector<8x128xf32>
    %cst_187 = arith.constant 1.000000e+00 : f32
    %634 = vector.broadcast %cst_187 : f32 to vector<8x128xf32>
    %635 = arith.addf %634, %633 : vector<8x128xf32>
    %636 = arith.divf %634, %635 : vector<8x128xf32>
    %637 = vector.extract_strided_slice %630 {offsets = [0, 128], sizes = [8, 128], strides = [1, 1]} : vector<8x512xf32> to vector<8x128xf32>
    %638 = arith.negf %637 : vector<8x128xf32>
    %639 = math.exp %638 : vector<8x128xf32>
    %cst_188 = arith.constant 1.000000e+00 : f32
    %640 = vector.broadcast %cst_188 : f32 to vector<8x128xf32>
    %641 = arith.addf %640, %639 : vector<8x128xf32>
    %642 = arith.divf %640, %641 : vector<8x128xf32>
    %643 = vector.extract_strided_slice %630 {offsets = [0, 256], sizes = [8, 128], strides = [1, 1]} : vector<8x512xf32> to vector<8x128xf32>
    %644 = math.tanh %643 : vector<8x128xf32>
    %645 = vector.extract_strided_slice %630 {offsets = [0, 384], sizes = [8, 128], strides = [1, 1]} : vector<8x512xf32> to vector<8x128xf32>
    %646 = arith.negf %645 : vector<8x128xf32>
    %647 = math.exp %646 : vector<8x128xf32>
    %cst_189 = arith.constant 1.000000e+00 : f32
    %648 = vector.broadcast %cst_189 : f32 to vector<8x128xf32>
    %649 = arith.addf %648, %647 : vector<8x128xf32>
    %650 = arith.divf %648, %649 : vector<8x128xf32>
    %651 = arith.mulf %642, %618 : vector<8x128xf32>
    %652 = arith.mulf %636, %644 : vector<8x128xf32>
    %653 = arith.addf %651, %652 : vector<8x128xf32>
    %654 = math.tanh %653 : vector<8x128xf32>
    %655 = arith.mulf %650, %654 : vector<8x128xf32>
    %cst_190 = arith.constant 0.000000e+00 : f32
    %656 = vector.broadcast %cst_190 : f32 to vector<8x128xf32>
    %657 = arith.maximumf %655, %656 : vector<8x128xf32>
    %658 = arith.index_cast %626 : i32 to index
    %c0_191 = arith.constant 0 : index
    %659 = vector.load %arg14[%658, %c0_191] : memref<64x128xf32, #tpu.memory_space<vmem>>, vector<8x128xf32>
    tpu.vector_store %arg14[%658, %c0_191], %657 {strides = array<i32>} : memref<64x128xf32, #tpu.memory_space<vmem>>, vector<8x128xf32>,
    %c2_i32_192 = arith.constant 2 : i32
    %c8_i32_193 = arith.constant 8 : i32
    %660 = arith.muli %c2_i32_192, %c8_i32_193 : i32
    %661 = tpu.assume_multiple %660, 8 : i32
    %662 = arith.index_cast %661 : i32 to index
    %c0_194 = arith.constant 0 : index
    %663 = vector.load %arg13[%662, %c0_194] : memref<64x512xf32, #tpu.memory_space<vmem>>, vector<8x512xf32>
    %cst_195 = arith.constant dense<0.000000e+00> : vector<8x512xf32>
    %664 = tpu.matmul %655, %587, %cst_195 {dimension_numbers = #tpu.dot_dimension_numbers<[1], [0], [0], [1], [0, 0, 1, 1], [], []>} : vector<8x128xf32>, vector<128x512xf32>, vector<8x512xf32> -> vector<8x512xf32>
    %665 = arith.addf %663, %664 : vector<8x512xf32>
    %666 = vector.extract_strided_slice %665 {offsets = [0, 0], sizes = [8, 128], strides = [1, 1]} : vector<8x512xf32> to vector<8x128xf32>
    %667 = arith.negf %666 : vector<8x128xf32>
    %668 = math.exp %667 : vector<8x128xf32>
    %cst_196 = arith.constant 1.000000e+00 : f32
    %669 = vector.broadcast %cst_196 : f32 to vector<8x128xf32>
    %670 = arith.addf %669, %668 : vector<8x128xf32>
    %671 = arith.divf %669, %670 : vector<8x128xf32>
    %672 = vector.extract_strided_slice %665 {offsets = [0, 128], sizes = [8, 128], strides = [1, 1]} : vector<8x512xf32> to vector<8x128xf32>
    %673 = arith.negf %672 : vector<8x128xf32>
    %674 = math.exp %673 : vector<8x128xf32>
    %cst_197 = arith.constant 1.000000e+00 : f32
    %675 = vector.broadcast %cst_197 : f32 to vector<8x128xf32>
    %676 = arith.addf %675, %674 : vector<8x128xf32>
    %677 = arith.divf %675, %676 : vector<8x128xf32>
    %678 = vector.extract_strided_slice %665 {offsets = [0, 256], sizes = [8, 128], strides = [1, 1]} : vector<8x512xf32> to vector<8x128xf32>
    %679 = math.tanh %678 : vector<8x128xf32>
    %680 = vector.extract_strided_slice %665 {offsets = [0, 384], sizes = [8, 128], strides = [1, 1]} : vector<8x512xf32> to vector<8x128xf32>
    %681 = arith.negf %680 : vector<8x128xf32>
    %682 = math.exp %681 : vector<8x128xf32>
    %cst_198 = arith.constant 1.000000e+00 : f32
    %683 = vector.broadcast %cst_198 : f32 to vector<8x128xf32>
    %684 = arith.addf %683, %682 : vector<8x128xf32>
    %685 = arith.divf %683, %684 : vector<8x128xf32>
    %686 = arith.mulf %677, %653 : vector<8x128xf32>
    %687 = arith.mulf %671, %679 : vector<8x128xf32>
    %688 = arith.addf %686, %687 : vector<8x128xf32>
    %689 = math.tanh %688 : vector<8x128xf32>
    %690 = arith.mulf %685, %689 : vector<8x128xf32>
    %cst_199 = arith.constant 0.000000e+00 : f32
    %691 = vector.broadcast %cst_199 : f32 to vector<8x128xf32>
    %692 = arith.maximumf %690, %691 : vector<8x128xf32>
    %693 = arith.index_cast %661 : i32 to index
    %c0_200 = arith.constant 0 : index
    %694 = vector.load %arg14[%693, %c0_200] : memref<64x128xf32, #tpu.memory_space<vmem>>, vector<8x128xf32>
    tpu.vector_store %arg14[%693, %c0_200], %692 {strides = array<i32>} : memref<64x128xf32, #tpu.memory_space<vmem>>, vector<8x128xf32>,
    %c3_i32_201 = arith.constant 3 : i32
    %c8_i32_202 = arith.constant 8 : i32
    %695 = arith.muli %c3_i32_201, %c8_i32_202 : i32
    %696 = tpu.assume_multiple %695, 8 : i32
    %697 = arith.index_cast %696 : i32 to index
    %c0_203 = arith.constant 0 : index
    %698 = vector.load %arg13[%697, %c0_203] : memref<64x512xf32, #tpu.memory_space<vmem>>, vector<8x512xf32>
    %cst_204 = arith.constant dense<0.000000e+00> : vector<8x512xf32>
    %699 = tpu.matmul %690, %587, %cst_204 {dimension_numbers = #tpu.dot_dimension_numbers<[1], [0], [0], [1], [0, 0, 1, 1], [], []>} : vector<8x128xf32>, vector<128x512xf32>, vector<8x512xf32> -> vector<8x512xf32>
    %700 = arith.addf %698, %699 : vector<8x512xf32>
    %701 = vector.extract_strided_slice %700 {offsets = [0, 0], sizes = [8, 128], strides = [1, 1]} : vector<8x512xf32> to vector<8x128xf32>
    %702 = arith.negf %701 : vector<8x128xf32>
    %703 = math.exp %702 : vector<8x128xf32>
    %cst_205 = arith.constant 1.000000e+00 : f32
    %704 = vector.broadcast %cst_205 : f32 to vector<8x128xf32>
    %705 = arith.addf %704, %703 : vector<8x128xf32>
    %706 = arith.divf %704, %705 : vector<8x128xf32>
    %707 = vector.extract_strided_slice %700 {offsets = [0, 128], sizes = [8, 128], strides = [1, 1]} : vector<8x512xf32> to vector<8x128xf32>
    %708 = arith.negf %707 : vector<8x128xf32>
    %709 = math.exp %708 : vector<8x128xf32>
    %cst_206 = arith.constant 1.000000e+00 : f32
    %710 = vector.broadcast %cst_206 : f32 to vector<8x128xf32>
    %711 = arith.addf %710, %709 : vector<8x128xf32>
    %712 = arith.divf %710, %711 : vector<8x128xf32>
    %713 = vector.extract_strided_slice %700 {offsets = [0, 256], sizes = [8, 128], strides = [1, 1]} : vector<8x512xf32> to vector<8x128xf32>
    %714 = math.tanh %713 : vector<8x128xf32>
    %715 = vector.extract_strided_slice %700 {offsets = [0, 384], sizes = [8, 128], strides = [1, 1]} : vector<8x512xf32> to vector<8x128xf32>
    %716 = arith.negf %715 : vector<8x128xf32>
    %717 = math.exp %716 : vector<8x128xf32>
    %cst_207 = arith.constant 1.000000e+00 : f32
    %718 = vector.broadcast %cst_207 : f32 to vector<8x128xf32>
    %719 = arith.addf %718, %717 : vector<8x128xf32>
    %720 = arith.divf %718, %719 : vector<8x128xf32>
    %721 = arith.mulf %712, %688 : vector<8x128xf32>
    %722 = arith.mulf %706, %714 : vector<8x128xf32>
    %723 = arith.addf %721, %722 : vector<8x128xf32>
    %724 = math.tanh %723 : vector<8x128xf32>
    %725 = arith.mulf %720, %724 : vector<8x128xf32>
    %cst_208 = arith.constant 0.000000e+00 : f32
    %726 = vector.broadcast %cst_208 : f32 to vector<8x128xf32>
    %727 = arith.maximumf %725, %726 : vector<8x128xf32>
    %728 = arith.index_cast %696 : i32 to index
    %c0_209 = arith.constant 0 : index
    %729 = vector.load %arg14[%728, %c0_209] : memref<64x128xf32, #tpu.memory_space<vmem>>, vector<8x128xf32>
    tpu.vector_store %arg14[%728, %c0_209], %727 {strides = array<i32>} : memref<64x128xf32, #tpu.memory_space<vmem>>, vector<8x128xf32>,
    %c4_i32_210 = arith.constant 4 : i32
    %c8_i32_211 = arith.constant 8 : i32
    %730 = arith.muli %c4_i32_210, %c8_i32_211 : i32
    %731 = tpu.assume_multiple %730, 8 : i32
    %732 = arith.index_cast %731 : i32 to index
    %c0_212 = arith.constant 0 : index
    %733 = vector.load %arg13[%732, %c0_212] : memref<64x512xf32, #tpu.memory_space<vmem>>, vector<8x512xf32>
    %cst_213 = arith.constant dense<0.000000e+00> : vector<8x512xf32>
    %734 = tpu.matmul %725, %587, %cst_213 {dimension_numbers = #tpu.dot_dimension_numbers<[1], [0], [0], [1], [0, 0, 1, 1], [], []>} : vector<8x128xf32>, vector<128x512xf32>, vector<8x512xf32> -> vector<8x512xf32>
    %735 = arith.addf %733, %734 : vector<8x512xf32>
    %736 = vector.extract_strided_slice %735 {offsets = [0, 0], sizes = [8, 128], strides = [1, 1]} : vector<8x512xf32> to vector<8x128xf32>
    %737 = arith.negf %736 : vector<8x128xf32>
    %738 = math.exp %737 : vector<8x128xf32>
    %cst_214 = arith.constant 1.000000e+00 : f32
    %739 = vector.broadcast %cst_214 : f32 to vector<8x128xf32>
    %740 = arith.addf %739, %738 : vector<8x128xf32>
    %741 = arith.divf %739, %740 : vector<8x128xf32>
    %742 = vector.extract_strided_slice %735 {offsets = [0, 128], sizes = [8, 128], strides = [1, 1]} : vector<8x512xf32> to vector<8x128xf32>
    %743 = arith.negf %742 : vector<8x128xf32>
    %744 = math.exp %743 : vector<8x128xf32>
    %cst_215 = arith.constant 1.000000e+00 : f32
    %745 = vector.broadcast %cst_215 : f32 to vector<8x128xf32>
    %746 = arith.addf %745, %744 : vector<8x128xf32>
    %747 = arith.divf %745, %746 : vector<8x128xf32>
    %748 = vector.extract_strided_slice %735 {offsets = [0, 256], sizes = [8, 128], strides = [1, 1]} : vector<8x512xf32> to vector<8x128xf32>
    %749 = math.tanh %748 : vector<8x128xf32>
    %750 = vector.extract_strided_slice %735 {offsets = [0, 384], sizes = [8, 128], strides = [1, 1]} : vector<8x512xf32> to vector<8x128xf32>
    %751 = arith.negf %750 : vector<8x128xf32>
    %752 = math.exp %751 : vector<8x128xf32>
    %cst_216 = arith.constant 1.000000e+00 : f32
    %753 = vector.broadcast %cst_216 : f32 to vector<8x128xf32>
    %754 = arith.addf %753, %752 : vector<8x128xf32>
    %755 = arith.divf %753, %754 : vector<8x128xf32>
    %756 = arith.mulf %747, %723 : vector<8x128xf32>
    %757 = arith.mulf %741, %749 : vector<8x128xf32>
    %758 = arith.addf %756, %757 : vector<8x128xf32>
    %759 = math.tanh %758 : vector<8x128xf32>
    %760 = arith.mulf %755, %759 : vector<8x128xf32>
    %cst_217 = arith.constant 0.000000e+00 : f32
    %761 = vector.broadcast %cst_217 : f32 to vector<8x128xf32>
    %762 = arith.maximumf %760, %761 : vector<8x128xf32>
    %763 = arith.index_cast %731 : i32 to index
    %c0_218 = arith.constant 0 : index
    %764 = vector.load %arg14[%763, %c0_218] : memref<64x128xf32, #tpu.memory_space<vmem>>, vector<8x128xf32>
    tpu.vector_store %arg14[%763, %c0_218], %762 {strides = array<i32>} : memref<64x128xf32, #tpu.memory_space<vmem>>, vector<8x128xf32>,
    %c5_i32_219 = arith.constant 5 : i32
    %c8_i32_220 = arith.constant 8 : i32
    %765 = arith.muli %c5_i32_219, %c8_i32_220 : i32
    %766 = tpu.assume_multiple %765, 8 : i32
    %767 = arith.index_cast %766 : i32 to index
    %c0_221 = arith.constant 0 : index
    %768 = vector.load %arg13[%767, %c0_221] : memref<64x512xf32, #tpu.memory_space<vmem>>, vector<8x512xf32>
    %cst_222 = arith.constant dense<0.000000e+00> : vector<8x512xf32>
    %769 = tpu.matmul %760, %587, %cst_222 {dimension_numbers = #tpu.dot_dimension_numbers<[1], [0], [0], [1], [0, 0, 1, 1], [], []>} : vector<8x128xf32>, vector<128x512xf32>, vector<8x512xf32> -> vector<8x512xf32>
    %770 = arith.addf %768, %769 : vector<8x512xf32>
    %771 = vector.extract_strided_slice %770 {offsets = [0, 0], sizes = [8, 128], strides = [1, 1]} : vector<8x512xf32> to vector<8x128xf32>
    %772 = arith.negf %771 : vector<8x128xf32>
    %773 = math.exp %772 : vector<8x128xf32>
    %cst_223 = arith.constant 1.000000e+00 : f32
    %774 = vector.broadcast %cst_223 : f32 to vector<8x128xf32>
    %775 = arith.addf %774, %773 : vector<8x128xf32>
    %776 = arith.divf %774, %775 : vector<8x128xf32>
    %777 = vector.extract_strided_slice %770 {offsets = [0, 128], sizes = [8, 128], strides = [1, 1]} : vector<8x512xf32> to vector<8x128xf32>
    %778 = arith.negf %777 : vector<8x128xf32>
    %779 = math.exp %778 : vector<8x128xf32>
    %cst_224 = arith.constant 1.000000e+00 : f32
    %780 = vector.broadcast %cst_224 : f32 to vector<8x128xf32>
    %781 = arith.addf %780, %779 : vector<8x128xf32>
    %782 = arith.divf %780, %781 : vector<8x128xf32>
    %783 = vector.extract_strided_slice %770 {offsets = [0, 256], sizes = [8, 128], strides = [1, 1]} : vector<8x512xf32> to vector<8x128xf32>
    %784 = math.tanh %783 : vector<8x128xf32>
    %785 = vector.extract_strided_slice %770 {offsets = [0, 384], sizes = [8, 128], strides = [1, 1]} : vector<8x512xf32> to vector<8x128xf32>
    %786 = arith.negf %785 : vector<8x128xf32>
    %787 = math.exp %786 : vector<8x128xf32>
    %cst_225 = arith.constant 1.000000e+00 : f32
    %788 = vector.broadcast %cst_225 : f32 to vector<8x128xf32>
    %789 = arith.addf %788, %787 : vector<8x128xf32>
    %790 = arith.divf %788, %789 : vector<8x128xf32>
    %791 = arith.mulf %782, %758 : vector<8x128xf32>
    %792 = arith.mulf %776, %784 : vector<8x128xf32>
    %793 = arith.addf %791, %792 : vector<8x128xf32>
    %794 = math.tanh %793 : vector<8x128xf32>
    %795 = arith.mulf %790, %794 : vector<8x128xf32>
    %cst_226 = arith.constant 0.000000e+00 : f32
    %796 = vector.broadcast %cst_226 : f32 to vector<8x128xf32>
    %797 = arith.maximumf %795, %796 : vector<8x128xf32>
    %798 = arith.index_cast %766 : i32 to index
    %c0_227 = arith.constant 0 : index
    %799 = vector.load %arg14[%798, %c0_227] : memref<64x128xf32, #tpu.memory_space<vmem>>, vector<8x128xf32>
    tpu.vector_store %arg14[%798, %c0_227], %797 {strides = array<i32>} : memref<64x128xf32, #tpu.memory_space<vmem>>, vector<8x128xf32>,
    %c6_i32_228 = arith.constant 6 : i32
    %c8_i32_229 = arith.constant 8 : i32
    %800 = arith.muli %c6_i32_228, %c8_i32_229 : i32
    %801 = tpu.assume_multiple %800, 8 : i32
    %802 = arith.index_cast %801 : i32 to index
    %c0_230 = arith.constant 0 : index
    %803 = vector.load %arg13[%802, %c0_230] : memref<64x512xf32, #tpu.memory_space<vmem>>, vector<8x512xf32>
    %cst_231 = arith.constant dense<0.000000e+00> : vector<8x512xf32>
    %804 = tpu.matmul %795, %587, %cst_231 {dimension_numbers = #tpu.dot_dimension_numbers<[1], [0], [0], [1], [0, 0, 1, 1], [], []>} : vector<8x128xf32>, vector<128x512xf32>, vector<8x512xf32> -> vector<8x512xf32>
    %805 = arith.addf %803, %804 : vector<8x512xf32>
    %806 = vector.extract_strided_slice %805 {offsets = [0, 0], sizes = [8, 128], strides = [1, 1]} : vector<8x512xf32> to vector<8x128xf32>
    %807 = arith.negf %806 : vector<8x128xf32>
    %808 = math.exp %807 : vector<8x128xf32>
    %cst_232 = arith.constant 1.000000e+00 : f32
    %809 = vector.broadcast %cst_232 : f32 to vector<8x128xf32>
    %810 = arith.addf %809, %808 : vector<8x128xf32>
    %811 = arith.divf %809, %810 : vector<8x128xf32>
    %812 = vector.extract_strided_slice %805 {offsets = [0, 128], sizes = [8, 128], strides = [1, 1]} : vector<8x512xf32> to vector<8x128xf32>
    %813 = arith.negf %812 : vector<8x128xf32>
    %814 = math.exp %813 : vector<8x128xf32>
    %cst_233 = arith.constant 1.000000e+00 : f32
    %815 = vector.broadcast %cst_233 : f32 to vector<8x128xf32>
    %816 = arith.addf %815, %814 : vector<8x128xf32>
    %817 = arith.divf %815, %816 : vector<8x128xf32>
    %818 = vector.extract_strided_slice %805 {offsets = [0, 256], sizes = [8, 128], strides = [1, 1]} : vector<8x512xf32> to vector<8x128xf32>
    %819 = math.tanh %818 : vector<8x128xf32>
    %820 = vector.extract_strided_slice %805 {offsets = [0, 384], sizes = [8, 128], strides = [1, 1]} : vector<8x512xf32> to vector<8x128xf32>
    %821 = arith.negf %820 : vector<8x128xf32>
    %822 = math.exp %821 : vector<8x128xf32>
    %cst_234 = arith.constant 1.000000e+00 : f32
    %823 = vector.broadcast %cst_234 : f32 to vector<8x128xf32>
    %824 = arith.addf %823, %822 : vector<8x128xf32>
    %825 = arith.divf %823, %824 : vector<8x128xf32>
    %826 = arith.mulf %817, %793 : vector<8x128xf32>
    %827 = arith.mulf %811, %819 : vector<8x128xf32>
    %828 = arith.addf %826, %827 : vector<8x128xf32>
    %829 = math.tanh %828 : vector<8x128xf32>
    %830 = arith.mulf %825, %829 : vector<8x128xf32>
    %cst_235 = arith.constant 0.000000e+00 : f32
    %831 = vector.broadcast %cst_235 : f32 to vector<8x128xf32>
    %832 = arith.maximumf %830, %831 : vector<8x128xf32>
    %833 = arith.index_cast %801 : i32 to index
    %c0_236 = arith.constant 0 : index
    %834 = vector.load %arg14[%833, %c0_236] : memref<64x128xf32, #tpu.memory_space<vmem>>, vector<8x128xf32>
    tpu.vector_store %arg14[%833, %c0_236], %832 {strides = array<i32>} : memref<64x128xf32, #tpu.memory_space<vmem>>, vector<8x128xf32>,
    %c7_i32_237 = arith.constant 7 : i32
    %c8_i32_238 = arith.constant 8 : i32
    %835 = arith.muli %c7_i32_237, %c8_i32_238 : i32
    %836 = tpu.assume_multiple %835, 8 : i32
    %837 = arith.index_cast %836 : i32 to index
    %c0_239 = arith.constant 0 : index
    %838 = vector.load %arg13[%837, %c0_239] : memref<64x512xf32, #tpu.memory_space<vmem>>, vector<8x512xf32>
    %cst_240 = arith.constant dense<0.000000e+00> : vector<8x512xf32>
    %839 = tpu.matmul %830, %587, %cst_240 {dimension_numbers = #tpu.dot_dimension_numbers<[1], [0], [0], [1], [0, 0, 1, 1], [], []>} : vector<8x128xf32>, vector<128x512xf32>, vector<8x512xf32> -> vector<8x512xf32>
    %840 = arith.addf %838, %839 : vector<8x512xf32>
    %841 = vector.extract_strided_slice %840 {offsets = [0, 0], sizes = [8, 128], strides = [1, 1]} : vector<8x512xf32> to vector<8x128xf32>
    %842 = arith.negf %841 : vector<8x128xf32>
    %843 = math.exp %842 : vector<8x128xf32>
    %cst_241 = arith.constant 1.000000e+00 : f32
    %844 = vector.broadcast %cst_241 : f32 to vector<8x128xf32>
    %845 = arith.addf %844, %843 : vector<8x128xf32>
    %846 = arith.divf %844, %845 : vector<8x128xf32>
    %847 = vector.extract_strided_slice %840 {offsets = [0, 128], sizes = [8, 128], strides = [1, 1]} : vector<8x512xf32> to vector<8x128xf32>
    %848 = arith.negf %847 : vector<8x128xf32>
    %849 = math.exp %848 : vector<8x128xf32>
    %cst_242 = arith.constant 1.000000e+00 : f32
    %850 = vector.broadcast %cst_242 : f32 to vector<8x128xf32>
    %851 = arith.addf %850, %849 : vector<8x128xf32>
    %852 = arith.divf %850, %851 : vector<8x128xf32>
    %853 = vector.extract_strided_slice %840 {offsets = [0, 256], sizes = [8, 128], strides = [1, 1]} : vector<8x512xf32> to vector<8x128xf32>
    %854 = math.tanh %853 : vector<8x128xf32>
    %855 = vector.extract_strided_slice %840 {offsets = [0, 384], sizes = [8, 128], strides = [1, 1]} : vector<8x512xf32> to vector<8x128xf32>
    %856 = arith.negf %855 : vector<8x128xf32>
    %857 = math.exp %856 : vector<8x128xf32>
    %cst_243 = arith.constant 1.000000e+00 : f32
    %858 = vector.broadcast %cst_243 : f32 to vector<8x128xf32>
    %859 = arith.addf %858, %857 : vector<8x128xf32>
    %860 = arith.divf %858, %859 : vector<8x128xf32>
    %861 = arith.mulf %852, %828 : vector<8x128xf32>
    %862 = arith.mulf %846, %854 : vector<8x128xf32>
    %863 = arith.addf %861, %862 : vector<8x128xf32>
    %864 = math.tanh %863 : vector<8x128xf32>
    %865 = arith.mulf %860, %864 : vector<8x128xf32>
    %cst_244 = arith.constant 0.000000e+00 : f32
    %866 = vector.broadcast %cst_244 : f32 to vector<8x128xf32>
    %867 = arith.maximumf %865, %866 : vector<8x128xf32>
    %868 = arith.index_cast %836 : i32 to index
    %c0_245 = arith.constant 0 : index
    %869 = vector.load %arg14[%868, %c0_245] : memref<64x128xf32, #tpu.memory_space<vmem>>, vector<8x128xf32>
    tpu.vector_store %arg14[%868, %c0_245], %867 {strides = array<i32>} : memref<64x128xf32, #tpu.memory_space<vmem>>, vector<8x128xf32>,
    %c8_i32_246 = arith.constant 8 : i32
    %c0_247 = arith.constant 0 : index
    %c0_248 = arith.constant 0 : index
    %870 = vector.load %arg14[%c0_247, %c0_248] : memref<64x128xf32, #tpu.memory_space<vmem>>, vector<64x128xf32>
    %c0_249 = arith.constant 0 : index
    %c0_250 = arith.constant 0 : index
    %871 = vector.load %arg10[%c0_249, %c0_250] : memref<128x2xf32, #tpu.memory_space<vmem>>, vector<128x2xf32>
    %cst_251 = arith.constant dense<0.000000e+00> : vector<64x2xf32>
    %872 = tpu.matmul %870, %871, %cst_251 {dimension_numbers = #tpu.dot_dimension_numbers<[1], [0], [0], [1], [0, 0, 1, 1], [], []>} : vector<64x128xf32>, vector<128x2xf32>, vector<64x2xf32> -> vector<64x2xf32>
    %c0_252 = arith.constant 0 : index
    %c0_253 = arith.constant 0 : index
    %873 = vector.load %arg11[%c0_252, %c0_253] : memref<1x2xf32, #tpu.memory_space<vmem>>, vector<1x2xf32>
    %874 = vector.broadcast %873 : vector<1x2xf32> to vector<64x2xf32>
    %875 = arith.addf %872, %874 : vector<64x2xf32>
    %c0_254 = arith.constant 0 : index
    %c0_255 = arith.constant 0 : index
    %876 = vector.load %arg12[%c0_254, %c0_255] : memref<64x2xf32, #tpu.memory_space<vmem>>, vector<64x2xf32>
    tpu.vector_store %arg12[%c0_254, %c0_255], %875 {strides = array<i32>} : memref<64x2xf32, #tpu.memory_space<vmem>>, vector<64x2xf32>,
    return
  }
}

</mosaic_0001>

<bundles_post_ra>
// kernel: _lambda_.1
= control target key start
LH: loop header
LB: loop body
LE: loop exit
PB: predicated region body
PF: predicated region fallthrough
CT: control target
= control target key end

     0   :  { %17 = vsyncpa [#allocation5], 0  ;;  %s9867_s0 = inlined_call_operand.vmem [shape: f32[64,6], index: 0, kind: input, shape index: {}]   ;;  %s9868_s1 = inlined_call_operand.vmem [shape: f32[6,512], index: 1, kind: input, shape index: {}]   ;;  %s9869_s2 = inlined_call_operand.hbm [shape: f32[128,512], index: 2, kind: input, shape index: {}]   ;;  %s9870_s3 = inlined_call_operand.vmem [shape: f32[1,512], index: 3, kind: input, shape index: {}]   ;;  %s9871_s4 = inlined_call_operand.hbm [shape: f32[128,512], index: 4, kind: input, shape index: {}]   ;;  %s9872_s5 = inlined_call_operand.hbm [shape: f32[128,512], index: 5, kind: input, shape index: {}]   ;;  %s9873_s6 = inlined_call_operand.vmem [shape: f32[1,512], index: 6, kind: input, shape index: {}]   ;;  %s9874_s7 = inlined_call_operand.hbm [shape: f32[128,512], index: 7, kind: input, shape index: {}]   ;;  %s9875_s8 = inlined_call_operand.hbm [shape: f32[128,512], index: 8, kind: input, shape index: {}]   ;;  %s9876_s9 = inlined_call_operand.vmem [shape: f32[1,512], index: 9, kind: input, shape index: {}]   ;;  %s9877_s10 = inlined_call_operand.vmem [shape: f32[128,2], index: 10, kind: input, shape index: {}]   ;;  %s9878_s11 = inlined_call_operand.vmem [shape: f32[1,2], index: 11, kind: input, shape index: {}]   ;;  %s9879_s12 = inlined_call_operand.vmem [shape: f32[64,2], index: 12, kind: output, shape index: {}]  }
   0x1   :  { %18 = vsyncpa [#allocation7], 0 }
   0x2   :  { %19 = vsyncpa [#allocation10], 0  ;;  %s6600_s21 = smov [#allocation6]   ;;  %s6601_s23 = smov [#allocation9]  }
   0x3   :  { %s43_s22 = sshll.u32 %s6600_s21, 4  ;;  %s69_s24 = sshll.u32 %s6601_s23, 4  ;;  %s44_s22 = int_to_ptr.vmem [resolvable:$true] %s43_s22  ;;  %s70_s24 = int_to_ptr.vmem [resolvable:$true] %s69_s24 }
   0x4   :  { %s6502_s25 = scalar_lea.vmem %s44_s22, 8192  ;;  %p6507_p1 = scmp.lt.s32.totalorder %s44_s22, %s44_s22 }
   0x5   :  { %p6503_p0 = scmp.ne.s32.totalorder %s44_s22, %s6502_s25  ;;  %p6508_p2 = scmp.lt.s32.totalorder %s6502_s25, %s6502_s25 }
   0x7   :  { %p6509_p3 = por %p6508_p2, %p6507_p1 }
   0x9   :  { %p6510_p4 = pnand %p6509_p3, %p6503_p0 }
   0xb   :  { %6513 = shalt.err (!%p6510_p4)
}
   0xc   :  { %s6602_s26 = smov 512   ;;  %s6603_s27 = smov 32  }
   0xd   :  { %49 = dma.hbm_to_vmem [thread:$0]  %s9871_s4, 8192, %s44_s22, [#allocation7], %s6602_s26, %s6602_s26, %s6603_s27  }
   0xe   :  { %s6522_s30 = scalar_lea.vmem %s70_s24, 8192  ;;  %p6527_p6 = scmp.lt.s32.totalorder %s70_s24, %s70_s24 }
   0xf   :  { %p6523_p5 = scmp.ne.s32.totalorder %s70_s24, %s6522_s30  ;;  %p6528_p7 = scmp.lt.s32.totalorder %s6522_s30, %s6522_s30 }
  0x11   :  { %p6529_p8 = por %p6528_p7, %p6527_p6 }
  0x13   :  { %p6530_p9 = pnand %p6529_p8, %p6523_p5 }
  0x15   :  { %6533 = shalt.err (!%p6530_p9)
}
  0x16   :  { %75 = dma.hbm_to_vmem [thread:$0]  %s9874_s7, 8192, %s70_s24, [#allocation10], %s6602_s26, %s6602_s26, %s6603_s27  }
  0x17   :  { %s6604_s15 = smov [#allocation4]   ;;  %s6605_s17 = smov [#allocation8]  }
  0x18   :  { %s29_s16 = sshll.u32 %s6604_s15, 4  ;;  %s55_s18 = sshll.u32 %s6605_s17, 4  ;;  %s30_s16 = int_to_ptr.vmem [resolvable:$true] %s29_s16  ;;  %s56_s18 = int_to_ptr.vmem [resolvable:$true] %s55_s18 }
  0x19   :  { %s6542_s4 = scalar_lea.vmem %s30_s16, 8192  ;;  %p6547_p11 = scmp.lt.s32.totalorder %s30_s16, %s30_s16 }
  0x1a   :  { %p6543_p10 = scmp.ne.s32.totalorder %s30_s16, %s6542_s4  ;;  %p6548_p12 = scmp.lt.s32.totalorder %s6542_s4, %s6542_s4 }
  0x1c   :  { %p6549_p13 = por %p6548_p12, %p6547_p11 }
  0x1e   :  { %p6550_p0 = pnand %p6549_p13, %p6543_p10 }
  0x20   :  { %6553 = shalt.err (!%p6550_p0)
}
  0x21   :  { %35 = dma.hbm_to_vmem [thread:$0]  %s9869_s2, 8192, %s30_s16, [#allocation5], %s6602_s26, %s6602_s26, %s6603_s27  }
  0x22   :  { %s6562_s7 = scalar_lea.vmem %s56_s18, 8192  ;;  %p6567_p2 = scmp.lt.s32.totalorder %s56_s18, %s56_s18 }
  0x23   :  { %p6563_p1 = scmp.ne.s32.totalorder %s56_s18, %s6562_s7  ;;  %p6568_p3 = scmp.lt.s32.totalorder %s6562_s7, %s6562_s7 }
  0x25   :  { %p6569_p4 = por %p6568_p3, %p6567_p2 }
  0x27   :  { %p6570_p5 = pnand %p6569_p4, %p6563_p1 }
  0x29   :  { %6573 = shalt.err (!%p6570_p5)
}
  0x2a   :  { %61 = dma.hbm_to_vmem [thread:$0]  %s9872_s5, 8192, %s56_s18, [#allocation7], %s6602_s26, %s6602_s26, %s6603_s27  }
  0x2b   :  { %s6606_s23 = smov [#allocation11]  }
  0x2c   :  { %s81_s24 = sshll.u32 %s6606_s23, 4  ;;  %s82_s24 = int_to_ptr.vmem [resolvable:$true] %s81_s24 }
  0x2d   :  { %s6582_s25 = scalar_lea.vmem %s82_s24, 8192  ;;  %p6587_p7 = scmp.lt.s32.totalorder %s82_s24, %s82_s24 }
  0x2e   :  { %p6583_p6 = scmp.ne.s32.totalorder %s82_s24, %s6582_s25  ;;  %p6588_p8 = scmp.lt.s32.totalorder %s6582_s25, %s6582_s25 }
  0x30   :  { %p6589_p9 = por %p6588_p8, %p6587_p7 }
  0x32   :  { %p6590_p10 = pnand %p6589_p9, %p6583_p6 }
  0x34   :  { %6593 = shalt.err (!%p6590_p10)
}
  0x35   :  { %87 = dma.hbm_to_vmem [thread:$0]  %s9875_s8, 8192, %s82_s24, [#allocation10], %s6602_s26, %s6602_s26, %s6603_s27  }
  0x36   :  { %6594 = dma.done.wait [#allocation5], 8192  }
  0x37   :  { %6595 = vsyncadd [#allocation5], 4294959104 }
  0x38   :  { %6596 = dma.done.wait [#allocation7], 16384  }
  0x39   :  { %6597 = vsyncadd [#allocation7], 4294950912 }
  0x3a   :  { %6598 = dma.done.wait [#allocation10], 16384  }
  0x3b   :  { %6599 = vsyncadd [#allocation10], 4294950912  ;;  %v9886_v0 = vmov 0.0   ;;  %vm168_vm0 = vcmask 1045504   ;;  %v120_v1 = vld [vmem:[%s9868_s1 + $0x18] sm:$0x3f] }
  0x3c   :  { %358 = vmatprep.mubr.f32.mxu1 %v9886_v0  ;;  %245 = vmatprep.mubr.f32.mxu0 %v9886_v0  ;;  %v119_v2 = vld [vmem:[%s9868_s1 + $0x10] sm:$0x3f]  ;;  %v109_v3 = vld [vmem:[%s9867_s0] sm:$0xff]  ;;  %vm143_vm1 = vcmask 48128   ;;  %v6715_v4 = vld [vmem:[#allocation4 + $0x1e8] sm:$0xff]  ;;  %vm5726_vm2 = vcmask 15360  }
  0x3d   :  { %5759 = vmatprep.subr.msk.mxu1 %vm168_vm0, %v120_v1  ;;  %10196 = vst [vmem:[#allocation15_spill] sm:$0xff] %v6715_v4  ;;  %v6717_v5 = vld [vmem:[#allocation4 + $0x1e0] sm:$0xff]  ;;  %v6720_v6 = vld [vmem:[#allocation4 + $0x1c8] sm:$0xff]  ;;  %v6751_v13 = vld [vmem:[%s9867_s0 + $0x10] sm:$0xff] }
  0x3e   :  { %5760 = vmatpush1.msk.msra.mxu1 %vm168_vm0, %v119_v2  ;;  %v6724_v7 = vld [vmem:[#allocation4 + $0x1c0] sm:$0xff]  ;;  %v6731_v8 = vld [vmem:[%s9867_s0 + $0x8] sm:$0xff]  ;;  %v6771_v18 = vld [vmem:[%s9867_s0 + $0x18] sm:$0xff] }
  0x3f   :  { %5761 = vmatmul.mubr.msk.f32.vlgmr.msra.gmra.mxu1 %vm143_vm1, %v109_v3  ;;  %510 = vmatprep.subr.mxu1 %v6715_v4  ;;  %v6733_v9 = vld [vmem:[#allocation4 + $0x1a8] sm:$0xff]  ;;  %v6736_v10 = vld [vmem:[#allocation4 + $0x1a0] sm:$0xff]  ;;  %v6843_v35 = vld [vmem:[%s9867_s0 + $0x30] sm:$0xff] }
  0x40   :  { %511 = vmatpush1.msra.mxu1 %v6717_v5  ;;  %364 = vmatprep.mubr.f32.mxu1 %v9886_v0  ;;  %v6739_v11 = vld [vmem:[#allocation4 + $0x188] sm:$0xff]  ;;  %v6744_v12 = vld [vmem:[#allocation4 + $0x180] sm:$0xff]  ;;  %v6866_v40 = vld [vmem:[%s9867_s0 + $0x38] sm:$0xff] }
  0x41   :  { %512 = vmatprep.subr.mxu1 %v6720_v6  ;;  %v6753_v14 = vld [vmem:[#allocation4 + $0x168] sm:$0xff]  ;;  %v6756_v15 = vld [vmem:[#allocation4 + $0x160] sm:$0xff]  ;;  %v6885_v45 = vld [vmem:[#allocation4 + $0x1f8] sm:$0xff] }
  0x42   :  { %513 = vmatpush1.msra.mxu1 %v6724_v7  ;;  %v6759_v16 = vld [vmem:[#allocation4 + $0x148] sm:$0xff]  ;;  %v6764_v17 = vld [vmem:[#allocation4 + $0x140] sm:$0xff]  ;;  %10209 = vst [vmem:[#allocation28_spill] sm:$0xff] %v6885_v45  ;;  %v6888_v46 = vld [vmem:[#allocation4 + $0x1f0] sm:$0xff] }
  0x43   :  { %5762 = vmatmul.mubr.msk.f32.gmra.mxu1 %vm143_vm1, %v6731_v8  ;;  %514 = vmatprep.subr.mxu1 %v6733_v9  ;;  %v6773_v19 = vld [vmem:[#allocation4 + $0x128] sm:$0xff]  ;;  %v6779_v21 = vld [vmem:[#allocation4 + $0x120] sm:$0xff]  ;;  %v6892_v47 = vld [vmem:[#allocation4 + $0x1d8] sm:$0xff] }
  0x44   :  { %515 = vmatpush1.msra.mxu1 %v6736_v10  ;;  %370 = vmatprep.mubr.f32.mxu1 %v9886_v0  ;;  %v118_v20 = vld [vmem:[%s9868_s1 + $0x8] sm:$0x3f]  ;;  %v117_v22 = vld [vmem:[%s9868_s1] sm:$0x3f]  ;;  %v6897_v48 = vld [vmem:[#allocation4 + $0x1d0] sm:$0xff] }
  0x45   :  { %516 = vmatprep.subr.mxu1 %v6739_v11  ;;  %5749 = vmatprep.subr.msk.mxu0 %vm168_vm0, %v118_v20  ;;  %v6786_v23 = vld [vmem:[#allocation4 + $0x108] sm:$0xff]  ;;  %v6792_v24 = vld [vmem:[#allocation4 + $0x100] sm:$0xff]  ;;  %v6900_v49 = vld [vmem:[#allocation4 + $0x1b8] sm:$0xff] }
  0x46   :  { %517 = vmatpush1.msra.mxu1 %v6744_v12  ;;  %5750 = vmatpush1.msk.msra.mxu0 %vm168_vm0, %v117_v22  ;;  %v6799_v25 = vld [vmem:[%s9867_s0 + $0x20] sm:$0xff]  ;;  %v6801_v26 = vld [vmem:[#allocation4 + $0xe8] sm:$0xff]  ;;  %v6904_v50 = vld [vmem:[#allocation4 + $0x1b0] sm:$0xff] }
  0x47   :  { %5763 = vmatmul.mubr.msk.f32.gmra.mxu1 %vm143_vm1, %v6751_v13  ;;  %518 = vmatprep.subr.mxu1 %v6753_v14  ;;  %v6804_v27 = vld [vmem:[#allocation4 + $0xe0] sm:$0xff]  ;;  %v6808_v28 = vld [vmem:[#allocation4 + $0xc8] sm:$0xff]  ;;  %v6908_v51 = vld [vmem:[#allocation4 + $0x198] sm:$0xff] }
  0x48   :  { %519 = vmatpush1.msra.mxu1 %v6756_v15  ;;  %376 = vmatprep.mubr.f32.mxu1 %v9886_v0  ;;  %v6814_v29 = vld [vmem:[#allocation4 + $0xc0] sm:$0xff]  ;;  %v6821_v30 = vld [vmem:[%s9867_s0 + $0x28] sm:$0xff]  ;;  %v6913_v52 = vld [vmem:[#allocation4 + $0x190] sm:$0xff] }
  0x49   :  { %520 = vmatprep.subr.mxu1 %v6759_v16  ;;  %5751 = vmatmul.mubr.msk.f32.vlgmr.msra.gmra.mxu0 %vm143_vm1, %v109_v3  ;;  %10197 = vst [vmem:[#allocation16_spill] sm:$0xff] %v6814_v29  ;;  %v6823_v31 = vld [vmem:[#allocation4 + $0xa8] sm:$0xff]  ;;  %v6826_v32 = vld [vmem:[#allocation4 + $0xa0] sm:$0xff]  ;;  %v6917_v53 = vld [vmem:[#allocation4 + $0x178] sm:$0xff] }
  0x4a   :  { %521 = vmatpush1.msra.mxu1 %v6764_v17  ;;  %689 = vmatprep.subr.mxu0 %v6715_v4  ;;  %10198 = vst [vmem:[#allocation17_spill] sm:$0xff] %v6823_v31  ;;  %10199 = vst [vmem:[#allocation18_spill] sm:$0xff] %v6826_v32  ;;  %v6830_v33 = vld [vmem:[#allocation4 + $0x88] sm:$0xff]  ;;  %v6836_v34 = vld [vmem:[#allocation4 + $0x80] sm:$0xff] }
  0x4b   :  { %5764 = vmatmul.mubr.msk.f32.gmra.mxu1 %vm143_vm1, %v6771_v18  ;;  %522 = vmatprep.subr.mxu1 %v6773_v19  ;;  %10200 = vst [vmem:[#allocation19_spill] sm:$0xff] %v6836_v34  ;;  %v6845_v36 = vld [vmem:[#allocation4 + $0x68] sm:$0xff]  ;;  %v6848_v37 = vld [vmem:[#allocation4 + $0x60] sm:$0xff]  ;;  %v6921_v54 = vld [vmem:[#allocation4 + $0x170] sm:$0xff] }
  0x4c   :  { %523 = vmatpush1.msra.mxu1 %v6779_v21  ;;  %382 = vmatprep.mubr.f32.mxu1 %v9886_v0  ;;  %10201 = vst [vmem:[#allocation20_spill] sm:$0xff] %v6845_v36  ;;  %10202 = vst [vmem:[#allocation21_spill] sm:$0xff] %v6848_v37  ;;  %v6852_v38 = vld [vmem:[#allocation4 + $0x48] sm:$0xff]  ;;  %v6859_v39 = vld [vmem:[#allocation4 + $0x40] sm:$0xff] }
  0x4d   :  { %524 = vmatprep.subr.mxu1 %v6786_v23  ;;  %690 = vmatpush1.msra.mxu0 %v6717_v5  ;;  %10203 = vst [vmem:[#allocation22_spill] sm:$0xff] %v6852_v38  ;;  %10204 = vst [vmem:[#allocation23_spill] sm:$0xff] %v6859_v39  ;;  %v6868_v41 = vld [vmem:[#allocation4 + $0x28] sm:$0xff]  ;;  %v6871_v42 = vld [vmem:[#allocation4 + $0x20] sm:$0xff] }
  0x4e   :  { %525 = vmatpush1.msra.mxu1 %v6792_v24  ;;  %251 = vmatprep.mubr.f32.mxu0 %v9886_v0  ;;  %10205 = vst [vmem:[#allocation24_spill] sm:$0xff] %v6868_v41  ;;  %10206 = vst [vmem:[#allocation25_spill] sm:$0xff] %v6871_v42  ;;  %v6875_v43 = vld [vmem:[#allocation4 + $0x8] sm:$0xff]  ;;  %v6881_v44 = vld [vmem:[#allocation4] sm:$0xff] }
  0x4f   :  { %5765 = vmatmul.mubr.msk.f32.gmra.mxu1 %vm143_vm1, %v6799_v25  ;;  %526 = vmatprep.subr.mxu1 %v6801_v26  ;;  %10207 = vst [vmem:[#allocation26_spill] sm:$0xff] %v6875_v43  ;;  %10208 = vst [vmem:[#allocation27_spill] sm:$0xff] %v6881_v44  ;;  %v6925_v55 = vld [vmem:[#allocation4 + $0x158] sm:$0xff]  ;;  %v6929_v56 = vld [vmem:[#allocation4 + $0x150] sm:$0xff] }
  0x50   :  { %527 = vmatpush1.msra.mxu1 %v6804_v27  ;;  %388 = vmatprep.mubr.f32.mxu1 %v9886_v0  ;;  %v6933_v57 = vld [vmem:[#allocation4 + $0x138] sm:$0xff]  ;;  %v6938_v58 = vld [vmem:[#allocation4 + $0x130] sm:$0xff] }
  0x51   :  { %528 = vmatprep.subr.mxu1 %v6808_v28  ;;  %691 = vmatprep.subr.mxu0 %v6720_v6  ;;  %v6942_v59 = vld [vmem:[#allocation4 + $0x118] sm:$0xff]  ;;  %v6946_v60 = vld [vmem:[#allocation4 + $0x110] sm:$0xff] }
  0x52   :  { %529 = vmatpush1.msra.mxu1 %v6814_v29  ;;  %5752 = vmatmul.mubr.msk.f32.gmra.mxu0 %vm143_vm1, %v6731_v8  ;;  %v6950_v61 = vld [vmem:[#allocation4 + $0xf8] sm:$0xff]  ;;  %v6954_v62 = vld [vmem:[#allocation4 + $0xf0] sm:$0xff] }
  0x53   :  { %5766 = vmatmul.mubr.msk.f32.gmra.mxu1 %vm143_vm1, %v6821_v30  ;;  %530 = vmatprep.subr.mxu1 %v6823_v31  ;;  %v6958_v63 = vld [vmem:[#allocation4 + $0xd8] sm:$0xff]  ;;  %v6963_v1 = vld [vmem:[#allocation4 + $0xd0] sm:$0xff] }
  0x54   :  { %531 = vmatpush1.msra.mxu1 %v6826_v32  ;;  %394 = vmatprep.mubr.f32.mxu1 %v9886_v0  ;;  %v6967_v2 = vld [vmem:[#allocation4 + $0xb8] sm:$0xff]  ;;  %v6971_v3 = vld [vmem:[#allocation4 + $0xb0] sm:$0xff] }
  0x55   :  { %532 = vmatprep.subr.mxu1 %v6830_v33  ;;  %692 = vmatpush1.msra.mxu0 %v6724_v7  ;;  %v6975_v8 = vld [vmem:[#allocation4 + $0x98] sm:$0xff]  ;;  %v6988_v20 = vld [vmem:[#allocation4 + $0x70] sm:$0xff] }
  0x56   :  { %533 = vmatpush1.msra.mxu1 %v6836_v34  ;;  %693 = vmatprep.subr.mxu0 %v6733_v9  ;;  %10210 = vst [vmem:[#allocation29_spill] sm:$0xff] %v6975_v8  ;;  %10213 = vst [vmem:[#allocation32_spill] sm:$0xff] %v6988_v20  ;;  %v6992_v22 = vld [vmem:[#allocation4 + $0x58] sm:$0xff] }
  0x57   :  { %5767 = vmatmul.mubr.msk.f32.gmra.mxu1 %vm143_vm1, %v6843_v35  ;;  %534 = vmatprep.subr.mxu1 %v6845_v36  ;;  %10214 = vst [vmem:[#allocation33_spill] sm:$0xff] %v6992_v22 }
  0x58   :  { %535 = vmatpush1.msra.mxu1 %v6848_v37  ;;  %400 = vmatprep.mubr.f32.mxu1 %v9886_v0 }
  0x59   :  { %536 = vmatprep.subr.mxu1 %v6852_v38  ;;  %694 = vmatpush1.msra.mxu0 %v6736_v10 }
  0x5a   :  { %537 = vmatpush1.msra.mxu1 %v6859_v39  ;;  %257 = vmatprep.mubr.f32.mxu0 %v9886_v0 }
  0x5b   :  { %5768 = vmatmul.mubr.msk.f32.gmra.mxu1 %vm143_vm1, %v6866_v40  ;;  %538 = vmatprep.subr.mxu1 %v6868_v41 }
  0x5c   :  { %539 = vmatpush1.msra.mxu1 %v6871_v42  ;;  %574 = vmatprep.mubr.f32.mxu1 %v9886_v0 }
  0x5d   :  { %540 = vmatprep.subr.mxu1 %v6875_v43  ;;  %695 = vmatprep.subr.mxu0 %v6739_v11 }
  0x5e   :  { %541 = vmatpush1.msra.mxu1 %v6881_v44  ;;  %5753 = vmatmul.mubr.msk.f32.gmra.mxu0 %vm143_vm1, %v6751_v13  ;;  %v6979_v13 = vld [vmem:[#allocation4 + $0x90] sm:$0xff] }
  0x5f   :  { %575 = vmatmul.mubr.f32.vlgmr.msra.gmra.mxu1 %v9886_v0  ;;  %581 = vmatprep.subr.mxu1 %v6885_v45  ;;  %10211 = vst [vmem:[#allocation30_spill] sm:$0xff] %v6979_v13 }
  0x60   :  { %582 = vmatpush1.msra.mxu1 %v6888_v46  ;;  %645 = vmatprep.mubr.f32.mxu1 %v9886_v0 }
  0x61   :  { %583 = vmatprep.subr.mxu1 %v6892_v47  ;;  %696 = vmatpush1.msra.mxu0 %v6744_v12 }
  0x62   :  { %584 = vmatpush1.msra.mxu1 %v6897_v48  ;;  %697 = vmatprep.subr.mxu0 %v6753_v14 }
  0x63   :  { %585 = vmatprep.subr.mxu1 %v6900_v49  ;;  %698 = vmatpush1.msra.mxu0 %v6756_v15 }
  0x64   :  { %586 = vmatpush1.msra.mxu1 %v6904_v50  ;;  %263 = vmatprep.mubr.f32.mxu0 %v9886_v0 }
  0x65   :  { %587 = vmatprep.subr.mxu1 %v6908_v51  ;;  %699 = vmatprep.subr.mxu0 %v6759_v16 }
  0x66   :  { %588 = vmatpush1.msra.mxu1 %v6913_v52  ;;  %5754 = vmatmul.mubr.msk.f32.gmra.mxu0 %vm143_vm1, %v6771_v18  ;;  %v6983_v18 = vld [vmem:[#allocation4 + $0x78] sm:$0xff] }
  0x67   :  { %589 = vmatprep.subr.mxu1 %v6917_v53  ;;  %700 = vmatpush1.msra.mxu0 %v6764_v17  ;;  %10212 = vst [vmem:[#allocation31_spill] sm:$0xff] %v6983_v18 }
  0x68   :  { %590 = vmatpush1.msra.mxu1 %v6921_v54  ;;  %701 = vmatprep.subr.mxu0 %v6773_v19 }
  0x69   :  { %591 = vmatprep.subr.mxu1 %v6925_v55  ;;  %702 = vmatpush1.msra.mxu0 %v6779_v21 }
  0x6a   :  { %592 = vmatpush1.msra.mxu1 %v6929_v56  ;;  %269 = vmatprep.mubr.f32.mxu0 %v9886_v0 }
  0x6b   :  { %593 = vmatprep.subr.mxu1 %v6933_v57  ;;  %703 = vmatprep.subr.mxu0 %v6786_v23 }
  0x6c   :  { %594 = vmatpush1.msra.mxu1 %v6938_v58  ;;  %5755 = vmatmul.mubr.msk.f32.gmra.mxu0 %vm143_vm1, %v6799_v25  ;;  %v6996_v25 = vld [vmem:[#allocation4 + $0x50] sm:$0xff] }
  0x6d   :  { %595 = vmatprep.subr.mxu1 %v6942_v59  ;;  %704 = vmatpush1.msra.mxu0 %v6792_v24  ;;  %10215 = vst [vmem:[#allocation34_spill] sm:$0xff] %v6996_v25 }
  0x6e   :  { %596 = vmatpush1.msra.mxu1 %v6946_v60  ;;  %705 = vmatprep.subr.mxu0 %v6801_v26 }
  0x6f   :  { %597 = vmatprep.subr.mxu1 %v6950_v61  ;;  %706 = vmatpush1.msra.mxu0 %v6804_v27 }
  0x70   :  { %598 = vmatpush1.msra.mxu1 %v6954_v62  ;;  %275 = vmatprep.mubr.f32.mxu0 %v9886_v0 }
  0x71   :  { %599 = vmatprep.subr.mxu1 %v6958_v63  ;;  %707 = vmatprep.subr.mxu0 %v6808_v28 }
  0x72   :  { %600 = vmatpush1.msra.mxu1 %v6963_v1  ;;  %5756 = vmatmul.mubr.msk.f32.gmra.mxu0 %vm143_vm1, %v6821_v30  ;;  %v7000_v30 = vld [vmem:[#allocation4 + $0x38] sm:$0xff] }
  0x73   :  { %601 = vmatprep.subr.mxu1 %v6967_v2  ;;  %708 = vmatpush1.msra.mxu0 %v6814_v29  ;;  %10216 = vst [vmem:[#allocation35_spill] sm:$0xff] %v7000_v30  ;;  %v7004_v29 = vld [vmem:[#allocation4 + $0x30] sm:$0xff] }
  0x74   :  { %602 = vmatpush1.msra.mxu1 %v6971_v3  ;;  %709 = vmatprep.subr.mxu0 %v6823_v31  ;;  %10217 = vst [vmem:[#allocation36_spill] sm:$0xff] %v7004_v29  ;;  %v7008_v31 = vld [vmem:[#allocation4 + $0x18] sm:$0xff] }
  0x75   :  { %603 = vmatprep.subr.mxu1 %v6975_v8  ;;  %710 = vmatpush1.msra.mxu0 %v6826_v32  ;;  %10218 = vst [vmem:[#allocation37_spill] sm:$0xff] %v7008_v31  ;;  %v7013_v32 = vld [vmem:[#allocation4 + $0x10] sm:$0xff] }
  0x76   :  { %604 = vmatpush1.msra.mxu1 %v6979_v13  ;;  %281 = vmatprep.mubr.f32.mxu0 %v9886_v0  ;;  %10219 = vst [vmem:[#allocation38_spill] sm:$0xff] %v7013_v32 }
  0x77   :  { %605 = vmatprep.subr.mxu1 %v6983_v18  ;;  %711 = vmatprep.subr.mxu0 %v6830_v33 }
  0x78   :  { %606 = vmatpush1.msra.mxu1 %v6988_v20  ;;  %5757 = vmatmul.mubr.msk.f32.gmra.mxu0 %vm143_vm1, %v6843_v35  ;;  %v123_v35 = vlaneseq }
  0x79   :  { %607 = vmatprep.subr.mxu1 %v6992_v22  ;;  %712 = vmatpush1.msra.mxu0 %v6836_v34 }
  0x7a   :  { %608 = vmatpush1.msra.mxu1 %v6996_v25  ;;  %713 = vmatprep.subr.mxu0 %v6845_v36 }
  0x7b   :  { %609 = vmatprep.subr.mxu1 %v7000_v30  ;;  %714 = vmatpush1.msra.mxu0 %v6848_v37 }
  0x7c   :  { %610 = vmatpush1.msra.mxu1 %v7004_v29  ;;  %287 = vmatprep.mubr.f32.mxu0 %v9886_v0 }
  0x7d   :  { %611 = vmatprep.subr.mxu1 %v7008_v31  ;;  %715 = vmatprep.subr.mxu0 %v6852_v38 }
  0x7e   :  { %612 = vmatpush1.msra.mxu1 %v7013_v32  ;;  %5758 = vmatmul.mubr.msk.f32.gmra.mxu0 %vm143_vm1, %v6866_v40  ;;  %v124_v40 = vshrl.u32 %v123_v35, 7 }
  0x7f   :  { %646 = vmatmul.mubr.f32.vlgmr.msra.gmra.mxu1 %v9886_v0  ;;  %760 = vmatprep.subr.mxu1 %v6885_v45 }
  0x80   :  { %761 = vmatpush1.msra.mxu1 %v6888_v46  ;;  %716 = vmatpush1.msra.mxu0 %v6859_v39  ;;  %v7119_v37 = vsub.s32 0, %v124_v40 }
  0x81   :  { %762 = vmatprep.subr.mxu1 %v6892_v47  ;;  %717 = vmatprep.subr.mxu0 %v6868_v41 }
  0x82   :  { %763 = vmatpush1.msra.mxu1 %v6897_v48  ;;  %718 = vmatpush1.msra.mxu0 %v6871_v42  ;;  %10234 = vst [vmem:[#allocation53_spill] sm:$0xff] %v7119_v37 }
  0x83   :  { %764 = vmatprep.subr.mxu1 %v6900_v49  ;;  %719 = vmatprep.subr.mxu0 %v6875_v43  ;;  %v7074_v43 = vsub.s32 3, %v124_v40 }
  0x84   :  { %765 = vmatpush1.msra.mxu1 %v6904_v50  ;;  %720 = vmatpush1.msra.mxu0 %v6881_v44 }
  0x85   :  { %766 = vmatprep.subr.mxu1 %v6908_v51  ;;  %753 = vmatprep.mubr.f32.mxu0 %v9886_v0  ;;  %10221 = vst [vmem:[#allocation40_spill] sm:$0xff] %v7074_v43 }
  0x86   :  { %767 = vmatpush1.msra.mxu1 %v6913_v52  ;;  %824 = vmatprep.mubr.f32.mxu1 %v9886_v0  ;;  %v7067_v0 = vsub.s32 2, %v124_v40 }
  0x87   :  { %768 = vmatprep.subr.mxu1 %v6917_v53  ;;  %869 = vmatprep.subr.mxu0 %v6715_v4  ;;  %v121_v4 = vld [vmem:[%s9870_s3] sm:$0xf] }
  0x88   :  { %769 = vmatpush1.msra.mxu1 %v6921_v54  ;;  %10220 = vst [vmem:[#allocation39_spill] sm:$0xff] %v7067_v0 }
  0x89   :  { %770 = vmatprep.subr.mxu1 %v6925_v55 }
  0x8a   :  { %771 = vmatpush1.msra.mxu1 %v6929_v56 }
  0x8b   :  { %772 = vmatprep.subr.mxu1 %v6933_v57 }
  0x8c   :  { %773 = vmatpush1.msra.mxu1 %v6938_v58 }
  0x8d   :  { %774 = vmatprep.subr.mxu1 %v6942_v59 }
  0x8e   :  { %775 = vmatpush1.msra.mxu1 %v6946_v60 }
  0x8f   :  { %776 = vmatprep.subr.mxu1 %v6950_v61 }
  0x90   :  { %777 = vmatpush1.msra.mxu1 %v6954_v62 }
  0x91   :  { %778 = vmatprep.subr.mxu1 %v6958_v63 }
  0x92   :  { %779 = vmatpush1.msra.mxu1 %v6963_v1 }
  0x93   :  { %780 = vmatprep.subr.mxu1 %v6967_v2 }
  0x94   :  { %781 = vmatpush1.msra.mxu1 %v6971_v3 }
  0x95   :  { %782 = vmatprep.subr.mxu1 %v6975_v8 }
  0x96   :  { %783 = vmatpush1.msra.mxu1 %v6979_v13 }
  0x97   :  { %784 = vmatprep.subr.mxu1 %v6983_v18 }
  0x98   :  { %785 = vmatpush1.msra.mxu1 %v6988_v20 }
  0x99   :  { %786 = vmatprep.subr.mxu1 %v6992_v22 }
  0x9a   :  { %787 = vmatpush1.msra.mxu1 %v6996_v25 }
  0x9b   :  { %788 = vmatprep.subr.mxu1 %v7000_v30 }
  0x9c   :  { %789 = vmatpush1.msra.mxu1 %v7004_v29 }
  0x9d   :  { %790 = vmatprep.subr.mxu1 %v7008_v31  ;;  %v7079_v31 = vrot.slane %v121_v4, %v7067_v0 }
  0x9e   :  { %791 = vmatpush1.msra.mxu1 %v7013_v32 }
  0x9f   :  { %940 = vmatprep.subr.mxu1 %v6885_v45  ;;  %v7082_v45 = vrot.slane %v121_v4, %v7074_v43 }
  0xff   :  { %v7072_v44 = vpop.f32.mrf.mxu1 }
 0x101   :  { %v7076_v42 = vpop.f32.mrf.mxu1 }
 0x103   :  { %v366_v32 = vpop.f32.mrf.mxu1 }
 0x104   :  { %v7085_v35 = vadd.f32 %v366_v32, %v7079_v31 }
 0x105   :  { %v368_v29 = vpop.f32.mrf.mxu1 }
 0x106   :  { %10222 = vst [vmem:[#allocation41_spill] sm:$0xff] %v7085_v35  ;;  %v7088_v30 = vadd.f32 %v368_v29, %v7082_v45 }
 0x107   :  { %v372_v41 = vpop.f32.mrf.mxu1 }
 0x108   :  { %10223 = vst [vmem:[#allocation42_spill] sm:$0xff] %v7088_v30  ;;  %v7091_v25 = vadd.f32 %v372_v41, %v7079_v31 }
 0x109   :  { %v374_v39 = vpop.f32.mrf.mxu1 }
 0x10a   :  { %10224 = vst [vmem:[#allocation43_spill] sm:$0xff] %v7091_v25  ;;  %v7094_v22 = vadd.f32 %v374_v39, %v7082_v45 }
 0x10b   :  { %v378_v0 = vpop.f32.mrf.mxu1 }
 0x10c   :  { %10225 = vst [vmem:[#allocation44_spill] sm:$0xff] %v7094_v22  ;;  %v7097_v38 = vadd.f32 %v378_v0, %v7079_v31  ;;  %v247_v22 = vpop.f32.mrf.mxu0 }
 0x10d   :  { %v380_v43 = vpop.f32.mrf.mxu1 }
 0x10e   :  { %10226 = vst [vmem:[#allocation45_spill] sm:$0xff] %v7097_v38  ;;  %v7100_v32 = vadd.f32 %v380_v43, %v7082_v45 }
 0x10f   :  { %v384_v35 = vpop.f32.mrf.mxu1 }
 0x110   :  { %10227 = vst [vmem:[#allocation46_spill] sm:$0xff] %v7100_v32  ;;  %v7103_v29 = vadd.f32 %v384_v35, %v7079_v31  ;;  %v7117_v32 = vsub.s32 1, %v124_v40  ;;  %v249_v35 = vpop.f32.mrf.mxu0 }
 0x111   :  { %v386_v30 = vpop.f32.mrf.mxu1 }
 0x112   :  { %10228 = vst [vmem:[#allocation47_spill] sm:$0xff] %v7103_v29  ;;  %v7106_v41 = vadd.f32 %v386_v30, %v7082_v45  ;;  %10233 = vst [vmem:[#allocation52_spill] sm:$0xff] %v7117_v32 }
 0x113   :  { %v390_v25 = vpop.f32.mrf.mxu1 }
 0x114   :  { %10229 = vst [vmem:[#allocation48_spill] sm:$0xff] %v7106_v41  ;;  %v7109_v39 = vadd.f32 %v390_v25, %v7079_v31  ;;  %v7124_v25 = vpop.f32.mrf.mxu0 }
 0x115   :  { %v392_v20 = vpop.f32.mrf.mxu1  ;;  %10236 = vst [vmem:[#allocation55_spill] sm:$0xff] %v7124_v25 }
 0x116   :  { %10230 = vst [vmem:[#allocation49_spill] sm:$0xff] %v7109_v39  ;;  %v7112_v0 = vadd.f32 %v392_v20, %v7082_v45  ;;  %v7130_v20 = vrot.slane %v121_v4, %v7117_v32  ;;  %v7138_v40 = vpop.f32.mrf.mxu0 }
 0x117   :  { %v396_v38 = vpop.f32.mrf.mxu1  ;;  %10240 = vst [vmem:[#allocation59_spill] sm:$0xff] %v7138_v40 }
 0x118   :  { %10231 = vst [vmem:[#allocation50_spill] sm:$0xff] %v7112_v0  ;;  %v7115_v43 = vadd.f32 %v396_v38, %v7079_v31  ;;  %10238 = vst [vmem:[#allocation57_spill] sm:$0xff] %v7130_v20  ;;  %v7133_v38 = vrot.slane %v121_v4, %v7119_v37 }
 0x119   :  { %v398_v29 = vpop.f32.mrf.mxu1 }
 0x11a   :  { %10232 = vst [vmem:[#allocation51_spill] sm:$0xff] %v7115_v43  ;;  %v7122_v30 = vadd.f32 %v398_v29, %v7082_v45  ;;  %v248_v25 = vadd.f32 %v247_v22, %v7133_v38 }
 0x11b   :  { %v402_v39 = vpop.f32.mrf.mxu1 }
 0x11c   :  { %10235 = vst [vmem:[#allocation54_spill] sm:$0xff] %v7122_v30  ;;  %v7127_v41 = vadd.f32 %v402_v39, %v7079_v31  ;;  %v250_v30 = vadd.f32 %v249_v35, %v7130_v20 }
 0x11d   :  { %v404_v43 = vpop.f32.mrf.mxu1 }
 0x11e   :  { %10237 = vst [vmem:[#allocation56_spill] sm:$0xff] %v7127_v41  ;;  %v7136_v0 = vadd.f32 %v404_v43, %v7082_v45  ;;  %v259_v39 = vpop.f32.mrf.mxu0 }
 0x11f   :  { %v576_v29 = vpop.f32.mrf.mxu1  ;;  %v7143_v41 = vadd.f32 %v259_v39, %v7133_v38 }
 0x120   :  { %10239 = vst [vmem:[#allocation58_spill] sm:$0xff] %v7136_v0  ;;  %v261_v36 = vpop.f32.mrf.mxu0  ;;  %v652_v4 = vadd.f32 %v576_v29, %v248_v25 }
 0x121   :  { %v578_v18 = vpop.f32.mrf.mxu1  ;;  %10241 = vst [vmem:[#allocation60_spill] sm:$0xff] %v7143_v41  ;;  %v7146_v37 = vadd.f32 %v261_v36, %v7130_v20  ;;  %v10271_v41 = vld [vmem:[#allocation27_spill] sm:$0xff] }
 0x122   :  { %v653_v32 = vadd.f32 %v578_v18, %v250_v30  ;;  %v5769_v13 = vmul.f32 -1.442695, %v652_v4 }
 0x123   :  { %10242 = vst [vmem:[#allocation61_spill] sm:$0xff] %v7146_v37 }
 0x124   :  { %v5770_v43 = vmul.f32 -1.442695, %v653_v32 }
 0x126   :  { %v265_v0 = vpop.f32.mrf.mxu0  ;;  %5918 = vpow2.f32 %v5770_v43 }
 0x127   :  { %v7149_v40 = vadd.f32 %v265_v0, %v7133_v38  ;;  %5920 = vpow2.f32 %v5769_v13 }
 0x128   :  { %v267_v35 = vpop.f32.mrf.mxu0 }
 0x129   :  { %10243 = vst [vmem:[#allocation62_spill] sm:$0xff] %v7149_v40  ;;  %v7152_v22 = vadd.f32 %v267_v35, %v7130_v20 }
 0x12b   :  { %10244 = vst [vmem:[#allocation63_spill] sm:$0xff] %v7152_v22 }
 0x12c   :  { %v271_v39 = vpop.f32.mrf.mxu0 }
 0x12d   :  { %v7155_v18 = vadd.f32 %v271_v39, %v7133_v38 }
 0x12e   :  { %v273_v30 = vpop.f32.mrf.mxu0 }
 0x12f   :  { %10245 = vst [vmem:[#allocation64_spill] sm:$0xff] %v7155_v18  ;;  %v7158_v36 = vadd.f32 %v273_v30, %v7130_v20 }
 0x131   :  { %10246 = vst [vmem:[#allocation65_spill] sm:$0xff] %v7158_v36 }
 0x132   :  { %v277_v32 = vpop.f32.mrf.mxu0 }
 0x133   :  { %v7161_v25 = vadd.f32 %v277_v32, %v7133_v38  ;;  %v5919_v4 = vpop.eup %5918  ;;  %v361_v32 = vadd.f32 %v7072_v44, %v7079_v31 }
 0x134   :  { %v279_v0 = vpop.f32.mrf.mxu0  ;;  %v5921_v35 = vpop.eup %5920  ;;  %v665_v39 = vadd.f32 1.0, %v5919_v4 }
 0x135   :  { %10247 = vst [vmem:[#allocation66_spill] sm:$0xff] %v7161_v25  ;;  %v7164_v29 = vadd.f32 %v279_v0, %v7130_v20  ;;  %v659_v22 = vadd.f32 1.0, %v5921_v35  ;;  %v363_v0 = vadd.f32 %v7076_v42, %v7082_v45 }
 0x136   :  { %5922 = vrcp.f32 %v665_v39  ;;  %v10256_v39 = vld [vmem:[#allocation30_spill] sm:$0xff] }
 0x137   :  { %10248 = vst [vmem:[#allocation67_spill] sm:$0xff] %v7164_v29  ;;  %5924 = vrcp.f32 %v659_v22 }
 0x138   :  { %v283_v43 = vpop.f32.mrf.mxu0 }
 0x139   :  { %v7167_v13 = vadd.f32 %v283_v43, %v7133_v38 }
 0x13a   :  { %v285_v18 = vpop.f32.mrf.mxu0 }
 0x13b   :  { %10249 = vst [vmem:[#allocation68_spill] sm:$0xff] %v7167_v13  ;;  %v7170_v30 = vadd.f32 %v285_v18, %v7130_v20 }
 0x13d   :  { %10250 = vst [vmem:[#allocation69_spill] sm:$0xff] %v7170_v30 }
 0x13e   :  { %v289_v40 = vpop.f32.mrf.mxu0 }
 0x13f   :  { %v647_v25 = vpop.f32.mrf.mxu1  ;;  %v7177_v4 = vadd.f32 %v289_v40, %v7133_v38  ;;  %v10253_v40 = vld [vmem:[#allocation16_spill] sm:$0xff] }
 0x140   :  { %v654_v29 = vadd.f32 %v647_v25, %v361_v32  ;;  %v10258_v32 = vld [vmem:[#allocation31_spill] sm:$0xff] }
 0x141   :  { %v649_v36 = vpop.f32.mrf.mxu1  ;;  %10251 = vst [vmem:[#allocation70_spill] sm:$0xff] %v7177_v4  ;;  %v10269_v4 = vld [vmem:[#allocation26_spill] sm:$0xff] }
 0x142   :  { %5926 = vtanh.f32 %v654_v29  ;;  %v655_v43 = vadd.f32 %v649_v36, %v363_v0  ;;  %v10254_v29 = vld [vmem:[#allocation17_spill] sm:$0xff] }
 0x143   :  { %v5923_v18 = vpop.eup %5922  ;;  %v10259_v0 = vld [vmem:[#allocation21_spill] sm:$0xff] }
 0x144   :  { %v5771_v35 = vmul.f32 -1.442695, %v655_v43  ;;  %v5925_v30 = vpop.eup %5924  ;;  %v675_v31 = vmul.f32 0.0, %v5923_v18  ;;  %v10260_v43 = vld [vmem:[#allocation32_spill] sm:$0xff]  ;;  %v10262_v18 = vld [vmem:[#allocation33_spill] sm:$0xff] }
 0x146   :  { %5928 = vpow2.f32 %v5771_v35  ;;  %v10261_v35 = vld [vmem:[#allocation22_spill] sm:$0xff] }
 0x14f   :  { %v5927_v13 = vpop.eup %5926 }
 0x150   :  { %v676_v44 = vmul.f32 %v5927_v13, %v5925_v30  ;;  %v10255_v13 = vld [vmem:[#allocation18_spill] sm:$0xff]  ;;  %v10257_v30 = vld [vmem:[#allocation20_spill] sm:$0xff] }
 0x152   :  { %v7179_v37 = vadd.f32 %v676_v44, %v675_v31  ;;  %v10263_v31 = vld [vmem:[#allocation23_spill] sm:$0xff]  ;;  %v10264_v44 = vld [vmem:[#allocation34_spill] sm:$0xff] }
 0x153   :  { %v5929_v42 = vpop.eup %5928 }
 0x154   :  { %v672_v45 = vadd.f32 1.0, %v5929_v42  ;;  %5930 = vtanh.f32 %v7179_v37  ;;  %v10265_v42 = vld [vmem:[#allocation24_spill] sm:$0xff] }
 0x156   :  { %5932 = vrcp.f32 %v672_v45  ;;  %v10266_v45 = vld [vmem:[#allocation35_spill] sm:$0xff] }
 0x161   :  { %v5931_v22 = vpop.eup %5930 }
 0x163   :  { %v5933_v25 = vpop.eup %5932 }
 0x164   :  { %v7182_v36 = vmul.f32 %v5933_v25, %v5931_v22  ;;  %v10267_v22 = vld [vmem:[#allocation25_spill] sm:$0xff]  ;;  %v10268_v25 = vld [vmem:[#allocation36_spill] sm:$0xff] }
 0x166   :  { %10252 = vst [vmem:[#allocation71_spill] sm:$0xff] %v7182_v36  ;;  %754 = vmatmul.mubr.f32.vlgmr.msra.gmra.mxu0 %v7182_v36  ;;  %825 = vmatmul.mubr.f32.vlgmr.msra.gmra.mxu1 %v7182_v36  ;;  %v10270_v36 = vld [vmem:[#allocation37_spill] sm:$0xff] }
 0x167   :  { %870 = vmatpush1.msra.mxu0 %v6717_v5  ;;  %941 = vmatpush1.msra.mxu1 %v6888_v46 }
 0x168   :  { %871 = vmatprep.subr.mxu0 %v6720_v6  ;;  %942 = vmatprep.subr.mxu1 %v6892_v47 }
 0x169   :  { %872 = vmatpush1.msra.mxu0 %v6724_v7  ;;  %943 = vmatpush1.msra.mxu1 %v6897_v48 }
 0x16a   :  { %873 = vmatprep.subr.mxu0 %v6733_v9  ;;  %944 = vmatprep.subr.mxu1 %v6900_v49 }
 0x16b   :  { %874 = vmatpush1.msra.mxu0 %v6736_v10  ;;  %945 = vmatpush1.msra.mxu1 %v6904_v50 }
 0x16c   :  { %875 = vmatprep.subr.mxu0 %v6739_v11  ;;  %946 = vmatprep.subr.mxu1 %v6908_v51 }
 0x16d   :  { %876 = vmatpush1.msra.mxu0 %v6744_v12  ;;  %947 = vmatpush1.msra.mxu1 %v6913_v52 }
 0x16e   :  { %877 = vmatprep.subr.mxu0 %v6753_v14  ;;  %948 = vmatprep.subr.mxu1 %v6917_v53 }
 0x16f   :  { %878 = vmatpush1.msra.mxu0 %v6756_v15  ;;  %949 = vmatpush1.msra.mxu1 %v6921_v54 }
 0x170   :  { %879 = vmatprep.subr.mxu0 %v6759_v16  ;;  %950 = vmatprep.subr.mxu1 %v6925_v55 }
 0x171   :  { %880 = vmatpush1.msra.mxu0 %v6764_v17  ;;  %951 = vmatpush1.msra.mxu1 %v6929_v56 }
 0x172   :  { %881 = vmatprep.subr.mxu0 %v6773_v19  ;;  %952 = vmatprep.subr.mxu1 %v6933_v57 }
 0x173   :  { %882 = vmatpush1.msra.mxu0 %v6779_v21  ;;  %953 = vmatpush1.msra.mxu1 %v6938_v58 }
 0x174   :  { %883 = vmatprep.subr.mxu0 %v6786_v23  ;;  %954 = vmatprep.subr.mxu1 %v6942_v59 }
 0x175   :  { %884 = vmatpush1.msra.mxu0 %v6792_v24  ;;  %955 = vmatpush1.msra.mxu1 %v6946_v60 }
 0x176   :  { %885 = vmatprep.subr.mxu0 %v6801_v26  ;;  %956 = vmatprep.subr.mxu1 %v6950_v61 }
 0x177   :  { %886 = vmatpush1.msra.mxu0 %v6804_v27  ;;  %957 = vmatpush1.msra.mxu1 %v6954_v62 }
 0x178   :  { %887 = vmatprep.subr.mxu0 %v6808_v28  ;;  %958 = vmatprep.subr.mxu1 %v6958_v63 }
 0x179   :  { %888 = vmatpush1.msra.mxu0 %v10253_v40  ;;  %959 = vmatpush1.msra.mxu1 %v6963_v1 }
 0x17a   :  { %889 = vmatprep.subr.mxu0 %v10254_v29  ;;  %960 = vmatprep.subr.mxu1 %v6967_v2 }
 0x17b   :  { %890 = vmatpush1.msra.mxu0 %v10255_v13  ;;  %961 = vmatpush1.msra.mxu1 %v6971_v3 }
 0x17c   :  { %891 = vmatprep.subr.mxu0 %v6830_v33  ;;  %962 = vmatprep.subr.mxu1 %v6975_v8 }
 0x17d   :  { %892 = vmatpush1.msra.mxu0 %v6836_v34  ;;  %963 = vmatpush1.msra.mxu1 %v10256_v39  ;;  %v10280_v39 = vld [vmem:[#allocation41_spill] sm:$0xff] }
 0x17e   :  { %893 = vmatprep.subr.mxu0 %v10257_v30  ;;  %964 = vmatprep.subr.mxu1 %v10258_v32  ;;  %v10279_v30 = vld [vmem:[#allocation42_spill] sm:$0xff] }
 0x17f   :  { %894 = vmatpush1.msra.mxu0 %v10259_v0  ;;  %965 = vmatpush1.msra.mxu1 %v10260_v43 }
 0x180   :  { %895 = vmatprep.subr.mxu0 %v10261_v35  ;;  %966 = vmatprep.subr.mxu1 %v10262_v18  ;;  %v10272_v35 = vmov 0.0   ;;  %v10273_v18 = vld [vmem:[#allocation38_spill] sm:$0xff] }
 0x181   :  { %896 = vmatpush1.msra.mxu0 %v10263_v31  ;;  %967 = vmatpush1.msra.mxu1 %v10264_v44  ;;  %v10274_v44 = vld [vmem:[#allocation15_spill] sm:$0xff] }
 0x182   :  { %897 = vmatprep.subr.mxu0 %v10265_v42  ;;  %968 = vmatprep.subr.mxu1 %v10266_v45  ;;  %v10275_v42 = vld [vmem:[#allocation28_spill] sm:$0xff]  ;;  %v7252_v45 = vpop.f32.mrf.mxu0 }
 0x183   :  { %898 = vmatpush1.msra.mxu0 %v10267_v22  ;;  %969 = vmatpush1.msra.mxu1 %v10268_v25  ;;  %10276 = vst [vmem:[#allocation16_spill] sm:$0xff] %v7252_v45  ;;  %v10277_v25 = vld [vmem:[#allocation55_spill] sm:$0xff] }
 0x184   :  { %899 = vmatprep.subr.mxu0 %v10269_v4  ;;  %970 = vmatprep.subr.mxu1 %v10270_v36  ;;  %v254_v22 = vadd.f32 %v10277_v25, %v7133_v38  ;;  %v10278_v36 = vld [vmem:[#allocation59_spill] sm:$0xff] }
 0x185   :  { %900 = vmatpush1.msra.mxu0 %v10271_v41  ;;  %933 = vmatprep.mubr.f32.mxu0 %v10272_v35  ;;  %v256_v31 = vadd.f32 %v10278_v36, %v7130_v20  ;;  %v7591_v20 = vld [vmem:[#allocation4 + $0x58] sm:$0xff] }
 0x186   :  { %971 = vmatpush1.msra.mxu1 %v10273_v18  ;;  %1004 = vmatprep.mubr.f32.mxu1 %v10272_v35 }
 0x187   :  { %1049 = vmatprep.subr.mxu0 %v10274_v44  ;;  %1120 = vmatprep.subr.mxu1 %v10275_v42 }
 0x226   :  { %v755_v4 = vpop.f32.mrf.mxu0  ;;  %v826_v18 = vpop.f32.mrf.mxu1 }
 0x227   :  { %v831_v41 = vadd.f32 %v755_v4, %v254_v22  ;;  %v833_v45 = vadd.f32 %v826_v18, %v10280_v39 }
 0x228   :  { %v757_v43 = vpop.f32.mrf.mxu0  ;;  %v828_v44 = vpop.f32.mrf.mxu1 }
 0x229   :  { %v5772_v0 = vmul.f32 -1.442695, %v831_v41  ;;  %v832_v32 = vadd.f32 %v757_v43, %v256_v31  ;;  %v834_v42 = vadd.f32 %v828_v44, %v10279_v30  ;;  %v10305_v44 = vld [vmem:[#allocation61_spill] sm:$0xff] }
 0x22b   :  { %5934 = vpow2.f32 %v5772_v0  ;;  %v5773_v35 = vmul.f32 -1.442695, %v832_v32  ;;  %v5774_v34 = vmul.f32 -1.442695, %v834_v42 }
 0x22d   :  { %5936 = vpow2.f32 %v5773_v35 }
 0x22e   :  { %5938 = vtanh.f32 %v833_v45 }
 0x22f   :  { %5940 = vpow2.f32 %v5774_v34  ;;  %v10301_v34 = vld [vmem:[#allocation38_spill] sm:$0xff] }
 0x238   :  { %v5935_v8 = vpop.eup %5934 }
 0x239   :  { %v838_v38 = vadd.f32 1.0, %v5935_v8 }
 0x23a   :  { %v5937_v25 = vpop.eup %5936 }
 0x23b   :  { %5942 = vrcp.f32 %v838_v38  ;;  %v844_v4 = vadd.f32 1.0, %v5937_v25  ;;  %v5939_v41 = vpop.eup %5938 }
 0x23c   :  { %v5941_v36 = vpop.eup %5940 }
 0x23d   :  { %5944 = vrcp.f32 %v844_v4  ;;  %v851_v35 = vadd.f32 1.0, %v5941_v36  ;;  %v10306_v36 = vld [vmem:[#allocation44_spill] sm:$0xff] }
 0x23f   :  { %5946 = vrcp.f32 %v851_v35 }
 0x248   :  { %v5943_v0 = vpop.eup %5942 }
 0x249   :  { %v855_v43 = vmul.f32 %v5943_v0, %v5939_v41 }
 0x24a   :  { %v5945_v32 = vpop.eup %5944 }
 0x24b   :  { %v854_v31 = vmul.f32 %v5945_v32, %v7179_v37  ;;  %v7332_v37 = vld [vmem:[#allocation4 + $0x1e8] sm:$0xff] }
 0x24c   :  { %v5947_v8 = vpop.eup %5946  ;;  %10302 = vst [vmem:[#allocation18_spill] sm:$0xff] %v7332_v37 }
 0x24d   :  { %v7261_v30 = vadd.f32 %v855_v43, %v854_v31  ;;  %v10307_v43 = vld [vmem:[#allocation43_spill] sm:$0xff] }
 0x24f   :  { %5948 = vtanh.f32 %v7261_v30 }
 0x25c   :  { %v5949_v39 = vpop.eup %5948 }
 0x25d   :  { %v7264_v18 = vmul.f32 %v5949_v39, %v5947_v8 }
 0x25f   :  { %10281 = vst [vmem:[#allocation17_spill] sm:$0xff] %v7264_v18  ;;  %934 = vmatmul.mubr.f32.vlgmr.msra.gmra.mxu0 %v7264_v18  ;;  %1005 = vmatmul.mubr.f32.vlgmr.msra.gmra.mxu1 %v7264_v18  ;;  %v7603_v18 = vld [vmem:[#allocation4 + $0x30] sm:$0xff] }
 0x260   :  { %1050 = vmatpush1.msra.mxu0 %v6717_v5  ;;  %1121 = vmatpush1.msra.mxu1 %v6888_v46  ;;  %v10282_v5 = vld [vmem:[#allocation29_spill] sm:$0xff] }
 0x261   :  { %1051 = vmatprep.subr.mxu0 %v6720_v6  ;;  %1122 = vmatprep.subr.mxu1 %v6892_v47  ;;  %v10283_v6 = vld [vmem:[#allocation19_spill] sm:$0xff] }
 0x262   :  { %1052 = vmatpush1.msra.mxu0 %v6724_v7  ;;  %1123 = vmatpush1.msra.mxu1 %v6897_v48  ;;  %v10284_v7 = vld [vmem:[#allocation30_spill] sm:$0xff] }
 0x263   :  { %1053 = vmatprep.subr.mxu0 %v6733_v9  ;;  %1124 = vmatprep.subr.mxu1 %v6900_v49  ;;  %v10285_v9 = vld [vmem:[#allocation20_spill] sm:$0xff] }
 0x264   :  { %1054 = vmatpush1.msra.mxu0 %v6736_v10  ;;  %1125 = vmatpush1.msra.mxu1 %v6904_v50  ;;  %v10286_v10 = vld [vmem:[#allocation31_spill] sm:$0xff] }
 0x265   :  { %1055 = vmatprep.subr.mxu0 %v6739_v11  ;;  %1126 = vmatprep.subr.mxu1 %v6908_v51  ;;  %v10287_v11 = vld [vmem:[#allocation21_spill] sm:$0xff] }
 0x266   :  { %1056 = vmatpush1.msra.mxu0 %v6744_v12  ;;  %1127 = vmatpush1.msra.mxu1 %v6913_v52  ;;  %v10288_v12 = vld [vmem:[#allocation32_spill] sm:$0xff] }
 0x267   :  { %1057 = vmatprep.subr.mxu0 %v6753_v14  ;;  %1128 = vmatprep.subr.mxu1 %v6917_v53  ;;  %v10289_v14 = vld [vmem:[#allocation22_spill] sm:$0xff] }
 0x268   :  { %1058 = vmatpush1.msra.mxu0 %v6756_v15  ;;  %1129 = vmatpush1.msra.mxu1 %v6921_v54  ;;  %v10290_v15 = vld [vmem:[#allocation33_spill] sm:$0xff] }
 0x269   :  { %1059 = vmatprep.subr.mxu0 %v6759_v16  ;;  %1130 = vmatprep.subr.mxu1 %v6925_v55  ;;  %v10291_v16 = vld [vmem:[#allocation23_spill] sm:$0xff] }
 0x26a   :  { %1060 = vmatpush1.msra.mxu0 %v6764_v17  ;;  %1131 = vmatpush1.msra.mxu1 %v6929_v56  ;;  %v10292_v17 = vld [vmem:[#allocation34_spill] sm:$0xff]  ;;  %10326 = vst [vmem:[#allocation23_spill] sm:$0xff] %v7591_v20 }
 0x26b   :  { %1061 = vmatprep.subr.mxu0 %v6773_v19  ;;  %1132 = vmatprep.subr.mxu1 %v6933_v57  ;;  %v10293_v19 = vld [vmem:[#allocation24_spill] sm:$0xff] }
 0x26c   :  { %1062 = vmatpush1.msra.mxu0 %v6779_v21  ;;  %1133 = vmatpush1.msra.mxu1 %v6938_v58  ;;  %v10294_v21 = vld [vmem:[#allocation35_spill] sm:$0xff] }
 0x26d   :  { %1063 = vmatprep.subr.mxu0 %v6786_v23  ;;  %1134 = vmatprep.subr.mxu1 %v6942_v59  ;;  %v10295_v23 = vld [vmem:[#allocation25_spill] sm:$0xff]  ;;  %10329 = vst [vmem:[#allocation35_spill] sm:$0xff] %v7603_v18 }
 0x26e   :  { %1064 = vmatpush1.msra.mxu0 %v6792_v24  ;;  %1135 = vmatpush1.msra.mxu1 %v6946_v60  ;;  %v10296_v24 = vld [vmem:[#allocation36_spill] sm:$0xff] }
 0x26f   :  { %1065 = vmatprep.subr.mxu0 %v6801_v26  ;;  %1136 = vmatprep.subr.mxu1 %v6950_v61  ;;  %v10297_v26 = vld [vmem:[#allocation26_spill] sm:$0xff] }
 0x270   :  { %1066 = vmatpush1.msra.mxu0 %v6804_v27  ;;  %1137 = vmatpush1.msra.mxu1 %v6954_v62  ;;  %v10298_v27 = vld [vmem:[#allocation37_spill] sm:$0xff] }
 0x271   :  { %1067 = vmatprep.subr.mxu0 %v6808_v28  ;;  %1138 = vmatprep.subr.mxu1 %v6958_v63  ;;  %v10299_v28 = vld [vmem:[#allocation27_spill] sm:$0xff] }
 0x272   :  { %1068 = vmatpush1.msra.mxu0 %v10253_v40  ;;  %1139 = vmatpush1.msra.mxu1 %v6963_v1  ;;  %v10303_v40 = vld [vmem:[#allocation28_spill] sm:$0xff] }
 0x273   :  { %1069 = vmatprep.subr.mxu0 %v10254_v29  ;;  %1140 = vmatprep.subr.mxu1 %v6967_v2 }
 0x274   :  { %1070 = vmatpush1.msra.mxu0 %v10255_v13  ;;  %1141 = vmatpush1.msra.mxu1 %v6971_v3  ;;  %v10304_v13 = vld [vmem:[#allocation60_spill] sm:$0xff] }
 0x275   :  { %1071 = vmatprep.subr.mxu0 %v6830_v33  ;;  %1142 = vmatprep.subr.mxu1 %v10282_v5  ;;  %v10300_v33 = vmov 0.0  }
 0x276   :  { %1072 = vmatpush1.msra.mxu0 %v10283_v6  ;;  %1143 = vmatpush1.msra.mxu1 %v10284_v7 }
 0x277   :  { %1073 = vmatprep.subr.mxu0 %v10285_v9  ;;  %1144 = vmatprep.subr.mxu1 %v10286_v10 }
 0x278   :  { %1074 = vmatpush1.msra.mxu0 %v10287_v11  ;;  %1145 = vmatpush1.msra.mxu1 %v10288_v12 }
 0x279   :  { %1075 = vmatprep.subr.mxu0 %v10289_v14  ;;  %1146 = vmatprep.subr.mxu1 %v10290_v15 }
 0x27a   :  { %1076 = vmatpush1.msra.mxu0 %v10291_v16  ;;  %1147 = vmatpush1.msra.mxu1 %v10292_v17 }
 0x27b   :  { %1077 = vmatprep.subr.mxu0 %v10293_v19  ;;  %1148 = vmatprep.subr.mxu1 %v10294_v21 }
 0x27c   :  { %1078 = vmatpush1.msra.mxu0 %v10295_v23  ;;  %1149 = vmatpush1.msra.mxu1 %v10296_v24 }
 0x27d   :  { %1079 = vmatprep.subr.mxu0 %v10297_v26  ;;  %1150 = vmatprep.subr.mxu1 %v10298_v27 }
 0x27e   :  { %1080 = vmatpush1.msra.mxu0 %v10299_v28  ;;  %1113 = vmatprep.mubr.f32.mxu0 %v10300_v33 }
 0x27f   :  { %1151 = vmatpush1.msra.mxu1 %v10301_v34  ;;  %1184 = vmatprep.mubr.f32.mxu1 %v10300_v33 }
 0x280   :  { %1229 = vmatprep.subr.mxu0 %v7332_v37  ;;  %1300 = vmatprep.subr.mxu1 %v10303_v40 }
 0x31f   :  { %v935_v29 = vpop.f32.mrf.mxu0  ;;  %v1006_v25 = vpop.f32.mrf.mxu1 }
 0x320   :  { %v1011_v42 = vadd.f32 %v935_v29, %v10304_v13  ;;  %v1013_v32 = vadd.f32 %v1006_v25, %v10307_v43  ;;  %v10320_v43 = vld [vmem:[#allocation46_spill] sm:$0xff] }
 0x321   :  { %v937_v45 = vpop.f32.mrf.mxu0  ;;  %v1008_v41 = vpop.f32.mrf.mxu1 }
 0x322   :  { %v5775_v22 = vmul.f32 -1.442695, %v1011_v42  ;;  %v1012_v38 = vadd.f32 %v937_v45, %v10305_v44  ;;  %v1014_v0 = vadd.f32 %v1008_v41, %v10306_v36  ;;  %v7348_v42 = vld [vmem:[#allocation4 + $0x1e0] sm:$0xff] }
 0x323   :  { %v7356_v45 = vld [vmem:[#allocation4 + $0x1c0] sm:$0xff] }
 0x324   :  { %5950 = vpow2.f32 %v5775_v22  ;;  %v5776_v4 = vmul.f32 -1.442695, %v1012_v38  ;;  %v5777_v35 = vmul.f32 -1.442695, %v1014_v0  ;;  %v7360_v22 = vld [vmem:[#allocation4 + $0x1a8] sm:$0xff]  ;;  %v7364_v44 = vld [vmem:[#allocation4 + $0x1a0] sm:$0xff] }
 0x326   :  { %5952 = vpow2.f32 %v5776_v4  ;;  %v10319_v4 = vld [vmem:[#allocation63_spill] sm:$0xff] }
 0x327   :  { %5954 = vtanh.f32 %v1013_v32 }
 0x328   :  { %5956 = vpow2.f32 %v5777_v35  ;;  %v10321_v35 = vld [vmem:[#allocation45_spill] sm:$0xff] }
 0x331   :  { %v5951_v31 = vpop.eup %5950 }
 0x332   :  { %v1018_v8 = vadd.f32 1.0, %v5951_v31 }
 0x333   :  { %v5953_v39 = vpop.eup %5952 }
 0x334   :  { %5958 = vrcp.f32 %v1018_v8  ;;  %v1024_v6 = vadd.f32 1.0, %v5953_v39  ;;  %v5955_v9 = vpop.eup %5954 }
 0x335   :  { %v5957_v11 = vpop.eup %5956 }
 0x336   :  { %5960 = vrcp.f32 %v1024_v6  ;;  %v1031_v23 = vadd.f32 1.0, %v5957_v11 }
 0x338   :  { %5962 = vrcp.f32 %v1031_v23 }
 0x341   :  { %v5959_v14 = vpop.eup %5958 }
 0x342   :  { %v1035_v16 = vmul.f32 %v5959_v14, %v5955_v9 }
 0x343   :  { %v5961_v19 = vpop.eup %5960 }
 0x344   :  { %v1034_v26 = vmul.f32 %v5961_v19, %v7261_v30  ;;  %v7352_v30 = vld [vmem:[#allocation4 + $0x1c8] sm:$0xff] }
 0x345   :  { %v5963_v40 = vpop.eup %5962 }
 0x346   :  { %v7341_v28 = vadd.f32 %v1035_v16, %v1034_v26 }
 0x348   :  { %5964 = vtanh.f32 %v7341_v28 }
 0x355   :  { %v5965_v29 = vpop.eup %5964 }
 0x356   :  { %v7344_v13 = vmul.f32 %v5965_v29, %v5963_v40 }
 0x358   :  { %10308 = vst [vmem:[#allocation15_spill] sm:$0xff] %v7344_v13  ;;  %1114 = vmatmul.mubr.f32.vlgmr.msra.gmra.mxu0 %v7344_v13  ;;  %1185 = vmatmul.mubr.f32.vlgmr.msra.gmra.mxu1 %v7344_v13  ;;  %v7599_v13 = vld [vmem:[#allocation4 + $0x38] sm:$0xff] }
 0x359   :  { %1230 = vmatpush1.msra.mxu0 %v7348_v42  ;;  %1301 = vmatpush1.msra.mxu1 %v6888_v46  ;;  %v7368_v46 = vld [vmem:[#allocation4 + $0x188] sm:$0xff]  ;;  %10328 = vst [vmem:[#allocation24_spill] sm:$0xff] %v7599_v13 }
 0x35a   :  { %1231 = vmatprep.subr.mxu0 %v7352_v30  ;;  %1302 = vmatprep.subr.mxu1 %v6892_v47  ;;  %v7372_v47 = vld [vmem:[#allocation4 + $0x180] sm:$0xff] }
 0x35b   :  { %1232 = vmatpush1.msra.mxu0 %v7356_v45  ;;  %1303 = vmatpush1.msra.mxu1 %v6897_v48  ;;  %v7376_v48 = vld [vmem:[#allocation4 + $0x168] sm:$0xff] }
 0x35c   :  { %1233 = vmatprep.subr.mxu0 %v7360_v22  ;;  %1304 = vmatprep.subr.mxu1 %v6900_v49  ;;  %v7380_v49 = vld [vmem:[#allocation4 + $0x160] sm:$0xff] }
 0x35d   :  { %1234 = vmatpush1.msra.mxu0 %v7364_v44  ;;  %1305 = vmatpush1.msra.mxu1 %v6904_v50  ;;  %v7384_v50 = vld [vmem:[#allocation4 + $0x148] sm:$0xff] }
 0x35e   :  { %1235 = vmatprep.subr.mxu0 %v7368_v46  ;;  %1306 = vmatprep.subr.mxu1 %v6908_v51  ;;  %v7388_v51 = vld [vmem:[#allocation4 + $0x140] sm:$0xff] }
 0x35f   :  { %1236 = vmatpush1.msra.mxu0 %v7372_v47  ;;  %1307 = vmatpush1.msra.mxu1 %v6913_v52  ;;  %v7392_v52 = vld [vmem:[#allocation4 + $0x128] sm:$0xff] }
 0x360   :  { %1237 = vmatprep.subr.mxu0 %v7376_v48  ;;  %1308 = vmatprep.subr.mxu1 %v6917_v53  ;;  %v7396_v53 = vld [vmem:[#allocation4 + $0x120] sm:$0xff] }
 0x361   :  { %1238 = vmatpush1.msra.mxu0 %v7380_v49  ;;  %1309 = vmatpush1.msra.mxu1 %v6921_v54  ;;  %v7400_v54 = vld [vmem:[#allocation4 + $0x108] sm:$0xff] }
 0x362   :  { %1239 = vmatprep.subr.mxu0 %v7384_v50  ;;  %1310 = vmatprep.subr.mxu1 %v6925_v55  ;;  %v7404_v55 = vld [vmem:[#allocation4 + $0x100] sm:$0xff] }
 0x363   :  { %1240 = vmatpush1.msra.mxu0 %v7388_v51  ;;  %1311 = vmatpush1.msra.mxu1 %v6929_v56  ;;  %v7408_v56 = vld [vmem:[#allocation4 + $0xe8] sm:$0xff] }
 0x364   :  { %1241 = vmatprep.subr.mxu0 %v7392_v52  ;;  %1312 = vmatprep.subr.mxu1 %v6933_v57  ;;  %v7412_v57 = vld [vmem:[#allocation4 + $0xe0] sm:$0xff] }
 0x365   :  { %1242 = vmatpush1.msra.mxu0 %v7396_v53  ;;  %1313 = vmatpush1.msra.mxu1 %v6938_v58  ;;  %v7416_v58 = vld [vmem:[#allocation4 + $0xc8] sm:$0xff] }
 0x366   :  { %1243 = vmatprep.subr.mxu0 %v7400_v54  ;;  %1314 = vmatprep.subr.mxu1 %v6942_v59  ;;  %v7420_v59 = vld [vmem:[#allocation4 + $0xc0] sm:$0xff] }
 0x367   :  { %1244 = vmatpush1.msra.mxu0 %v7404_v55  ;;  %1315 = vmatpush1.msra.mxu1 %v6946_v60  ;;  %v7424_v60 = vld [vmem:[#allocation4 + $0xa8] sm:$0xff] }
 0x368   :  { %1245 = vmatprep.subr.mxu0 %v7408_v56  ;;  %1316 = vmatprep.subr.mxu1 %v6950_v61  ;;  %v7428_v61 = vld [vmem:[#allocation4 + $0xa0] sm:$0xff] }
 0x369   :  { %1246 = vmatpush1.msra.mxu0 %v7412_v57  ;;  %1317 = vmatpush1.msra.mxu1 %v6954_v62  ;;  %v7432_v62 = vld [vmem:[#allocation4 + $0x88] sm:$0xff] }
 0x36a   :  { %1247 = vmatprep.subr.mxu0 %v7416_v58  ;;  %1318 = vmatprep.subr.mxu1 %v6958_v63  ;;  %v7436_v63 = vld [vmem:[#allocation4 + $0x80] sm:$0xff] }
 0x36b   :  { %1248 = vmatpush1.msra.mxu0 %v7420_v59  ;;  %1319 = vmatpush1.msra.mxu1 %v6963_v1  ;;  %v7440_v1 = vld [vmem:[#allocation4 + $0x68] sm:$0xff] }
 0x36c   :  { %1249 = vmatprep.subr.mxu0 %v7424_v60  ;;  %1320 = vmatprep.subr.mxu1 %v6967_v2  ;;  %10309 = vst [vmem:[#allocation55_spill] sm:$0xff] %v7440_v1  ;;  %v7444_v2 = vld [vmem:[#allocation4 + $0x60] sm:$0xff] }
 0x36d   :  { %1250 = vmatpush1.msra.mxu0 %v7428_v61  ;;  %1321 = vmatpush1.msra.mxu1 %v6971_v3  ;;  %10310 = vst [vmem:[#allocation59_spill] sm:$0xff] %v7444_v2  ;;  %v7448_v3 = vld [vmem:[#allocation4 + $0x48] sm:$0xff] }
 0x36e   :  { %1251 = vmatprep.subr.mxu0 %v7432_v62  ;;  %1322 = vmatprep.subr.mxu1 %v10282_v5  ;;  %10311 = vst [vmem:[#allocation42_spill] sm:$0xff] %v7448_v3  ;;  %v7452_v5 = vld [vmem:[#allocation4 + $0x40] sm:$0xff] }
 0x36f   :  { %1252 = vmatpush1.msra.mxu0 %v7436_v63  ;;  %1323 = vmatpush1.msra.mxu1 %v10284_v7  ;;  %10312 = vst [vmem:[#allocation41_spill] sm:$0xff] %v7452_v5  ;;  %v7456_v7 = vld [vmem:[#allocation4 + $0x28] sm:$0xff] }
 0x370   :  { %1253 = vmatprep.subr.mxu0 %v7440_v1  ;;  %1324 = vmatprep.subr.mxu1 %v10286_v10  ;;  %10313 = vst [vmem:[#allocation29_spill] sm:$0xff] %v7456_v7  ;;  %v7460_v10 = vld [vmem:[#allocation4 + $0x20] sm:$0xff] }
 0x371   :  { %1254 = vmatpush1.msra.mxu0 %v7444_v2  ;;  %1325 = vmatpush1.msra.mxu1 %v10288_v12  ;;  %10314 = vst [vmem:[#allocation19_spill] sm:$0xff] %v7460_v10  ;;  %v7464_v12 = vld [vmem:[#allocation4 + $0x8] sm:$0xff] }
 0x372   :  { %1255 = vmatprep.subr.mxu0 %v7448_v3  ;;  %1326 = vmatprep.subr.mxu1 %v10290_v15  ;;  %10315 = vst [vmem:[#allocation30_spill] sm:$0xff] %v7464_v12  ;;  %v7468_v15 = vld [vmem:[#allocation4] sm:$0xff] }
 0x373   :  { %1256 = vmatpush1.msra.mxu0 %v7452_v5  ;;  %1327 = vmatpush1.msra.mxu1 %v10292_v17  ;;  %10316 = vst [vmem:[#allocation20_spill] sm:$0xff] %v7468_v15  ;;  %v7475_v17 = vld [vmem:[#allocation4 + $0x1f8] sm:$0xff] }
 0x374   :  { %1257 = vmatprep.subr.mxu0 %v7456_v7  ;;  %1328 = vmatprep.subr.mxu1 %v10294_v21  ;;  %10317 = vst [vmem:[#allocation31_spill] sm:$0xff] %v7475_v17 }
 0x375   :  { %1258 = vmatpush1.msra.mxu0 %v7460_v10  ;;  %1329 = vmatpush1.msra.mxu1 %v10296_v24  ;;  %v10318_v24 = vld [vmem:[#allocation62_spill] sm:$0xff] }
 0x376   :  { %1259 = vmatprep.subr.mxu0 %v7464_v12  ;;  %1330 = vmatprep.subr.mxu1 %v10298_v27 }
 0x377   :  { %1260 = vmatpush1.msra.mxu0 %v7468_v15  ;;  %1293 = vmatprep.mubr.f32.mxu0 %v10300_v33 }
 0x378   :  { %1331 = vmatpush1.msra.mxu1 %v10301_v34  ;;  %1364 = vmatprep.mubr.f32.mxu1 %v10300_v33 }
 0x379   :  { %1409 = vmatprep.subr.mxu0 %v7332_v37  ;;  %1480 = vmatprep.subr.mxu1 %v7475_v17 }
 0x418   :  { %v1115_v21 = vpop.f32.mrf.mxu0  ;;  %v1186_v36 = vpop.f32.mrf.mxu1 }
 0x419   :  { %v1191_v38 = vadd.f32 %v1115_v21, %v10318_v24  ;;  %v1193_v31 = vadd.f32 %v1186_v36, %v10321_v35  ;;  %v7507_v36 = vld [vmem:[#allocation4 + $0x1b0] sm:$0xff]  ;;  %v7527_v35 = vld [vmem:[#allocation4 + $0x158] sm:$0xff] }
 0x41a   :  { %v1117_v27 = vpop.f32.mrf.mxu0  ;;  %v1188_v34 = vpop.f32.mrf.mxu1 }
 0x41b   :  { %v5778_v25 = vmul.f32 -1.442695, %v1191_v38  ;;  %v1192_v41 = vadd.f32 %v1117_v27, %v10319_v4  ;;  %v1194_v32 = vadd.f32 %v1188_v34, %v10320_v43  ;;  %v7499_v4 = vld [vmem:[#allocation4 + $0x1d0] sm:$0xff]  ;;  %v7519_v43 = vld [vmem:[#allocation4 + $0x178] sm:$0xff] }
 0x41c   :  { %v7515_v34 = vld [vmem:[#allocation4 + $0x190] sm:$0xff] }
 0x41d   :  { %5966 = vpow2.f32 %v5778_v25  ;;  %v5779_v0 = vmul.f32 -1.442695, %v1192_v41  ;;  %v5780_v8 = vmul.f32 -1.442695, %v1194_v32  ;;  %v7491_v25 = vld [vmem:[#allocation4 + $0x1f0] sm:$0xff]  ;;  %v7503_v41 = vld [vmem:[#allocation4 + $0x1b8] sm:$0xff] }
 0x41e   :  { %v7523_v32 = vld [vmem:[#allocation4 + $0x170] sm:$0xff] }
 0x41f   :  { %5968 = vpow2.f32 %v5779_v0  ;;  %v7511_v0 = vld [vmem:[#allocation4 + $0x198] sm:$0xff] }
 0x420   :  { %5970 = vtanh.f32 %v1193_v31  ;;  %v7531_v31 = vld [vmem:[#allocation4 + $0x150] sm:$0xff] }
 0x421   :  { %5972 = vpow2.f32 %v5780_v8  ;;  %v7535_v8 = vld [vmem:[#allocation4 + $0x138] sm:$0xff] }
 0x42a   :  { %v5967_v39 = vpop.eup %5966 }
 0x42b   :  { %v1198_v6 = vadd.f32 1.0, %v5967_v39  ;;  %v7539_v39 = vld [vmem:[#allocation4 + $0x130] sm:$0xff] }
 0x42c   :  { %v5969_v9 = vpop.eup %5968 }
 0x42d   :  { %5974 = vrcp.f32 %v1198_v6  ;;  %v1204_v11 = vadd.f32 1.0, %v5969_v9  ;;  %v5971_v14 = vpop.eup %5970  ;;  %v7543_v6 = vld [vmem:[#allocation4 + $0x118] sm:$0xff]  ;;  %v7547_v9 = vld [vmem:[#allocation4 + $0x110] sm:$0xff] }
 0x42e   :  { %v5973_v16 = vpop.eup %5972 }
 0x42f   :  { %5976 = vrcp.f32 %v1204_v11  ;;  %v1211_v40 = vadd.f32 1.0, %v5973_v16  ;;  %v7551_v11 = vld [vmem:[#allocation4 + $0xf8] sm:$0xff] }
 0x430   :  { %v7559_v16 = vld [vmem:[#allocation4 + $0xd8] sm:$0xff] }
 0x431   :  { %5978 = vrcp.f32 %v1211_v40  ;;  %v7575_v40 = vld [vmem:[#allocation4 + $0x98] sm:$0xff] }
 0x43a   :  { %v5975_v19 = vpop.eup %5974 }
 0x43b   :  { %v1215_v23 = vmul.f32 %v5975_v19, %v5971_v14  ;;  %v7555_v14 = vld [vmem:[#allocation4 + $0xf0] sm:$0xff] }
 0x43c   :  { %v5977_v26 = vpop.eup %5976  ;;  %v7563_v19 = vld [vmem:[#allocation4 + $0xd0] sm:$0xff] }
 0x43d   :  { %v1214_v29 = vmul.f32 %v5977_v26, %v7341_v28  ;;  %v7495_v28 = vld [vmem:[#allocation4 + $0x1d8] sm:$0xff]  ;;  %v7571_v26 = vld [vmem:[#allocation4 + $0xb0] sm:$0xff] }
 0x43e   :  { %v5979_v24 = vpop.eup %5978 }
 0x43f   :  { %v7483_v21 = vadd.f32 %v1215_v23, %v1214_v29  ;;  %v7567_v23 = vld [vmem:[#allocation4 + $0xb8] sm:$0xff]  ;;  %v7579_v29 = vld [vmem:[#allocation4 + $0x90] sm:$0xff] }
 0x440   :  { %10323 = vst [vmem:[#allocation32_spill] sm:$0xff] %v7579_v29 }
 0x441   :  { %5980 = vtanh.f32 %v7483_v21 }
 0x44e   :  { %v5981_v38 = vpop.eup %5980 }
 0x44f   :  { %v7486_v27 = vmul.f32 %v5981_v38, %v5979_v24  ;;  %v7583_v24 = vld [vmem:[#allocation4 + $0x78] sm:$0xff]  ;;  %v7587_v38 = vld [vmem:[#allocation4 + $0x70] sm:$0xff] }
 0x450   :  { %10324 = vst [vmem:[#allocation22_spill] sm:$0xff] %v7583_v24  ;;  %10325 = vst [vmem:[#allocation33_spill] sm:$0xff] %v7587_v38 }
 0x451   :  { %10322 = vst [vmem:[#allocation21_spill] sm:$0xff] %v7486_v27  ;;  %1294 = vmatmul.mubr.f32.vlgmr.msra.gmra.mxu0 %v7486_v27  ;;  %1365 = vmatmul.mubr.f32.vlgmr.msra.gmra.mxu1 %v7486_v27  ;;  %v7595_v27 = vld [vmem:[#allocation4 + $0x50] sm:$0xff] }
 0x452   :  { %1410 = vmatpush1.msra.mxu0 %v7348_v42  ;;  %1481 = vmatpush1.msra.mxu1 %v7491_v25  ;;  %10327 = vst [vmem:[#allocation34_spill] sm:$0xff] %v7595_v27 }
 0x453   :  { %1411 = vmatprep.subr.mxu0 %v7352_v30  ;;  %1482 = vmatprep.subr.mxu1 %v7495_v28 }
 0x454   :  { %1412 = vmatpush1.msra.mxu0 %v7356_v45  ;;  %1483 = vmatpush1.msra.mxu1 %v7499_v4 }
 0x455   :  { %1413 = vmatprep.subr.mxu0 %v7360_v22  ;;  %1484 = vmatprep.subr.mxu1 %v7503_v41 }
 0x456   :  { %1414 = vmatpush1.msra.mxu0 %v7364_v44  ;;  %1485 = vmatpush1.msra.mxu1 %v7507_v36 }
 0x457   :  { %1415 = vmatprep.subr.mxu0 %v7368_v46  ;;  %1486 = vmatprep.subr.mxu1 %v7511_v0 }
 0x458   :  { %1416 = vmatpush1.msra.mxu0 %v7372_v47  ;;  %1487 = vmatpush1.msra.mxu1 %v7515_v34 }
 0x459   :  { %1417 = vmatprep.subr.mxu0 %v7376_v48  ;;  %1488 = vmatprep.subr.mxu1 %v7519_v43 }
 0x45a   :  { %1418 = vmatpush1.msra.mxu0 %v7380_v49  ;;  %1489 = vmatpush1.msra.mxu1 %v7523_v32 }
 0x45b   :  { %1419 = vmatprep.subr.mxu0 %v7384_v50  ;;  %1490 = vmatprep.subr.mxu1 %v7527_v35 }
 0x45c   :  { %1420 = vmatpush1.msra.mxu0 %v7388_v51  ;;  %1491 = vmatpush1.msra.mxu1 %v7531_v31 }
 0x45d   :  { %1421 = vmatprep.subr.mxu0 %v7392_v52  ;;  %1492 = vmatprep.subr.mxu1 %v7535_v8 }
 0x45e   :  { %1422 = vmatpush1.msra.mxu0 %v7396_v53  ;;  %1493 = vmatpush1.msra.mxu1 %v7539_v39 }
 0x45f   :  { %1423 = vmatprep.subr.mxu0 %v7400_v54  ;;  %1494 = vmatprep.subr.mxu1 %v7543_v6 }
 0x460   :  { %1424 = vmatpush1.msra.mxu0 %v7404_v55  ;;  %1495 = vmatpush1.msra.mxu1 %v7547_v9 }
 0x461   :  { %1425 = vmatprep.subr.mxu0 %v7408_v56  ;;  %1496 = vmatprep.subr.mxu1 %v7551_v11 }
 0x462   :  { %1426 = vmatpush1.msra.mxu0 %v7412_v57  ;;  %1497 = vmatpush1.msra.mxu1 %v7555_v14 }
 0x463   :  { %1427 = vmatprep.subr.mxu0 %v7416_v58  ;;  %1498 = vmatprep.subr.mxu1 %v7559_v16 }
 0x464   :  { %1428 = vmatpush1.msra.mxu0 %v7420_v59  ;;  %1499 = vmatpush1.msra.mxu1 %v7563_v19 }
 0x465   :  { %1429 = vmatprep.subr.mxu0 %v7424_v60  ;;  %1500 = vmatprep.subr.mxu1 %v7567_v23 }
 0x466   :  { %1430 = vmatpush1.msra.mxu0 %v7428_v61  ;;  %1501 = vmatpush1.msra.mxu1 %v7571_v26 }
 0x467   :  { %1431 = vmatprep.subr.mxu0 %v7432_v62  ;;  %1502 = vmatprep.subr.mxu1 %v7575_v40 }
 0x468   :  { %1432 = vmatpush1.msra.mxu0 %v7436_v63  ;;  %1503 = vmatpush1.msra.mxu1 %v7579_v29 }
 0x469   :  { %1433 = vmatprep.subr.mxu0 %v7440_v1  ;;  %1504 = vmatprep.subr.mxu1 %v7583_v24  ;;  %v10335_v24 = vld [vmem:[#allocation47_spill] sm:$0xff] }
 0x46a   :  { %1434 = vmatpush1.msra.mxu0 %v7444_v2  ;;  %1505 = vmatpush1.msra.mxu1 %v7587_v38  ;;  %v10334_v2 = vld [vmem:[#allocation48_spill] sm:$0xff] }
 0x46b   :  { %1435 = vmatprep.subr.mxu0 %v7448_v3  ;;  %1506 = vmatprep.subr.mxu1 %v7591_v20  ;;  %v7607_v20 = vld [vmem:[#allocation4 + $0x18] sm:$0xff] }
 0x46c   :  { %1436 = vmatpush1.msra.mxu0 %v7452_v5  ;;  %1507 = vmatpush1.msra.mxu1 %v7595_v27  ;;  %10330 = vst [vmem:[#allocation25_spill] sm:$0xff] %v7607_v20 }
 0x46d   :  { %1437 = vmatprep.subr.mxu0 %v7456_v7  ;;  %1508 = vmatprep.subr.mxu1 %v7599_v13  ;;  %v7612_v7 = vld [vmem:[#allocation4 + $0x10] sm:$0xff] }
 0x46e   :  { %1438 = vmatpush1.msra.mxu0 %v7460_v10  ;;  %1509 = vmatpush1.msra.mxu1 %v7603_v18  ;;  %10331 = vst [vmem:[#allocation36_spill] sm:$0xff] %v7612_v7 }
 0x46f   :  { %1439 = vmatprep.subr.mxu0 %v7464_v12  ;;  %1510 = vmatprep.subr.mxu1 %v7607_v20  ;;  %v10332_v12 = vld [vmem:[#allocation64_spill] sm:$0xff]  ;;  %v10333_v20 = vld [vmem:[#allocation65_spill] sm:$0xff] }
 0x470   :  { %1440 = vmatpush1.msra.mxu0 %v7468_v15  ;;  %1473 = vmatprep.mubr.f32.mxu0 %v10300_v33 }
 0x471   :  { %1511 = vmatpush1.msra.mxu1 %v7612_v7  ;;  %1544 = vmatprep.mubr.f32.mxu1 %v10300_v33 }
 0x472   :  { %1589 = vmatprep.subr.mxu0 %v7332_v37  ;;  %1660 = vmatprep.subr.mxu1 %v7475_v17 }
 0x511   :  { %v1295_v18 = vpop.f32.mrf.mxu0  ;;  %v1366_v15 = vpop.f32.mrf.mxu1 }
 0x512   :  { %v1371_v10 = vadd.f32 %v1295_v18, %v10332_v12  ;;  %v1373_v33 = vadd.f32 %v1366_v15, %v10335_v24  ;;  %v10338_v15 = vld [vmem:[#allocation55_spill] sm:$0xff]  ;;  %v10342_v24 = vld [vmem:[#allocation42_spill] sm:$0xff] }
 0x513   :  { %v1297_v13 = vpop.f32.mrf.mxu0  ;;  %v1368_v38 = vpop.f32.mrf.mxu1 }
 0x514   :  { %v5781_v27 = vmul.f32 -1.442695, %v1371_v10  ;;  %v1372_v5 = vadd.f32 %v1297_v13, %v10333_v20  ;;  %v1374_v7 = vadd.f32 %v1368_v38, %v10334_v2  ;;  %v10343_v38 = vld [vmem:[#allocation23_spill] sm:$0xff] }
 0x516   :  { %5982 = vpow2.f32 %v5781_v27  ;;  %v5782_v3 = vmul.f32 -1.442695, %v1372_v5  ;;  %v5783_v1 = vmul.f32 -1.442695, %v1374_v7 }
 0x518   :  { %5984 = vpow2.f32 %v5782_v3 }
 0x519   :  { %5986 = vtanh.f32 %v1373_v33 }
 0x51a   :  { %5988 = vpow2.f32 %v5783_v1  ;;  %v10337_v1 = vld [vmem:[#allocation32_spill] sm:$0xff] }
 0x523   :  { %v5983_v37 = vpop.eup %5982 }
 0x524   :  { %v1378_v29 = vadd.f32 1.0, %v5983_v37 }
 0x525   :  { %v5985_v17 = vpop.eup %5984 }
 0x526   :  { %5990 = vrcp.f32 %v1378_v29  ;;  %v1384_v18 = vadd.f32 1.0, %v5985_v17  ;;  %v5987_v10 = vpop.eup %5986  ;;  %v10339_v17 = vld [vmem:[#allocation22_spill] sm:$0xff]  ;;  %v10341_v29 = vld [vmem:[#allocation33_spill] sm:$0xff] }
 0x527   :  { %v5989_v20 = vpop.eup %5988 }
 0x528   :  { %5992 = vrcp.f32 %v1384_v18  ;;  %v1391_v3 = vadd.f32 1.0, %v5989_v20  ;;  %v10344_v18 = vld [vmem:[#allocation41_spill] sm:$0xff] }
 0x529   :  { %v10346_v20 = vld [vmem:[#allocation29_spill] sm:$0xff] }
 0x52a   :  { %5994 = vrcp.f32 %v1391_v3  ;;  %v10350_v3 = vld [vmem:[#allocation30_spill] sm:$0xff] }
 0x533   :  { %v5991_v13 = vpop.eup %5990 }
 0x534   :  { %v1395_v12 = vmul.f32 %v5991_v13, %v5987_v10  ;;  %v10345_v10 = vld [vmem:[#allocation34_spill] sm:$0xff]  ;;  %v10347_v13 = vld [vmem:[#allocation24_spill] sm:$0xff] }
 0x535   :  { %v5993_v5 = vpop.eup %5992 }
 0x536   :  { %v1394_v27 = vmul.f32 %v5993_v5, %v7483_v21  ;;  %v10340_v21 = vld [vmem:[#allocation59_spill] sm:$0xff] }
 0x537   :  { %v5995_v37 = vpop.eup %5994  ;;  %v10349_v5 = vld [vmem:[#allocation35_spill] sm:$0xff] }
 0x538   :  { %v7623_v2 = vadd.f32 %v1395_v12, %v1394_v27  ;;  %v10348_v12 = vld [vmem:[#allocation19_spill] sm:$0xff]  ;;  %v10351_v27 = vld [vmem:[#allocation25_spill] sm:$0xff] }
 0x53a   :  { %5996 = vtanh.f32 %v7623_v2 }
 0x547   :  { %v5997_v33 = vpop.eup %5996 }
 0x548   :  { %v7626_v7 = vmul.f32 %v5997_v33, %v5995_v37  ;;  %v10352_v37 = vld [vmem:[#allocation20_spill] sm:$0xff]  ;;  %v10353_v33 = vmov 0.0  }
 0x54a   :  { %10336 = vst [vmem:[#allocation26_spill] sm:$0xff] %v7626_v7  ;;  %1474 = vmatmul.mubr.f32.vlgmr.msra.gmra.mxu0 %v7626_v7  ;;  %1545 = vmatmul.mubr.f32.vlgmr.msra.gmra.mxu1 %v7626_v7  ;;  %v10354_v7 = vld [vmem:[#allocation36_spill] sm:$0xff] }
 0x54b   :  { %1590 = vmatpush1.msra.mxu0 %v7348_v42  ;;  %1661 = vmatpush1.msra.mxu1 %v7491_v25 }
 0x54c   :  { %1591 = vmatprep.subr.mxu0 %v7352_v30  ;;  %1662 = vmatprep.subr.mxu1 %v7495_v28 }
 0x54d   :  { %1592 = vmatpush1.msra.mxu0 %v7356_v45  ;;  %1663 = vmatpush1.msra.mxu1 %v7499_v4 }
 0x54e   :  { %1593 = vmatprep.subr.mxu0 %v7360_v22  ;;  %1664 = vmatprep.subr.mxu1 %v7503_v41 }
 0x54f   :  { %1594 = vmatpush1.msra.mxu0 %v7364_v44  ;;  %1665 = vmatpush1.msra.mxu1 %v7507_v36 }
 0x550   :  { %1595 = vmatprep.subr.mxu0 %v7368_v46  ;;  %1666 = vmatprep.subr.mxu1 %v7511_v0 }
 0x551   :  { %1596 = vmatpush1.msra.mxu0 %v7372_v47  ;;  %1667 = vmatpush1.msra.mxu1 %v7515_v34 }
 0x552   :  { %1597 = vmatprep.subr.mxu0 %v7376_v48  ;;  %1668 = vmatprep.subr.mxu1 %v7519_v43 }
 0x553   :  { %1598 = vmatpush1.msra.mxu0 %v7380_v49  ;;  %1669 = vmatpush1.msra.mxu1 %v7523_v32 }
 0x554   :  { %1599 = vmatprep.subr.mxu0 %v7384_v50  ;;  %1670 = vmatprep.subr.mxu1 %v7527_v35 }
 0x555   :  { %1600 = vmatpush1.msra.mxu0 %v7388_v51  ;;  %1671 = vmatpush1.msra.mxu1 %v7531_v31 }
 0x556   :  { %1601 = vmatprep.subr.mxu0 %v7392_v52  ;;  %1672 = vmatprep.subr.mxu1 %v7535_v8 }
 0x557   :  { %1602 = vmatpush1.msra.mxu0 %v7396_v53  ;;  %1673 = vmatpush1.msra.mxu1 %v7539_v39 }
 0x558   :  { %1603 = vmatprep.subr.mxu0 %v7400_v54  ;;  %1674 = vmatprep.subr.mxu1 %v7543_v6 }
 0x559   :  { %1604 = vmatpush1.msra.mxu0 %v7404_v55  ;;  %1675 = vmatpush1.msra.mxu1 %v7547_v9 }
 0x55a   :  { %1605 = vmatprep.subr.mxu0 %v7408_v56  ;;  %1676 = vmatprep.subr.mxu1 %v7551_v11 }
 0x55b   :  { %1606 = vmatpush1.msra.mxu0 %v7412_v57  ;;  %1677 = vmatpush1.msra.mxu1 %v7555_v14 }
 0x55c   :  { %1607 = vmatprep.subr.mxu0 %v7416_v58  ;;  %1678 = vmatprep.subr.mxu1 %v7559_v16 }
 0x55d   :  { %1608 = vmatpush1.msra.mxu0 %v7420_v59  ;;  %1679 = vmatpush1.msra.mxu1 %v7563_v19 }
 0x55e   :  { %1609 = vmatprep.subr.mxu0 %v7424_v60  ;;  %1680 = vmatprep.subr.mxu1 %v7567_v23 }
 0x55f   :  { %1610 = vmatpush1.msra.mxu0 %v7428_v61  ;;  %1681 = vmatpush1.msra.mxu1 %v7571_v26 }
 0x560   :  { %1611 = vmatprep.subr.mxu0 %v7432_v62  ;;  %1682 = vmatprep.subr.mxu1 %v7575_v40 }
 0x561   :  { %1612 = vmatpush1.msra.mxu0 %v7436_v63  ;;  %1683 = vmatpush1.msra.mxu1 %v10337_v1 }
 0x562   :  { %1613 = vmatprep.subr.mxu0 %v10338_v15  ;;  %1684 = vmatprep.subr.mxu1 %v10339_v17  ;;  %v10360_v17 = vld [vmem:[#allocation49_spill] sm:$0xff] }
 0x563   :  { %1614 = vmatpush1.msra.mxu0 %v10340_v21  ;;  %1685 = vmatpush1.msra.mxu1 %v10341_v29  ;;  %v10359_v21 = vld [vmem:[#allocation50_spill] sm:$0xff] }
 0x564   :  { %1615 = vmatprep.subr.mxu0 %v10342_v24  ;;  %1686 = vmatprep.subr.mxu1 %v10343_v38 }
 0x565   :  { %1616 = vmatpush1.msra.mxu0 %v10344_v18  ;;  %1687 = vmatpush1.msra.mxu1 %v10345_v10  ;;  %v10355_v10 = vld [vmem:[#allocation18_spill] sm:$0xff] }
 0x566   :  { %1617 = vmatprep.subr.mxu0 %v10346_v20  ;;  %1688 = vmatprep.subr.mxu1 %v10347_v13  ;;  %v10356_v20 = vld [vmem:[#allocation31_spill] sm:$0xff] }
 0x567   :  { %1618 = vmatpush1.msra.mxu0 %v10348_v12  ;;  %1689 = vmatpush1.msra.mxu1 %v10349_v5  ;;  %v10357_v12 = vld [vmem:[#allocation66_spill] sm:$0xff] }
 0x568   :  { %1619 = vmatprep.subr.mxu0 %v10350_v3  ;;  %1690 = vmatprep.subr.mxu1 %v10351_v27  ;;  %v10358_v3 = vld [vmem:[#allocation67_spill] sm:$0xff] }
 0x569   :  { %1620 = vmatpush1.msra.mxu0 %v10352_v37  ;;  %1653 = vmatprep.mubr.f32.mxu0 %v10353_v33 }
 0x56a   :  { %1691 = vmatpush1.msra.mxu1 %v10354_v7  ;;  %1724 = vmatprep.mubr.f32.mxu1 %v10353_v33 }
 0x56b   :  { %1769 = vmatprep.subr.mxu0 %v10355_v10  ;;  %1840 = vmatprep.subr.mxu1 %v10356_v20 }
 0x60a   :  { %v1475_v13 = vpop.f32.mrf.mxu0  ;;  %v1546_v27 = vpop.f32.mrf.mxu1 }
 0x60b   :  { %v1551_v18 = vadd.f32 %v1475_v13, %v10357_v12  ;;  %v1553_v33 = vadd.f32 %v1546_v27, %v10360_v17 }
 0x60c   :  { %v1477_v5 = vpop.f32.mrf.mxu0  ;;  %v1548_v29 = vpop.f32.mrf.mxu1 }
 0x60d   :  { %v5784_v38 = vmul.f32 -1.442695, %v1551_v18  ;;  %v1552_v24 = vadd.f32 %v1477_v5, %v10358_v3  ;;  %v1554_v7 = vadd.f32 %v1548_v29, %v10359_v21 }
 0x60f   :  { %5998 = vpow2.f32 %v5784_v38  ;;  %v5785_v37 = vmul.f32 -1.442695, %v1552_v24  ;;  %v5786_v15 = vmul.f32 -1.442695, %v1554_v7 }
 0x611   :  { %6000 = vpow2.f32 %v5785_v37 }
 0x612   :  { %6002 = vtanh.f32 %v1553_v33 }
 0x613   :  { %6004 = vpow2.f32 %v5786_v15 }
 0x61c   :  { %v5999_v10 = vpop.eup %5998 }
 0x61d   :  { %v1558_v1 = vadd.f32 1.0, %v5999_v10  ;;  %v2010_v10 = vld [vmem:[#allocation6 + $0x1e0] sm:$0xff] }
 0x61e   :  { %v6001_v20 = vpop.eup %6000 }
 0x61f   :  { %6006 = vrcp.f32 %v1558_v1  ;;  %v1564_v13 = vadd.f32 1.0, %v6001_v20  ;;  %v6003_v18 = vpop.eup %6002  ;;  %v2012_v20 = vld [vmem:[#allocation6 + $0x1f0] sm:$0xff] }
 0x620   :  { %v6005_v12 = vpop.eup %6004 }
 0x621   :  { %6008 = vrcp.f32 %v1564_v13  ;;  %v1571_v3 = vadd.f32 1.0, %v6005_v12  ;;  %v2007_v13 = vld [vmem:[#allocation6 + $0x1c8] sm:$0xff]  ;;  %v2006_v12 = vld [vmem:[#allocation6 + $0x1c0] sm:$0xff] }
 0x623   :  { %6010 = vrcp.f32 %v1571_v3  ;;  %v2002_v3 = vld [vmem:[#allocation6 + $0x1a0] sm:$0xff] }
 0x62c   :  { %v6007_v38 = vpop.eup %6006 }
 0x62d   :  { %v1575_v5 = vmul.f32 %v6007_v38, %v6003_v18  ;;  %v2009_v18 = vld [vmem:[#allocation6 + $0x1d8] sm:$0xff]  ;;  %v2008_v38 = vld [vmem:[#allocation6 + $0x1d0] sm:$0xff] }
 0x62e   :  { %v6009_v24 = vpop.eup %6008 }
 0x62f   :  { %v1574_v37 = vmul.f32 %v6009_v24, %v7623_v2  ;;  %v2005_v24 = vld [vmem:[#allocation6 + $0x1b8] sm:$0xff] }
 0x630   :  { %v6011_v7 = vpop.eup %6010 }
 0x631   :  { %v7701_v21 = vadd.f32 %v1575_v5, %v1574_v37  ;;  %v2003_v5 = vld [vmem:[#allocation6 + $0x1a8] sm:$0xff]  ;;  %v2004_v37 = vld [vmem:[#allocation6 + $0x1b0] sm:$0xff] }
 0x633   :  { %6012 = vtanh.f32 %v7701_v21 }
 0x640   :  { %v6013_v17 = vpop.eup %6012 }
 0x641   :  { %v7704_v29 = vmul.f32 %v6013_v17, %v6011_v7  ;;  %v2001_v7 = vld [vmem:[#allocation6 + $0x198] sm:$0xff]  ;;  %v1998_v17 = vld [vmem:[#allocation6 + $0x180] sm:$0xff] }
 0x643   :  { %1654 = vmatmul.mubr.f32.vlgmr.msra.gmra.mxu0 %v7704_v29  ;;  %1725 = vmatmul.mubr.f32.vlgmr.msra.gmra.mxu1 %v7704_v29 }
 0x644   :  { %1770 = vmatpush1.msra.mxu0 %v7348_v42  ;;  %1841 = vmatpush1.msra.mxu1 %v7491_v25  ;;  %v10361_v42 = vld [vmem:[#allocation32_spill] sm:$0xff] }
 0x645   :  { %1771 = vmatprep.subr.mxu0 %v7352_v30  ;;  %1842 = vmatprep.subr.mxu1 %v7495_v28  ;;  %v10362_v30 = vld [vmem:[#allocation55_spill] sm:$0xff] }
 0x646   :  { %1772 = vmatpush1.msra.mxu0 %v7356_v45  ;;  %1843 = vmatpush1.msra.mxu1 %v7499_v4  ;;  %v10363_v45 = vld [vmem:[#allocation22_spill] sm:$0xff]  ;;  %v10380_v4 = vld [vmem:[#allocation69_spill] sm:$0xff] }
 0x647   :  { %1773 = vmatprep.subr.mxu0 %v7360_v22  ;;  %1844 = vmatprep.subr.mxu1 %v7503_v41  ;;  %v10364_v22 = vld [vmem:[#allocation59_spill] sm:$0xff] }
 0x648   :  { %1774 = vmatpush1.msra.mxu0 %v7364_v44  ;;  %1845 = vmatpush1.msra.mxu1 %v7507_v36  ;;  %v10365_v44 = vld [vmem:[#allocation33_spill] sm:$0xff] }
 0x649   :  { %1775 = vmatprep.subr.mxu0 %v7368_v46  ;;  %1846 = vmatprep.subr.mxu1 %v7511_v0  ;;  %v10366_v46 = vld [vmem:[#allocation42_spill] sm:$0xff] }
 0x64a   :  { %1776 = vmatpush1.msra.mxu0 %v7372_v47  ;;  %1847 = vmatpush1.msra.mxu1 %v7515_v34  ;;  %v10367_v47 = vld [vmem:[#allocation23_spill] sm:$0xff] }
 0x64b   :  { %1777 = vmatprep.subr.mxu0 %v7376_v48  ;;  %1848 = vmatprep.subr.mxu1 %v7519_v43  ;;  %v10368_v48 = vld [vmem:[#allocation41_spill] sm:$0xff]  ;;  %v10381_v43 = vld [vmem:[#allocation54_spill] sm:$0xff] }
 0x64c   :  { %1778 = vmatpush1.msra.mxu0 %v7380_v49  ;;  %1849 = vmatpush1.msra.mxu1 %v7523_v32  ;;  %v10369_v49 = vld [vmem:[#allocation34_spill] sm:$0xff] }
 0x64d   :  { %1779 = vmatprep.subr.mxu0 %v7384_v50  ;;  %1850 = vmatprep.subr.mxu1 %v7527_v35  ;;  %v10370_v50 = vld [vmem:[#allocation29_spill] sm:$0xff]  ;;  %v10382_v35 = vld [vmem:[#allocation51_spill] sm:$0xff] }
 0x64e   :  { %1780 = vmatpush1.msra.mxu0 %v7388_v51  ;;  %1851 = vmatpush1.msra.mxu1 %v7531_v31  ;;  %v10371_v51 = vld [vmem:[#allocation24_spill] sm:$0xff] }
 0x64f   :  { %1781 = vmatprep.subr.mxu0 %v7392_v52  ;;  %1852 = vmatprep.subr.mxu1 %v7535_v8  ;;  %v10372_v52 = vld [vmem:[#allocation19_spill] sm:$0xff] }
 0x650   :  { %1782 = vmatpush1.msra.mxu0 %v7396_v53  ;;  %1853 = vmatpush1.msra.mxu1 %v7539_v39  ;;  %v10373_v53 = vld [vmem:[#allocation35_spill] sm:$0xff] }
 0x651   :  { %1783 = vmatprep.subr.mxu0 %v7400_v54  ;;  %1854 = vmatprep.subr.mxu1 %v7543_v6  ;;  %v10374_v54 = vld [vmem:[#allocation30_spill] sm:$0xff] }
 0x652   :  { %1784 = vmatpush1.msra.mxu0 %v7404_v55  ;;  %1855 = vmatpush1.msra.mxu1 %v7547_v9  ;;  %v10375_v55 = vld [vmem:[#allocation25_spill] sm:$0xff] }
 0x653   :  { %1785 = vmatprep.subr.mxu0 %v7408_v56  ;;  %1856 = vmatprep.subr.mxu1 %v7551_v11  ;;  %v10376_v56 = vld [vmem:[#allocation20_spill] sm:$0xff] }
 0x654   :  { %1786 = vmatpush1.msra.mxu0 %v7412_v57  ;;  %1857 = vmatpush1.msra.mxu1 %v7555_v14  ;;  %v10377_v57 = vld [vmem:[#allocation36_spill] sm:$0xff] }
 0x655   :  { %1787 = vmatprep.subr.mxu0 %v7416_v58  ;;  %1858 = vmatprep.subr.mxu1 %v7559_v16  ;;  %v10378_v58 = vmov 0.0  }
 0x656   :  { %1788 = vmatpush1.msra.mxu0 %v7420_v59  ;;  %1859 = vmatpush1.msra.mxu1 %v7563_v19  ;;  %v2011_v59 = vld [vmem:[#allocation6 + $0x1e8] sm:$0xff] }
 0x657   :  { %1789 = vmatprep.subr.mxu0 %v7424_v60  ;;  %1860 = vmatprep.subr.mxu1 %v7567_v23  ;;  %v2013_v60 = vld [vmem:[#allocation6 + $0x1f8] sm:$0xff] }
 0x658   :  { %1790 = vmatpush1.msra.mxu0 %v7428_v61  ;;  %1861 = vmatpush1.msra.mxu1 %v7571_v26 }
 0x659   :  { %1791 = vmatprep.subr.mxu0 %v7432_v62  ;;  %1862 = vmatprep.subr.mxu1 %v7575_v40  ;;  %v10379_v62 = vld [vmem:[#allocation68_spill] sm:$0xff] }
 0x65a   :  { %1792 = vmatpush1.msra.mxu0 %v7436_v63  ;;  %1863 = vmatpush1.msra.mxu1 %v10361_v42  ;;  %v2000_v42 = vld [vmem:[#allocation6 + $0x190] sm:$0xff] }
 0x65b   :  { %1793 = vmatprep.subr.mxu0 %v10362_v30  ;;  %1864 = vmatprep.subr.mxu1 %v10363_v45  ;;  %v1995_v30 = vld [vmem:[#allocation6 + $0x168] sm:$0xff]  ;;  %v1997_v45 = vld [vmem:[#allocation6 + $0x178] sm:$0xff] }
 0x65c   :  { %1794 = vmatpush1.msra.mxu0 %v10364_v22  ;;  %1865 = vmatpush1.msra.mxu1 %v10365_v44  ;;  %v1994_v22 = vld [vmem:[#allocation6 + $0x160] sm:$0xff]  ;;  %v1996_v44 = vld [vmem:[#allocation6 + $0x170] sm:$0xff] }
 0x65d   :  { %1795 = vmatprep.subr.mxu0 %v10366_v46  ;;  %1866 = vmatprep.subr.mxu1 %v10367_v47  ;;  %v1991_v46 = vld [vmem:[#allocation6 + $0x148] sm:$0xff]  ;;  %v1993_v47 = vld [vmem:[#allocation6 + $0x158] sm:$0xff] }
 0x65e   :  { %1796 = vmatpush1.msra.mxu0 %v10368_v48  ;;  %1867 = vmatpush1.msra.mxu1 %v10369_v49  ;;  %v1990_v48 = vld [vmem:[#allocation6 + $0x140] sm:$0xff]  ;;  %v1992_v49 = vld [vmem:[#allocation6 + $0x150] sm:$0xff] }
 0x65f   :  { %1797 = vmatprep.subr.mxu0 %v10370_v50  ;;  %1868 = vmatprep.subr.mxu1 %v10371_v51  ;;  %v1987_v50 = vld [vmem:[#allocation6 + $0x128] sm:$0xff]  ;;  %v1989_v51 = vld [vmem:[#allocation6 + $0x138] sm:$0xff] }
 0x660   :  { %1798 = vmatpush1.msra.mxu0 %v10372_v52  ;;  %1869 = vmatpush1.msra.mxu1 %v10373_v53  ;;  %v1986_v52 = vld [vmem:[#allocation6 + $0x120] sm:$0xff]  ;;  %v1988_v53 = vld [vmem:[#allocation6 + $0x130] sm:$0xff] }
 0x661   :  { %1799 = vmatprep.subr.mxu0 %v10374_v54  ;;  %1870 = vmatprep.subr.mxu1 %v10375_v55  ;;  %v1983_v54 = vld [vmem:[#allocation6 + $0x108] sm:$0xff]  ;;  %v1985_v55 = vld [vmem:[#allocation6 + $0x118] sm:$0xff] }
 0x662   :  { %1800 = vmatpush1.msra.mxu0 %v10376_v56  ;;  %1871 = vmatpush1.msra.mxu1 %v10377_v57  ;;  %v1982_v56 = vld [vmem:[#allocation6 + $0x100] sm:$0xff]  ;;  %v1984_v57 = vld [vmem:[#allocation6 + $0x110] sm:$0xff] }
 0x663   :  { %1833 = vmatprep.mubr.f32.mxu0 %v10378_v58  ;;  %1904 = vmatprep.mubr.f32.mxu1 %v10378_v58 }
 0x664   :  { %2036 = vmatprep.subr.mxu0 %v2011_v59  ;;  %2149 = vmatprep.subr.mxu1 %v2013_v60  ;;  %v1979_v59 = vld [vmem:[#allocation6 + $0xe8] sm:$0xff]  ;;  %v1981_v60 = vld [vmem:[#allocation6 + $0xf8] sm:$0xff] }
 0x703   :  { %v1655_v61 = vpop.f32.mrf.mxu0  ;;  %v1726_v36 = vpop.f32.mrf.mxu1 }
 0x704   :  { %v1731_v63 = vadd.f32 %v1655_v61, %v10379_v62  ;;  %v1733_v31 = vadd.f32 %v1726_v36, %v10382_v35  ;;  %v1978_v61 = vld [vmem:[#allocation6 + $0xe0] sm:$0xff]  ;;  %v1980_v62 = vld [vmem:[#allocation6 + $0xf0] sm:$0xff]  ;;  %v1973_v36 = vld [vmem:[#allocation6 + $0xb8] sm:$0xff] }
 0x705   :  { %v1657_v25 = vpop.f32.mrf.mxu0  ;;  %v1728_v34 = vpop.f32.mrf.mxu1  ;;  %v1966_v35 = vld [vmem:[#allocation6 + $0x80] sm:$0xff] }
 0x706   :  { %v5787_v28 = vmul.f32 -1.442695, %v1731_v63  ;;  %v1732_v41 = vadd.f32 %v1657_v25, %v10380_v4  ;;  %v1734_v32 = vadd.f32 %v1728_v34, %v10381_v43  ;;  %v1975_v63 = vld [vmem:[#allocation6 + $0xc8] sm:$0xff]  ;;  %v1977_v25 = vld [vmem:[#allocation6 + $0xd8] sm:$0xff]  ;;  %v1976_v4 = vld [vmem:[#allocation6 + $0xd0] sm:$0xff] }
 0x707   :  { %v1972_v34 = vld [vmem:[#allocation6 + $0xb0] sm:$0xff]  ;;  %v1967_v43 = vld [vmem:[#allocation6 + $0x88] sm:$0xff] }
 0x708   :  { %6014 = vpow2.f32 %v5787_v28  ;;  %v5788_v0 = vmul.f32 -1.442695, %v1732_v41  ;;  %v5789_v8 = vmul.f32 -1.442695, %v1734_v32  ;;  %v1974_v28 = vld [vmem:[#allocation6 + $0xc0] sm:$0xff]  ;;  %v1971_v41 = vld [vmem:[#allocation6 + $0xa8] sm:$0xff] }
 0x709   :  { %v1969_v32 = vld [vmem:[#allocation6 + $0x98] sm:$0xff] }
 0x70a   :  { %6016 = vpow2.f32 %v5788_v0  ;;  %v1970_v0 = vld [vmem:[#allocation6 + $0xa0] sm:$0xff] }
 0x70b   :  { %6018 = vtanh.f32 %v1733_v31  ;;  %v1968_v31 = vld [vmem:[#allocation6 + $0x90] sm:$0xff] }
 0x70c   :  { %6020 = vpow2.f32 %v5789_v8  ;;  %v1963_v8 = vld [vmem:[#allocation6 + $0x68] sm:$0xff] }
 0x715   :  { %v6015_v39 = vpop.eup %6014 }
 0x716   :  { %v1738_v6 = vadd.f32 1.0, %v6015_v39  ;;  %v1965_v39 = vld [vmem:[#allocation6 + $0x78] sm:$0xff] }
 0x717   :  { %v6017_v9 = vpop.eup %6016 }
 0x718   :  { %6022 = vrcp.f32 %v1738_v6  ;;  %v1744_v11 = vadd.f32 1.0, %v6017_v9  ;;  %v6019_v14 = vpop.eup %6018  ;;  %v1962_v6 = vld [vmem:[#allocation6 + $0x60] sm:$0xff]  ;;  %v1964_v9 = vld [vmem:[#allocation6 + $0x70] sm:$0xff] }
 0x719   :  { %v6021_v16 = vpop.eup %6020 }
 0x71a   :  { %6024 = vrcp.f32 %v1744_v11  ;;  %v1751_v40 = vadd.f32 1.0, %v6021_v16  ;;  %v1959_v11 = vld [vmem:[#allocation6 + $0x48] sm:$0xff]  ;;  %v1958_v16 = vld [vmem:[#allocation6 + $0x40] sm:$0xff] }
 0x71c   :  { %6026 = vrcp.f32 %v1751_v40  ;;  %v1954_v40 = vld [vmem:[#allocation6 + $0x20] sm:$0xff] }
 0x725   :  { %v6023_v19 = vpop.eup %6022 }
 0x726   :  { %v1755_v23 = vmul.f32 %v6023_v19, %v6019_v14  ;;  %v1961_v14 = vld [vmem:[#allocation6 + $0x58] sm:$0xff]  ;;  %v1960_v19 = vld [vmem:[#allocation6 + $0x50] sm:$0xff] }
 0x727   :  { %v6025_v26 = vpop.eup %6024 }
 0x728   :  { %v1754_v2 = vmul.f32 %v6025_v26, %v7701_v21  ;;  %v1999_v21 = vld [vmem:[#allocation6 + $0x188] sm:$0xff]  ;;  %v1957_v26 = vld [vmem:[#allocation6 + $0x38] sm:$0xff] }
 0x729   :  { %v6027_v15 = vpop.eup %6026 }
 0x72a   :  { %v7777_v1 = vadd.f32 %v1755_v23, %v1754_v2  ;;  %v1955_v23 = vld [vmem:[#allocation6 + $0x28] sm:$0xff]  ;;  %v1956_v2 = vld [vmem:[#allocation6 + $0x30] sm:$0xff] }
 0x72c   :  { %6028 = vtanh.f32 %v7777_v1 }
 0x739   :  { %v6029_v27 = vpop.eup %6028 }
 0x73a   :  { %v7780_v33 = vmul.f32 %v6029_v27, %v6027_v15  ;;  %v1951_v15 = vld [vmem:[#allocation6 + $0x8] sm:$0xff]  ;;  %v1953_v27 = vld [vmem:[#allocation6 + $0x18] sm:$0xff] }
 0x73c   :  { %1834 = vmatmul.mubr.f32.vlgmr.msra.gmra.mxu0 %v7780_v33  ;;  %1905 = vmatmul.mubr.f32.vlgmr.msra.gmra.mxu1 %v7780_v33 }
 0x73d   :  { %2037 = vmatpush1.msra.mxu0 %v2010_v10  ;;  %2150 = vmatpush1.msra.mxu1 %v2012_v20  ;;  %v1950_v10 = vld [vmem:[#allocation6] sm:$0xff]  ;;  %v1952_v20 = vld [vmem:[#allocation6 + $0x10] sm:$0xff] }
 0x73e   :  { %2038 = vmatprep.subr.mxu0 %v2007_v13  ;;  %2151 = vmatprep.subr.mxu1 %v2009_v18  ;;  %v10383_v13 = vld [vmem:[#allocation71_spill] sm:$0xff] }
 0x73f   :  { %2039 = vmatpush1.msra.mxu0 %v2006_v12  ;;  %2152 = vmatpush1.msra.mxu1 %v2008_v38  ;;  %v680_v18 = vmax.f32 %v10383_v13, 0.0  ;;  %v10384_v12 = vld [vmem:[#allocation17_spill] sm:$0xff]  ;;  %v7956_v13 = vld [vmem:[#allocation8 + $0x60] sm:$0xff] }
 0x740   :  { %2040 = vmatprep.subr.mxu0 %v2003_v5  ;;  %2153 = vmatprep.subr.mxu1 %v2005_v24  ;;  %v859_v38 = vmax.f32 %v10384_v12, 0.0  ;;  %v10385_v5 = vld [vmem:[#allocation15_spill] sm:$0xff]  ;;  %10397 = vst [vmem:[#allocation63_spill] sm:$0xff] %v7956_v13  ;;  %v7962_v12 = vld [vmem:[#allocation8 + $0x48] sm:$0xff] }
 0x741   :  { %2041 = vmatpush1.msra.mxu0 %v2002_v3  ;;  %2154 = vmatpush1.msra.mxu1 %v2004_v37  ;;  %v1039_v24 = vmax.f32 %v10385_v5, 0.0  ;;  %v10386_v3 = vld [vmem:[#allocation21_spill] sm:$0xff]  ;;  %10399 = vst [vmem:[#allocation45_spill] sm:$0xff] %v7962_v12  ;;  %v7968_v5 = vld [vmem:[#allocation8 + $0x40] sm:$0xff] }
 0x742   :  { %2042 = vmatprep.subr.mxu0 %v1999_v21  ;;  %2155 = vmatprep.subr.mxu1 %v2001_v7  ;;  %v1219_v37 = vmax.f32 %v10386_v3, 0.0  ;;  %v10387_v21 = vld [vmem:[#allocation26_spill] sm:$0xff]  ;;  %10401 = vst [vmem:[#allocation65_spill] sm:$0xff] %v7968_v5  ;;  %v7974_v3 = vld [vmem:[#allocation8 + $0x28] sm:$0xff] }
 0x743   :  { %2043 = vmatpush1.msra.mxu0 %v1998_v17  ;;  %2156 = vmatpush1.msra.mxu1 %v2000_v42  ;;  %v1399_v7 = vmax.f32 %v10387_v21, 0.0  ;;  %v1579_v17 = vmax.f32 %v7704_v29, 0.0  ;;  %v1759_v42 = vmax.f32 %v7780_v33, 0.0  ;;  %v7812_v29 = vld [vmem:[#allocation8 + $0x1e0] sm:$0xff]  ;;  %v7818_v33 = vld [vmem:[#allocation8 + $0x1c8] sm:$0xff]  ;;  %10403 = vst [vmem:[#allocation47_spill] sm:$0xff] %v7974_v3 }
 0x744   :  { %2044 = vmatprep.subr.mxu0 %v1995_v30  ;;  %2157 = vmatprep.subr.mxu1 %v1997_v45  ;;  %v7807_v30 = vld [vmem:[#allocation8 + $0x1e8] sm:$0xff]  ;;  %v7809_v45 = vld [vmem:[#allocation8 + $0x1f8] sm:$0xff] }
 0x745   :  { %2045 = vmatpush1.msra.mxu0 %v1994_v22  ;;  %2158 = vmatpush1.msra.mxu1 %v1996_v44  ;;  %10388 = vst [vmem:[#allocation37_spill] sm:$0xff] %v7807_v30  ;;  %10389 = vst [vmem:[#allocation27_spill] sm:$0xff] %v7809_v45  ;;  %v7815_v22 = vld [vmem:[#allocation8 + $0x1f0] sm:$0xff]  ;;  %v7821_v44 = vld [vmem:[#allocation8 + $0x1d8] sm:$0xff] }
 0x746   :  { %2046 = vmatprep.subr.mxu0 %v1991_v46  ;;  %2159 = vmatprep.subr.mxu1 %v1993_v47  ;;  %v7824_v46 = vld [vmem:[#allocation8 + $0x1c0] sm:$0xff]  ;;  %v7827_v47 = vld [vmem:[#allocation8 + $0x1d0] sm:$0xff]  ;;  %v7979_v21 = vld [vmem:[#allocation8 + $0x38] sm:$0xff] }
 0x747   :  { %2047 = vmatpush1.msra.mxu0 %v1990_v48  ;;  %2160 = vmatpush1.msra.mxu1 %v1992_v49  ;;  %v7830_v48 = vld [vmem:[#allocation8 + $0x1a8] sm:$0xff]  ;;  %v7833_v49 = vld [vmem:[#allocation8 + $0x1b8] sm:$0xff]  ;;  %10405 = vst [vmem:[#allocation31_spill] sm:$0xff] %v7979_v21 }
 0x748   :  { %2048 = vmatprep.subr.mxu0 %v1987_v50  ;;  %2161 = vmatprep.subr.mxu1 %v1989_v51  ;;  %v7836_v50 = vld [vmem:[#allocation8 + $0x1a0] sm:$0xff]  ;;  %v7839_v51 = vld [vmem:[#allocation8 + $0x1b0] sm:$0xff] }
 0x749   :  { %2049 = vmatpush1.msra.mxu0 %v1986_v52  ;;  %2162 = vmatpush1.msra.mxu1 %v1988_v53  ;;  %v7842_v52 = vld [vmem:[#allocation8 + $0x188] sm:$0xff]  ;;  %v7845_v53 = vld [vmem:[#allocation8 + $0x198] sm:$0xff] }
 0x74a   :  { %2050 = vmatprep.subr.mxu0 %v1983_v54  ;;  %2163 = vmatprep.subr.mxu1 %v1985_v55  ;;  %v7848_v54 = vld [vmem:[#allocation8 + $0x180] sm:$0xff]  ;;  %v7851_v55 = vld [vmem:[#allocation8 + $0x190] sm:$0xff] }
 0x74b   :  { %2051 = vmatpush1.msra.mxu0 %v1982_v56  ;;  %2164 = vmatpush1.msra.mxu1 %v1984_v57  ;;  %v7854_v56 = vld [vmem:[#allocation8 + $0x168] sm:$0xff]  ;;  %v7857_v57 = vld [vmem:[#allocation8 + $0x178] sm:$0xff] }
 0x74c   :  { %2052 = vmatprep.subr.mxu0 %v1979_v59  ;;  %2165 = vmatprep.subr.mxu1 %v1981_v60  ;;  %v7860_v59 = vld [vmem:[#allocation8 + $0x160] sm:$0xff]  ;;  %v7863_v60 = vld [vmem:[#allocation8 + $0x170] sm:$0xff] }
 0x74d   :  { %2053 = vmatpush1.msra.mxu0 %v1978_v61  ;;  %2166 = vmatpush1.msra.mxu1 %v1980_v62  ;;  %v7866_v61 = vld [vmem:[#allocation8 + $0x148] sm:$0xff]  ;;  %v7869_v62 = vld [vmem:[#allocation8 + $0x158] sm:$0xff] }
 0x74e   :  { %2054 = vmatprep.subr.mxu0 %v1975_v63  ;;  %2167 = vmatprep.subr.mxu1 %v1977_v25  ;;  %v7872_v63 = vld [vmem:[#allocation8 + $0x140] sm:$0xff]  ;;  %v7875_v25 = vld [vmem:[#allocation8 + $0x150] sm:$0xff] }
 0x74f   :  { %2055 = vmatpush1.msra.mxu0 %v1974_v28  ;;  %2168 = vmatpush1.msra.mxu1 %v1976_v4  ;;  %v7878_v28 = vld [vmem:[#allocation8 + $0x128] sm:$0xff]  ;;  %v7881_v4 = vld [vmem:[#allocation8 + $0x138] sm:$0xff] }
 0x750   :  { %2056 = vmatprep.subr.mxu0 %v1971_v41  ;;  %2169 = vmatprep.subr.mxu1 %v1973_v36  ;;  %v7884_v41 = vld [vmem:[#allocation8 + $0x120] sm:$0xff]  ;;  %v7887_v36 = vld [vmem:[#allocation8 + $0x130] sm:$0xff] }
 0x751   :  { %2057 = vmatpush1.msra.mxu0 %v1970_v0  ;;  %2170 = vmatpush1.msra.mxu1 %v1972_v34  ;;  %v7890_v0 = vld [vmem:[#allocation8 + $0x108] sm:$0xff]  ;;  %v7893_v34 = vld [vmem:[#allocation8 + $0x118] sm:$0xff] }
 0x752   :  { %2058 = vmatprep.subr.mxu0 %v1967_v43  ;;  %2171 = vmatprep.subr.mxu1 %v1969_v32  ;;  %v7896_v43 = vld [vmem:[#allocation8 + $0x100] sm:$0xff]  ;;  %v7899_v32 = vld [vmem:[#allocation8 + $0x110] sm:$0xff] }
 0x753   :  { %2059 = vmatpush1.msra.mxu0 %v1966_v35  ;;  %2172 = vmatpush1.msra.mxu1 %v1968_v31  ;;  %v7902_v35 = vld [vmem:[#allocation8 + $0xe8] sm:$0xff]  ;;  %v7905_v31 = vld [vmem:[#allocation8 + $0xf8] sm:$0xff] }
 0x754   :  { %2060 = vmatprep.subr.mxu0 %v1963_v8  ;;  %2173 = vmatprep.subr.mxu1 %v1965_v39  ;;  %v7908_v8 = vld [vmem:[#allocation8 + $0xe0] sm:$0xff]  ;;  %v7911_v39 = vld [vmem:[#allocation8 + $0xf0] sm:$0xff] }
 0x755   :  { %2061 = vmatpush1.msra.mxu0 %v1962_v6  ;;  %2174 = vmatpush1.msra.mxu1 %v1964_v9  ;;  %v7914_v6 = vld [vmem:[#allocation8 + $0xc8] sm:$0xff]  ;;  %v7917_v9 = vld [vmem:[#allocation8 + $0xd8] sm:$0xff] }
 0x756   :  { %2062 = vmatprep.subr.mxu0 %v1959_v11  ;;  %2175 = vmatprep.subr.mxu1 %v1961_v14  ;;  %v7920_v11 = vld [vmem:[#allocation8 + $0xc0] sm:$0xff]  ;;  %v7923_v14 = vld [vmem:[#allocation8 + $0xd0] sm:$0xff] }
 0x757   :  { %2063 = vmatpush1.msra.mxu0 %v1958_v16  ;;  %2176 = vmatpush1.msra.mxu1 %v1960_v19  ;;  %v7926_v16 = vld [vmem:[#allocation8 + $0xa8] sm:$0xff]  ;;  %v7929_v19 = vld [vmem:[#allocation8 + $0xb8] sm:$0xff] }
 0x758   :  { %2064 = vmatprep.subr.mxu0 %v1955_v23  ;;  %2177 = vmatprep.subr.mxu1 %v1957_v26  ;;  %v7932_v23 = vld [vmem:[#allocation8 + $0xa0] sm:$0xff]  ;;  %v7935_v26 = vld [vmem:[#allocation8 + $0xb0] sm:$0xff] }
 0x759   :  { %2065 = vmatpush1.msra.mxu0 %v1954_v40  ;;  %2178 = vmatpush1.msra.mxu1 %v1956_v2  ;;  %10390 = vst [vmem:[#allocation38_spill] sm:$0xff] %v7935_v26  ;;  %v7938_v40 = vld [vmem:[#allocation8 + $0x88] sm:$0xff]  ;;  %v7941_v2 = vld [vmem:[#allocation8 + $0x98] sm:$0xff] }
 0x75a   :  { %2066 = vmatprep.subr.mxu0 %v1951_v15  ;;  %2179 = vmatprep.subr.mxu1 %v1953_v27  ;;  %10391 = vst [vmem:[#allocation28_spill] sm:$0xff] %v7938_v40  ;;  %10392 = vst [vmem:[#allocation60_spill] sm:$0xff] %v7941_v2  ;;  %v7944_v15 = vld [vmem:[#allocation8 + $0x80] sm:$0xff]  ;;  %v7947_v27 = vld [vmem:[#allocation8 + $0x90] sm:$0xff] }
 0x75b   :  { %2067 = vmatpush1.msra.mxu0 %v1950_v10  ;;  %2100 = vmatprep.mubr.f32.mxu0 %v10378_v58  ;;  %10393 = vst [vmem:[#allocation61_spill] sm:$0xff] %v7944_v15  ;;  %10394 = vst [vmem:[#allocation44_spill] sm:$0xff] %v7947_v27  ;;  %v7950_v10 = vld [vmem:[#allocation8 + $0x68] sm:$0xff] }
 0x75c   :  { %2180 = vmatpush1.msra.mxu1 %v1952_v20  ;;  %2213 = vmatprep.mubr.f32.mxu1 %v10378_v58  ;;  %10395 = vst [vmem:[#allocation43_spill] sm:$0xff] %v7950_v10  ;;  %v7953_v20 = vld [vmem:[#allocation8 + $0x78] sm:$0xff] }
 0x75d   :  { %2101 = vmatmul.mubr.f32.vlgmr.msra.gmra.mxu0 %v680_v18  ;;  %2214 = vmatmul.mubr.f32.vlgmr.msra.gmra.mxu1 %v680_v18  ;;  %10396 = vst [vmem:[#allocation62_spill] sm:$0xff] %v7953_v20  ;;  %v7959_v18 = vld [vmem:[#allocation8 + $0x70] sm:$0xff] }
 0x75e   :  { %2106 = vmatprep.mubr.f32.mxu0 %v10378_v58  ;;  %2219 = vmatprep.mubr.f32.mxu1 %v10378_v58  ;;  %10398 = vst [vmem:[#allocation46_spill] sm:$0xff] %v7959_v18 }
 0x75f   :  { %2362 = vmatprep.subr.mxu0 %v7807_v30  ;;  %2433 = vmatprep.subr.mxu1 %v7809_v45 }
 0x760   :  { %2363 = vmatpush1.msra.mxu0 %v7812_v29  ;;  %2434 = vmatpush1.msra.mxu1 %v7815_v22 }
 0x761   :  { %2107 = vmatmul.mubr.f32.gmra.mxu0 %v859_v38  ;;  %2220 = vmatmul.mubr.f32.gmra.mxu1 %v859_v38  ;;  %v7965_v38 = vld [vmem:[#allocation8 + $0x58] sm:$0xff] }
 0x762   :  { %2112 = vmatprep.mubr.f32.mxu0 %v10378_v58  ;;  %2225 = vmatprep.mubr.f32.mxu1 %v10378_v58  ;;  %10400 = vst [vmem:[#allocation64_spill] sm:$0xff] %v7965_v38 }
 0x763   :  { %2364 = vmatprep.subr.mxu0 %v7818_v33  ;;  %2435 = vmatprep.subr.mxu1 %v7821_v44 }
 0x764   :  { %2365 = vmatpush1.msra.mxu0 %v7824_v46  ;;  %2436 = vmatpush1.msra.mxu1 %v7827_v47 }
 0x765   :  { %2113 = vmatmul.mubr.f32.gmra.mxu0 %v1039_v24  ;;  %2226 = vmatmul.mubr.f32.gmra.mxu1 %v1039_v24  ;;  %v7971_v24 = vld [vmem:[#allocation8 + $0x50] sm:$0xff] }
 0x766   :  { %2118 = vmatprep.mubr.f32.mxu0 %v10378_v58  ;;  %2231 = vmatprep.mubr.f32.mxu1 %v10378_v58  ;;  %10402 = vst [vmem:[#allocation48_spill] sm:$0xff] %v7971_v24 }
 0x767   :  { %2366 = vmatprep.subr.mxu0 %v7830_v48  ;;  %2437 = vmatprep.subr.mxu1 %v7833_v49 }
 0x768   :  { %2367 = vmatpush1.msra.mxu0 %v7836_v50  ;;  %2438 = vmatpush1.msra.mxu1 %v7839_v51 }
 0x769   :  { %2119 = vmatmul.mubr.f32.gmra.mxu0 %v1219_v37  ;;  %2232 = vmatmul.mubr.f32.gmra.mxu1 %v1219_v37  ;;  %v7977_v37 = vld [vmem:[#allocation8 + $0x20] sm:$0xff] }
 0x76a   :  { %2124 = vmatprep.mubr.f32.mxu0 %v10378_v58  ;;  %2237 = vmatprep.mubr.f32.mxu1 %v10378_v58  ;;  %10404 = vst [vmem:[#allocation18_spill] sm:$0xff] %v7977_v37 }
 0x76b   :  { %2368 = vmatprep.subr.mxu0 %v7842_v52  ;;  %2439 = vmatprep.subr.mxu1 %v7845_v53 }
 0x76c   :  { %2369 = vmatpush1.msra.mxu0 %v7848_v54  ;;  %2440 = vmatpush1.msra.mxu1 %v7851_v55 }
 0x76d   :  { %2125 = vmatmul.mubr.f32.gmra.mxu0 %v1399_v7  ;;  %2238 = vmatmul.mubr.f32.gmra.mxu1 %v1399_v7  ;;  %v7983_v7 = vld [vmem:[#allocation8 + $0x8] sm:$0xff] }
 0x76e   :  { %2130 = vmatprep.mubr.f32.mxu0 %v10378_v58  ;;  %2243 = vmatprep.mubr.f32.mxu1 %v10378_v58  ;;  %10406 = vst [vmem:[#allocation66_spill] sm:$0xff] %v7983_v7 }
 0x76f   :  { %2370 = vmatprep.subr.mxu0 %v7854_v56  ;;  %2441 = vmatprep.subr.mxu1 %v7857_v57 }
 0x770   :  { %2371 = vmatpush1.msra.mxu0 %v7860_v59  ;;  %2442 = vmatpush1.msra.mxu1 %v7863_v60 }
 0x771   :  { %2131 = vmatmul.mubr.f32.gmra.mxu0 %v1579_v17  ;;  %2244 = vmatmul.mubr.f32.gmra.mxu1 %v1579_v17  ;;  %v7985_v17 = vld [vmem:[#allocation8 + $0x30] sm:$0xff] }
 0x772   :  { %2136 = vmatprep.mubr.f32.mxu0 %v10378_v58  ;;  %2249 = vmatprep.mubr.f32.mxu1 %v10378_v58  ;;  %10407 = vst [vmem:[#allocation67_spill] sm:$0xff] %v7985_v17 }
 0x773   :  { %2372 = vmatprep.subr.mxu0 %v7866_v61  ;;  %2443 = vmatprep.subr.mxu1 %v7869_v62 }
 0x774   :  { %2373 = vmatpush1.msra.mxu0 %v7872_v63  ;;  %2444 = vmatpush1.msra.mxu1 %v7875_v25 }
 0x775   :  { %2137 = vmatmul.mubr.f32.gmra.mxu0 %v1759_v42  ;;  %2250 = vmatmul.mubr.f32.gmra.mxu1 %v1759_v42  ;;  %v7987_v42 = vld [vmem:[#allocation8] sm:$0xff] }
 0x776   :  { %2142 = vmatprep.mubr.f32.mxu0 %v10378_v58  ;;  %2255 = vmatprep.mubr.f32.mxu1 %v10378_v58  ;;  %10408 = vst [vmem:[#allocation50_spill] sm:$0xff] %v7987_v42 }
 0x777   :  { %2374 = vmatprep.subr.mxu0 %v7878_v28  ;;  %2445 = vmatprep.subr.mxu1 %v7881_v4 }
 0x778   :  { %2375 = vmatpush1.msra.mxu0 %v7884_v41  ;;  %2446 = vmatpush1.msra.mxu1 %v7887_v36 }
 0x779   :  { %2376 = vmatprep.subr.mxu0 %v7890_v0  ;;  %2447 = vmatprep.subr.mxu1 %v7893_v34 }
 0x77a   :  { %2377 = vmatpush1.msra.mxu0 %v7896_v43  ;;  %2448 = vmatpush1.msra.mxu1 %v7899_v32 }
 0x77b   :  { %2378 = vmatprep.subr.mxu0 %v7902_v35  ;;  %2449 = vmatprep.subr.mxu1 %v7905_v31 }
 0x77c   :  { %2379 = vmatpush1.msra.mxu0 %v7908_v8  ;;  %2450 = vmatpush1.msra.mxu1 %v7911_v39 }
 0x77d   :  { %2380 = vmatprep.subr.mxu0 %v7914_v6  ;;  %2451 = vmatprep.subr.mxu1 %v7917_v9 }
 0x77e   :  { %2381 = vmatpush1.msra.mxu0 %v7920_v11  ;;  %2452 = vmatpush1.msra.mxu1 %v7923_v14 }
 0x77f   :  { %2382 = vmatprep.subr.mxu0 %v7926_v16  ;;  %2453 = vmatprep.subr.mxu1 %v7929_v19 }
 0x780   :  { %2383 = vmatpush1.msra.mxu0 %v7932_v23  ;;  %2454 = vmatpush1.msra.mxu1 %v7935_v26 }
 0x781   :  { %2384 = vmatprep.subr.mxu0 %v7938_v40  ;;  %2455 = vmatprep.subr.mxu1 %v7941_v2 }
 0x782   :  { %2385 = vmatpush1.msra.mxu0 %v7944_v15  ;;  %2456 = vmatpush1.msra.mxu1 %v7947_v27  ;;  %v10415_v27 = vld [vmem:[#allocation56_spill] sm:$0xff] }
 0x783   :  { %2386 = vmatprep.subr.mxu0 %v7950_v10  ;;  %2457 = vmatprep.subr.mxu1 %v7953_v20  ;;  %v10414_v10 = vld [vmem:[#allocation58_spill] sm:$0xff] }
 0x784   :  { %2387 = vmatpush1.msra.mxu0 %v7956_v13  ;;  %2458 = vmatpush1.msra.mxu1 %v7959_v18 }
 0x785   :  { %2388 = vmatprep.subr.mxu0 %v7962_v12  ;;  %2459 = vmatprep.subr.mxu1 %v7965_v38  ;;  %v10413_v38 = vld [vmem:[#allocation70_spill] sm:$0xff] }
 0x786   :  { %2389 = vmatpush1.msra.mxu0 %v7968_v5  ;;  %2460 = vmatpush1.msra.mxu1 %v7971_v24  ;;  %v7991_v5 = vld [vmem:[#allocation8 + $0x18] sm:$0xff]  ;;  %v7993_v24 = vld [vmem:[#allocation8 + $0x10] sm:$0xff] }
 0x787   :  { %2390 = vmatprep.subr.mxu0 %v7974_v3  ;;  %2461 = vmatprep.subr.mxu1 %v7979_v21  ;;  %10409 = vst [vmem:[#allocation49_spill] sm:$0xff] %v7991_v5  ;;  %10410 = vst [vmem:[#allocation32_spill] sm:$0xff] %v7993_v24  ;;  %v10412_v3 = vld [vmem:[#allocation16_spill] sm:$0xff] }
 0x788   :  { %2391 = vmatpush1.msra.mxu0 %v7977_v37  ;;  %2462 = vmatpush1.msra.mxu1 %v7985_v17  ;;  %v10411_v37 = vld [vmem:[#allocation57_spill] sm:$0xff] }
 0x789   :  { %2392 = vmatprep.subr.mxu0 %v7983_v7  ;;  %2463 = vmatprep.subr.mxu1 %v7991_v5  ;;  %v292_v17 = vadd.f32 %v10412_v3, %v10411_v37 }
 0x78a   :  { %2393 = vmatpush1.msra.mxu0 %v7987_v42  ;;  %2464 = vmatpush1.msra.mxu1 %v7993_v24 }
 0x78b   :  { %2538 = vmatprep.subr.mxu0 %v7807_v30  ;;  %2609 = vmatprep.subr.mxu1 %v7809_v45 }
 0x7fc   :  { %v1835_v21 = vpop.f32.mrf.mxu0  ;;  %v1906_v7 = vpop.f32.mrf.mxu1 }
 0x7fd   :  { %v1911_v12 = vadd.f32 %v1835_v21, %v10413_v38  ;;  %v1913_v30 = vadd.f32 %v1906_v7, %v10415_v27  ;;  %v10420_v21 = vld [vmem:[#allocation43_spill] sm:$0xff]  ;;  %v10421_v7 = vld [vmem:[#allocation62_spill] sm:$0xff] }
 0x7fe   :  { %v1837_v18 = vpop.f32.mrf.mxu0  ;;  %v1908_v42 = vpop.f32.mrf.mxu1 }
 0x7ff   :  { %v5790_v13 = vmul.f32 -1.442695, %v1911_v12  ;;  %v1912_v20 = vadd.f32 %v1837_v18, %v292_v17  ;;  %v1914_v24 = vadd.f32 %v1908_v42, %v10414_v10  ;;  %v10422_v17 = vld [vmem:[#allocation63_spill] sm:$0xff]  ;;  %v10423_v42 = vld [vmem:[#allocation46_spill] sm:$0xff] }
 0x801   :  { %6030 = vpow2.f32 %v5790_v13  ;;  %v5791_v5 = vmul.f32 -1.442695, %v1912_v20  ;;  %v5792_v15 = vmul.f32 -1.442695, %v1914_v24 }
 0x803   :  { %6032 = vpow2.f32 %v5791_v5 }
 0x804   :  { %6034 = vtanh.f32 %v1913_v30 }
 0x805   :  { %6036 = vpow2.f32 %v5792_v15  ;;  %v10419_v15 = vld [vmem:[#allocation44_spill] sm:$0xff] }
 0x80e   :  { %v6031_v45 = vpop.eup %6030 }
 0x80f   :  { %v1918_v2 = vadd.f32 1.0, %v6031_v45 }
 0x810   :  { %v6033_v40 = vpop.eup %6032 }
 0x811   :  { %6038 = vrcp.f32 %v1918_v2  ;;  %v1924_v38 = vadd.f32 1.0, %v6033_v40  ;;  %v6035_v12 = vpop.eup %6034  ;;  %v10417_v40 = vld [vmem:[#allocation60_spill] sm:$0xff]  ;;  %v10418_v2 = vld [vmem:[#allocation61_spill] sm:$0xff] }
 0x812   :  { %v6037_v18 = vpop.eup %6036 }
 0x813   :  { %6040 = vrcp.f32 %v1924_v38  ;;  %v1931_v5 = vadd.f32 1.0, %v6037_v18  ;;  %v10424_v38 = vld [vmem:[#allocation45_spill] sm:$0xff] }
 0x814   :  { %v10426_v18 = vld [vmem:[#allocation65_spill] sm:$0xff] }
 0x815   :  { %6042 = vrcp.f32 %v1931_v5  ;;  %v10430_v5 = vld [vmem:[#allocation18_spill] sm:$0xff] }
 0x81e   :  { %v6039_v13 = vpop.eup %6038 }
 0x81f   :  { %v1935_v3 = vmul.f32 %v6039_v13, %v6035_v12  ;;  %v10425_v12 = vld [vmem:[#allocation64_spill] sm:$0xff] }
 0x820   :  { %v6041_v20 = vpop.eup %6040  ;;  %v10427_v13 = vld [vmem:[#allocation48_spill] sm:$0xff] }
 0x821   :  { %v1934_v37 = vmul.f32 %v6041_v20, %v7777_v1  ;;  %v10416_v1 = vld [vmem:[#allocation28_spill] sm:$0xff]  ;;  %v10429_v20 = vld [vmem:[#allocation31_spill] sm:$0xff] }
 0x822   :  { %v6043_v27 = vpop.eup %6042 }
 0x823   :  { %v1936_v10 = vadd.f32 %v1935_v3, %v1934_v37  ;;  %v10428_v3 = vld [vmem:[#allocation47_spill] sm:$0xff] }
 0x824   :  { %v10431_v37 = vld [vmem:[#allocation67_spill] sm:$0xff] }
 0x825   :  { %6044 = vtanh.f32 %v1936_v10  ;;  %v10432_v10 = vld [vmem:[#allocation66_spill] sm:$0xff] }
 0x832   :  { %v6045_v24 = vpop.eup %6044 }
 0x833   :  { %v1938_v45 = vmul.f32 %v6045_v24, %v6043_v27  ;;  %v10433_v27 = vld [vmem:[#allocation49_spill] sm:$0xff]  ;;  %v10434_v24 = vld [vmem:[#allocation50_spill] sm:$0xff] }
 0x835   :  { %v1939_v30 = vmax.f32 %v1938_v45, 0.0  ;;  %v10435_v45 = vld [vmem:[#allocation32_spill] sm:$0xff] }
 0x837   :  { %2143 = vmatmul.mubr.f32.gmra.mxu0 %v1939_v30  ;;  %2256 = vmatmul.mubr.f32.gmra.mxu1 %v1939_v30  ;;  %v10436_v30 = vld [vmem:[#allocation37_spill] sm:$0xff] }
 0x838   :  { %2426 = vmatprep.mubr.f32.mxu0 %v10378_v58  ;;  %2497 = vmatprep.mubr.f32.mxu1 %v10378_v58 }
 0x83b   :  { %2427 = vmatmul.mubr.f32.vlgmr.msra.gmra.mxu0 %v10378_v58  ;;  %2498 = vmatmul.mubr.f32.vlgmr.msra.gmra.mxu1 %v10378_v58 }
 0x83c   :  { %2539 = vmatpush1.msra.mxu0 %v7812_v29  ;;  %2610 = vmatpush1.msra.mxu1 %v7815_v22 }
 0x83d   :  { %2540 = vmatprep.subr.mxu0 %v7818_v33  ;;  %2611 = vmatprep.subr.mxu1 %v7821_v44 }
 0x83e   :  { %2541 = vmatpush1.msra.mxu0 %v7824_v46  ;;  %2612 = vmatpush1.msra.mxu1 %v7827_v47 }
 0x83f   :  { %2542 = vmatprep.subr.mxu0 %v7830_v48  ;;  %2613 = vmatprep.subr.mxu1 %v7833_v49 }
 0x840   :  { %2543 = vmatpush1.msra.mxu0 %v7836_v50  ;;  %2614 = vmatpush1.msra.mxu1 %v7839_v51 }
 0x841   :  { %2544 = vmatprep.subr.mxu0 %v7842_v52  ;;  %2615 = vmatprep.subr.mxu1 %v7845_v53 }
 0x842   :  { %2545 = vmatpush1.msra.mxu0 %v7848_v54  ;;  %2616 = vmatpush1.msra.mxu1 %v7851_v55 }
 0x843   :  { %2546 = vmatprep.subr.mxu0 %v7854_v56  ;;  %2617 = vmatprep.subr.mxu1 %v7857_v57 }
 0x844   :  { %2547 = vmatpush1.msra.mxu0 %v7860_v59  ;;  %2618 = vmatpush1.msra.mxu1 %v7863_v60 }
 0x845   :  { %2548 = vmatprep.subr.mxu0 %v7866_v61  ;;  %2619 = vmatprep.subr.mxu1 %v7869_v62 }
 0x846   :  { %2549 = vmatpush1.msra.mxu0 %v7872_v63  ;;  %2620 = vmatpush1.msra.mxu1 %v7875_v25 }
 0x847   :  { %2550 = vmatprep.subr.mxu0 %v7878_v28  ;;  %2621 = vmatprep.subr.mxu1 %v7881_v4 }
 0x848   :  { %2551 = vmatpush1.msra.mxu0 %v7884_v41  ;;  %2622 = vmatpush1.msra.mxu1 %v7887_v36 }
 0x849   :  { %2552 = vmatprep.subr.mxu0 %v7890_v0  ;;  %2623 = vmatprep.subr.mxu1 %v7893_v34 }
 0x84a   :  { %2553 = vmatpush1.msra.mxu0 %v7896_v43  ;;  %2624 = vmatpush1.msra.mxu1 %v7899_v32 }
 0x84b   :  { %2554 = vmatprep.subr.mxu0 %v7902_v35  ;;  %2625 = vmatprep.subr.mxu1 %v7905_v31 }
 0x84c   :  { %2555 = vmatpush1.msra.mxu0 %v7908_v8  ;;  %2626 = vmatpush1.msra.mxu1 %v7911_v39 }
 0x84d   :  { %2556 = vmatprep.subr.mxu0 %v7914_v6  ;;  %2627 = vmatprep.subr.mxu1 %v7917_v9 }
 0x84e   :  { %2557 = vmatpush1.msra.mxu0 %v7920_v11  ;;  %2628 = vmatpush1.msra.mxu1 %v7923_v14 }
 0x84f   :  { %2558 = vmatprep.subr.mxu0 %v7926_v16  ;;  %2629 = vmatprep.subr.mxu1 %v7929_v19 }
 0x850   :  { %2559 = vmatpush1.msra.mxu0 %v7932_v23  ;;  %2630 = vmatpush1.msra.mxu1 %v7935_v26 }
 0x851   :  { %2560 = vmatprep.subr.mxu0 %v10416_v1  ;;  %2631 = vmatprep.subr.mxu1 %v10417_v40 }
 0x852   :  { %2561 = vmatpush1.msra.mxu0 %v10418_v2  ;;  %2632 = vmatpush1.msra.mxu1 %v10419_v15 }
 0x853   :  { %2562 = vmatprep.subr.mxu0 %v10420_v21  ;;  %2633 = vmatprep.subr.mxu1 %v10421_v7 }
 0x854   :  { %2563 = vmatpush1.msra.mxu0 %v10422_v17  ;;  %2634 = vmatpush1.msra.mxu1 %v10423_v42 }
 0x855   :  { %2564 = vmatprep.subr.mxu0 %v10424_v38  ;;  %2635 = vmatprep.subr.mxu1 %v10425_v12 }
 0x856   :  { %2565 = vmatpush1.msra.mxu0 %v10426_v18  ;;  %2636 = vmatpush1.msra.mxu1 %v10427_v13 }
 0x857   :  { %2566 = vmatprep.subr.mxu0 %v10428_v3  ;;  %2637 = vmatprep.subr.mxu1 %v10429_v20  ;;  %v10437_v3 = vld [vmem:[#allocation27_spill] sm:$0xff]  ;;  %v2102_v20 = vpop.f32.mrf.mxu0 }
 0x858   :  { %2567 = vmatpush1.msra.mxu0 %v10430_v5  ;;  %2638 = vmatpush1.msra.mxu1 %v10431_v37  ;;  %v2215_v5 = vpop.f32.mrf.mxu1 }
 0x859   :  { %2568 = vmatprep.subr.mxu0 %v10432_v10  ;;  %2639 = vmatprep.subr.mxu1 %v10433_v27  ;;  %v2104_v13 = vpop.f32.mrf.mxu0 }
 0x85a   :  { %2569 = vmatpush1.msra.mxu0 %v10434_v24  ;;  %2602 = vmatprep.mubr.f32.mxu0 %v10378_v58  ;;  %v2217_v37 = vpop.f32.mrf.mxu1 }
 0x85b   :  { %2640 = vmatpush1.msra.mxu1 %v10435_v45  ;;  %2673 = vmatprep.mubr.f32.mxu1 %v10378_v58  ;;  %v8077_v18 = vpop.f32.mrf.mxu0 }
 0x85c   :  { %2714 = vmatprep.subr.mxu0 %v10436_v30  ;;  %2785 = vmatprep.subr.mxu1 %v10437_v3  ;;  %10438 = vst [vmem:[#allocation55_spill] sm:$0xff] %v8077_v18  ;;  %v8079_v10 = vpop.f32.mrf.mxu1 }
 0x85d   :  { %10439 = vst [vmem:[#allocation22_spill] sm:$0xff] %v8079_v10  ;;  %v8081_v27 = vpop.f32.mrf.mxu0 }
 0x85e   :  { %10440 = vst [vmem:[#allocation59_spill] sm:$0xff] %v8081_v27  ;;  %v8083_v24 = vpop.f32.mrf.mxu1 }
 0x85f   :  { %10441 = vst [vmem:[#allocation33_spill] sm:$0xff] %v8083_v24  ;;  %v8085_v12 = vpop.f32.mrf.mxu0 }
 0x860   :  { %10442 = vst [vmem:[#allocation42_spill] sm:$0xff] %v8085_v12  ;;  %v8087_v45 = vpop.f32.mrf.mxu1 }
 0x861   :  { %10443 = vst [vmem:[#allocation23_spill] sm:$0xff] %v8087_v45  ;;  %v8089_v58 = vpop.f32.mrf.mxu0 }
 0x862   :  { %10444 = vst [vmem:[#allocation41_spill] sm:$0xff] %v8089_v58  ;;  %v8091_v30 = vpop.f32.mrf.mxu1 }
 0x863   :  { %10445 = vst [vmem:[#allocation34_spill] sm:$0xff] %v8091_v30  ;;  %v8093_v3 = vpop.f32.mrf.mxu0 }
 0x864   :  { %10446 = vst [vmem:[#allocation29_spill] sm:$0xff] %v8093_v3  ;;  %v8095_v38 = vpop.f32.mrf.mxu1 }
 0x865   :  { %10447 = vst [vmem:[#allocation24_spill] sm:$0xff] %v8095_v38  ;;  %v8097_v42 = vpop.f32.mrf.mxu0 }
 0x866   :  { %10448 = vst [vmem:[#allocation19_spill] sm:$0xff] %v8097_v42  ;;  %v8099_v18 = vpop.f32.mrf.mxu1 }
 0x867   :  { %10449 = vst [vmem:[#allocation35_spill] sm:$0xff] %v8099_v18  ;;  %v8101_v10 = vpop.f32.mrf.mxu0 }
 0x868   :  { %10450 = vst [vmem:[#allocation30_spill] sm:$0xff] %v8101_v10  ;;  %v8103_v27 = vpop.f32.mrf.mxu1 }
 0x869   :  { %10451 = vst [vmem:[#allocation25_spill] sm:$0xff] %v8103_v27  ;;  %v8105_v24 = vpop.f32.mrf.mxu0  ;;  %v2014_v27 = vld [vmem:[%s9873_s6] sm:$0xf] }
 0x86a   :  { %10452 = vst [vmem:[#allocation20_spill] sm:$0xff] %v8105_v24  ;;  %v8107_v12 = vpop.f32.mrf.mxu1  ;;  %v10461_v24 = vld [vmem:[#allocation53_spill] sm:$0xff] }
 0x86b   :  { %10453 = vst [vmem:[#allocation36_spill] sm:$0xff] %v8107_v12  ;;  %v8109_v45 = vpop.f32.mrf.mxu0  ;;  %v8127_v12 = vrot.slane %v2014_v27, %v10461_v24 }
 0x86c   :  { %10454 = vst [vmem:[#allocation68_spill] sm:$0xff] %v8109_v45  ;;  %v8111_v58 = vpop.f32.mrf.mxu1 }
 0x86d   :  { %10455 = vst [vmem:[#allocation69_spill] sm:$0xff] %v8111_v58  ;;  %v8113_v30 = vpop.f32.mrf.mxu0  ;;  %10462 = vst [vmem:[#allocation21_spill] sm:$0xff] %v8127_v12 }
 0x86e   :  { %10456 = vst [vmem:[#allocation54_spill] sm:$0xff] %v8113_v30  ;;  %v8115_v3 = vpop.f32.mrf.mxu1  ;;  %v10465_v30 = vld [vmem:[#allocation52_spill] sm:$0xff] }
 0x86f   :  { %10457 = vst [vmem:[#allocation51_spill] sm:$0xff] %v8115_v3  ;;  %v8117_v38 = vpop.f32.mrf.mxu0  ;;  %v8134_v18 = vrot.slane %v2014_v27, %v10465_v30  ;;  %v10469_v30 = vld [vmem:[#allocation40_spill] sm:$0xff] }
 0x870   :  { %10458 = vst [vmem:[#allocation71_spill] sm:$0xff] %v8117_v38  ;;  %v8119_v42 = vpop.f32.mrf.mxu1  ;;  %v8145_v40 = vrot.slane %v2014_v27, %v10469_v30 }
 0x871   :  { %10459 = vst [vmem:[#allocation17_spill] sm:$0xff] %v8119_v42  ;;  %v8124_v10 = vpop.f32.mrf.mxu0  ;;  %v2103_v42 = vadd.f32 %v2102_v20, %v8127_v12  ;;  %v2105_v7 = vadd.f32 %v2104_v13, %v8134_v18  ;;  %v10471_v20 = vld [vmem:[#allocation39_spill] sm:$0xff] }
 0x872   :  { %10460 = vst [vmem:[#allocation15_spill] sm:$0xff] %v8124_v10  ;;  %v8129_v45 = vpop.f32.mrf.mxu1  ;;  %10470 = vst [vmem:[#allocation56_spill] sm:$0xff] %v8145_v40  ;;  %v8149_v12 = vrot.slane %v2014_v27, %v10471_v20 }
 0x873   :  { %10463 = vst [vmem:[#allocation26_spill] sm:$0xff] %v8129_v45 }
 0x8f7   :  { %v8131_v58 = vpop.f32.mrf.mxu0  ;;  %v8136_v3 = vpop.f32.mrf.mxu1 }
 0x8f8   :  { %10464 = vst [vmem:[#allocation57_spill] sm:$0xff] %v8131_v58  ;;  %10466 = vst [vmem:[#allocation16_spill] sm:$0xff] %v8136_v3 }
 0x8f9   :  { %v8138_v38 = vpop.f32.mrf.mxu0  ;;  %v8142_v10 = vpop.f32.mrf.mxu1 }
 0x8fa   :  { %10467 = vst [vmem:[#allocation70_spill] sm:$0xff] %v8138_v38  ;;  %10468 = vst [vmem:[#allocation58_spill] sm:$0xff] %v8142_v10  ;;  %v2218_v38 = vadd.f32 %v2217_v37, %v8145_v40  ;;  %v2216_v10 = vadd.f32 %v2215_v5, %v8149_v12 }
 0x8fb   :  { %v2428_v17 = vpop.f32.mrf.mxu0  ;;  %v2499_v58 = vpop.f32.mrf.mxu1 }
 0x8fc   :  { %v2504_v24 = vadd.f32 %v2428_v17, %v2103_v42 }
 0x8fd   :  { %v2430_v21 = vpop.f32.mrf.mxu0  ;;  %v2501_v3 = vpop.f32.mrf.mxu1 }
 0x8fe   :  { %v5793_v15 = vmul.f32 -1.442695, %v2504_v24  ;;  %v2505_v45 = vadd.f32 %v2430_v21, %v2105_v7  ;;  %v2507_v13 = vadd.f32 %v2501_v3, %v2218_v38  ;;  %v2506_v24 = vadd.f32 %v2499_v58, %v2216_v10  ;;  %v10474_v10 = vld [vmem:[#allocation61_spill] sm:$0xff] }
 0x900   :  { %6046 = vpow2.f32 %v5793_v15  ;;  %v5794_v2 = vmul.f32 -1.442695, %v2505_v45  ;;  %v5795_v17 = vmul.f32 -1.442695, %v2507_v13  ;;  %v10477_v13 = vld [vmem:[#allocation62_spill] sm:$0xff] }
 0x902   :  { %6048 = vpow2.f32 %v5794_v2 }
 0x903   :  { %6050 = vpow2.f32 %v5795_v17  ;;  %v10478_v17 = vld [vmem:[#allocation63_spill] sm:$0xff] }
 0x90d   :  { %v6047_v42 = vpop.eup %6046 }
 0x90e   :  { %v2511_v21 = vadd.f32 1.0, %v6047_v42  ;;  %v10479_v42 = vld [vmem:[#allocation46_spill] sm:$0xff] }
 0x90f   :  { %v6049_v15 = vpop.eup %6048 }
 0x910   :  { %6052 = vrcp.f32 %v2511_v21  ;;  %v2517_v7 = vadd.f32 1.0, %v6049_v15  ;;  %v6051_v2 = vpop.eup %6050  ;;  %v10481_v21 = vld [vmem:[#allocation64_spill] sm:$0xff]  ;;  %v10482_v15 = vld [vmem:[#allocation65_spill] sm:$0xff] }
 0x911   :  { %6054 = vtanh.f32 %v2506_v24  ;;  %v2524_v40 = vadd.f32 1.0, %v6051_v2  ;;  %v10480_v24 = vld [vmem:[#allocation45_spill] sm:$0xff]  ;;  %v10484_v2 = vld [vmem:[#allocation47_spill] sm:$0xff] }
 0x912   :  { %6056 = vrcp.f32 %v2517_v7  ;;  %v10483_v7 = vld [vmem:[#allocation48_spill] sm:$0xff] }
 0x913   :  { %6058 = vrcp.f32 %v2524_v40  ;;  %v10473_v40 = vld [vmem:[#allocation60_spill] sm:$0xff] }
 0x91d   :  { %v6053_v45 = vpop.eup %6052 }
 0x91e   :  { %v6055_v30 = vpop.eup %6054 }
 0x91f   :  { %v6057_v37 = vpop.eup %6056  ;;  %v2528_v20 = vmul.f32 %v6055_v30, %v6053_v45  ;;  %v10475_v30 = vld [vmem:[#allocation44_spill] sm:$0xff]  ;;  %v10485_v45 = vld [vmem:[#allocation31_spill] sm:$0xff] }
 0x920   :  { %v2527_v27 = vmul.f32 0.0, %v6057_v37  ;;  %v6059_v58 = vpop.eup %6058  ;;  %v10486_v37 = vld [vmem:[#allocation18_spill] sm:$0xff] }
 0x922   :  { %v8152_v38 = vadd.f32 %v2528_v20, %v2527_v27  ;;  %v10476_v20 = vld [vmem:[#allocation43_spill] sm:$0xff] }
 0x923   :  { %v10487_v27 = vld [vmem:[#allocation67_spill] sm:$0xff] }
 0x924   :  { %6060 = vtanh.f32 %v8152_v38 }
 0x931   :  { %v6061_v3 = vpop.eup %6060 }
 0x932   :  { %v8155_v5 = vmul.f32 %v6061_v3, %v6059_v58  ;;  %v10488_v58 = vld [vmem:[#allocation66_spill] sm:$0xff]  ;;  %v10489_v3 = vld [vmem:[#allocation49_spill] sm:$0xff] }
 0x934   :  { %10472 = vst [vmem:[#allocation72_spill] sm:$0xff] %v8155_v5  ;;  %2603 = vmatmul.mubr.f32.vlgmr.msra.gmra.mxu0 %v8155_v5  ;;  %2674 = vmatmul.mubr.f32.vlgmr.msra.gmra.mxu1 %v8155_v5  ;;  %v10490_v5 = vld [vmem:[#allocation50_spill] sm:$0xff] }
 0x935   :  { %2715 = vmatpush1.msra.mxu0 %v7812_v29  ;;  %2786 = vmatpush1.msra.mxu1 %v7815_v22 }
 0x936   :  { %2716 = vmatprep.subr.mxu0 %v7818_v33  ;;  %2787 = vmatprep.subr.mxu1 %v7821_v44 }
 0x937   :  { %2717 = vmatpush1.msra.mxu0 %v7824_v46  ;;  %2788 = vmatpush1.msra.mxu1 %v7827_v47 }
 0x938   :  { %2718 = vmatprep.subr.mxu0 %v7830_v48  ;;  %2789 = vmatprep.subr.mxu1 %v7833_v49 }
 0x939   :  { %2719 = vmatpush1.msra.mxu0 %v7836_v50  ;;  %2790 = vmatpush1.msra.mxu1 %v7839_v51 }
 0x93a   :  { %2720 = vmatprep.subr.mxu0 %v7842_v52  ;;  %2791 = vmatprep.subr.mxu1 %v7845_v53 }
 0x93b   :  { %2721 = vmatpush1.msra.mxu0 %v7848_v54  ;;  %2792 = vmatpush1.msra.mxu1 %v7851_v55 }
 0x93c   :  { %2722 = vmatprep.subr.mxu0 %v7854_v56  ;;  %2793 = vmatprep.subr.mxu1 %v7857_v57 }
 0x93d   :  { %2723 = vmatpush1.msra.mxu0 %v7860_v59  ;;  %2794 = vmatpush1.msra.mxu1 %v7863_v60 }
 0x93e   :  { %2724 = vmatprep.subr.mxu0 %v7866_v61  ;;  %2795 = vmatprep.subr.mxu1 %v7869_v62 }
 0x93f   :  { %2725 = vmatpush1.msra.mxu0 %v7872_v63  ;;  %2796 = vmatpush1.msra.mxu1 %v7875_v25 }
 0x940   :  { %2726 = vmatprep.subr.mxu0 %v7878_v28  ;;  %2797 = vmatprep.subr.mxu1 %v7881_v4 }
 0x941   :  { %2727 = vmatpush1.msra.mxu0 %v7884_v41  ;;  %2798 = vmatpush1.msra.mxu1 %v7887_v36 }
 0x942   :  { %2728 = vmatprep.subr.mxu0 %v7890_v0  ;;  %2799 = vmatprep.subr.mxu1 %v7893_v34 }
 0x943   :  { %2729 = vmatpush1.msra.mxu0 %v7896_v43  ;;  %2800 = vmatpush1.msra.mxu1 %v7899_v32 }
 0x944   :  { %2730 = vmatprep.subr.mxu0 %v7902_v35  ;;  %2801 = vmatprep.subr.mxu1 %v7905_v31 }
 0x945   :  { %2731 = vmatpush1.msra.mxu0 %v7908_v8  ;;  %2802 = vmatpush1.msra.mxu1 %v7911_v39 }
 0x946   :  { %2732 = vmatprep.subr.mxu0 %v7914_v6  ;;  %2803 = vmatprep.subr.mxu1 %v7917_v9 }
 0x947   :  { %2733 = vmatpush1.msra.mxu0 %v7920_v11  ;;  %2804 = vmatpush1.msra.mxu1 %v7923_v14 }
 0x948   :  { %2734 = vmatprep.subr.mxu0 %v7926_v16  ;;  %2805 = vmatprep.subr.mxu1 %v7929_v19 }
 0x949   :  { %2735 = vmatpush1.msra.mxu0 %v7932_v23  ;;  %2806 = vmatpush1.msra.mxu1 %v7935_v26 }
 0x94a   :  { %2736 = vmatprep.subr.mxu0 %v10416_v1  ;;  %2807 = vmatprep.subr.mxu1 %v10473_v40  ;;  %v10500_v40 = vld [vmem:[#allocation22_spill] sm:$0xff] }
 0x94b   :  { %2737 = vmatpush1.msra.mxu0 %v10474_v10  ;;  %2808 = vmatpush1.msra.mxu1 %v10475_v30  ;;  %v10498_v30 = vld [vmem:[#allocation56_spill] sm:$0xff] }
 0x94c   :  { %2738 = vmatprep.subr.mxu0 %v10476_v20  ;;  %2809 = vmatprep.subr.mxu1 %v10477_v13 }
 0x94d   :  { %2739 = vmatpush1.msra.mxu0 %v10478_v17  ;;  %2810 = vmatpush1.msra.mxu1 %v10479_v42 }
 0x94e   :  { %2740 = vmatprep.subr.mxu0 %v10480_v24  ;;  %2811 = vmatprep.subr.mxu1 %v10481_v21  ;;  %v10491_v24 = vmov 0.0   ;;  %v10492_v21 = vld [vmem:[#allocation32_spill] sm:$0xff] }
 0x94f   :  { %2741 = vmatpush1.msra.mxu0 %v10482_v15  ;;  %2812 = vmatpush1.msra.mxu1 %v10483_v7  ;;  %v10493_v7 = vld [vmem:[#allocation37_spill] sm:$0xff] }
 0x950   :  { %2742 = vmatprep.subr.mxu0 %v10484_v2  ;;  %2813 = vmatprep.subr.mxu1 %v10485_v45  ;;  %v10494_v2 = vld [vmem:[#allocation27_spill] sm:$0xff]  ;;  %v10495_v45 = vld [vmem:[#allocation21_spill] sm:$0xff] }
 0x951   :  { %2743 = vmatpush1.msra.mxu0 %v10486_v37  ;;  %2814 = vmatpush1.msra.mxu1 %v10487_v27  ;;  %v10496_v37 = vld [vmem:[#allocation55_spill] sm:$0xff] }
 0x952   :  { %2744 = vmatprep.subr.mxu0 %v10488_v58  ;;  %2815 = vmatprep.subr.mxu1 %v10489_v3  ;;  %v2109_v15 = vadd.f32 %v10496_v37, %v10495_v45  ;;  %v10497_v58 = vld [vmem:[#allocation59_spill] sm:$0xff]  ;;  %v2222_v37 = vadd.f32 %v10500_v40, %v8149_v12 }
 0x953   :  { %2745 = vmatpush1.msra.mxu0 %v10490_v5  ;;  %2778 = vmatprep.mubr.f32.mxu0 %v10491_v24  ;;  %v2111_v42 = vadd.f32 %v10497_v58, %v8134_v18 }
 0x954   :  { %2816 = vmatpush1.msra.mxu1 %v10492_v21  ;;  %2849 = vmatprep.mubr.f32.mxu1 %v10491_v24 }
 0x955   :  { %2890 = vmatprep.subr.mxu0 %v10493_v7  ;;  %2961 = vmatprep.subr.mxu1 %v10494_v2  ;;  %v10499_v7 = vld [vmem:[#allocation33_spill] sm:$0xff] }
 0x956   :  { %v2224_v10 = vadd.f32 %v10499_v7, %v10498_v30 }
 0x9f4   :  { %v2604_v27 = vpop.f32.mrf.mxu0  ;;  %v2675_v20 = vpop.f32.mrf.mxu1 }
 0x9f5   :  { %v2680_v3 = vadd.f32 %v2604_v27, %v2109_v15  ;;  %v2682_v45 = vadd.f32 %v2675_v20, %v2222_v37  ;;  %v10520_v37 = vld [vmem:[#allocation49_spill] sm:$0xff] }
 0x9f6   :  { %v2606_v17 = vpop.f32.mrf.mxu0  ;;  %v2677_v24 = vpop.f32.mrf.mxu1 }
 0x9f7   :  { %v5796_v5 = vmul.f32 -1.442695, %v2680_v3  ;;  %v2681_v13 = vadd.f32 %v2606_v17, %v2111_v42  ;;  %v2683_v2 = vadd.f32 %v2677_v24, %v2224_v10  ;;  %v10519_v3 = vld [vmem:[#allocation66_spill] sm:$0xff] }
 0x9f9   :  { %6062 = vpow2.f32 %v5796_v5  ;;  %v5797_v21 = vmul.f32 -1.442695, %v2681_v13  ;;  %v5798_v1 = vmul.f32 -1.442695, %v2683_v2  ;;  %v10517_v2 = vld [vmem:[#allocation18_spill] sm:$0xff] }
 0x9fb   :  { %6064 = vpow2.f32 %v5797_v21 }
 0x9fc   :  { %6066 = vtanh.f32 %v2682_v45  ;;  %v10518_v45 = vld [vmem:[#allocation67_spill] sm:$0xff] }
 0x9fd   :  { %6068 = vpow2.f32 %v5798_v1  ;;  %v10515_v1 = vld [vmem:[#allocation47_spill] sm:$0xff] }
 0xa06   :  { %v6063_v26 = vpop.eup %6062 }
 0xa07   :  { %v2687_v58 = vadd.f32 1.0, %v6063_v26 }
 0xa08   :  { %v6065_v15 = vpop.eup %6064 }
 0xa09   :  { %6070 = vrcp.f32 %v2687_v58  ;;  %v2693_v5 = vadd.f32 1.0, %v6065_v15  ;;  %v6067_v13 = vpop.eup %6066  ;;  %v10521_v58 = vld [vmem:[#allocation50_spill] sm:$0xff]  ;;  %v10522_v15 = vmov 0.0  }
 0xa0a   :  { %v6069_v17 = vpop.eup %6068 }
 0xa0b   :  { %6072 = vrcp.f32 %v2693_v5  ;;  %v2700_v7 = vadd.f32 1.0, %v6069_v17  ;;  %v10523_v5 = vld [vmem:[#allocation32_spill] sm:$0xff]  ;;  %v10525_v17 = vld [vmem:[#allocation27_spill] sm:$0xff] }
 0xa0d   :  { %6074 = vrcp.f32 %v2700_v7 }
 0xa16   :  { %v6071_v42 = vpop.eup %6070 }
 0xa17   :  { %v2704_v21 = vmul.f32 %v6071_v42, %v6067_v13  ;;  %v10524_v13 = vld [vmem:[#allocation37_spill] sm:$0xff] }
 0xa18   :  { %v6073_v27 = vpop.eup %6072  ;;  %v10526_v42 = vld [vmem:[#allocation21_spill] sm:$0xff] }
 0xa19   :  { %v2703_v10 = vmul.f32 %v6073_v27, %v8152_v38  ;;  %v10516_v38 = vld [vmem:[#allocation31_spill] sm:$0xff] }
 0xa1a   :  { %v6075_v26 = vpop.eup %6074 }
 0xa1b   :  { %v8234_v24 = vadd.f32 %v2704_v21, %v2703_v10  ;;  %v10527_v21 = vld [vmem:[#allocation42_spill] sm:$0xff]  ;;  %v10528_v10 = vld [vmem:[#allocation41_spill] sm:$0xff] }
 0xa1c   :  { %v2115_v27 = vadd.f32 %v10527_v21, %v10526_v42 }
 0xa1d   :  { %6076 = vtanh.f32 %v8234_v24 }
 0xa2a   :  { %v6077_v40 = vpop.eup %6076 }
 0xa2b   :  { %v8237_v20 = vmul.f32 %v6077_v40, %v6075_v26  ;;  %v2117_v26 = vadd.f32 %v10528_v10, %v8134_v18 }
 0xa2d   :  { %10501 = vst [vmem:[#allocation55_spill] sm:$0xff] %v8237_v20  ;;  %2779 = vmatmul.mubr.f32.vlgmr.msra.gmra.mxu0 %v8237_v20  ;;  %2850 = vmatmul.mubr.f32.vlgmr.msra.gmra.mxu1 %v8237_v20 }
 0xa2e   :  { %2891 = vmatpush1.msra.mxu0 %v7812_v29  ;;  %2962 = vmatpush1.msra.mxu1 %v7815_v22  ;;  %v10502_v29 = vld [vmem:[#allocation38_spill] sm:$0xff]  ;;  %v10503_v22 = vld [vmem:[#allocation28_spill] sm:$0xff] }
 0xa2f   :  { %2892 = vmatprep.subr.mxu0 %v7818_v33  ;;  %2963 = vmatprep.subr.mxu1 %v7821_v44  ;;  %v10504_v33 = vld [vmem:[#allocation60_spill] sm:$0xff]  ;;  %v10505_v44 = vld [vmem:[#allocation61_spill] sm:$0xff] }
 0xa30   :  { %2893 = vmatpush1.msra.mxu0 %v7824_v46  ;;  %2964 = vmatpush1.msra.mxu1 %v7827_v47  ;;  %v10506_v46 = vld [vmem:[#allocation44_spill] sm:$0xff]  ;;  %v10507_v47 = vld [vmem:[#allocation43_spill] sm:$0xff] }
 0xa31   :  { %2894 = vmatprep.subr.mxu0 %v7830_v48  ;;  %2965 = vmatprep.subr.mxu1 %v7833_v49  ;;  %v10508_v48 = vld [vmem:[#allocation62_spill] sm:$0xff]  ;;  %v10509_v49 = vld [vmem:[#allocation63_spill] sm:$0xff] }
 0xa32   :  { %2895 = vmatpush1.msra.mxu0 %v7836_v50  ;;  %2966 = vmatpush1.msra.mxu1 %v7839_v51  ;;  %v10510_v50 = vld [vmem:[#allocation46_spill] sm:$0xff]  ;;  %v10511_v51 = vld [vmem:[#allocation45_spill] sm:$0xff] }
 0xa33   :  { %2896 = vmatprep.subr.mxu0 %v7842_v52  ;;  %2967 = vmatprep.subr.mxu1 %v7845_v53  ;;  %v10512_v52 = vld [vmem:[#allocation64_spill] sm:$0xff]  ;;  %v10513_v53 = vld [vmem:[#allocation65_spill] sm:$0xff] }
 0xa34   :  { %2897 = vmatpush1.msra.mxu0 %v7848_v54  ;;  %2968 = vmatpush1.msra.mxu1 %v7851_v55  ;;  %v10514_v54 = vld [vmem:[#allocation48_spill] sm:$0xff] }
 0xa35   :  { %2898 = vmatprep.subr.mxu0 %v7854_v56  ;;  %2969 = vmatprep.subr.mxu1 %v7857_v57 }
 0xa36   :  { %2899 = vmatpush1.msra.mxu0 %v7860_v59  ;;  %2970 = vmatpush1.msra.mxu1 %v7863_v60 }
 0xa37   :  { %2900 = vmatprep.subr.mxu0 %v7866_v61  ;;  %2971 = vmatprep.subr.mxu1 %v7869_v62 }
 0xa38   :  { %2901 = vmatpush1.msra.mxu0 %v7872_v63  ;;  %2972 = vmatpush1.msra.mxu1 %v7875_v25 }
 0xa39   :  { %2902 = vmatprep.subr.mxu0 %v7878_v28  ;;  %2973 = vmatprep.subr.mxu1 %v7881_v4 }
 0xa3a   :  { %2903 = vmatpush1.msra.mxu0 %v7884_v41  ;;  %2974 = vmatpush1.msra.mxu1 %v7887_v36 }
 0xa3b   :  { %2904 = vmatprep.subr.mxu0 %v7890_v0  ;;  %2975 = vmatprep.subr.mxu1 %v7893_v34 }
 0xa3c   :  { %2905 = vmatpush1.msra.mxu0 %v7896_v43  ;;  %2976 = vmatpush1.msra.mxu1 %v7899_v32 }
 0xa3d   :  { %2906 = vmatprep.subr.mxu0 %v7902_v35  ;;  %2977 = vmatprep.subr.mxu1 %v7905_v31 }
 0xa3e   :  { %2907 = vmatpush1.msra.mxu0 %v7908_v8  ;;  %2978 = vmatpush1.msra.mxu1 %v7911_v39 }
 0xa3f   :  { %2908 = vmatprep.subr.mxu0 %v7914_v6  ;;  %2979 = vmatprep.subr.mxu1 %v7917_v9 }
 0xa40   :  { %2909 = vmatpush1.msra.mxu0 %v7920_v11  ;;  %2980 = vmatpush1.msra.mxu1 %v7923_v14 }
 0xa41   :  { %2910 = vmatprep.subr.mxu0 %v7926_v16  ;;  %2981 = vmatprep.subr.mxu1 %v7929_v19 }
 0xa42   :  { %2911 = vmatpush1.msra.mxu0 %v7932_v23  ;;  %2982 = vmatpush1.msra.mxu1 %v10502_v29 }
 0xa43   :  { %2912 = vmatprep.subr.mxu0 %v10503_v22  ;;  %2983 = vmatprep.subr.mxu1 %v10504_v33 }
 0xa44   :  { %2913 = vmatpush1.msra.mxu0 %v10505_v44  ;;  %2984 = vmatpush1.msra.mxu1 %v10506_v46 }
 0xa45   :  { %2914 = vmatprep.subr.mxu0 %v10507_v47  ;;  %2985 = vmatprep.subr.mxu1 %v10508_v48 }
 0xa46   :  { %2915 = vmatpush1.msra.mxu0 %v10509_v49  ;;  %2986 = vmatpush1.msra.mxu1 %v10510_v50 }
 0xa47   :  { %2916 = vmatprep.subr.mxu0 %v10511_v51  ;;  %2987 = vmatprep.subr.mxu1 %v10512_v52 }
 0xa48   :  { %2917 = vmatpush1.msra.mxu0 %v10513_v53  ;;  %2988 = vmatpush1.msra.mxu1 %v10514_v54 }
 0xa49   :  { %2918 = vmatprep.subr.mxu0 %v10515_v1  ;;  %2989 = vmatprep.subr.mxu1 %v10516_v38 }
 0xa4a   :  { %2919 = vmatpush1.msra.mxu0 %v10517_v2  ;;  %2990 = vmatpush1.msra.mxu1 %v10518_v45  ;;  %v10530_v2 = vld [vmem:[#allocation23_spill] sm:$0xff] }
 0xa4b   :  { %2920 = vmatprep.subr.mxu0 %v10519_v3  ;;  %2991 = vmatprep.subr.mxu1 %v10520_v37  ;;  %v2228_v21 = vadd.f32 %v10530_v2, %v8149_v12 }
 0xa4c   :  { %2921 = vmatpush1.msra.mxu0 %v10521_v58  ;;  %2954 = vmatprep.mubr.f32.mxu0 %v10522_v15 }
 0xa4d   :  { %2992 = vmatpush1.msra.mxu1 %v10523_v5  ;;  %3025 = vmatprep.mubr.f32.mxu1 %v10522_v15 }
 0xa4e   :  { %3066 = vmatprep.subr.mxu0 %v10524_v13  ;;  %3137 = vmatprep.subr.mxu1 %v10525_v17  ;;  %v10529_v13 = vld [vmem:[#allocation34_spill] sm:$0xff] }
 0xa4f   :  { %v2230_v45 = vadd.f32 %v10529_v13, %v10498_v30  ;;  %v8332_v13 = vld [vmem:[#allocation8 + $0x1d8] sm:$0xff] }
 0xaed   :  { %v2780_v7 = vpop.f32.mrf.mxu0  ;;  %v2851_v3 = vpop.f32.mrf.mxu1 }
 0xaee   :  { %v2856_v40 = vadd.f32 %v2780_v7, %v2115_v27  ;;  %v2858_v42 = vadd.f32 %v2851_v3, %v2228_v21  ;;  %v8338_v21 = vld [vmem:[#allocation8 + $0x1d0] sm:$0xff] }
 0xaef   :  { %v2782_v20 = vpop.f32.mrf.mxu0  ;;  %v2853_v15 = vpop.f32.mrf.mxu1 }
 0xaf0   :  { %v5799_v58 = vmul.f32 -1.442695, %v2856_v40  ;;  %v2857_v37 = vadd.f32 %v2782_v20, %v2117_v26  ;;  %v2859_v17 = vadd.f32 %v2853_v15, %v2230_v45 }
 0xaf2   :  { %6078 = vpow2.f32 %v5799_v58  ;;  %v5800_v5 = vmul.f32 -1.442695, %v2857_v37  ;;  %v5801_v38 = vmul.f32 -1.442695, %v2859_v17  ;;  %v8335_v17 = vld [vmem:[#allocation8 + $0x1c0] sm:$0xff] }
 0xaf4   :  { %6080 = vpow2.f32 %v5800_v5 }
 0xaf5   :  { %6082 = vtanh.f32 %v2858_v42  ;;  %v8326_v42 = vld [vmem:[#allocation8 + $0x1f0] sm:$0xff] }
 0xaf6   :  { %6084 = vpow2.f32 %v5801_v38  ;;  %v8323_v38 = vld [vmem:[#allocation8 + $0x1e0] sm:$0xff] }
 0xaff   :  { %v6079_v1 = vpop.eup %6078 }
 0xb00   :  { %v2863_v10 = vadd.f32 1.0, %v6079_v1 }
 0xb01   :  { %v6081_v27 = vpop.eup %6080 }
 0xb02   :  { %6086 = vrcp.f32 %v2863_v10  ;;  %v2869_v20 = vadd.f32 1.0, %v6081_v27  ;;  %v6083_v37 = vpop.eup %6082  ;;  %v8341_v10 = vld [vmem:[#allocation8 + $0x1a8] sm:$0xff]  ;;  %v8344_v27 = vld [vmem:[#allocation8 + $0x1b8] sm:$0xff] }
 0xb03   :  { %v6085_v58 = vpop.eup %6084 }
 0xb04   :  { %6088 = vrcp.f32 %v2869_v20  ;;  %v2876_v40 = vadd.f32 1.0, %v6085_v58  ;;  %v8347_v20 = vld [vmem:[#allocation8 + $0x1a0] sm:$0xff]  ;;  %v8353_v58 = vld [vmem:[#allocation8 + $0x188] sm:$0xff] }
 0xb06   :  { %6090 = vrcp.f32 %v2876_v40 }
 0xb0f   :  { %v6087_v5 = vpop.eup %6086 }
 0xb10   :  { %v2880_v7 = vmul.f32 %v6087_v5, %v6083_v37  ;;  %v8350_v37 = vld [vmem:[#allocation8 + $0x1b0] sm:$0xff]  ;;  %v8356_v5 = vld [vmem:[#allocation8 + $0x198] sm:$0xff] }
 0xb11   :  { %v6089_v26 = vpop.eup %6088 }
 0xb12   :  { %v2879_v45 = vmul.f32 %v6089_v26, %v8234_v24  ;;  %v8329_v24 = vld [vmem:[#allocation8 + $0x1c8] sm:$0xff] }
 0xb13   :  { %v6091_v1 = vpop.eup %6090 }
 0xb14   :  { %v8316_v15 = vadd.f32 %v2880_v7, %v2879_v45  ;;  %v8359_v7 = vld [vmem:[#allocation8 + $0x180] sm:$0xff] }
 0xb16   :  { %6092 = vtanh.f32 %v8316_v15 }
 0xb23   :  { %v6093_v2 = vpop.eup %6092 }
 0xb24   :  { %v8319_v3 = vmul.f32 %v6093_v2, %v6091_v1 }
 0xb26   :  { %10531 = vst [vmem:[#allocation59_spill] sm:$0xff] %v8319_v3  ;;  %2955 = vmatmul.mubr.f32.vlgmr.msra.gmra.mxu0 %v8319_v3  ;;  %3026 = vmatmul.mubr.f32.vlgmr.msra.gmra.mxu1 %v8319_v3  ;;  %v8574_v3 = vld [vmem:[#allocation8 + $0x38] sm:$0xff] }
 0xb27   :  { %3067 = vmatpush1.msra.mxu0 %v8323_v38  ;;  %3138 = vmatpush1.msra.mxu1 %v8326_v42  ;;  %10563 = vst [vmem:[#allocation27_spill] sm:$0xff] %v8574_v3 }
 0xb28   :  { %3068 = vmatprep.subr.mxu0 %v8329_v24  ;;  %3139 = vmatprep.subr.mxu1 %v8332_v13 }
 0xb29   :  { %3069 = vmatpush1.msra.mxu0 %v8335_v17  ;;  %3140 = vmatpush1.msra.mxu1 %v8338_v21 }
 0xb2a   :  { %3070 = vmatprep.subr.mxu0 %v8341_v10  ;;  %3141 = vmatprep.subr.mxu1 %v8344_v27 }
 0xb2b   :  { %3071 = vmatpush1.msra.mxu0 %v8347_v20  ;;  %3142 = vmatpush1.msra.mxu1 %v8350_v37 }
 0xb2c   :  { %3072 = vmatprep.subr.mxu0 %v8353_v58  ;;  %3143 = vmatprep.subr.mxu1 %v8356_v5 }
 0xb2d   :  { %3073 = vmatpush1.msra.mxu0 %v8359_v7  ;;  %3144 = vmatpush1.msra.mxu1 %v7851_v55  ;;  %v10532_v55 = vld [vmem:[#allocation47_spill] sm:$0xff] }
 0xb2e   :  { %3074 = vmatprep.subr.mxu0 %v7854_v56  ;;  %3145 = vmatprep.subr.mxu1 %v7857_v57  ;;  %v10533_v56 = vld [vmem:[#allocation31_spill] sm:$0xff]  ;;  %v10534_v57 = vld [vmem:[#allocation18_spill] sm:$0xff] }
 0xb2f   :  { %3075 = vmatpush1.msra.mxu0 %v7860_v59  ;;  %3146 = vmatpush1.msra.mxu1 %v7863_v60  ;;  %v10535_v59 = vld [vmem:[#allocation67_spill] sm:$0xff]  ;;  %v10536_v60 = vld [vmem:[#allocation66_spill] sm:$0xff] }
 0xb30   :  { %3076 = vmatprep.subr.mxu0 %v7866_v61  ;;  %3147 = vmatprep.subr.mxu1 %v7869_v62  ;;  %v10537_v61 = vld [vmem:[#allocation49_spill] sm:$0xff]  ;;  %v10538_v62 = vld [vmem:[#allocation50_spill] sm:$0xff] }
 0xb31   :  { %3077 = vmatpush1.msra.mxu0 %v7872_v63  ;;  %3148 = vmatpush1.msra.mxu1 %v7875_v25  ;;  %v10539_v63 = vmov 0.0   ;;  %v10540_v25 = vld [vmem:[#allocation32_spill] sm:$0xff] }
 0xb32   :  { %3078 = vmatprep.subr.mxu0 %v7878_v28  ;;  %3149 = vmatprep.subr.mxu1 %v7881_v4  ;;  %v8413_v28 = vld [vmem:[#allocation8 + $0x1e8] sm:$0xff]  ;;  %v8416_v4 = vld [vmem:[#allocation8 + $0x1f8] sm:$0xff] }
 0xb33   :  { %3079 = vmatpush1.msra.mxu0 %v7884_v41  ;;  %3150 = vmatpush1.msra.mxu1 %v7887_v36  ;;  %10541 = vst [vmem:[#allocation56_spill] sm:$0xff] %v8413_v28  ;;  %10542 = vst [vmem:[#allocation33_spill] sm:$0xff] %v8416_v4  ;;  %v10543_v41 = vld [vmem:[#allocation21_spill] sm:$0xff] }
 0xb34   :  { %3080 = vmatprep.subr.mxu0 %v7890_v0  ;;  %3151 = vmatprep.subr.mxu1 %v7893_v34  ;;  %v10544_v36 = vld [vmem:[#allocation29_spill] sm:$0xff] }
 0xb35   :  { %3081 = vmatpush1.msra.mxu0 %v7896_v43  ;;  %3152 = vmatpush1.msra.mxu1 %v7899_v32  ;;  %v2121_v0 = vadd.f32 %v10544_v36, %v10543_v41  ;;  %v10545_v43 = vld [vmem:[#allocation19_spill] sm:$0xff]  ;;  %v8475_v36 = vld [vmem:[#allocation8 + $0x128] sm:$0xff] }
 0xb36   :  { %3082 = vmatprep.subr.mxu0 %v7902_v35  ;;  %3153 = vmatprep.subr.mxu1 %v7905_v31  ;;  %v2123_v32 = vadd.f32 %v10545_v43, %v8134_v18  ;;  %v8484_v43 = vld [vmem:[#allocation8 + $0x130] sm:$0xff] }
 0xb37   :  { %3083 = vmatpush1.msra.mxu0 %v7908_v8  ;;  %3154 = vmatpush1.msra.mxu1 %v7911_v39 }
 0xb38   :  { %3084 = vmatprep.subr.mxu0 %v7914_v6  ;;  %3155 = vmatprep.subr.mxu1 %v7917_v9 }
 0xb39   :  { %3085 = vmatpush1.msra.mxu0 %v7920_v11  ;;  %3156 = vmatpush1.msra.mxu1 %v7923_v14  ;;  %v10546_v14 = vld [vmem:[#allocation35_spill] sm:$0xff] }
 0xb3a   :  { %3086 = vmatprep.subr.mxu0 %v7926_v16  ;;  %3157 = vmatprep.subr.mxu1 %v7929_v19  ;;  %v2236_v16 = vadd.f32 %v10546_v14, %v10498_v30  ;;  %v8511_v14 = vld [vmem:[#allocation8 + $0xc8] sm:$0xff] }
 0xb3b   :  { %3087 = vmatpush1.msra.mxu0 %v7932_v23  ;;  %3158 = vmatpush1.msra.mxu1 %v10502_v29  ;;  %v10547_v23 = vld [vmem:[#allocation24_spill] sm:$0xff] }
 0xb3c   :  { %3088 = vmatprep.subr.mxu0 %v10503_v22  ;;  %3159 = vmatprep.subr.mxu1 %v10504_v33  ;;  %v2234_v29 = vadd.f32 %v10547_v23, %v8149_v12  ;;  %v8520_v23 = vld [vmem:[#allocation8 + $0xd0] sm:$0xff] }
 0xb3d   :  { %3089 = vmatpush1.msra.mxu0 %v10505_v44  ;;  %3160 = vmatpush1.msra.mxu1 %v10506_v46 }
 0xb3e   :  { %3090 = vmatprep.subr.mxu0 %v10507_v47  ;;  %3161 = vmatprep.subr.mxu1 %v10508_v48 }
 0xb3f   :  { %3091 = vmatpush1.msra.mxu0 %v10509_v49  ;;  %3162 = vmatpush1.msra.mxu1 %v10510_v50 }
 0xb40   :  { %3092 = vmatprep.subr.mxu0 %v10511_v51  ;;  %3163 = vmatprep.subr.mxu1 %v10512_v52 }
 0xb41   :  { %3093 = vmatpush1.msra.mxu0 %v10513_v53  ;;  %3164 = vmatpush1.msra.mxu1 %v10514_v54 }
 0xb42   :  { %3094 = vmatprep.subr.mxu0 %v10532_v55  ;;  %3165 = vmatprep.subr.mxu1 %v10533_v56  ;;  %v8451_v55 = vld [vmem:[#allocation8 + $0x168] sm:$0xff]  ;;  %v8454_v56 = vld [vmem:[#allocation8 + $0x178] sm:$0xff] }
 0xb43   :  { %3095 = vmatpush1.msra.mxu0 %v10534_v57  ;;  %3166 = vmatpush1.msra.mxu1 %v10535_v59  ;;  %v8457_v57 = vld [vmem:[#allocation8 + $0x160] sm:$0xff]  ;;  %v8460_v59 = vld [vmem:[#allocation8 + $0x170] sm:$0xff] }
 0xb44   :  { %3096 = vmatprep.subr.mxu0 %v10536_v60  ;;  %3167 = vmatprep.subr.mxu1 %v10537_v61  ;;  %v8463_v60 = vld [vmem:[#allocation8 + $0x148] sm:$0xff]  ;;  %v8466_v61 = vld [vmem:[#allocation8 + $0x158] sm:$0xff] }
 0xb45   :  { %3097 = vmatpush1.msra.mxu0 %v10538_v62  ;;  %3130 = vmatprep.mubr.f32.mxu0 %v10539_v63  ;;  %v8469_v62 = vld [vmem:[#allocation8 + $0x140] sm:$0xff] }
 0xb46   :  { %3168 = vmatpush1.msra.mxu1 %v10540_v25  ;;  %3201 = vmatprep.mubr.f32.mxu1 %v10539_v63  ;;  %v8472_v25 = vld [vmem:[#allocation8 + $0x150] sm:$0xff] }
 0xb47   :  { %3242 = vmatprep.subr.mxu0 %v8413_v28  ;;  %3313 = vmatprep.subr.mxu1 %v8416_v4 }
 0xbe6   :  { %v2956_v34 = vpop.f32.mrf.mxu0  ;;  %v3027_v6 = vpop.f32.mrf.mxu1 }
 0xbe7   :  { %v3032_v35 = vadd.f32 %v2956_v34, %v2121_v0  ;;  %v3034_v22 = vadd.f32 %v3027_v6, %v2234_v29  ;;  %v8478_v0 = vld [vmem:[#allocation8 + $0x138] sm:$0xff]  ;;  %v8481_v34 = vld [vmem:[#allocation8 + $0x120] sm:$0xff]  ;;  %v8523_v29 = vld [vmem:[#allocation8 + $0xa8] sm:$0xff] }
 0xbe8   :  { %v2958_v31 = vpop.f32.mrf.mxu0  ;;  %v3029_v11 = vpop.f32.mrf.mxu1  ;;  %v8502_v6 = vld [vmem:[#allocation8 + $0xf8] sm:$0xff] }
 0xbe9   :  { %v5802_v8 = vmul.f32 -1.442695, %v3032_v35  ;;  %v3033_v39 = vadd.f32 %v2958_v31, %v2123_v32  ;;  %v3035_v19 = vadd.f32 %v3029_v11, %v2236_v16  ;;  %v8487_v32 = vld [vmem:[#allocation8 + $0x108] sm:$0xff]  ;;  %v8490_v35 = vld [vmem:[#allocation8 + $0x118] sm:$0xff]  ;;  %v8493_v31 = vld [vmem:[#allocation8 + $0x100] sm:$0xff] }
 0xbea   :  { %v8508_v11 = vld [vmem:[#allocation8 + $0xf0] sm:$0xff]  ;;  %v8514_v16 = vld [vmem:[#allocation8 + $0xd8] sm:$0xff] }
 0xbeb   :  { %6094 = vpow2.f32 %v5802_v8  ;;  %v5803_v9 = vmul.f32 -1.442695, %v3033_v39  ;;  %v5804_v33 = vmul.f32 -1.442695, %v3035_v19  ;;  %v8496_v8 = vld [vmem:[#allocation8 + $0x110] sm:$0xff]  ;;  %v8499_v39 = vld [vmem:[#allocation8 + $0xe8] sm:$0xff] }
 0xbec   :  { %v8517_v19 = vld [vmem:[#allocation8 + $0xc0] sm:$0xff] }
 0xbed   :  { %6096 = vpow2.f32 %v5803_v9  ;;  %v8505_v9 = vld [vmem:[#allocation8 + $0xe0] sm:$0xff] }
 0xbee   :  { %6098 = vtanh.f32 %v3034_v22  ;;  %v8526_v22 = vld [vmem:[#allocation8 + $0xb8] sm:$0xff] }
 0xbef   :  { %6100 = vpow2.f32 %v5804_v33  ;;  %v8529_v33 = vld [vmem:[#allocation8 + $0xa0] sm:$0xff] }
 0xbf8   :  { %v6095_v44 = vpop.eup %6094 }
 0xbf9   :  { %v3039_v46 = vadd.f32 1.0, %v6095_v44  ;;  %v8532_v44 = vld [vmem:[#allocation8 + $0xb0] sm:$0xff] }
 0xbfa   :  { %v6097_v47 = vpop.eup %6096  ;;  %10549 = vst [vmem:[#allocation38_spill] sm:$0xff] %v8532_v44 }
 0xbfb   :  { %6102 = vrcp.f32 %v3039_v46  ;;  %v3045_v48 = vadd.f32 1.0, %v6097_v47  ;;  %v6099_v49 = vpop.eup %6098  ;;  %v8535_v46 = vld [vmem:[#allocation8 + $0x88] sm:$0xff]  ;;  %v8538_v47 = vld [vmem:[#allocation8 + $0x98] sm:$0xff] }
 0xbfc   :  { %v6101_v50 = vpop.eup %6100  ;;  %10550 = vst [vmem:[#allocation28_spill] sm:$0xff] %v8535_v46  ;;  %10551 = vst [vmem:[#allocation60_spill] sm:$0xff] %v8538_v47 }
 0xbfd   :  { %6104 = vrcp.f32 %v3045_v48  ;;  %v3052_v54 = vadd.f32 1.0, %v6101_v50  ;;  %v8541_v48 = vld [vmem:[#allocation8 + $0x80] sm:$0xff]  ;;  %v8547_v50 = vld [vmem:[#allocation8 + $0x68] sm:$0xff] }
 0xbfe   :  { %10552 = vst [vmem:[#allocation61_spill] sm:$0xff] %v8541_v48  ;;  %10554 = vst [vmem:[#allocation43_spill] sm:$0xff] %v8547_v50 }
 0xbff   :  { %6106 = vrcp.f32 %v3052_v54  ;;  %v8559_v54 = vld [vmem:[#allocation8 + $0x48] sm:$0xff] }
 0xc00   :  { %10558 = vst [vmem:[#allocation45_spill] sm:$0xff] %v8559_v54 }
 0xc08   :  { %v6103_v51 = vpop.eup %6102 }
 0xc09   :  { %v3056_v52 = vmul.f32 %v6103_v51, %v6099_v49  ;;  %v8544_v49 = vld [vmem:[#allocation8 + $0x90] sm:$0xff]  ;;  %v8550_v51 = vld [vmem:[#allocation8 + $0x78] sm:$0xff] }
 0xc0a   :  { %v6105_v53 = vpop.eup %6104  ;;  %10553 = vst [vmem:[#allocation44_spill] sm:$0xff] %v8544_v49  ;;  %10555 = vst [vmem:[#allocation62_spill] sm:$0xff] %v8550_v51 }
 0xc0b   :  { %v3055_v26 = vmul.f32 %v6105_v53, %v8316_v15  ;;  %v8448_v15 = vld [vmem:[#allocation8 + $0x190] sm:$0xff] }
 0xc0c   :  { %v6107_v45 = vpop.eup %6106  ;;  %v8556_v53 = vld [vmem:[#allocation8 + $0x70] sm:$0xff] }
 0xc0d   :  { %v8428_v40 = vadd.f32 %v3056_v52, %v3055_v26  ;;  %v8553_v52 = vld [vmem:[#allocation8 + $0x60] sm:$0xff]  ;;  %10557 = vst [vmem:[#allocation46_spill] sm:$0xff] %v8556_v53  ;;  %v8562_v26 = vld [vmem:[#allocation8 + $0x58] sm:$0xff] }
 0xc0e   :  { %10556 = vst [vmem:[#allocation63_spill] sm:$0xff] %v8553_v52  ;;  %10559 = vst [vmem:[#allocation64_spill] sm:$0xff] %v8562_v26 }
 0xc0f   :  { %6108 = vtanh.f32 %v8428_v40 }
 0xc1c   :  { %v6109_v1 = vpop.eup %6108 }
 0xc1d   :  { %v8431_v2 = vmul.f32 %v6109_v1, %v6107_v45  ;;  %v8565_v45 = vld [vmem:[#allocation8 + $0x40] sm:$0xff]  ;;  %v8568_v1 = vld [vmem:[#allocation8 + $0x50] sm:$0xff] }
 0xc1e   :  { %10560 = vst [vmem:[#allocation65_spill] sm:$0xff] %v8565_v45  ;;  %10561 = vst [vmem:[#allocation48_spill] sm:$0xff] %v8568_v1 }
 0xc1f   :  { %10548 = vst [vmem:[#allocation22_spill] sm:$0xff] %v8431_v2  ;;  %3131 = vmatmul.mubr.f32.vlgmr.msra.gmra.mxu0 %v8431_v2  ;;  %3202 = vmatmul.mubr.f32.vlgmr.msra.gmra.mxu1 %v8431_v2  ;;  %v8571_v2 = vld [vmem:[#allocation8 + $0x28] sm:$0xff] }
 0xc20   :  { %3243 = vmatpush1.msra.mxu0 %v8323_v38  ;;  %3314 = vmatpush1.msra.mxu1 %v8326_v42  ;;  %10562 = vst [vmem:[#allocation37_spill] sm:$0xff] %v8571_v2 }
 0xc21   :  { %3244 = vmatprep.subr.mxu0 %v8329_v24  ;;  %3315 = vmatprep.subr.mxu1 %v8332_v13 }
 0xc22   :  { %3245 = vmatpush1.msra.mxu0 %v8335_v17  ;;  %3316 = vmatpush1.msra.mxu1 %v8338_v21 }
 0xc23   :  { %3246 = vmatprep.subr.mxu0 %v8341_v10  ;;  %3317 = vmatprep.subr.mxu1 %v8344_v27 }
 0xc24   :  { %3247 = vmatpush1.msra.mxu0 %v8347_v20  ;;  %3318 = vmatpush1.msra.mxu1 %v8350_v37 }
 0xc25   :  { %3248 = vmatprep.subr.mxu0 %v8353_v58  ;;  %3319 = vmatprep.subr.mxu1 %v8356_v5 }
 0xc26   :  { %3249 = vmatpush1.msra.mxu0 %v8359_v7  ;;  %3320 = vmatpush1.msra.mxu1 %v8448_v15 }
 0xc27   :  { %3250 = vmatprep.subr.mxu0 %v8451_v55  ;;  %3321 = vmatprep.subr.mxu1 %v8454_v56 }
 0xc28   :  { %3251 = vmatpush1.msra.mxu0 %v8457_v57  ;;  %3322 = vmatpush1.msra.mxu1 %v8460_v59 }
 0xc29   :  { %3252 = vmatprep.subr.mxu0 %v8463_v60  ;;  %3323 = vmatprep.subr.mxu1 %v8466_v61 }
 0xc2a   :  { %3253 = vmatpush1.msra.mxu0 %v8469_v62  ;;  %3324 = vmatpush1.msra.mxu1 %v8472_v25 }
 0xc2b   :  { %3254 = vmatprep.subr.mxu0 %v8475_v36  ;;  %3325 = vmatprep.subr.mxu1 %v8478_v0 }
 0xc2c   :  { %3255 = vmatpush1.msra.mxu0 %v8481_v34  ;;  %3326 = vmatpush1.msra.mxu1 %v8484_v43 }
 0xc2d   :  { %3256 = vmatprep.subr.mxu0 %v8487_v32  ;;  %3327 = vmatprep.subr.mxu1 %v8490_v35 }
 0xc2e   :  { %3257 = vmatpush1.msra.mxu0 %v8493_v31  ;;  %3328 = vmatpush1.msra.mxu1 %v8496_v8 }
 0xc2f   :  { %3258 = vmatprep.subr.mxu0 %v8499_v39  ;;  %3329 = vmatprep.subr.mxu1 %v8502_v6 }
 0xc30   :  { %3259 = vmatpush1.msra.mxu0 %v8505_v9  ;;  %3330 = vmatpush1.msra.mxu1 %v8508_v11 }
 0xc31   :  { %3260 = vmatprep.subr.mxu0 %v8511_v14  ;;  %3331 = vmatprep.subr.mxu1 %v8514_v16 }
 0xc32   :  { %3261 = vmatpush1.msra.mxu0 %v8517_v19  ;;  %3332 = vmatpush1.msra.mxu1 %v8520_v23 }
 0xc33   :  { %3262 = vmatprep.subr.mxu0 %v8523_v29  ;;  %3333 = vmatprep.subr.mxu1 %v8526_v22 }
 0xc34   :  { %3263 = vmatpush1.msra.mxu0 %v8529_v33  ;;  %3334 = vmatpush1.msra.mxu1 %v8532_v44 }
 0xc35   :  { %3264 = vmatprep.subr.mxu0 %v8535_v46  ;;  %3335 = vmatprep.subr.mxu1 %v8538_v47  ;;  %v10573_v47 = vld [vmem:[#allocation25_spill] sm:$0xff] }
 0xc36   :  { %3265 = vmatpush1.msra.mxu0 %v8541_v48  ;;  %3336 = vmatpush1.msra.mxu1 %v8544_v49 }
 0xc37   :  { %3266 = vmatprep.subr.mxu0 %v8547_v50  ;;  %3337 = vmatprep.subr.mxu1 %v8550_v51 }
 0xc38   :  { %3267 = vmatpush1.msra.mxu0 %v8553_v52  ;;  %3338 = vmatpush1.msra.mxu1 %v8556_v53 }
 0xc39   :  { %3268 = vmatprep.subr.mxu0 %v8559_v54  ;;  %3339 = vmatprep.subr.mxu1 %v8562_v26  ;;  %v8577_v54 = vld [vmem:[#allocation8 + $0x20] sm:$0xff]  ;;  %v8580_v26 = vld [vmem:[#allocation8 + $0x30] sm:$0xff] }
 0xc3a   :  { %3269 = vmatpush1.msra.mxu0 %v8565_v45  ;;  %3340 = vmatpush1.msra.mxu1 %v8568_v1  ;;  %10564 = vst [vmem:[#allocation42_spill] sm:$0xff] %v8577_v54  ;;  %10565 = vst [vmem:[#allocation41_spill] sm:$0xff] %v8580_v26  ;;  %v8583_v45 = vld [vmem:[#allocation8 + $0x8] sm:$0xff]  ;;  %v8586_v1 = vld [vmem:[#allocation8 + $0x18] sm:$0xff] }
 0xc3b   :  { %3270 = vmatprep.subr.mxu0 %v8571_v2  ;;  %3341 = vmatprep.subr.mxu1 %v8574_v3  ;;  %10566 = vst [vmem:[#allocation34_spill] sm:$0xff] %v8583_v45  ;;  %10567 = vst [vmem:[#allocation23_spill] sm:$0xff] %v8586_v1  ;;  %v8589_v2 = vld [vmem:[#allocation8] sm:$0xff]  ;;  %v8593_v3 = vld [vmem:[#allocation8 + $0x10] sm:$0xff] }
 0xc3c   :  { %3271 = vmatpush1.msra.mxu0 %v8577_v54  ;;  %3342 = vmatpush1.msra.mxu1 %v8580_v26  ;;  %10568 = vst [vmem:[#allocation47_spill] sm:$0xff] %v8589_v2  ;;  %10569 = vst [vmem:[#allocation31_spill] sm:$0xff] %v8593_v3  ;;  %v10571_v54 = vld [vmem:[#allocation20_spill] sm:$0xff] }
 0xc3d   :  { %3272 = vmatprep.subr.mxu0 %v8583_v45  ;;  %3343 = vmatprep.subr.mxu1 %v8586_v1  ;;  %v10570_v45 = vld [vmem:[#allocation30_spill] sm:$0xff]  ;;  %v2129_v53 = vadd.f32 %v10571_v54, %v8134_v18 }
 0xc3e   :  { %3273 = vmatpush1.msra.mxu0 %v8589_v2  ;;  %3306 = vmatprep.mubr.f32.mxu0 %v10539_v63  ;;  %v2127_v26 = vadd.f32 %v10570_v45, %v10543_v41  ;;  %v2240_v45 = vadd.f32 %v10573_v47, %v8149_v12  ;;  %v10577_v47 = vld [vmem:[#allocation60_spill] sm:$0xff] }
 0xc3f   :  { %3344 = vmatpush1.msra.mxu1 %v8593_v3  ;;  %3377 = vmatprep.mubr.f32.mxu1 %v10539_v63 }
 0xc40   :  { %3418 = vmatprep.subr.mxu0 %v8413_v28  ;;  %3489 = vmatprep.subr.mxu1 %v8416_v4  ;;  %v10572_v28 = vld [vmem:[#allocation36_spill] sm:$0xff] }
 0xc41   :  { %v2242_v48 = vadd.f32 %v10572_v28, %v10498_v30 }
 0xcdf   :  { %v3132_v1 = vpop.f32.mrf.mxu0  ;;  %v3203_v49 = vpop.f32.mrf.mxu1 }
 0xce0   :  { %v3208_v2 = vadd.f32 %v3132_v1, %v2127_v26  ;;  %v3210_v41 = vadd.f32 %v3203_v49, %v2240_v45  ;;  %v10578_v49 = vld [vmem:[#allocation61_spill] sm:$0xff]  ;;  %v10579_v1 = vld [vmem:[#allocation44_spill] sm:$0xff]  ;;  %v10580_v45 = vld [vmem:[#allocation43_spill] sm:$0xff] }
 0xce1   :  { %v3134_v52 = vpop.f32.mrf.mxu0  ;;  %v3205_v63 = vpop.f32.mrf.mxu1 }
 0xce2   :  { %v5805_v51 = vmul.f32 -1.442695, %v3208_v2  ;;  %v3209_v50 = vadd.f32 %v3134_v52, %v2129_v53  ;;  %v3211_v4 = vadd.f32 %v3205_v63, %v2242_v48 }
 0xce4   :  { %6110 = vpow2.f32 %v5805_v51  ;;  %v5806_v3 = vmul.f32 -1.442695, %v3209_v50  ;;  %v5807_v46 = vmul.f32 -1.442695, %v3211_v4 }
 0xce6   :  { %6112 = vpow2.f32 %v5806_v3 }
 0xce7   :  { %6114 = vtanh.f32 %v3210_v41 }
 0xce8   :  { %6116 = vpow2.f32 %v5807_v46  ;;  %v10576_v46 = vld [vmem:[#allocation28_spill] sm:$0xff] }
 0xcf1   :  { %v6111_v44 = vpop.eup %6110 }
 0xcf2   :  { %v3215_v54 = vadd.f32 1.0, %v6111_v44 }
 0xcf3   :  { %v6113_v26 = vpop.eup %6112 }
 0xcf4   :  { %6118 = vrcp.f32 %v3215_v54  ;;  %v3221_v2 = vadd.f32 1.0, %v6113_v26  ;;  %v6115_v50 = vpop.eup %6114  ;;  %v10581_v54 = vld [vmem:[#allocation62_spill] sm:$0xff]  ;;  %v10582_v26 = vld [vmem:[#allocation63_spill] sm:$0xff] }
 0xcf5   :  { %v6117_v3 = vpop.eup %6116 }
 0xcf6   :  { %6120 = vrcp.f32 %v3221_v2  ;;  %v3228_v28 = vadd.f32 1.0, %v6117_v3  ;;  %v10583_v2 = vld [vmem:[#allocation46_spill] sm:$0xff]  ;;  %v10585_v3 = vld [vmem:[#allocation64_spill] sm:$0xff] }
 0xcf8   :  { %6122 = vrcp.f32 %v3228_v28  ;;  %v10589_v28 = vld [vmem:[#allocation27_spill] sm:$0xff] }
 0xd01   :  { %v6119_v51 = vpop.eup %6118 }
 0xd02   :  { %v3232_v52 = vmul.f32 %v6119_v51, %v6115_v50  ;;  %v10584_v50 = vld [vmem:[#allocation45_spill] sm:$0xff] }
 0xd03   :  { %v6121_v53 = vpop.eup %6120  ;;  %v10586_v51 = vld [vmem:[#allocation65_spill] sm:$0xff] }
 0xd04   :  { %v3231_v63 = vmul.f32 %v6121_v53, %v8428_v40  ;;  %v10575_v40 = vld [vmem:[#allocation38_spill] sm:$0xff]  ;;  %v10588_v53 = vld [vmem:[#allocation37_spill] sm:$0xff] }
 0xd05   :  { %v6123_v4 = vpop.eup %6122 }
 0xd06   :  { %v8608_v48 = vadd.f32 %v3232_v52, %v3231_v63  ;;  %v10587_v52 = vld [vmem:[#allocation48_spill] sm:$0xff]  ;;  %v10590_v63 = vld [vmem:[#allocation42_spill] sm:$0xff] }
 0xd08   :  { %6124 = vtanh.f32 %v8608_v48 }
 0xd15   :  { %v6125_v41 = vpop.eup %6124 }
 0xd16   :  { %v8611_v44 = vmul.f32 %v6125_v41, %v6123_v4  ;;  %v10591_v4 = vld [vmem:[#allocation41_spill] sm:$0xff]  ;;  %v10592_v41 = vld [vmem:[#allocation34_spill] sm:$0xff] }
 0xd18   :  { %10574 = vst [vmem:[#allocation18_spill] sm:$0xff] %v8611_v44  ;;  %3307 = vmatmul.mubr.f32.vlgmr.msra.gmra.mxu0 %v8611_v44  ;;  %3378 = vmatmul.mubr.f32.vlgmr.msra.gmra.mxu1 %v8611_v44  ;;  %v10593_v44 = vld [vmem:[#allocation23_spill] sm:$0xff] }
 0xd19   :  { %3419 = vmatpush1.msra.mxu0 %v8323_v38  ;;  %3490 = vmatpush1.msra.mxu1 %v8326_v42 }
 0xd1a   :  { %3420 = vmatprep.subr.mxu0 %v8329_v24  ;;  %3491 = vmatprep.subr.mxu1 %v8332_v13 }
 0xd1b   :  { %3421 = vmatpush1.msra.mxu0 %v8335_v17  ;;  %3492 = vmatpush1.msra.mxu1 %v8338_v21 }
 0xd1c   :  { %3422 = vmatprep.subr.mxu0 %v8341_v10  ;;  %3493 = vmatprep.subr.mxu1 %v8344_v27 }
 0xd1d   :  { %3423 = vmatpush1.msra.mxu0 %v8347_v20  ;;  %3494 = vmatpush1.msra.mxu1 %v8350_v37 }
 0xd1e   :  { %3424 = vmatprep.subr.mxu0 %v8353_v58  ;;  %3495 = vmatprep.subr.mxu1 %v8356_v5 }
 0xd1f   :  { %3425 = vmatpush1.msra.mxu0 %v8359_v7  ;;  %3496 = vmatpush1.msra.mxu1 %v8448_v15 }
 0xd20   :  { %3426 = vmatprep.subr.mxu0 %v8451_v55  ;;  %3497 = vmatprep.subr.mxu1 %v8454_v56 }
 0xd21   :  { %3427 = vmatpush1.msra.mxu0 %v8457_v57  ;;  %3498 = vmatpush1.msra.mxu1 %v8460_v59 }
 0xd22   :  { %3428 = vmatprep.subr.mxu0 %v8463_v60  ;;  %3499 = vmatprep.subr.mxu1 %v8466_v61 }
 0xd23   :  { %3429 = vmatpush1.msra.mxu0 %v8469_v62  ;;  %3500 = vmatpush1.msra.mxu1 %v8472_v25 }
 0xd24   :  { %3430 = vmatprep.subr.mxu0 %v8475_v36  ;;  %3501 = vmatprep.subr.mxu1 %v8478_v0 }
 0xd25   :  { %3431 = vmatpush1.msra.mxu0 %v8481_v34  ;;  %3502 = vmatpush1.msra.mxu1 %v8484_v43 }
 0xd26   :  { %3432 = vmatprep.subr.mxu0 %v8487_v32  ;;  %3503 = vmatprep.subr.mxu1 %v8490_v35 }
 0xd27   :  { %3433 = vmatpush1.msra.mxu0 %v8493_v31  ;;  %3504 = vmatpush1.msra.mxu1 %v8496_v8 }
 0xd28   :  { %3434 = vmatprep.subr.mxu0 %v8499_v39  ;;  %3505 = vmatprep.subr.mxu1 %v8502_v6 }
 0xd29   :  { %3435 = vmatpush1.msra.mxu0 %v8505_v9  ;;  %3506 = vmatpush1.msra.mxu1 %v8508_v11 }
 0xd2a   :  { %3436 = vmatprep.subr.mxu0 %v8511_v14  ;;  %3507 = vmatprep.subr.mxu1 %v8514_v16 }
 0xd2b   :  { %3437 = vmatpush1.msra.mxu0 %v8517_v19  ;;  %3508 = vmatpush1.msra.mxu1 %v8520_v23 }
 0xd2c   :  { %3438 = vmatprep.subr.mxu0 %v8523_v29  ;;  %3509 = vmatprep.subr.mxu1 %v8526_v22 }
 0xd2d   :  { %3439 = vmatpush1.msra.mxu0 %v8529_v33  ;;  %3510 = vmatpush1.msra.mxu1 %v10575_v40 }
 0xd2e   :  { %3440 = vmatprep.subr.mxu0 %v10576_v46  ;;  %3511 = vmatprep.subr.mxu1 %v10577_v47  ;;  %v10603_v47 = vld [vmem:[#allocation69_spill] sm:$0xff] }
 0xd2f   :  { %3441 = vmatpush1.msra.mxu0 %v10578_v49  ;;  %3512 = vmatpush1.msra.mxu1 %v10579_v1 }
 0xd30   :  { %3442 = vmatprep.subr.mxu0 %v10580_v45  ;;  %3513 = vmatprep.subr.mxu1 %v10581_v54 }
 0xd31   :  { %3443 = vmatpush1.msra.mxu0 %v10582_v26  ;;  %3514 = vmatpush1.msra.mxu1 %v10583_v2  ;;  %v10594_v2 = vld [vmem:[#allocation47_spill] sm:$0xff] }
 0xd32   :  { %3444 = vmatprep.subr.mxu0 %v10584_v50  ;;  %3515 = vmatprep.subr.mxu1 %v10585_v3  ;;  %v10595_v50 = vmov 0.0   ;;  %v10596_v3 = vld [vmem:[#allocation31_spill] sm:$0xff] }
 0xd33   :  { %3445 = vmatpush1.msra.mxu0 %v10586_v51  ;;  %3516 = vmatpush1.msra.mxu1 %v10587_v52  ;;  %v10597_v52 = vld [vmem:[#allocation56_spill] sm:$0xff] }
 0xd34   :  { %3446 = vmatprep.subr.mxu0 %v10588_v53  ;;  %3517 = vmatprep.subr.mxu1 %v10589_v28  ;;  %v10598_v53 = vld [vmem:[#allocation33_spill] sm:$0xff] }
 0xd35   :  { %3447 = vmatpush1.msra.mxu0 %v10590_v63  ;;  %3518 = vmatpush1.msra.mxu1 %v10591_v4  ;;  %v10599_v28 = vld [vmem:[#allocation21_spill] sm:$0xff]  ;;  %v10600_v63 = vld [vmem:[#allocation68_spill] sm:$0xff] }
 0xd36   :  { %3448 = vmatprep.subr.mxu0 %v10592_v41  ;;  %3519 = vmatprep.subr.mxu1 %v10593_v44  ;;  %v2133_v51 = vadd.f32 %v10600_v63, %v10599_v28  ;;  %v10601_v41 = vld [vmem:[#allocation54_spill] sm:$0xff]  ;;  %v2246_v63 = vadd.f32 %v10603_v47, %v8149_v12 }
 0xd37   :  { %3449 = vmatpush1.msra.mxu0 %v10594_v2  ;;  %3482 = vmatprep.mubr.f32.mxu0 %v10595_v50  ;;  %v2135_v26 = vadd.f32 %v10601_v41, %v8134_v18 }
 0xd38   :  { %3520 = vmatpush1.msra.mxu1 %v10596_v3  ;;  %3553 = vmatprep.mubr.f32.mxu1 %v10595_v50 }
 0xd39   :  { %3594 = vmatprep.subr.mxu0 %v10597_v52  ;;  %3665 = vmatprep.subr.mxu1 %v10598_v53  ;;  %v10602_v52 = vld [vmem:[#allocation51_spill] sm:$0xff] }
 0xd3a   :  { %v2248_v49 = vadd.f32 %v10602_v52, %v10498_v30 }
 0xdd8   :  { %v3308_v4 = vpop.f32.mrf.mxu0  ;;  %v3379_v1 = vpop.f32.mrf.mxu1 }
 0xdd9   :  { %v3384_v44 = vadd.f32 %v3308_v4, %v2133_v51  ;;  %v3386_v28 = vadd.f32 %v3379_v1, %v2246_v63 }
 0xdda   :  { %v3310_v54 = vpop.f32.mrf.mxu0  ;;  %v3381_v50 = vpop.f32.mrf.mxu1 }
 0xddb   :  { %v5808_v2 = vmul.f32 -1.442695, %v3384_v44  ;;  %v3385_v45 = vadd.f32 %v3310_v54, %v2135_v26  ;;  %v3387_v53 = vadd.f32 %v3381_v50, %v2248_v49 }
 0xddd   :  { %6126 = vpow2.f32 %v5808_v2  ;;  %v5809_v3 = vmul.f32 -1.442695, %v3385_v45  ;;  %v5810_v46 = vmul.f32 -1.442695, %v3387_v53 }
 0xddf   :  { %6128 = vpow2.f32 %v5809_v3 }
 0xde0   :  { %6130 = vtanh.f32 %v3386_v28 }
 0xde1   :  { %6132 = vpow2.f32 %v5810_v46 }
 0xdea   :  { %v6127_v40 = vpop.eup %6126 }
 0xdeb   :  { %v3391_v41 = vadd.f32 1.0, %v6127_v40 }
 0xdec   :  { %v6129_v51 = vpop.eup %6128 }
 0xded   :  { %6134 = vrcp.f32 %v3391_v41  ;;  %v3397_v44 = vadd.f32 1.0, %v6129_v51  ;;  %v6131_v45 = vpop.eup %6130 }
 0xdee   :  { %v6133_v54 = vpop.eup %6132 }
 0xdef   :  { %6136 = vrcp.f32 %v3397_v44  ;;  %v3404_v4 = vadd.f32 1.0, %v6133_v54 }
 0xdf1   :  { %6138 = vrcp.f32 %v3404_v4 }
 0xdfa   :  { %v6135_v26 = vpop.eup %6134 }
 0xdfb   :  { %v3408_v2 = vmul.f32 %v6135_v26, %v6131_v45 }
 0xdfc   :  { %v6137_v3 = vpop.eup %6136 }
 0xdfd   :  { %v3407_v49 = vmul.f32 %v6137_v3, %v8608_v48 }
 0xdfe   :  { %v6139_v40 = vpop.eup %6138 }
 0xdff   :  { %v8690_v50 = vadd.f32 %v3408_v2, %v3407_v49 }
 0xe01   :  { %6140 = vtanh.f32 %v8690_v50 }
 0xe0e   :  { %v6141_v47 = vpop.eup %6140 }
 0xe0f   :  { %v8693_v1 = vmul.f32 %v6141_v47, %v6139_v40 }
 0xe11   :  { %3483 = vmatmul.mubr.f32.vlgmr.msra.gmra.mxu0 %v8693_v1  ;;  %3554 = vmatmul.mubr.f32.vlgmr.msra.gmra.mxu1 %v8693_v1 }
 0xe12   :  { %3595 = vmatpush1.msra.mxu0 %v8323_v38  ;;  %3666 = vmatpush1.msra.mxu1 %v8326_v42  ;;  %v10604_v38 = vld [vmem:[#allocation38_spill] sm:$0xff]  ;;  %v10605_v42 = vld [vmem:[#allocation28_spill] sm:$0xff] }
 0xe13   :  { %3596 = vmatprep.subr.mxu0 %v8329_v24  ;;  %3667 = vmatprep.subr.mxu1 %v8332_v13  ;;  %v10606_v24 = vld [vmem:[#allocation60_spill] sm:$0xff]  ;;  %v10607_v13 = vld [vmem:[#allocation61_spill] sm:$0xff] }
 0xe14   :  { %3597 = vmatpush1.msra.mxu0 %v8335_v17  ;;  %3668 = vmatpush1.msra.mxu1 %v8338_v21  ;;  %v10608_v17 = vld [vmem:[#allocation44_spill] sm:$0xff]  ;;  %v10609_v21 = vld [vmem:[#allocation43_spill] sm:$0xff] }
 0xe15   :  { %3598 = vmatprep.subr.mxu0 %v8341_v10  ;;  %3669 = vmatprep.subr.mxu1 %v8344_v27  ;;  %v10610_v10 = vld [vmem:[#allocation62_spill] sm:$0xff]  ;;  %v10611_v27 = vld [vmem:[#allocation63_spill] sm:$0xff] }
 0xe16   :  { %3599 = vmatpush1.msra.mxu0 %v8347_v20  ;;  %3670 = vmatpush1.msra.mxu1 %v8350_v37  ;;  %v10612_v20 = vld [vmem:[#allocation46_spill] sm:$0xff]  ;;  %v10613_v37 = vld [vmem:[#allocation45_spill] sm:$0xff] }
 0xe17   :  { %3600 = vmatprep.subr.mxu0 %v8353_v58  ;;  %3671 = vmatprep.subr.mxu1 %v8356_v5  ;;  %v10614_v58 = vld [vmem:[#allocation64_spill] sm:$0xff]  ;;  %v10615_v5 = vld [vmem:[#allocation65_spill] sm:$0xff] }
 0xe18   :  { %3601 = vmatpush1.msra.mxu0 %v8359_v7  ;;  %3672 = vmatpush1.msra.mxu1 %v8448_v15  ;;  %v10616_v7 = vld [vmem:[#allocation48_spill] sm:$0xff]  ;;  %v10617_v15 = vld [vmem:[#allocation37_spill] sm:$0xff] }
 0xe19   :  { %3602 = vmatprep.subr.mxu0 %v8451_v55  ;;  %3673 = vmatprep.subr.mxu1 %v8454_v56  ;;  %v10618_v55 = vld [vmem:[#allocation27_spill] sm:$0xff]  ;;  %v10619_v56 = vld [vmem:[#allocation42_spill] sm:$0xff] }
 0xe1a   :  { %3603 = vmatpush1.msra.mxu0 %v8457_v57  ;;  %3674 = vmatpush1.msra.mxu1 %v8460_v59  ;;  %v10620_v57 = vld [vmem:[#allocation41_spill] sm:$0xff]  ;;  %v10621_v59 = vld [vmem:[#allocation34_spill] sm:$0xff] }
 0xe1b   :  { %3604 = vmatprep.subr.mxu0 %v8463_v60  ;;  %3675 = vmatprep.subr.mxu1 %v8466_v61  ;;  %v10622_v60 = vld [vmem:[#allocation23_spill] sm:$0xff] }
 0xe1c   :  { %3605 = vmatpush1.msra.mxu0 %v8469_v62  ;;  %3676 = vmatpush1.msra.mxu1 %v8472_v25  ;;  %v10623_v61 = vld [vmem:[#allocation47_spill] sm:$0xff]  ;;  %v10625_v25 = vmov 0.0  }
 0xe1d   :  { %3606 = vmatprep.subr.mxu0 %v8475_v36  ;;  %3677 = vmatprep.subr.mxu1 %v8478_v0  ;;  %v10624_v62 = vld [vmem:[#allocation31_spill] sm:$0xff]  ;;  %v3835_v36 = vld [vmem:[#allocation9 + $0x1e8] sm:$0xff]  ;;  %v3837_v0 = vld [vmem:[#allocation9 + $0x1f8] sm:$0xff] }
 0xe1e   :  { %3607 = vmatpush1.msra.mxu0 %v8481_v34  ;;  %3678 = vmatpush1.msra.mxu1 %v8484_v43  ;;  %v10626_v34 = vld [vmem:[#allocation21_spill] sm:$0xff]  ;;  %v10627_v43 = vld [vmem:[#allocation71_spill] sm:$0xff] }
 0xe1f   :  { %3608 = vmatprep.subr.mxu0 %v8487_v32  ;;  %3679 = vmatprep.subr.mxu1 %v8490_v35  ;;  %v2139_v32 = vadd.f32 %v10627_v43, %v10626_v34  ;;  %v3810_v43 = vld [vmem:[#allocation9 + $0x120] sm:$0xff] }
 0xe20   :  { %3609 = vmatpush1.msra.mxu0 %v8493_v31  ;;  %3680 = vmatpush1.msra.mxu1 %v8496_v8  ;;  %v10628_v31 = vld [vmem:[#allocation15_spill] sm:$0xff] }
 0xe21   :  { %3610 = vmatprep.subr.mxu0 %v8499_v39  ;;  %3681 = vmatprep.subr.mxu1 %v8502_v6  ;;  %v2141_v8 = vadd.f32 %v10628_v31, %v8134_v18  ;;  %v3809_v31 = vld [vmem:[#allocation9 + $0x118] sm:$0xff] }
 0xe22   :  { %3611 = vmatpush1.msra.mxu0 %v8505_v9  ;;  %3682 = vmatpush1.msra.mxu1 %v8508_v11 }
 0xe23   :  { %3612 = vmatprep.subr.mxu0 %v8511_v14  ;;  %3683 = vmatprep.subr.mxu1 %v8514_v16 }
 0xe24   :  { %3613 = vmatpush1.msra.mxu0 %v8517_v19  ;;  %3684 = vmatpush1.msra.mxu1 %v8520_v23  ;;  %v10629_v23 = vld [vmem:[#allocation26_spill] sm:$0xff] }
 0xe25   :  { %3614 = vmatprep.subr.mxu0 %v8523_v29  ;;  %3685 = vmatprep.subr.mxu1 %v8526_v22  ;;  %v2254_v29 = vadd.f32 %v10629_v23, %v10498_v30  ;;  %v3798_v23 = vld [vmem:[#allocation9 + $0xc0] sm:$0xff] }
 0xe26   :  { %3615 = vmatpush1.msra.mxu0 %v8529_v33  ;;  %3686 = vmatpush1.msra.mxu1 %v10604_v38  ;;  %v10630_v33 = vld [vmem:[#allocation17_spill] sm:$0xff]  ;;  %v3834_v38 = vld [vmem:[#allocation9 + $0x1e0] sm:$0xff] }
 0xe27   :  { %3616 = vmatprep.subr.mxu0 %v10605_v42  ;;  %3687 = vmatprep.subr.mxu1 %v10606_v24  ;;  %v2252_v48 = vadd.f32 %v10630_v33, %v8149_v12  ;;  %v3836_v42 = vld [vmem:[#allocation9 + $0x1f0] sm:$0xff]  ;;  %v3831_v24 = vld [vmem:[#allocation9 + $0x1c8] sm:$0xff]  ;;  %v3797_v33 = vld [vmem:[#allocation9 + $0xb8] sm:$0xff] }
 0xe28   :  { %3617 = vmatpush1.msra.mxu0 %v10607_v13  ;;  %3688 = vmatpush1.msra.mxu1 %v10608_v17  ;;  %v3833_v13 = vld [vmem:[#allocation9 + $0x1d8] sm:$0xff]  ;;  %v3830_v17 = vld [vmem:[#allocation9 + $0x1c0] sm:$0xff] }
 0xe29   :  { %3618 = vmatprep.subr.mxu0 %v10609_v21  ;;  %3689 = vmatprep.subr.mxu1 %v10610_v10  ;;  %v3832_v21 = vld [vmem:[#allocation9 + $0x1d0] sm:$0xff]  ;;  %v3829_v10 = vld [vmem:[#allocation9 + $0x1b8] sm:$0xff] }
 0xe2a   :  { %3619 = vmatpush1.msra.mxu0 %v10611_v27  ;;  %3690 = vmatpush1.msra.mxu1 %v10612_v20  ;;  %v3826_v27 = vld [vmem:[#allocation9 + $0x1a0] sm:$0xff]  ;;  %v3828_v20 = vld [vmem:[#allocation9 + $0x1b0] sm:$0xff] }
 0xe2b   :  { %3620 = vmatprep.subr.mxu0 %v10613_v37  ;;  %3691 = vmatprep.subr.mxu1 %v10614_v58  ;;  %v3823_v37 = vld [vmem:[#allocation9 + $0x188] sm:$0xff]  ;;  %v3825_v58 = vld [vmem:[#allocation9 + $0x198] sm:$0xff] }
 0xe2c   :  { %3621 = vmatpush1.msra.mxu0 %v10615_v5  ;;  %3692 = vmatpush1.msra.mxu1 %v10616_v7  ;;  %v3822_v5 = vld [vmem:[#allocation9 + $0x180] sm:$0xff]  ;;  %v3824_v7 = vld [vmem:[#allocation9 + $0x190] sm:$0xff] }
 0xe2d   :  { %3622 = vmatprep.subr.mxu0 %v10617_v15  ;;  %3693 = vmatprep.subr.mxu1 %v10618_v55  ;;  %v3819_v15 = vld [vmem:[#allocation9 + $0x168] sm:$0xff]  ;;  %v3821_v55 = vld [vmem:[#allocation9 + $0x178] sm:$0xff] }
 0xe2e   :  { %3623 = vmatpush1.msra.mxu0 %v10619_v56  ;;  %3694 = vmatpush1.msra.mxu1 %v10620_v57  ;;  %v3818_v56 = vld [vmem:[#allocation9 + $0x160] sm:$0xff]  ;;  %v3820_v57 = vld [vmem:[#allocation9 + $0x170] sm:$0xff] }
 0xe2f   :  { %3624 = vmatprep.subr.mxu0 %v10621_v59  ;;  %3695 = vmatprep.subr.mxu1 %v10622_v60  ;;  %v3815_v59 = vld [vmem:[#allocation9 + $0x148] sm:$0xff]  ;;  %v3817_v60 = vld [vmem:[#allocation9 + $0x158] sm:$0xff] }
 0xe30   :  { %3625 = vmatpush1.msra.mxu0 %v10623_v61  ;;  %3696 = vmatpush1.msra.mxu1 %v10624_v62  ;;  %v3814_v61 = vld [vmem:[#allocation9 + $0x140] sm:$0xff]  ;;  %v3816_v62 = vld [vmem:[#allocation9 + $0x150] sm:$0xff] }
 0xe31   :  { %3658 = vmatprep.mubr.f32.mxu0 %v10625_v25  ;;  %3729 = vmatprep.mubr.f32.mxu1 %v10625_v25 }
 0xe32   :  { %3860 = vmatprep.subr.mxu0 %v3835_v36  ;;  %3973 = vmatprep.subr.mxu1 %v3837_v0  ;;  %v3811_v36 = vld [vmem:[#allocation9 + $0x128] sm:$0xff]  ;;  %v3813_v0 = vld [vmem:[#allocation9 + $0x138] sm:$0xff] }
 0xed1   :  { %v3484_v35 = vpop.f32.mrf.mxu0  ;;  %v3555_v14 = vpop.f32.mrf.mxu1 }
 0xed2   :  { %v3560_v39 = vadd.f32 %v3484_v35, %v2139_v32  ;;  %v3562_v46 = vadd.f32 %v3555_v14, %v2252_v48  ;;  %v3812_v32 = vld [vmem:[#allocation9 + $0x130] sm:$0xff]  ;;  %v3807_v35 = vld [vmem:[#allocation9 + $0x108] sm:$0xff]  ;;  %v3794_v48 = vld [vmem:[#allocation9 + $0xa0] sm:$0xff] }
 0xed3   :  { %v3486_v6 = vpop.f32.mrf.mxu0  ;;  %v3557_v19 = vpop.f32.mrf.mxu1  ;;  %v3804_v14 = vld [vmem:[#allocation9 + $0xf0] sm:$0xff] }
 0xed4   :  { %v5811_v9 = vmul.f32 -1.442695, %v3560_v39  ;;  %v3561_v11 = vadd.f32 %v3486_v6, %v2141_v8  ;;  %v3563_v22 = vadd.f32 %v3557_v19, %v2254_v29  ;;  %v3806_v8 = vld [vmem:[#allocation9 + $0x100] sm:$0xff]  ;;  %v3808_v39 = vld [vmem:[#allocation9 + $0x110] sm:$0xff]  ;;  %v3803_v6 = vld [vmem:[#allocation9 + $0xe8] sm:$0xff] }
 0xed5   :  { %v3801_v19 = vld [vmem:[#allocation9 + $0xd8] sm:$0xff]  ;;  %v3800_v29 = vld [vmem:[#allocation9 + $0xd0] sm:$0xff] }
 0xed6   :  { %6142 = vpow2.f32 %v5811_v9  ;;  %v5812_v16 = vmul.f32 -1.442695, %v3561_v11  ;;  %v5813_v28 = vmul.f32 -1.442695, %v3563_v22  ;;  %v3805_v9 = vld [vmem:[#allocation9 + $0xf8] sm:$0xff]  ;;  %v3802_v11 = vld [vmem:[#allocation9 + $0xe0] sm:$0xff] }
 0xed7   :  { %v3795_v22 = vld [vmem:[#allocation9 + $0xa8] sm:$0xff] }
 0xed8   :  { %6144 = vpow2.f32 %v5812_v16  ;;  %v3799_v16 = vld [vmem:[#allocation9 + $0xc8] sm:$0xff] }
 0xed9   :  { %6146 = vtanh.f32 %v3562_v46  ;;  %v3796_v46 = vld [vmem:[#allocation9 + $0xb0] sm:$0xff] }
 0xeda   :  { %6148 = vpow2.f32 %v5813_v28  ;;  %v3791_v28 = vld [vmem:[#allocation9 + $0x88] sm:$0xff] }
 0xee3   :  { %v6143_v52 = vpop.eup %6142 }
 0xee4   :  { %v3567_v53 = vadd.f32 1.0, %v6143_v52  ;;  %v3793_v52 = vld [vmem:[#allocation9 + $0x98] sm:$0xff] }
 0xee5   :  { %v6145_v63 = vpop.eup %6144 }
 0xee6   :  { %6150 = vrcp.f32 %v3567_v53  ;;  %v3573_v41 = vadd.f32 1.0, %v6145_v63  ;;  %v6147_v51 = vpop.eup %6146  ;;  %v3790_v53 = vld [vmem:[#allocation9 + $0x80] sm:$0xff]  ;;  %v3792_v63 = vld [vmem:[#allocation9 + $0x90] sm:$0xff] }
 0xee7   :  { %v6149_v44 = vpop.eup %6148 }
 0xee8   :  { %6152 = vrcp.f32 %v3573_v41  ;;  %v3580_v2 = vadd.f32 1.0, %v6149_v44  ;;  %v3787_v41 = vld [vmem:[#allocation9 + $0x68] sm:$0xff]  ;;  %v3786_v44 = vld [vmem:[#allocation9 + $0x60] sm:$0xff] }
 0xeea   :  { %6154 = vrcp.f32 %v3580_v2  ;;  %v3782_v2 = vld [vmem:[#allocation9 + $0x40] sm:$0xff] }
 0xef3   :  { %v6151_v45 = vpop.eup %6150 }
 0xef4   :  { %v3584_v54 = vmul.f32 %v6151_v45, %v6147_v51  ;;  %v3789_v51 = vld [vmem:[#allocation9 + $0x78] sm:$0xff]  ;;  %v3788_v45 = vld [vmem:[#allocation9 + $0x70] sm:$0xff] }
 0xef5   :  { %v6153_v26 = vpop.eup %6152 }
 0xef6   :  { %v3583_v3 = vmul.f32 %v6153_v26, %v8690_v50  ;;  %v3827_v50 = vld [vmem:[#allocation9 + $0x1a8] sm:$0xff]  ;;  %v3785_v26 = vld [vmem:[#allocation9 + $0x58] sm:$0xff] }
 0xef7   :  { %v6155_v49 = vpop.eup %6154 }
 0xef8   :  { %v8770_v4 = vadd.f32 %v3584_v54, %v3583_v3  ;;  %v3783_v54 = vld [vmem:[#allocation9 + $0x48] sm:$0xff]  ;;  %v3784_v3 = vld [vmem:[#allocation9 + $0x50] sm:$0xff] }
 0xefa   :  { %6156 = vtanh.f32 %v8770_v4 }
 0xf07   :  { %v6157_v40 = vpop.eup %6156 }
 0xf08   :  { %v8773_v47 = vmul.f32 %v6157_v40, %v6155_v49  ;;  %v3779_v49 = vld [vmem:[#allocation9 + $0x28] sm:$0xff]  ;;  %v3781_v40 = vld [vmem:[#allocation9 + $0x38] sm:$0xff] }
 0xf0a   :  { %3659 = vmatmul.mubr.f32.vlgmr.msra.gmra.mxu0 %v8773_v47  ;;  %3730 = vmatmul.mubr.f32.vlgmr.msra.gmra.mxu1 %v8773_v47 }
 0xf0b   :  { %3861 = vmatpush1.msra.mxu0 %v3834_v38  ;;  %3974 = vmatpush1.msra.mxu1 %v3836_v42  ;;  %v3778_v38 = vld [vmem:[#allocation9 + $0x20] sm:$0xff]  ;;  %v3780_v42 = vld [vmem:[#allocation9 + $0x30] sm:$0xff] }
 0xf0c   :  { %3862 = vmatprep.subr.mxu0 %v3831_v24  ;;  %3975 = vmatprep.subr.mxu1 %v3833_v13  ;;  %v3775_v24 = vld [vmem:[#allocation9 + $0x8] sm:$0xff]  ;;  %v3777_v13 = vld [vmem:[#allocation9 + $0x18] sm:$0xff] }
 0xf0d   :  { %3863 = vmatpush1.msra.mxu0 %v3830_v17  ;;  %3976 = vmatpush1.msra.mxu1 %v3832_v21  ;;  %v3774_v17 = vld [vmem:[#allocation9] sm:$0xff]  ;;  %v3776_v21 = vld [vmem:[#allocation9 + $0x10] sm:$0xff] }
 0xf0e   :  { %3864 = vmatprep.subr.mxu0 %v3827_v50  ;;  %3977 = vmatprep.subr.mxu1 %v3829_v10  ;;  %v10631_v50 = vld [vmem:[#allocation72_spill] sm:$0xff] }
 0xf0f   :  { %3865 = vmatpush1.msra.mxu0 %v3826_v27  ;;  %3978 = vmatpush1.msra.mxu1 %v3828_v20  ;;  %v2532_v10 = vmax.f32 %v10631_v50, 0.0  ;;  %v10632_v27 = vld [vmem:[#allocation55_spill] sm:$0xff] }
 0xf10   :  { %3866 = vmatprep.subr.mxu0 %v3823_v37  ;;  %3979 = vmatprep.subr.mxu1 %v3825_v58  ;;  %v2708_v20 = vmax.f32 %v10632_v27, 0.0  ;;  %v10633_v37 = vld [vmem:[#allocation59_spill] sm:$0xff]  ;;  %v8943_v27 = vld [vmem:[#allocation11 + $0x68] sm:$0xff] }
 0xf11   :  { %3867 = vmatpush1.msra.mxu0 %v3822_v5  ;;  %3980 = vmatpush1.msra.mxu1 %v3824_v7  ;;  %v2884_v58 = vmax.f32 %v10633_v37, 0.0  ;;  %v10634_v5 = vld [vmem:[#allocation22_spill] sm:$0xff]  ;;  %v8937_v50 = vld [vmem:[#allocation11 + $0x80] sm:$0xff]  ;;  %10644 = vst [vmem:[#allocation24_spill] sm:$0xff] %v8943_v27 }
 0xf12   :  { %3868 = vmatprep.subr.mxu0 %v3819_v15  ;;  %3981 = vmatprep.subr.mxu1 %v3821_v55  ;;  %v3060_v7 = vmax.f32 %v10634_v5, 0.0  ;;  %v10635_v15 = vld [vmem:[#allocation18_spill] sm:$0xff]  ;;  %10642 = vst [vmem:[#allocation19_spill] sm:$0xff] %v8937_v50  ;;  %v8949_v37 = vld [vmem:[#allocation11 + $0x60] sm:$0xff]  ;;  %v8955_v5 = vld [vmem:[#allocation11 + $0x48] sm:$0xff] }
 0xf13   :  { %3869 = vmatpush1.msra.mxu0 %v3818_v56  ;;  %3982 = vmatpush1.msra.mxu1 %v3820_v57  ;;  %v3236_v55 = vmax.f32 %v10635_v15, 0.0  ;;  %v3412_v56 = vmax.f32 %v8693_v1, 0.0  ;;  %v3588_v57 = vmax.f32 %v8773_v47, 0.0  ;;  %v8805_v1 = vld [vmem:[#allocation11 + $0x1e0] sm:$0xff]  ;;  %v8811_v47 = vld [vmem:[#allocation11 + $0x1c8] sm:$0xff]  ;;  %10646 = vst [vmem:[#allocation20_spill] sm:$0xff] %v8949_v37 }
 0xf14   :  { %3870 = vmatprep.subr.mxu0 %v3815_v59  ;;  %3983 = vmatprep.subr.mxu1 %v3817_v60  ;;  %v8800_v59 = vld [vmem:[#allocation11 + $0x1e8] sm:$0xff]  ;;  %v8802_v60 = vld [vmem:[#allocation11 + $0x1f8] sm:$0xff]  ;;  %10648 = vst [vmem:[#allocation25_spill] sm:$0xff] %v8955_v5  ;;  %v8961_v15 = vld [vmem:[#allocation11 + $0x40] sm:$0xff] }
 0xf15   :  { %3871 = vmatpush1.msra.mxu0 %v3814_v61  ;;  %3984 = vmatpush1.msra.mxu1 %v3816_v62  ;;  %10636 = vst [vmem:[#allocation67_spill] sm:$0xff] %v8800_v59  ;;  %10637 = vst [vmem:[#allocation66_spill] sm:$0xff] %v8802_v60  ;;  %v8808_v61 = vld [vmem:[#allocation11 + $0x1f0] sm:$0xff]  ;;  %v8814_v62 = vld [vmem:[#allocation11 + $0x1d8] sm:$0xff] }
 0xf16   :  { %3872 = vmatprep.subr.mxu0 %v3811_v36  ;;  %3985 = vmatprep.subr.mxu1 %v3813_v0  ;;  %v8817_v36 = vld [vmem:[#allocation11 + $0x1c0] sm:$0xff]  ;;  %v8820_v0 = vld [vmem:[#allocation11 + $0x1d0] sm:$0xff]  ;;  %10650 = vst [vmem:[#allocation33_spill] sm:$0xff] %v8961_v15 }
 0xf17   :  { %3873 = vmatpush1.msra.mxu0 %v3810_v43  ;;  %3986 = vmatpush1.msra.mxu1 %v3812_v32  ;;  %v8823_v43 = vld [vmem:[#allocation11 + $0x1a8] sm:$0xff]  ;;  %v8826_v32 = vld [vmem:[#allocation11 + $0x1b8] sm:$0xff] }
 0xf18   :  { %3874 = vmatprep.subr.mxu0 %v3807_v35  ;;  %3987 = vmatprep.subr.mxu1 %v3809_v31  ;;  %v8829_v35 = vld [vmem:[#allocation11 + $0x1a0] sm:$0xff]  ;;  %v8832_v31 = vld [vmem:[#allocation11 + $0x1b0] sm:$0xff] }
 0xf19   :  { %3875 = vmatpush1.msra.mxu0 %v3806_v8  ;;  %3988 = vmatpush1.msra.mxu1 %v3808_v39  ;;  %v8835_v8 = vld [vmem:[#allocation11 + $0x188] sm:$0xff]  ;;  %v8838_v39 = vld [vmem:[#allocation11 + $0x198] sm:$0xff] }
 0xf1a   :  { %3876 = vmatprep.subr.mxu0 %v3803_v6  ;;  %3989 = vmatprep.subr.mxu1 %v3805_v9  ;;  %v8841_v6 = vld [vmem:[#allocation11 + $0x180] sm:$0xff]  ;;  %v8844_v9 = vld [vmem:[#allocation11 + $0x190] sm:$0xff] }
 0xf1b   :  { %3877 = vmatpush1.msra.mxu0 %v3802_v11  ;;  %3990 = vmatpush1.msra.mxu1 %v3804_v14  ;;  %v8847_v11 = vld [vmem:[#allocation11 + $0x168] sm:$0xff]  ;;  %v8850_v14 = vld [vmem:[#allocation11 + $0x178] sm:$0xff] }
 0xf1c   :  { %3878 = vmatprep.subr.mxu0 %v3799_v16  ;;  %3991 = vmatprep.subr.mxu1 %v3801_v19  ;;  %v8853_v16 = vld [vmem:[#allocation11 + $0x160] sm:$0xff]  ;;  %v8856_v19 = vld [vmem:[#allocation11 + $0x170] sm:$0xff] }
 0xf1d   :  { %3879 = vmatpush1.msra.mxu0 %v3798_v23  ;;  %3992 = vmatpush1.msra.mxu1 %v3800_v29  ;;  %v8859_v23 = vld [vmem:[#allocation11 + $0x148] sm:$0xff]  ;;  %v8862_v29 = vld [vmem:[#allocation11 + $0x158] sm:$0xff] }
 0xf1e   :  { %3880 = vmatprep.subr.mxu0 %v3795_v22  ;;  %3993 = vmatprep.subr.mxu1 %v3797_v33  ;;  %v8865_v22 = vld [vmem:[#allocation11 + $0x140] sm:$0xff]  ;;  %v8868_v33 = vld [vmem:[#allocation11 + $0x150] sm:$0xff] }
 0xf1f   :  { %3881 = vmatpush1.msra.mxu0 %v3794_v48  ;;  %3994 = vmatpush1.msra.mxu1 %v3796_v46  ;;  %v8871_v48 = vld [vmem:[#allocation11 + $0x128] sm:$0xff]  ;;  %v8874_v46 = vld [vmem:[#allocation11 + $0x138] sm:$0xff] }
 0xf20   :  { %3882 = vmatprep.subr.mxu0 %v3791_v28  ;;  %3995 = vmatprep.subr.mxu1 %v3793_v52  ;;  %v8877_v28 = vld [vmem:[#allocation11 + $0x120] sm:$0xff]  ;;  %v8880_v52 = vld [vmem:[#allocation11 + $0x130] sm:$0xff] }
 0xf21   :  { %3883 = vmatpush1.msra.mxu0 %v3790_v53  ;;  %3996 = vmatpush1.msra.mxu1 %v3792_v63  ;;  %v8883_v53 = vld [vmem:[#allocation11 + $0x108] sm:$0xff]  ;;  %v8886_v63 = vld [vmem:[#allocation11 + $0x118] sm:$0xff] }
 0xf22   :  { %3884 = vmatprep.subr.mxu0 %v3787_v41  ;;  %3997 = vmatprep.subr.mxu1 %v3789_v51  ;;  %v8889_v41 = vld [vmem:[#allocation11 + $0x100] sm:$0xff]  ;;  %v8892_v51 = vld [vmem:[#allocation11 + $0x110] sm:$0xff] }
 0xf23   :  { %3885 = vmatpush1.msra.mxu0 %v3786_v44  ;;  %3998 = vmatpush1.msra.mxu1 %v3788_v45  ;;  %v8895_v44 = vld [vmem:[#allocation11 + $0xe8] sm:$0xff]  ;;  %v8898_v45 = vld [vmem:[#allocation11 + $0xf8] sm:$0xff] }
 0xf24   :  { %3886 = vmatprep.subr.mxu0 %v3783_v54  ;;  %3999 = vmatprep.subr.mxu1 %v3785_v26  ;;  %v8901_v54 = vld [vmem:[#allocation11 + $0xe0] sm:$0xff]  ;;  %v8904_v26 = vld [vmem:[#allocation11 + $0xf0] sm:$0xff] }
 0xf25   :  { %3887 = vmatpush1.msra.mxu0 %v3782_v2  ;;  %4000 = vmatpush1.msra.mxu1 %v3784_v3  ;;  %v8907_v2 = vld [vmem:[#allocation11 + $0xc8] sm:$0xff]  ;;  %v8910_v3 = vld [vmem:[#allocation11 + $0xd8] sm:$0xff] }
 0xf26   :  { %3888 = vmatprep.subr.mxu0 %v3779_v49  ;;  %4001 = vmatprep.subr.mxu1 %v3781_v40  ;;  %v8913_v49 = vld [vmem:[#allocation11 + $0xc0] sm:$0xff]  ;;  %v8916_v40 = vld [vmem:[#allocation11 + $0xd0] sm:$0xff] }
 0xf27   :  { %3889 = vmatpush1.msra.mxu0 %v3778_v38  ;;  %4002 = vmatpush1.msra.mxu1 %v3780_v42  ;;  %v8919_v38 = vld [vmem:[#allocation11 + $0xa8] sm:$0xff]  ;;  %v8922_v42 = vld [vmem:[#allocation11 + $0xb8] sm:$0xff] }
 0xf28   :  { %3890 = vmatprep.subr.mxu0 %v3775_v24  ;;  %4003 = vmatprep.subr.mxu1 %v3777_v13  ;;  %v8925_v24 = vld [vmem:[#allocation11 + $0xa0] sm:$0xff]  ;;  %v8928_v13 = vld [vmem:[#allocation11 + $0xb0] sm:$0xff] }
 0xf29   :  { %3891 = vmatpush1.msra.mxu0 %v3774_v17  ;;  %3924 = vmatprep.mubr.f32.mxu0 %v10625_v25  ;;  %10638 = vst [vmem:[#allocation49_spill] sm:$0xff] %v8925_v24  ;;  %10639 = vst [vmem:[#allocation50_spill] sm:$0xff] %v8928_v13  ;;  %v8931_v17 = vld [vmem:[#allocation11 + $0x88] sm:$0xff] }
 0xf2a   :  { %4004 = vmatpush1.msra.mxu1 %v3776_v21  ;;  %4037 = vmatprep.mubr.f32.mxu1 %v10625_v25  ;;  %10640 = vst [vmem:[#allocation32_spill] sm:$0xff] %v8931_v17  ;;  %v8934_v21 = vld [vmem:[#allocation11 + $0x98] sm:$0xff] }
 0xf2b   :  { %3925 = vmatmul.mubr.f32.vlgmr.msra.gmra.mxu0 %v2532_v10  ;;  %4038 = vmatmul.mubr.f32.vlgmr.msra.gmra.mxu1 %v2532_v10  ;;  %10641 = vst [vmem:[#allocation29_spill] sm:$0xff] %v8934_v21  ;;  %v8940_v10 = vld [vmem:[#allocation11 + $0x90] sm:$0xff] }
 0xf2c   :  { %3930 = vmatprep.mubr.f32.mxu0 %v10625_v25  ;;  %4043 = vmatprep.mubr.f32.mxu1 %v10625_v25  ;;  %10643 = vst [vmem:[#allocation35_spill] sm:$0xff] %v8940_v10 }
 0xf2d   :  { %4186 = vmatprep.subr.mxu0 %v8800_v59  ;;  %4257 = vmatprep.subr.mxu1 %v8802_v60 }
 0xf2e   :  { %4187 = vmatpush1.msra.mxu0 %v8805_v1  ;;  %4258 = vmatpush1.msra.mxu1 %v8808_v61 }
 0xf2f   :  { %3931 = vmatmul.mubr.f32.gmra.mxu0 %v2708_v20  ;;  %4044 = vmatmul.mubr.f32.gmra.mxu1 %v2708_v20  ;;  %v8946_v20 = vld [vmem:[#allocation11 + $0x78] sm:$0xff] }
 0xf30   :  { %3936 = vmatprep.mubr.f32.mxu0 %v10625_v25  ;;  %4049 = vmatprep.mubr.f32.mxu1 %v10625_v25  ;;  %10645 = vst [vmem:[#allocation30_spill] sm:$0xff] %v8946_v20 }
 0xf31   :  { %4188 = vmatprep.subr.mxu0 %v8811_v47  ;;  %4259 = vmatprep.subr.mxu1 %v8814_v62 }
 0xf32   :  { %4189 = vmatpush1.msra.mxu0 %v8817_v36  ;;  %4260 = vmatpush1.msra.mxu1 %v8820_v0 }
 0xf33   :  { %3937 = vmatmul.mubr.f32.gmra.mxu0 %v2884_v58  ;;  %4050 = vmatmul.mubr.f32.gmra.mxu1 %v2884_v58  ;;  %v8952_v58 = vld [vmem:[#allocation11 + $0x70] sm:$0xff] }
 0xf34   :  { %3942 = vmatprep.mubr.f32.mxu0 %v10625_v25  ;;  %4055 = vmatprep.mubr.f32.mxu1 %v10625_v25  ;;  %10647 = vst [vmem:[#allocation36_spill] sm:$0xff] %v8952_v58 }
 0xf35   :  { %4190 = vmatprep.subr.mxu0 %v8823_v43  ;;  %4261 = vmatprep.subr.mxu1 %v8826_v32 }
 0xf36   :  { %4191 = vmatpush1.msra.mxu0 %v8829_v35  ;;  %4262 = vmatpush1.msra.mxu1 %v8832_v31 }
 0xf37   :  { %3943 = vmatmul.mubr.f32.gmra.mxu0 %v3060_v7  ;;  %4056 = vmatmul.mubr.f32.gmra.mxu1 %v3060_v7  ;;  %v8958_v7 = vld [vmem:[#allocation11 + $0x58] sm:$0xff] }
 0xf38   :  { %3948 = vmatprep.mubr.f32.mxu0 %v10625_v25  ;;  %4061 = vmatprep.mubr.f32.mxu1 %v10625_v25  ;;  %10649 = vst [vmem:[#allocation56_spill] sm:$0xff] %v8958_v7 }
 0xf39   :  { %4192 = vmatprep.subr.mxu0 %v8835_v8  ;;  %4263 = vmatprep.subr.mxu1 %v8838_v39 }
 0xf3a   :  { %4193 = vmatpush1.msra.mxu0 %v8841_v6  ;;  %4264 = vmatpush1.msra.mxu1 %v8844_v9 }
 0xf3b   :  { %3949 = vmatmul.mubr.f32.gmra.mxu0 %v3236_v55  ;;  %4062 = vmatmul.mubr.f32.gmra.mxu1 %v3236_v55  ;;  %v8964_v55 = vld [vmem:[#allocation11 + $0x50] sm:$0xff] }
 0xf3c   :  { %3954 = vmatprep.mubr.f32.mxu0 %v10625_v25  ;;  %4067 = vmatprep.mubr.f32.mxu1 %v10625_v25  ;;  %10651 = vst [vmem:[#allocation68_spill] sm:$0xff] %v8964_v55 }
 0xf3d   :  { %4194 = vmatprep.subr.mxu0 %v8847_v11  ;;  %4265 = vmatprep.subr.mxu1 %v8850_v14 }
 0xf3e   :  { %4195 = vmatpush1.msra.mxu0 %v8853_v16  ;;  %4266 = vmatpush1.msra.mxu1 %v8856_v19 }
 0xf3f   :  { %3955 = vmatmul.mubr.f32.gmra.mxu0 %v3412_v56  ;;  %4068 = vmatmul.mubr.f32.gmra.mxu1 %v3412_v56  ;;  %v8967_v56 = vld [vmem:[#allocation11 + $0x28] sm:$0xff] }
 0xf40   :  { %3960 = vmatprep.mubr.f32.mxu0 %v10625_v25  ;;  %4073 = vmatprep.mubr.f32.mxu1 %v10625_v25  ;;  %10652 = vst [vmem:[#allocation54_spill] sm:$0xff] %v8967_v56 }
 0xf41   :  { %4196 = vmatprep.subr.mxu0 %v8859_v23  ;;  %4267 = vmatprep.subr.mxu1 %v8862_v29 }
 0xf42   :  { %4197 = vmatpush1.msra.mxu0 %v8865_v22  ;;  %4268 = vmatpush1.msra.mxu1 %v8868_v33 }
 0xf43   :  { %3961 = vmatmul.mubr.f32.gmra.mxu0 %v3588_v57  ;;  %4074 = vmatmul.mubr.f32.gmra.mxu1 %v3588_v57  ;;  %v8970_v57 = vld [vmem:[#allocation11 + $0x20] sm:$0xff] }
 0xf44   :  { %3966 = vmatprep.mubr.f32.mxu0 %v10625_v25  ;;  %4079 = vmatprep.mubr.f32.mxu1 %v10625_v25  ;;  %10653 = vst [vmem:[#allocation51_spill] sm:$0xff] %v8970_v57 }
 0xf45   :  { %4198 = vmatprep.subr.mxu0 %v8871_v48  ;;  %4269 = vmatprep.subr.mxu1 %v8874_v46 }
 0xf46   :  { %4199 = vmatpush1.msra.mxu0 %v8877_v28  ;;  %4270 = vmatpush1.msra.mxu1 %v8880_v52 }
 0xf47   :  { %4200 = vmatprep.subr.mxu0 %v8883_v53  ;;  %4271 = vmatprep.subr.mxu1 %v8886_v63 }
 0xf48   :  { %4201 = vmatpush1.msra.mxu0 %v8889_v41  ;;  %4272 = vmatpush1.msra.mxu1 %v8892_v51 }
 0xf49   :  { %4202 = vmatprep.subr.mxu0 %v8895_v44  ;;  %4273 = vmatprep.subr.mxu1 %v8898_v45 }
 0xf4a   :  { %4203 = vmatpush1.msra.mxu0 %v8901_v54  ;;  %4274 = vmatpush1.msra.mxu1 %v8904_v26 }
 0xf4b   :  { %4204 = vmatprep.subr.mxu0 %v8907_v2  ;;  %4275 = vmatprep.subr.mxu1 %v8910_v3 }
 0xf4c   :  { %4205 = vmatpush1.msra.mxu0 %v8913_v49  ;;  %4276 = vmatpush1.msra.mxu1 %v8916_v40 }
 0xf4d   :  { %4206 = vmatprep.subr.mxu0 %v8919_v38  ;;  %4277 = vmatprep.subr.mxu1 %v8922_v42 }
 0xf4e   :  { %4207 = vmatpush1.msra.mxu0 %v8925_v24  ;;  %4278 = vmatpush1.msra.mxu1 %v8928_v13 }
 0xf4f   :  { %4208 = vmatprep.subr.mxu0 %v8931_v17  ;;  %4279 = vmatprep.subr.mxu1 %v8934_v21  ;;  %v10663_v17 = vld [vmem:[#allocation16_spill] sm:$0xff] }
 0xf50   :  { %4209 = vmatpush1.msra.mxu0 %v8937_v50  ;;  %4280 = vmatpush1.msra.mxu1 %v8940_v10 }
 0xf51   :  { %4210 = vmatprep.subr.mxu0 %v8943_v27  ;;  %4281 = vmatprep.subr.mxu1 %v8946_v20 }
 0xf52   :  { %4211 = vmatpush1.msra.mxu0 %v8949_v37  ;;  %4282 = vmatpush1.msra.mxu1 %v8952_v58  ;;  %v8972_v37 = vld [vmem:[#allocation11 + $0x38] sm:$0xff]  ;;  %v8978_v58 = vld [vmem:[#allocation11 + $0x30] sm:$0xff] }
 0xf53   :  { %4212 = vmatprep.subr.mxu0 %v8955_v5  ;;  %4283 = vmatprep.subr.mxu1 %v8958_v7  ;;  %10654 = vst [vmem:[#allocation69_spill] sm:$0xff] %v8972_v37  ;;  %v8976_v5 = vld [vmem:[#allocation11 + $0x8] sm:$0xff]  ;;  %10656 = vst [vmem:[#allocation28_spill] sm:$0xff] %v8978_v58  ;;  %v8980_v7 = vld [vmem:[#allocation11] sm:$0xff] }
 0xf54   :  { %4213 = vmatpush1.msra.mxu0 %v8961_v15  ;;  %4284 = vmatpush1.msra.mxu1 %v8964_v55  ;;  %10655 = vst [vmem:[#allocation38_spill] sm:$0xff] %v8976_v5  ;;  %10657 = vst [vmem:[#allocation60_spill] sm:$0xff] %v8980_v7  ;;  %v8984_v15 = vld [vmem:[#allocation11 + $0x18] sm:$0xff]  ;;  %v8986_v55 = vld [vmem:[#allocation11 + $0x10] sm:$0xff] }
 0xf55   :  { %4214 = vmatprep.subr.mxu0 %v8967_v56  ;;  %4285 = vmatprep.subr.mxu1 %v8972_v37  ;;  %10658 = vst [vmem:[#allocation61_spill] sm:$0xff] %v8984_v15  ;;  %10659 = vst [vmem:[#allocation44_spill] sm:$0xff] %v8986_v55  ;;  %v10661_v56 = vld [vmem:[#allocation70_spill] sm:$0xff] }
 0xf56   :  { %4215 = vmatpush1.msra.mxu0 %v8970_v57  ;;  %4286 = vmatpush1.msra.mxu1 %v8978_v58  ;;  %v10660_v57 = vld [vmem:[#allocation57_spill] sm:$0xff]  ;;  %v2147_v20 = vadd.f32 %v10661_v56, %v8134_v18  ;;  %v10669_v56 = vld [vmem:[#allocation35_spill] sm:$0xff] }
 0xf57   :  { %4216 = vmatprep.subr.mxu0 %v8976_v5  ;;  %4287 = vmatprep.subr.mxu1 %v8984_v15  ;;  %v2145_v37 = vadd.f32 %v10660_v57, %v10626_v34  ;;  %v2258_v34 = vadd.f32 %v10663_v17, %v8149_v12 }
 0xf58   :  { %4217 = vmatpush1.msra.mxu0 %v8980_v7  ;;  %4288 = vmatpush1.msra.mxu1 %v8986_v55 }
 0xf59   :  { %4362 = vmatprep.subr.mxu0 %v8800_v59  ;;  %4433 = vmatprep.subr.mxu1 %v8802_v60  ;;  %v10662_v59 = vld [vmem:[#allocation58_spill] sm:$0xff] }
 0xf5a   :  { %v2260_v21 = vadd.f32 %v10662_v59, %v10498_v30 }
 0xfca   :  { %v3660_v58 = vpop.f32.mrf.mxu0  ;;  %v3731_v15 = vpop.f32.mrf.mxu1 }
 0xfcb   :  { %v3736_v27 = vadd.f32 %v3660_v58, %v2145_v37  ;;  %v3738_v57 = vadd.f32 %v3731_v15, %v2258_v34  ;;  %v10667_v15 = vld [vmem:[#allocation29_spill] sm:$0xff]  ;;  %v10670_v34 = vld [vmem:[#allocation24_spill] sm:$0xff] }
 0xfcc   :  { %v3662_v10 = vpop.f32.mrf.mxu0  ;;  %v3733_v55 = vpop.f32.mrf.mxu1 }
 0xfcd   :  { %v5814_v5 = vmul.f32 -1.442695, %v3736_v27  ;;  %v3737_v50 = vadd.f32 %v3662_v10, %v2147_v20  ;;  %v3739_v60 = vadd.f32 %v3733_v55, %v2260_v21  ;;  %v10668_v55 = vld [vmem:[#allocation19_spill] sm:$0xff] }
 0xfcf   :  { %6158 = vpow2.f32 %v5814_v5  ;;  %v5815_v7 = vmul.f32 -1.442695, %v3737_v50  ;;  %v5816_v13 = vmul.f32 -1.442695, %v3739_v60 }
 0xfd1   :  { %6160 = vpow2.f32 %v5815_v7  ;;  %v10666_v7 = vld [vmem:[#allocation32_spill] sm:$0xff] }
 0xfd2   :  { %6162 = vtanh.f32 %v3738_v57  ;;  %v10671_v57 = vld [vmem:[#allocation30_spill] sm:$0xff] }
 0xfd3   :  { %6164 = vpow2.f32 %v5816_v13  ;;  %v10665_v13 = vld [vmem:[#allocation50_spill] sm:$0xff] }
 0xfdc   :  { %v6159_v24 = vpop.eup %6158 }
 0xfdd   :  { %v3743_v18 = vadd.f32 1.0, %v6159_v24 }
 0xfde   :  { %v6161_v37 = vpop.eup %6160 }
 0xfdf   :  { %6166 = vrcp.f32 %v3743_v18  ;;  %v3749_v10 = vadd.f32 1.0, %v6161_v37  ;;  %v6163_v50 = vpop.eup %6162  ;;  %v10672_v18 = vld [vmem:[#allocation20_spill] sm:$0xff] }
 0xfe0   :  { %v6165_v27 = vpop.eup %6164  ;;  %v10673_v37 = vld [vmem:[#allocation36_spill] sm:$0xff] }
 0xfe1   :  { %6168 = vrcp.f32 %v3749_v10  ;;  %v3756_v30 = vadd.f32 1.0, %v6165_v27  ;;  %v10674_v10 = vld [vmem:[#allocation25_spill] sm:$0xff] }
 0xfe2   :  { %v10676_v27 = vld [vmem:[#allocation33_spill] sm:$0xff] }
 0xfe3   :  { %6170 = vrcp.f32 %v3756_v30  ;;  %v10680_v30 = vld [vmem:[#allocation51_spill] sm:$0xff] }
 0xfec   :  { %v6167_v20 = vpop.eup %6166 }
 0xfed   :  { %v3760_v58 = vmul.f32 %v6167_v20, %v6163_v50  ;;  %v10675_v50 = vld [vmem:[#allocation56_spill] sm:$0xff] }
 0xfee   :  { %v6169_v5 = vpop.eup %6168  ;;  %v10677_v20 = vld [vmem:[#allocation68_spill] sm:$0xff] }
 0xfef   :  { %v3759_v59 = vmul.f32 %v6169_v5, %v8770_v4  ;;  %v10664_v4 = vld [vmem:[#allocation49_spill] sm:$0xff] }
 0xff0   :  { %v6171_v12 = vpop.eup %6170  ;;  %v10679_v5 = vld [vmem:[#allocation69_spill] sm:$0xff] }
 0xff1   :  { %v3761_v21 = vadd.f32 %v3760_v58, %v3759_v59  ;;  %v10678_v58 = vld [vmem:[#allocation54_spill] sm:$0xff]  ;;  %v10681_v59 = vld [vmem:[#allocation28_spill] sm:$0xff] }
 0xff3   :  { %6172 = vtanh.f32 %v3761_v21  ;;  %v10682_v21 = vld [vmem:[#allocation38_spill] sm:$0xff] }
0x1000   :  { %v6173_v60 = vpop.eup %6172 }
0x1001   :  { %v3763_v24 = vmul.f32 %v6173_v60, %v6171_v12  ;;  %v10683_v12 = vld [vmem:[#allocation61_spill] sm:$0xff]  ;;  %v10684_v60 = vld [vmem:[#allocation60_spill] sm:$0xff] }
0x1003   :  { %v3764_v17 = vmax.f32 %v3763_v24, 0.0  ;;  %v10685_v24 = vld [vmem:[#allocation44_spill] sm:$0xff] }
0x1005   :  { %3967 = vmatmul.mubr.f32.gmra.mxu0 %v3764_v17  ;;  %4080 = vmatmul.mubr.f32.gmra.mxu1 %v3764_v17  ;;  %v10686_v17 = vld [vmem:[#allocation67_spill] sm:$0xff] }
0x1006   :  { %4250 = vmatprep.mubr.f32.mxu0 %v10625_v25  ;;  %4321 = vmatprep.mubr.f32.mxu1 %v10625_v25 }
0x1009   :  { %4251 = vmatmul.mubr.f32.vlgmr.msra.gmra.mxu0 %v10625_v25  ;;  %4322 = vmatmul.mubr.f32.vlgmr.msra.gmra.mxu1 %v10625_v25 }
0x100a   :  { %4363 = vmatpush1.msra.mxu0 %v8805_v1  ;;  %4434 = vmatpush1.msra.mxu1 %v8808_v61 }
0x100b   :  { %4364 = vmatprep.subr.mxu0 %v8811_v47  ;;  %4435 = vmatprep.subr.mxu1 %v8814_v62 }
0x100c   :  { %4365 = vmatpush1.msra.mxu0 %v8817_v36  ;;  %4436 = vmatpush1.msra.mxu1 %v8820_v0 }
0x100d   :  { %4366 = vmatprep.subr.mxu0 %v8823_v43  ;;  %4437 = vmatprep.subr.mxu1 %v8826_v32 }
0x100e   :  { %4367 = vmatpush1.msra.mxu0 %v8829_v35  ;;  %4438 = vmatpush1.msra.mxu1 %v8832_v31 }
0x100f   :  { %4368 = vmatprep.subr.mxu0 %v8835_v8  ;;  %4439 = vmatprep.subr.mxu1 %v8838_v39 }
0x1010   :  { %4369 = vmatpush1.msra.mxu0 %v8841_v6  ;;  %4440 = vmatpush1.msra.mxu1 %v8844_v9 }
0x1011   :  { %4370 = vmatprep.subr.mxu0 %v8847_v11  ;;  %4441 = vmatprep.subr.mxu1 %v8850_v14 }
0x1012   :  { %4371 = vmatpush1.msra.mxu0 %v8853_v16  ;;  %4442 = vmatpush1.msra.mxu1 %v8856_v19 }
0x1013   :  { %4372 = vmatprep.subr.mxu0 %v8859_v23  ;;  %4443 = vmatprep.subr.mxu1 %v8862_v29 }
0x1014   :  { %4373 = vmatpush1.msra.mxu0 %v8865_v22  ;;  %4444 = vmatpush1.msra.mxu1 %v8868_v33 }
0x1015   :  { %4374 = vmatprep.subr.mxu0 %v8871_v48  ;;  %4445 = vmatprep.subr.mxu1 %v8874_v46 }
0x1016   :  { %4375 = vmatpush1.msra.mxu0 %v8877_v28  ;;  %4446 = vmatpush1.msra.mxu1 %v8880_v52 }
0x1017   :  { %4376 = vmatprep.subr.mxu0 %v8883_v53  ;;  %4447 = vmatprep.subr.mxu1 %v8886_v63 }
0x1018   :  { %4377 = vmatpush1.msra.mxu0 %v8889_v41  ;;  %4448 = vmatpush1.msra.mxu1 %v8892_v51 }
0x1019   :  { %4378 = vmatprep.subr.mxu0 %v8895_v44  ;;  %4449 = vmatprep.subr.mxu1 %v8898_v45 }
0x101a   :  { %4379 = vmatpush1.msra.mxu0 %v8901_v54  ;;  %4450 = vmatpush1.msra.mxu1 %v8904_v26 }
0x101b   :  { %4380 = vmatprep.subr.mxu0 %v8907_v2  ;;  %4451 = vmatprep.subr.mxu1 %v8910_v3 }
0x101c   :  { %4381 = vmatpush1.msra.mxu0 %v8913_v49  ;;  %4452 = vmatpush1.msra.mxu1 %v8916_v40 }
0x101d   :  { %4382 = vmatprep.subr.mxu0 %v8919_v38  ;;  %4453 = vmatprep.subr.mxu1 %v8922_v42 }
0x101e   :  { %4383 = vmatpush1.msra.mxu0 %v10664_v4  ;;  %4454 = vmatpush1.msra.mxu1 %v10665_v13 }
0x101f   :  { %4384 = vmatprep.subr.mxu0 %v10666_v7  ;;  %4455 = vmatprep.subr.mxu1 %v10667_v15 }
0x1020   :  { %4385 = vmatpush1.msra.mxu0 %v10668_v55  ;;  %4456 = vmatpush1.msra.mxu1 %v10669_v56 }
0x1021   :  { %4386 = vmatprep.subr.mxu0 %v10670_v34  ;;  %4457 = vmatprep.subr.mxu1 %v10671_v57 }
0x1022   :  { %4387 = vmatpush1.msra.mxu0 %v10672_v18  ;;  %4458 = vmatpush1.msra.mxu1 %v10673_v37 }
0x1023   :  { %4388 = vmatprep.subr.mxu0 %v10674_v10  ;;  %4459 = vmatprep.subr.mxu1 %v10675_v50 }
0x1024   :  { %4389 = vmatpush1.msra.mxu0 %v10676_v27  ;;  %4460 = vmatpush1.msra.mxu1 %v10677_v20 }
0x1025   :  { %4390 = vmatprep.subr.mxu0 %v10678_v58  ;;  %4461 = vmatprep.subr.mxu1 %v10679_v5  ;;  %v10687_v58 = vld [vmem:[#allocation66_spill] sm:$0xff]  ;;  %v3926_v5 = vpop.f32.mrf.mxu0 }
0x1026   :  { %4391 = vmatpush1.msra.mxu0 %v10680_v30  ;;  %4462 = vmatpush1.msra.mxu1 %v10681_v59  ;;  %v4039_v30 = vpop.f32.mrf.mxu1 }
0x1027   :  { %4392 = vmatprep.subr.mxu0 %v10682_v21  ;;  %4463 = vmatprep.subr.mxu1 %v10683_v12  ;;  %v3928_v20 = vpop.f32.mrf.mxu0 }
0x1028   :  { %4393 = vmatpush1.msra.mxu0 %v10684_v60  ;;  %4426 = vmatprep.mubr.f32.mxu0 %v10625_v25  ;;  %v4041_v59 = vpop.f32.mrf.mxu1 }
0x1029   :  { %4464 = vmatpush1.msra.mxu1 %v10685_v24  ;;  %4497 = vmatprep.mubr.f32.mxu1 %v10625_v25  ;;  %v9073_v27 = vpop.f32.mrf.mxu0 }
0x102a   :  { %4538 = vmatprep.subr.mxu0 %v10686_v17  ;;  %4609 = vmatprep.subr.mxu1 %v10687_v58  ;;  %10688 = vst [vmem:[#allocation43_spill] sm:$0xff] %v9073_v27  ;;  %v9075_v21 = vpop.f32.mrf.mxu1 }
0x102b   :  { %10689 = vst [vmem:[#allocation62_spill] sm:$0xff] %v9075_v21  ;;  %v9077_v12 = vpop.f32.mrf.mxu0 }
0x102c   :  { %10690 = vst [vmem:[#allocation63_spill] sm:$0xff] %v9077_v12  ;;  %v9079_v60 = vpop.f32.mrf.mxu1 }
0x102d   :  { %10691 = vst [vmem:[#allocation46_spill] sm:$0xff] %v9079_v60  ;;  %v9081_v50 = vpop.f32.mrf.mxu0 }
0x102e   :  { %10692 = vst [vmem:[#allocation45_spill] sm:$0xff] %v9081_v50  ;;  %v9083_v24 = vpop.f32.mrf.mxu1 }
0x102f   :  { %10693 = vst [vmem:[#allocation64_spill] sm:$0xff] %v9083_v24  ;;  %v9085_v25 = vpop.f32.mrf.mxu0 }
0x1030   :  { %10694 = vst [vmem:[#allocation65_spill] sm:$0xff] %v9085_v25  ;;  %v9087_v17 = vpop.f32.mrf.mxu1 }
0x1031   :  { %10695 = vst [vmem:[#allocation48_spill] sm:$0xff] %v9087_v17  ;;  %v9089_v58 = vpop.f32.mrf.mxu0 }
0x1032   :  { %10696 = vst [vmem:[#allocation37_spill] sm:$0xff] %v9089_v58  ;;  %v9091_v10 = vpop.f32.mrf.mxu1 }
0x1033   :  { %10697 = vst [vmem:[#allocation27_spill] sm:$0xff] %v9091_v10  ;;  %v9093_v37 = vpop.f32.mrf.mxu0 }
0x1034   :  { %10698 = vst [vmem:[#allocation42_spill] sm:$0xff] %v9093_v37  ;;  %v9095_v27 = vpop.f32.mrf.mxu1 }
0x1035   :  { %10699 = vst [vmem:[#allocation41_spill] sm:$0xff] %v9095_v27  ;;  %v9097_v21 = vpop.f32.mrf.mxu0 }
0x1036   :  { %10700 = vst [vmem:[#allocation34_spill] sm:$0xff] %v9097_v21  ;;  %v9099_v12 = vpop.f32.mrf.mxu1 }
0x1037   :  { %10701 = vst [vmem:[#allocation23_spill] sm:$0xff] %v9099_v12  ;;  %v9101_v60 = vpop.f32.mrf.mxu0  ;;  %v3838_v12 = vld [vmem:[%s9876_s9] sm:$0xf] }
0x1038   :  { %10702 = vst [vmem:[#allocation47_spill] sm:$0xff] %v9101_v60  ;;  %v9103_v50 = vpop.f32.mrf.mxu1  ;;  %v10711_v60 = vld [vmem:[#allocation53_spill] sm:$0xff] }
0x1039   :  { %10703 = vst [vmem:[#allocation31_spill] sm:$0xff] %v9103_v50  ;;  %v9105_v24 = vpop.f32.mrf.mxu0  ;;  %v9123_v50 = vrot.slane %v3838_v12, %v10711_v60 }
0x103a   :  { %10704 = vst [vmem:[#allocation21_spill] sm:$0xff] %v9105_v24  ;;  %v9107_v25 = vpop.f32.mrf.mxu1 }
0x103b   :  { %10705 = vst [vmem:[#allocation71_spill] sm:$0xff] %v9107_v25  ;;  %v9109_v17 = vpop.f32.mrf.mxu0  ;;  %10712 = vst [vmem:[#allocation59_spill] sm:$0xff] %v9123_v50 }
0x103c   :  { %10706 = vst [vmem:[#allocation15_spill] sm:$0xff] %v9109_v17  ;;  %v9111_v58 = vpop.f32.mrf.mxu1  ;;  %v10715_v17 = vld [vmem:[#allocation52_spill] sm:$0xff] }
0x103d   :  { %10707 = vst [vmem:[#allocation26_spill] sm:$0xff] %v9111_v58  ;;  %v9113_v10 = vpop.f32.mrf.mxu0  ;;  %v9130_v27 = vrot.slane %v3838_v12, %v10715_v17  ;;  %v10719_v17 = vld [vmem:[#allocation40_spill] sm:$0xff] }
0x103e   :  { %10708 = vst [vmem:[#allocation17_spill] sm:$0xff] %v9113_v10  ;;  %v9115_v37 = vpop.f32.mrf.mxu1  ;;  %v9141_v15 = vrot.slane %v3838_v12, %v10719_v17 }
0x103f   :  { %10709 = vst [vmem:[#allocation72_spill] sm:$0xff] %v9115_v37  ;;  %v9120_v21 = vpop.f32.mrf.mxu0  ;;  %v3927_v37 = vadd.f32 %v3926_v5, %v9123_v50  ;;  %v3929_v57 = vadd.f32 %v3928_v20, %v9130_v27  ;;  %v10721_v5 = vld [vmem:[#allocation39_spill] sm:$0xff] }
0x1040   :  { %10710 = vst [vmem:[#allocation55_spill] sm:$0xff] %v9120_v21  ;;  %v9125_v24 = vpop.f32.mrf.mxu1  ;;  %10720 = vst [vmem:[#allocation16_spill] sm:$0xff] %v9141_v15  ;;  %v9145_v50 = vrot.slane %v3838_v12, %v10721_v5 }
0x1041   :  { %10713 = vst [vmem:[#allocation22_spill] sm:$0xff] %v9125_v24 }
0x10c5   :  { %v9127_v25 = vpop.f32.mrf.mxu0  ;;  %v9132_v58 = vpop.f32.mrf.mxu1 }
0x10c6   :  { %10714 = vst [vmem:[#allocation18_spill] sm:$0xff] %v9127_v25  ;;  %10716 = vst [vmem:[#allocation57_spill] sm:$0xff] %v9132_v58 }
0x10c7   :  { %v9134_v10 = vpop.f32.mrf.mxu0  ;;  %v9138_v21 = vpop.f32.mrf.mxu1 }
0x10c8   :  { %10717 = vst [vmem:[#allocation70_spill] sm:$0xff] %v9134_v10  ;;  %10718 = vst [vmem:[#allocation58_spill] sm:$0xff] %v9138_v21  ;;  %v4042_v10 = vadd.f32 %v4041_v59, %v9141_v15  ;;  %v4040_v21 = vadd.f32 %v4039_v30, %v9145_v50 }
0x10c9   :  { %v4252_v18 = vpop.f32.mrf.mxu0  ;;  %v4323_v25 = vpop.f32.mrf.mxu1 }
0x10ca   :  { %v4328_v60 = vadd.f32 %v4252_v18, %v3927_v37 }
0x10cb   :  { %v4254_v34 = vpop.f32.mrf.mxu0  ;;  %v4325_v58 = vpop.f32.mrf.mxu1 }
0x10cc   :  { %v5817_v56 = vmul.f32 -1.442695, %v4328_v60  ;;  %v4329_v24 = vadd.f32 %v4254_v34, %v3929_v57  ;;  %v4331_v20 = vadd.f32 %v4325_v58, %v4042_v10  ;;  %v4330_v60 = vadd.f32 %v4323_v25, %v4040_v21  ;;  %v10724_v21 = vld [vmem:[#allocation19_spill] sm:$0xff] }
0x10ce   :  { %6174 = vpow2.f32 %v5817_v56  ;;  %v5818_v55 = vmul.f32 -1.442695, %v4329_v24  ;;  %v5819_v18 = vmul.f32 -1.442695, %v4331_v20  ;;  %v10725_v20 = vld [vmem:[#allocation35_spill] sm:$0xff] }
0x10d0   :  { %6176 = vpow2.f32 %v5818_v55 }
0x10d1   :  { %6178 = vpow2.f32 %v5819_v18  ;;  %v10726_v18 = vld [vmem:[#allocation24_spill] sm:$0xff] }
0x10db   :  { %v6175_v37 = vpop.eup %6174 }
0x10dc   :  { %v4335_v34 = vadd.f32 1.0, %v6175_v37  ;;  %v10727_v37 = vld [vmem:[#allocation30_spill] sm:$0xff] }
0x10dd   :  { %v6177_v56 = vpop.eup %6176 }
0x10de   :  { %6180 = vrcp.f32 %v4335_v34  ;;  %v4341_v57 = vadd.f32 1.0, %v6177_v56  ;;  %v6179_v55 = vpop.eup %6178  ;;  %v10729_v34 = vld [vmem:[#allocation36_spill] sm:$0xff]  ;;  %v10730_v56 = vld [vmem:[#allocation25_spill] sm:$0xff] }
0x10df   :  { %6182 = vtanh.f32 %v4330_v60  ;;  %v4348_v15 = vadd.f32 1.0, %v6179_v55  ;;  %v10728_v60 = vld [vmem:[#allocation20_spill] sm:$0xff]  ;;  %v10732_v55 = vld [vmem:[#allocation33_spill] sm:$0xff] }
0x10e0   :  { %6184 = vrcp.f32 %v4341_v57  ;;  %v10731_v57 = vld [vmem:[#allocation56_spill] sm:$0xff] }
0x10e1   :  { %6186 = vrcp.f32 %v4348_v15  ;;  %v10723_v15 = vld [vmem:[#allocation29_spill] sm:$0xff] }
0x10eb   :  { %v6181_v24 = vpop.eup %6180 }
0x10ec   :  { %v6183_v17 = vpop.eup %6182 }
0x10ed   :  { %v6185_v59 = vpop.eup %6184  ;;  %v4352_v5 = vmul.f32 %v6183_v17, %v6181_v24  ;;  %v10733_v24 = vld [vmem:[#allocation68_spill] sm:$0xff]  ;;  %v10734_v17 = vld [vmem:[#allocation54_spill] sm:$0xff] }
0x10ee   :  { %v4351_v12 = vmul.f32 0.0, %v6185_v59  ;;  %v6187_v25 = vpop.eup %6186  ;;  %v10735_v59 = vld [vmem:[#allocation69_spill] sm:$0xff] }
0x10f0   :  { %v9148_v10 = vadd.f32 %v4352_v5, %v4351_v12  ;;  %v10736_v12 = vld [vmem:[#allocation51_spill] sm:$0xff]  ;;  %v10737_v5 = vld [vmem:[#allocation28_spill] sm:$0xff] }
0x10f2   :  { %6188 = vtanh.f32 %v9148_v10 }
0x10ff   :  { %v6189_v58 = vpop.eup %6188 }
0x1100   :  { %v9151_v30 = vmul.f32 %v6189_v58, %v6187_v25  ;;  %v10738_v25 = vld [vmem:[#allocation38_spill] sm:$0xff]  ;;  %v10739_v58 = vld [vmem:[#allocation61_spill] sm:$0xff] }
0x1102   :  { %10722 = vst [vmem:[#allocation49_spill] sm:$0xff] %v9151_v30  ;;  %4427 = vmatmul.mubr.f32.vlgmr.msra.gmra.mxu0 %v9151_v30  ;;  %4498 = vmatmul.mubr.f32.vlgmr.msra.gmra.mxu1 %v9151_v30  ;;  %v10740_v30 = vld [vmem:[#allocation60_spill] sm:$0xff] }
0x1103   :  { %4539 = vmatpush1.msra.mxu0 %v8805_v1  ;;  %4610 = vmatpush1.msra.mxu1 %v8808_v61 }
0x1104   :  { %4540 = vmatprep.subr.mxu0 %v8811_v47  ;;  %4611 = vmatprep.subr.mxu1 %v8814_v62 }
0x1105   :  { %4541 = vmatpush1.msra.mxu0 %v8817_v36  ;;  %4612 = vmatpush1.msra.mxu1 %v8820_v0 }
0x1106   :  { %4542 = vmatprep.subr.mxu0 %v8823_v43  ;;  %4613 = vmatprep.subr.mxu1 %v8826_v32 }
0x1107   :  { %4543 = vmatpush1.msra.mxu0 %v8829_v35  ;;  %4614 = vmatpush1.msra.mxu1 %v8832_v31 }
0x1108   :  { %4544 = vmatprep.subr.mxu0 %v8835_v8  ;;  %4615 = vmatprep.subr.mxu1 %v8838_v39 }
0x1109   :  { %4545 = vmatpush1.msra.mxu0 %v8841_v6  ;;  %4616 = vmatpush1.msra.mxu1 %v8844_v9 }
0x110a   :  { %4546 = vmatprep.subr.mxu0 %v8847_v11  ;;  %4617 = vmatprep.subr.mxu1 %v8850_v14 }
0x110b   :  { %4547 = vmatpush1.msra.mxu0 %v8853_v16  ;;  %4618 = vmatpush1.msra.mxu1 %v8856_v19 }
0x110c   :  { %4548 = vmatprep.subr.mxu0 %v8859_v23  ;;  %4619 = vmatprep.subr.mxu1 %v8862_v29 }
0x110d   :  { %4549 = vmatpush1.msra.mxu0 %v8865_v22  ;;  %4620 = vmatpush1.msra.mxu1 %v8868_v33 }
0x110e   :  { %4550 = vmatprep.subr.mxu0 %v8871_v48  ;;  %4621 = vmatprep.subr.mxu1 %v8874_v46 }
0x110f   :  { %4551 = vmatpush1.msra.mxu0 %v8877_v28  ;;  %4622 = vmatpush1.msra.mxu1 %v8880_v52 }
0x1110   :  { %4552 = vmatprep.subr.mxu0 %v8883_v53  ;;  %4623 = vmatprep.subr.mxu1 %v8886_v63 }
0x1111   :  { %4553 = vmatpush1.msra.mxu0 %v8889_v41  ;;  %4624 = vmatpush1.msra.mxu1 %v8892_v51 }
0x1112   :  { %4554 = vmatprep.subr.mxu0 %v8895_v44  ;;  %4625 = vmatprep.subr.mxu1 %v8898_v45 }
0x1113   :  { %4555 = vmatpush1.msra.mxu0 %v8901_v54  ;;  %4626 = vmatpush1.msra.mxu1 %v8904_v26 }
0x1114   :  { %4556 = vmatprep.subr.mxu0 %v8907_v2  ;;  %4627 = vmatprep.subr.mxu1 %v8910_v3 }
0x1115   :  { %4557 = vmatpush1.msra.mxu0 %v8913_v49  ;;  %4628 = vmatpush1.msra.mxu1 %v8916_v40 }
0x1116   :  { %4558 = vmatprep.subr.mxu0 %v8919_v38  ;;  %4629 = vmatprep.subr.mxu1 %v8922_v42 }
0x1117   :  { %4559 = vmatpush1.msra.mxu0 %v10664_v4  ;;  %4630 = vmatpush1.msra.mxu1 %v10665_v13 }
0x1118   :  { %4560 = vmatprep.subr.mxu0 %v10666_v7  ;;  %4631 = vmatprep.subr.mxu1 %v10723_v15  ;;  %v10750_v15 = vld [vmem:[#allocation62_spill] sm:$0xff] }
0x1119   :  { %4561 = vmatpush1.msra.mxu0 %v10724_v21  ;;  %4632 = vmatpush1.msra.mxu1 %v10725_v20  ;;  %v10748_v20 = vld [vmem:[#allocation16_spill] sm:$0xff] }
0x111a   :  { %4562 = vmatprep.subr.mxu0 %v10726_v18  ;;  %4633 = vmatprep.subr.mxu1 %v10727_v37 }
0x111b   :  { %4563 = vmatpush1.msra.mxu0 %v10728_v60  ;;  %4634 = vmatpush1.msra.mxu1 %v10729_v34 }
0x111c   :  { %4564 = vmatprep.subr.mxu0 %v10730_v56  ;;  %4635 = vmatprep.subr.mxu1 %v10731_v57  ;;  %v10741_v56 = vmov 0.0   ;;  %v10742_v57 = vld [vmem:[#allocation44_spill] sm:$0xff] }
0x111d   :  { %4565 = vmatpush1.msra.mxu0 %v10732_v55  ;;  %4636 = vmatpush1.msra.mxu1 %v10733_v24  ;;  %v10743_v24 = vld [vmem:[#allocation67_spill] sm:$0xff] }
0x111e   :  { %4566 = vmatprep.subr.mxu0 %v10734_v17  ;;  %4637 = vmatprep.subr.mxu1 %v10735_v59  ;;  %v10744_v17 = vld [vmem:[#allocation66_spill] sm:$0xff]  ;;  %v10745_v59 = vld [vmem:[#allocation59_spill] sm:$0xff] }
0x111f   :  { %4567 = vmatpush1.msra.mxu0 %v10736_v12  ;;  %4638 = vmatpush1.msra.mxu1 %v10737_v5  ;;  %v10746_v12 = vld [vmem:[#allocation43_spill] sm:$0xff] }
0x1120   :  { %4568 = vmatprep.subr.mxu0 %v10738_v25  ;;  %4639 = vmatprep.subr.mxu1 %v10739_v58  ;;  %v3933_v55 = vadd.f32 %v10746_v12, %v10745_v59  ;;  %v10747_v25 = vld [vmem:[#allocation63_spill] sm:$0xff]  ;;  %v4046_v12 = vadd.f32 %v10750_v15, %v9145_v50 }
0x1121   :  { %4569 = vmatpush1.msra.mxu0 %v10740_v30  ;;  %4602 = vmatprep.mubr.f32.mxu0 %v10741_v56  ;;  %v3935_v34 = vadd.f32 %v10747_v25, %v9130_v27 }
0x1122   :  { %4640 = vmatpush1.msra.mxu1 %v10742_v57  ;;  %4673 = vmatprep.mubr.f32.mxu1 %v10741_v56 }
0x1123   :  { %4714 = vmatprep.subr.mxu0 %v10743_v24  ;;  %4785 = vmatprep.subr.mxu1 %v10744_v17  ;;  %v10749_v24 = vld [vmem:[#allocation46_spill] sm:$0xff] }
0x1124   :  { %v4048_v21 = vadd.f32 %v10749_v24, %v10748_v20 }
0x11c2   :  { %v4428_v5 = vpop.f32.mrf.mxu0  ;;  %v4499_v18 = vpop.f32.mrf.mxu1 }
0x11c3   :  { %v4504_v58 = vadd.f32 %v4428_v5, %v3933_v55  ;;  %v4506_v59 = vadd.f32 %v4499_v18, %v4046_v12  ;;  %v10773_v12 = vld [vmem:[#allocation44_spill] sm:$0xff] }
0x11c4   :  { %v4430_v60 = vpop.f32.mrf.mxu0  ;;  %v4501_v56 = vpop.f32.mrf.mxu1 }
0x11c5   :  { %v5820_v30 = vmul.f32 -1.442695, %v4504_v58  ;;  %v4505_v37 = vadd.f32 %v4430_v60, %v3935_v34  ;;  %v4507_v17 = vadd.f32 %v4501_v56, %v4048_v21  ;;  %v10772_v58 = vmov 0.0  }
0x11c7   :  { %6190 = vpow2.f32 %v5820_v30  ;;  %v5821_v57 = vmul.f32 -1.442695, %v4505_v37  ;;  %v5822_v7 = vmul.f32 -1.442695, %v4507_v17  ;;  %v10770_v17 = vld [vmem:[#allocation61_spill] sm:$0xff] }
0x11c9   :  { %6192 = vpow2.f32 %v5821_v57 }
0x11ca   :  { %6194 = vtanh.f32 %v4506_v59  ;;  %v10771_v59 = vld [vmem:[#allocation60_spill] sm:$0xff] }
0x11cb   :  { %6196 = vpow2.f32 %v5822_v7  ;;  %v10768_v7 = vld [vmem:[#allocation28_spill] sm:$0xff] }
0x11d4   :  { %v6191_v13 = vpop.eup %6190 }
0x11d5   :  { %v4511_v25 = vadd.f32 1.0, %v6191_v13 }
0x11d6   :  { %v6193_v55 = vpop.eup %6192 }
0x11d7   :  { %6198 = vrcp.f32 %v4511_v25  ;;  %v4517_v30 = vadd.f32 1.0, %v6193_v55  ;;  %v6195_v37 = vpop.eup %6194  ;;  %v10774_v25 = vld [vmem:[#allocation67_spill] sm:$0xff]  ;;  %v10775_v55 = vld [vmem:[#allocation66_spill] sm:$0xff] }
0x11d8   :  { %v6197_v60 = vpop.eup %6196 }
0x11d9   :  { %6200 = vrcp.f32 %v4517_v30  ;;  %v4524_v24 = vadd.f32 1.0, %v6197_v60  ;;  %v10776_v30 = vld [vmem:[#allocation59_spill] sm:$0xff] }
0x11db   :  { %6202 = vrcp.f32 %v4524_v24 }
0x11e4   :  { %v6199_v34 = vpop.eup %6198 }
0x11e5   :  { %v4528_v57 = vmul.f32 %v6199_v34, %v6195_v37  ;;  %v10777_v37 = vld [vmem:[#allocation45_spill] sm:$0xff] }
0x11e6   :  { %v6201_v5 = vpop.eup %6200  ;;  %v3939_v60 = vadd.f32 %v10777_v37, %v10776_v30 }
0x11e7   :  { %v4527_v21 = vmul.f32 %v6201_v5, %v9148_v10  ;;  %v10769_v10 = vld [vmem:[#allocation38_spill] sm:$0xff] }
0x11e8   :  { %v6203_v13 = vpop.eup %6202 }
0x11e9   :  { %v9230_v56 = vadd.f32 %v4528_v57, %v4527_v21  ;;  %v10778_v57 = vld [vmem:[#allocation65_spill] sm:$0xff] }
0x11ea   :  { %v3941_v5 = vadd.f32 %v10778_v57, %v9130_v27 }
0x11eb   :  { %6204 = vtanh.f32 %v9230_v56 }
0x11f8   :  { %v6205_v15 = vpop.eup %6204 }
0x11f9   :  { %v9233_v18 = vmul.f32 %v6205_v15, %v6203_v13 }
0x11fb   :  { %10751 = vst [vmem:[#allocation53_spill] sm:$0xff] %v9233_v18  ;;  %4603 = vmatmul.mubr.f32.vlgmr.msra.gmra.mxu0 %v9233_v18  ;;  %4674 = vmatmul.mubr.f32.vlgmr.msra.gmra.mxu1 %v9233_v18 }
0x11fc   :  { %4715 = vmatpush1.msra.mxu0 %v8805_v1  ;;  %4786 = vmatpush1.msra.mxu1 %v8808_v61  ;;  %v10752_v1 = vld [vmem:[#allocation50_spill] sm:$0xff]  ;;  %v10753_v61 = vld [vmem:[#allocation32_spill] sm:$0xff] }
0x11fd   :  { %4716 = vmatprep.subr.mxu0 %v8811_v47  ;;  %4787 = vmatprep.subr.mxu1 %v8814_v62  ;;  %v10754_v47 = vld [vmem:[#allocation29_spill] sm:$0xff]  ;;  %v10755_v62 = vld [vmem:[#allocation19_spill] sm:$0xff] }
0x11fe   :  { %4717 = vmatpush1.msra.mxu0 %v8817_v36  ;;  %4788 = vmatpush1.msra.mxu1 %v8820_v0  ;;  %v10756_v36 = vld [vmem:[#allocation35_spill] sm:$0xff]  ;;  %v10757_v0 = vld [vmem:[#allocation24_spill] sm:$0xff] }
0x11ff   :  { %4718 = vmatprep.subr.mxu0 %v8823_v43  ;;  %4789 = vmatprep.subr.mxu1 %v8826_v32  ;;  %v10758_v43 = vld [vmem:[#allocation30_spill] sm:$0xff]  ;;  %v10759_v32 = vld [vmem:[#allocation20_spill] sm:$0xff] }
0x1200   :  { %4719 = vmatpush1.msra.mxu0 %v8829_v35  ;;  %4790 = vmatpush1.msra.mxu1 %v8832_v31  ;;  %v10760_v35 = vld [vmem:[#allocation36_spill] sm:$0xff]  ;;  %v10761_v31 = vld [vmem:[#allocation25_spill] sm:$0xff] }
0x1201   :  { %4720 = vmatprep.subr.mxu0 %v8835_v8  ;;  %4791 = vmatprep.subr.mxu1 %v8838_v39  ;;  %v10762_v8 = vld [vmem:[#allocation56_spill] sm:$0xff]  ;;  %v10763_v39 = vld [vmem:[#allocation33_spill] sm:$0xff] }
0x1202   :  { %4721 = vmatpush1.msra.mxu0 %v8841_v6  ;;  %4792 = vmatpush1.msra.mxu1 %v8844_v9  ;;  %v10764_v6 = vld [vmem:[#allocation68_spill] sm:$0xff]  ;;  %v10765_v9 = vld [vmem:[#allocation54_spill] sm:$0xff] }
0x1203   :  { %4722 = vmatprep.subr.mxu0 %v8847_v11  ;;  %4793 = vmatprep.subr.mxu1 %v8850_v14  ;;  %v10766_v11 = vld [vmem:[#allocation69_spill] sm:$0xff]  ;;  %v10767_v14 = vld [vmem:[#allocation51_spill] sm:$0xff] }
0x1204   :  { %4723 = vmatpush1.msra.mxu0 %v8853_v16  ;;  %4794 = vmatpush1.msra.mxu1 %v8856_v19 }
0x1205   :  { %4724 = vmatprep.subr.mxu0 %v8859_v23  ;;  %4795 = vmatprep.subr.mxu1 %v8862_v29 }
0x1206   :  { %4725 = vmatpush1.msra.mxu0 %v8865_v22  ;;  %4796 = vmatpush1.msra.mxu1 %v8868_v33 }
0x1207   :  { %4726 = vmatprep.subr.mxu0 %v8871_v48  ;;  %4797 = vmatprep.subr.mxu1 %v8874_v46 }
0x1208   :  { %4727 = vmatpush1.msra.mxu0 %v8877_v28  ;;  %4798 = vmatpush1.msra.mxu1 %v8880_v52 }
0x1209   :  { %4728 = vmatprep.subr.mxu0 %v8883_v53  ;;  %4799 = vmatprep.subr.mxu1 %v8886_v63 }
0x120a   :  { %4729 = vmatpush1.msra.mxu0 %v8889_v41  ;;  %4800 = vmatpush1.msra.mxu1 %v8892_v51 }
0x120b   :  { %4730 = vmatprep.subr.mxu0 %v8895_v44  ;;  %4801 = vmatprep.subr.mxu1 %v8898_v45 }
0x120c   :  { %4731 = vmatpush1.msra.mxu0 %v8901_v54  ;;  %4802 = vmatpush1.msra.mxu1 %v8904_v26 }
0x120d   :  { %4732 = vmatprep.subr.mxu0 %v8907_v2  ;;  %4803 = vmatprep.subr.mxu1 %v8910_v3 }
0x120e   :  { %4733 = vmatpush1.msra.mxu0 %v8913_v49  ;;  %4804 = vmatpush1.msra.mxu1 %v8916_v40 }
0x120f   :  { %4734 = vmatprep.subr.mxu0 %v8919_v38  ;;  %4805 = vmatprep.subr.mxu1 %v8922_v42 }
0x1210   :  { %4735 = vmatpush1.msra.mxu0 %v10664_v4  ;;  %4806 = vmatpush1.msra.mxu1 %v10752_v1 }
0x1211   :  { %4736 = vmatprep.subr.mxu0 %v10753_v61  ;;  %4807 = vmatprep.subr.mxu1 %v10754_v47 }
0x1212   :  { %4737 = vmatpush1.msra.mxu0 %v10755_v62  ;;  %4808 = vmatpush1.msra.mxu1 %v10756_v36 }
0x1213   :  { %4738 = vmatprep.subr.mxu0 %v10757_v0  ;;  %4809 = vmatprep.subr.mxu1 %v10758_v43 }
0x1214   :  { %4739 = vmatpush1.msra.mxu0 %v10759_v32  ;;  %4810 = vmatpush1.msra.mxu1 %v10760_v35 }
0x1215   :  { %4740 = vmatprep.subr.mxu0 %v10761_v31  ;;  %4811 = vmatprep.subr.mxu1 %v10762_v8 }
0x1216   :  { %4741 = vmatpush1.msra.mxu0 %v10763_v39  ;;  %4812 = vmatpush1.msra.mxu1 %v10764_v6 }
0x1217   :  { %4742 = vmatprep.subr.mxu0 %v10765_v9  ;;  %4813 = vmatprep.subr.mxu1 %v10766_v11 }
0x1218   :  { %4743 = vmatpush1.msra.mxu0 %v10767_v14  ;;  %4814 = vmatpush1.msra.mxu1 %v10768_v7 }
0x1219   :  { %4744 = vmatprep.subr.mxu0 %v10769_v10  ;;  %4815 = vmatprep.subr.mxu1 %v10770_v17  ;;  %v10780_v17 = vld [vmem:[#allocation64_spill] sm:$0xff] }
0x121a   :  { %4745 = vmatpush1.msra.mxu0 %v10771_v59  ;;  %4778 = vmatprep.mubr.f32.mxu0 %v10772_v58  ;;  %v4052_v37 = vadd.f32 %v10780_v17, %v9145_v50 }
0x121b   :  { %4816 = vmatpush1.msra.mxu1 %v10773_v12  ;;  %4849 = vmatprep.mubr.f32.mxu1 %v10772_v58 }
0x121c   :  { %4890 = vmatprep.subr.mxu0 %v10774_v25  ;;  %4961 = vmatprep.subr.mxu1 %v10775_v55  ;;  %v10779_v25 = vld [vmem:[#allocation48_spill] sm:$0xff] }
0x121d   :  { %v4054_v59 = vadd.f32 %v10779_v25, %v10748_v20  ;;  %v9328_v25 = vld [vmem:[#allocation11 + $0x1d8] sm:$0xff] }
0x12bb   :  { %v4604_v34 = vpop.f32.mrf.mxu0  ;;  %v4675_v18 = vpop.f32.mrf.mxu1 }
0x12bc   :  { %v4680_v24 = vadd.f32 %v4604_v34, %v3939_v60  ;;  %v4682_v30 = vadd.f32 %v4675_v18, %v4052_v37  ;;  %v9334_v37 = vld [vmem:[#allocation11 + $0x1d0] sm:$0xff] }
0x12bd   :  { %v4606_v21 = vpop.f32.mrf.mxu0  ;;  %v4677_v58 = vpop.f32.mrf.mxu1 }
0x12be   :  { %v5823_v13 = vmul.f32 -1.442695, %v4680_v24  ;;  %v4681_v15 = vadd.f32 %v4606_v21, %v3941_v5  ;;  %v4683_v55 = vadd.f32 %v4677_v58, %v4054_v59 }
0x12c0   :  { %6206 = vpow2.f32 %v5823_v13  ;;  %v5824_v12 = vmul.f32 -1.442695, %v4681_v15  ;;  %v5825_v10 = vmul.f32 -1.442695, %v4683_v55  ;;  %v9331_v55 = vld [vmem:[#allocation11 + $0x1c0] sm:$0xff] }
0x12c2   :  { %6208 = vpow2.f32 %v5824_v12 }
0x12c3   :  { %6210 = vtanh.f32 %v4682_v30  ;;  %v9322_v30 = vld [vmem:[#allocation11 + $0x1f0] sm:$0xff] }
0x12c4   :  { %6212 = vpow2.f32 %v5825_v10  ;;  %v9319_v10 = vld [vmem:[#allocation11 + $0x1e0] sm:$0xff] }
0x12cd   :  { %v6207_v7 = vpop.eup %6206 }
0x12ce   :  { %v4687_v57 = vadd.f32 1.0, %v6207_v7 }
0x12cf   :  { %v6209_v60 = vpop.eup %6208 }
0x12d0   :  { %6214 = vrcp.f32 %v4687_v57  ;;  %v4693_v34 = vadd.f32 1.0, %v6209_v60  ;;  %v6211_v5 = vpop.eup %6210  ;;  %v9337_v57 = vld [vmem:[#allocation11 + $0x1a8] sm:$0xff]  ;;  %v9340_v60 = vld [vmem:[#allocation11 + $0x1b8] sm:$0xff] }
0x12d1   :  { %v6213_v12 = vpop.eup %6212 }
0x12d2   :  { %6216 = vrcp.f32 %v4693_v34  ;;  %v4700_v15 = vadd.f32 1.0, %v6213_v12  ;;  %v9343_v34 = vld [vmem:[#allocation11 + $0x1a0] sm:$0xff]  ;;  %v9349_v12 = vld [vmem:[#allocation11 + $0x188] sm:$0xff] }
0x12d4   :  { %6218 = vrcp.f32 %v4700_v15  ;;  %v9361_v15 = vld [vmem:[#allocation11 + $0x168] sm:$0xff] }
0x12dd   :  { %v6215_v24 = vpop.eup %6214 }
0x12de   :  { %v4704_v21 = vmul.f32 %v6215_v24, %v6211_v5  ;;  %v9346_v5 = vld [vmem:[#allocation11 + $0x1b0] sm:$0xff]  ;;  %v9352_v24 = vld [vmem:[#allocation11 + $0x198] sm:$0xff] }
0x12df   :  { %v6217_v13 = vpop.eup %6216 }
0x12e0   :  { %v4703_v59 = vmul.f32 %v6217_v13, %v9230_v56  ;;  %v9325_v56 = vld [vmem:[#allocation11 + $0x1c8] sm:$0xff]  ;;  %v9358_v13 = vld [vmem:[#allocation11 + $0x190] sm:$0xff] }
0x12e1   :  { %v6219_v18 = vpop.eup %6218 }
0x12e2   :  { %v9312_v58 = vadd.f32 %v4704_v21, %v4703_v59  ;;  %v9355_v21 = vld [vmem:[#allocation11 + $0x180] sm:$0xff]  ;;  %v9364_v59 = vld [vmem:[#allocation11 + $0x178] sm:$0xff] }
0x12e4   :  { %6220 = vtanh.f32 %v9312_v58 }
0x12f1   :  { %v6221_v7 = vpop.eup %6220 }
0x12f2   :  { %v9315_v17 = vmul.f32 %v6221_v7, %v6219_v18 }
0x12f4   :  { %10781 = vst [vmem:[#allocation52_spill] sm:$0xff] %v9315_v17  ;;  %4779 = vmatmul.mubr.f32.vlgmr.msra.gmra.mxu0 %v9315_v17  ;;  %4850 = vmatmul.mubr.f32.vlgmr.msra.gmra.mxu1 %v9315_v17  ;;  %v9570_v17 = vld [vmem:[#allocation11 + $0x38] sm:$0xff] }
0x12f5   :  { %4891 = vmatpush1.msra.mxu0 %v9319_v10  ;;  %4962 = vmatpush1.msra.mxu1 %v9322_v30  ;;  %10810 = vst [vmem:[#allocation56_spill] sm:$0xff] %v9570_v17 }
0x12f6   :  { %4892 = vmatprep.subr.mxu0 %v9325_v56  ;;  %4963 = vmatprep.subr.mxu1 %v9328_v25 }
0x12f7   :  { %4893 = vmatpush1.msra.mxu0 %v9331_v55  ;;  %4964 = vmatpush1.msra.mxu1 %v9334_v37 }
0x12f8   :  { %4894 = vmatprep.subr.mxu0 %v9337_v57  ;;  %4965 = vmatprep.subr.mxu1 %v9340_v60 }
0x12f9   :  { %4895 = vmatpush1.msra.mxu0 %v9343_v34  ;;  %4966 = vmatpush1.msra.mxu1 %v9346_v5 }
0x12fa   :  { %4896 = vmatprep.subr.mxu0 %v9349_v12  ;;  %4967 = vmatprep.subr.mxu1 %v9352_v24 }
0x12fb   :  { %4897 = vmatpush1.msra.mxu0 %v9355_v21  ;;  %4968 = vmatpush1.msra.mxu1 %v9358_v13 }
0x12fc   :  { %4898 = vmatprep.subr.mxu0 %v9361_v15  ;;  %4969 = vmatprep.subr.mxu1 %v9364_v59 }
0x12fd   :  { %4899 = vmatpush1.msra.mxu0 %v8853_v16  ;;  %4970 = vmatpush1.msra.mxu1 %v8856_v19  ;;  %v10782_v16 = vld [vmem:[#allocation28_spill] sm:$0xff]  ;;  %v10783_v19 = vld [vmem:[#allocation38_spill] sm:$0xff] }
0x12fe   :  { %4900 = vmatprep.subr.mxu0 %v8859_v23  ;;  %4971 = vmatprep.subr.mxu1 %v8862_v29  ;;  %v10784_v23 = vld [vmem:[#allocation61_spill] sm:$0xff]  ;;  %v10785_v29 = vld [vmem:[#allocation60_spill] sm:$0xff] }
0x12ff   :  { %4901 = vmatpush1.msra.mxu0 %v8865_v22  ;;  %4972 = vmatpush1.msra.mxu1 %v8868_v33  ;;  %v10786_v22 = vmov 0.0   ;;  %v10787_v33 = vld [vmem:[#allocation44_spill] sm:$0xff] }
0x1300   :  { %4902 = vmatprep.subr.mxu0 %v8871_v48  ;;  %4973 = vmatprep.subr.mxu1 %v8874_v46  ;;  %v9415_v48 = vld [vmem:[#allocation11 + $0x1e8] sm:$0xff]  ;;  %v9418_v46 = vld [vmem:[#allocation11 + $0x1f8] sm:$0xff] }
0x1301   :  { %4903 = vmatpush1.msra.mxu0 %v8877_v28  ;;  %4974 = vmatpush1.msra.mxu1 %v8880_v52  ;;  %10788 = vst [vmem:[#allocation40_spill] sm:$0xff] %v9415_v48  ;;  %10789 = vst [vmem:[#allocation39_spill] sm:$0xff] %v9418_v46  ;;  %v10790_v28 = vld [vmem:[#allocation59_spill] sm:$0xff]  ;;  %v10791_v52 = vld [vmem:[#allocation37_spill] sm:$0xff] }
0x1302   :  { %4904 = vmatprep.subr.mxu0 %v8883_v53  ;;  %4975 = vmatprep.subr.mxu1 %v8886_v63  ;;  %v3945_v53 = vadd.f32 %v10791_v52, %v10790_v28  ;;  %v9471_v52 = vld [vmem:[#allocation11 + $0x128] sm:$0xff] }
0x1303   :  { %4905 = vmatpush1.msra.mxu0 %v8889_v41  ;;  %4976 = vmatpush1.msra.mxu1 %v8892_v51  ;;  %v10792_v41 = vld [vmem:[#allocation42_spill] sm:$0xff] }
0x1304   :  { %4906 = vmatprep.subr.mxu0 %v8895_v44  ;;  %4977 = vmatprep.subr.mxu1 %v8898_v45  ;;  %v3947_v51 = vadd.f32 %v10792_v41, %v9130_v27  ;;  %v9480_v41 = vld [vmem:[#allocation11 + $0x130] sm:$0xff] }
0x1305   :  { %4907 = vmatpush1.msra.mxu0 %v8901_v54  ;;  %4978 = vmatpush1.msra.mxu1 %v8904_v26 }
0x1306   :  { %4908 = vmatprep.subr.mxu0 %v8907_v2  ;;  %4979 = vmatprep.subr.mxu1 %v8910_v3 }
0x1307   :  { %4909 = vmatpush1.msra.mxu0 %v8913_v49  ;;  %4980 = vmatpush1.msra.mxu1 %v8916_v40  ;;  %v10793_v40 = vld [vmem:[#allocation41_spill] sm:$0xff] }
0x1308   :  { %4910 = vmatprep.subr.mxu0 %v8919_v38  ;;  %4981 = vmatprep.subr.mxu1 %v8922_v42  ;;  %v4060_v38 = vadd.f32 %v10793_v40, %v10748_v20  ;;  %v9507_v40 = vld [vmem:[#allocation11 + $0xc8] sm:$0xff] }
0x1309   :  { %4911 = vmatpush1.msra.mxu0 %v10664_v4  ;;  %4982 = vmatpush1.msra.mxu1 %v10752_v1  ;;  %v10794_v4 = vld [vmem:[#allocation27_spill] sm:$0xff] }
0x130a   :  { %4912 = vmatprep.subr.mxu0 %v10753_v61  ;;  %4983 = vmatprep.subr.mxu1 %v10754_v47  ;;  %v4058_v1 = vadd.f32 %v10794_v4, %v9145_v50  ;;  %v9516_v4 = vld [vmem:[#allocation11 + $0xd0] sm:$0xff] }
0x130b   :  { %4913 = vmatpush1.msra.mxu0 %v10755_v62  ;;  %4984 = vmatpush1.msra.mxu1 %v10756_v36 }
0x130c   :  { %4914 = vmatprep.subr.mxu0 %v10757_v0  ;;  %4985 = vmatprep.subr.mxu1 %v10758_v43 }
0x130d   :  { %4915 = vmatpush1.msra.mxu0 %v10759_v32  ;;  %4986 = vmatpush1.msra.mxu1 %v10760_v35 }
0x130e   :  { %4916 = vmatprep.subr.mxu0 %v10761_v31  ;;  %4987 = vmatprep.subr.mxu1 %v10762_v8 }
0x130f   :  { %4917 = vmatpush1.msra.mxu0 %v10763_v39  ;;  %4988 = vmatpush1.msra.mxu1 %v10764_v6 }
0x1310   :  { %4918 = vmatprep.subr.mxu0 %v10765_v9  ;;  %4989 = vmatprep.subr.mxu1 %v10766_v11 }
0x1311   :  { %4919 = vmatpush1.msra.mxu0 %v10767_v14  ;;  %4990 = vmatpush1.msra.mxu1 %v10782_v16  ;;  %v9456_v16 = vld [vmem:[#allocation11 + $0x170] sm:$0xff] }
0x1312   :  { %4920 = vmatprep.subr.mxu0 %v10783_v19  ;;  %4991 = vmatprep.subr.mxu1 %v10784_v23  ;;  %v9459_v19 = vld [vmem:[#allocation11 + $0x148] sm:$0xff]  ;;  %v9462_v23 = vld [vmem:[#allocation11 + $0x158] sm:$0xff] }
0x1313   :  { %4921 = vmatpush1.msra.mxu0 %v10785_v29  ;;  %4954 = vmatprep.mubr.f32.mxu0 %v10786_v22  ;;  %v9465_v29 = vld [vmem:[#allocation11 + $0x140] sm:$0xff] }
0x1314   :  { %4992 = vmatpush1.msra.mxu1 %v10787_v33  ;;  %5025 = vmatprep.mubr.f32.mxu1 %v10786_v22  ;;  %v9468_v33 = vld [vmem:[#allocation11 + $0x150] sm:$0xff] }
0x1315   :  { %5066 = vmatprep.subr.mxu0 %v9415_v48  ;;  %5137 = vmatprep.subr.mxu1 %v9418_v46 }
0x13b4   :  { %v4780_v63 = vpop.f32.mrf.mxu0  ;;  %v4851_v2 = vpop.f32.mrf.mxu1 }
0x13b5   :  { %v4856_v44 = vadd.f32 %v4780_v63, %v3945_v53  ;;  %v4858_v61 = vadd.f32 %v4851_v2, %v4058_v1  ;;  %v9474_v53 = vld [vmem:[#allocation11 + $0x138] sm:$0xff]  ;;  %v9477_v63 = vld [vmem:[#allocation11 + $0x120] sm:$0xff]  ;;  %v9519_v1 = vld [vmem:[#allocation11 + $0xa8] sm:$0xff] }
0x13b6   :  { %v4782_v45 = vpop.f32.mrf.mxu0  ;;  %v4853_v49 = vpop.f32.mrf.mxu1  ;;  %v9498_v2 = vld [vmem:[#allocation11 + $0xf8] sm:$0xff] }
0x13b7   :  { %v5826_v54 = vmul.f32 -1.442695, %v4856_v44  ;;  %v4857_v26 = vadd.f32 %v4782_v45, %v3947_v51  ;;  %v4859_v42 = vadd.f32 %v4853_v49, %v4060_v38  ;;  %v9483_v51 = vld [vmem:[#allocation11 + $0x108] sm:$0xff]  ;;  %v9486_v44 = vld [vmem:[#allocation11 + $0x118] sm:$0xff]  ;;  %v9489_v45 = vld [vmem:[#allocation11 + $0x100] sm:$0xff] }
0x13b8   :  { %v9504_v49 = vld [vmem:[#allocation11 + $0xf0] sm:$0xff]  ;;  %v9510_v38 = vld [vmem:[#allocation11 + $0xd8] sm:$0xff] }
0x13b9   :  { %6222 = vpow2.f32 %v5826_v54  ;;  %v5827_v3 = vmul.f32 -1.442695, %v4857_v26  ;;  %v5828_v47 = vmul.f32 -1.442695, %v4859_v42  ;;  %v9492_v54 = vld [vmem:[#allocation11 + $0x110] sm:$0xff]  ;;  %v9495_v26 = vld [vmem:[#allocation11 + $0xe8] sm:$0xff] }
0x13ba   :  { %v9513_v42 = vld [vmem:[#allocation11 + $0xc0] sm:$0xff] }
0x13bb   :  { %6224 = vpow2.f32 %v5827_v3  ;;  %v9501_v3 = vld [vmem:[#allocation11 + $0xe0] sm:$0xff] }
0x13bc   :  { %6226 = vtanh.f32 %v4858_v61  ;;  %v9522_v61 = vld [vmem:[#allocation11 + $0xb8] sm:$0xff] }
0x13bd   :  { %6228 = vpow2.f32 %v5828_v47  ;;  %v9525_v47 = vld [vmem:[#allocation11 + $0xa0] sm:$0xff] }
0x13c6   :  { %v6223_v62 = vpop.eup %6222 }
0x13c7   :  { %v4863_v36 = vadd.f32 1.0, %v6223_v62  ;;  %v9528_v62 = vld [vmem:[#allocation11 + $0xb0] sm:$0xff] }
0x13c8   :  { %v6225_v0 = vpop.eup %6224  ;;  %10796 = vst [vmem:[#allocation63_spill] sm:$0xff] %v9528_v62 }
0x13c9   :  { %6230 = vrcp.f32 %v4863_v36  ;;  %v4869_v43 = vadd.f32 1.0, %v6225_v0  ;;  %v6227_v32 = vpop.eup %6226  ;;  %v9531_v36 = vld [vmem:[#allocation11 + $0x88] sm:$0xff]  ;;  %v9534_v0 = vld [vmem:[#allocation11 + $0x98] sm:$0xff] }
0x13ca   :  { %v6229_v35 = vpop.eup %6228  ;;  %10797 = vst [vmem:[#allocation16_spill] sm:$0xff] %v9531_v36  ;;  %10798 = vst [vmem:[#allocation46_spill] sm:$0xff] %v9534_v0 }
0x13cb   :  { %6232 = vrcp.f32 %v4869_v43  ;;  %v4876_v6 = vadd.f32 1.0, %v6229_v35  ;;  %v9537_v43 = vld [vmem:[#allocation11 + $0x80] sm:$0xff]  ;;  %v9543_v35 = vld [vmem:[#allocation11 + $0x68] sm:$0xff] }
0x13cc   :  { %10799 = vst [vmem:[#allocation62_spill] sm:$0xff] %v9537_v43  ;;  %10801 = vst [vmem:[#allocation32_spill] sm:$0xff] %v9543_v35 }
0x13cd   :  { %6234 = vrcp.f32 %v4876_v6  ;;  %v9555_v6 = vld [vmem:[#allocation11 + $0x48] sm:$0xff] }
0x13ce   :  { %10805 = vst [vmem:[#allocation24_spill] sm:$0xff] %v9555_v6 }
0x13d6   :  { %v6231_v31 = vpop.eup %6230 }
0x13d7   :  { %v4880_v8 = vmul.f32 %v6231_v31, %v6227_v32  ;;  %v9540_v32 = vld [vmem:[#allocation11 + $0x90] sm:$0xff]  ;;  %v9546_v31 = vld [vmem:[#allocation11 + $0x78] sm:$0xff] }
0x13d8   :  { %v6233_v39 = vpop.eup %6232  ;;  %10800 = vst [vmem:[#allocation50_spill] sm:$0xff] %v9540_v32  ;;  %10802 = vst [vmem:[#allocation29_spill] sm:$0xff] %v9546_v31 }
0x13d9   :  { %v4879_v9 = vmul.f32 %v6233_v39, %v9312_v58  ;;  %v9453_v58 = vld [vmem:[#allocation11 + $0x160] sm:$0xff]  ;;  %v9552_v39 = vld [vmem:[#allocation11 + $0x70] sm:$0xff] }
0x13da   :  { %v6235_v14 = vpop.eup %6234  ;;  %10804 = vst [vmem:[#allocation35_spill] sm:$0xff] %v9552_v39 }
0x13db   :  { %v9430_v11 = vadd.f32 %v4880_v8, %v4879_v9  ;;  %v9549_v8 = vld [vmem:[#allocation11 + $0x60] sm:$0xff]  ;;  %v9558_v9 = vld [vmem:[#allocation11 + $0x58] sm:$0xff] }
0x13dc   :  { %10803 = vst [vmem:[#allocation19_spill] sm:$0xff] %v9549_v8  ;;  %10806 = vst [vmem:[#allocation30_spill] sm:$0xff] %v9558_v9 }
0x13dd   :  { %6236 = vtanh.f32 %v9430_v11 }
0x13ea   :  { %v6237_v18 = vpop.eup %6236 }
0x13eb   :  { %v9433_v7 = vmul.f32 %v6237_v18, %v6235_v14  ;;  %v9561_v14 = vld [vmem:[#allocation11 + $0x40] sm:$0xff]  ;;  %v9564_v18 = vld [vmem:[#allocation11 + $0x50] sm:$0xff] }
0x13ec   :  { %10807 = vst [vmem:[#allocation20_spill] sm:$0xff] %v9561_v14  ;;  %10808 = vst [vmem:[#allocation36_spill] sm:$0xff] %v9564_v18 }
0x13ed   :  { %10795 = vst [vmem:[#allocation43_spill] sm:$0xff] %v9433_v7  ;;  %4955 = vmatmul.mubr.f32.vlgmr.msra.gmra.mxu0 %v9433_v7  ;;  %5026 = vmatmul.mubr.f32.vlgmr.msra.gmra.mxu1 %v9433_v7  ;;  %v9567_v7 = vld [vmem:[#allocation11 + $0x28] sm:$0xff] }
0x13ee   :  { %5067 = vmatpush1.msra.mxu0 %v9319_v10  ;;  %5138 = vmatpush1.msra.mxu1 %v9322_v30  ;;  %10809 = vst [vmem:[#allocation25_spill] sm:$0xff] %v9567_v7 }
0x13ef   :  { %5068 = vmatprep.subr.mxu0 %v9325_v56  ;;  %5139 = vmatprep.subr.mxu1 %v9328_v25 }
0x13f0   :  { %5069 = vmatpush1.msra.mxu0 %v9331_v55  ;;  %5140 = vmatpush1.msra.mxu1 %v9334_v37 }
0x13f1   :  { %5070 = vmatprep.subr.mxu0 %v9337_v57  ;;  %5141 = vmatprep.subr.mxu1 %v9340_v60 }
0x13f2   :  { %5071 = vmatpush1.msra.mxu0 %v9343_v34  ;;  %5142 = vmatpush1.msra.mxu1 %v9346_v5 }
0x13f3   :  { %5072 = vmatprep.subr.mxu0 %v9349_v12  ;;  %5143 = vmatprep.subr.mxu1 %v9352_v24 }
0x13f4   :  { %5073 = vmatpush1.msra.mxu0 %v9355_v21  ;;  %5144 = vmatpush1.msra.mxu1 %v9358_v13 }
0x13f5   :  { %5074 = vmatprep.subr.mxu0 %v9361_v15  ;;  %5145 = vmatprep.subr.mxu1 %v9364_v59 }
0x13f6   :  { %5075 = vmatpush1.msra.mxu0 %v9453_v58  ;;  %5146 = vmatpush1.msra.mxu1 %v9456_v16 }
0x13f7   :  { %5076 = vmatprep.subr.mxu0 %v9459_v19  ;;  %5147 = vmatprep.subr.mxu1 %v9462_v23 }
0x13f8   :  { %5077 = vmatpush1.msra.mxu0 %v9465_v29  ;;  %5148 = vmatpush1.msra.mxu1 %v9468_v33 }
0x13f9   :  { %5078 = vmatprep.subr.mxu0 %v9471_v52  ;;  %5149 = vmatprep.subr.mxu1 %v9474_v53 }
0x13fa   :  { %5079 = vmatpush1.msra.mxu0 %v9477_v63  ;;  %5150 = vmatpush1.msra.mxu1 %v9480_v41 }
0x13fb   :  { %5080 = vmatprep.subr.mxu0 %v9483_v51  ;;  %5151 = vmatprep.subr.mxu1 %v9486_v44 }
0x13fc   :  { %5081 = vmatpush1.msra.mxu0 %v9489_v45  ;;  %5152 = vmatpush1.msra.mxu1 %v9492_v54 }
0x13fd   :  { %5082 = vmatprep.subr.mxu0 %v9495_v26  ;;  %5153 = vmatprep.subr.mxu1 %v9498_v2 }
0x13fe   :  { %5083 = vmatpush1.msra.mxu0 %v9501_v3  ;;  %5154 = vmatpush1.msra.mxu1 %v9504_v49 }
0x13ff   :  { %5084 = vmatprep.subr.mxu0 %v9507_v40  ;;  %5155 = vmatprep.subr.mxu1 %v9510_v38 }
0x1400   :  { %5085 = vmatpush1.msra.mxu0 %v9513_v42  ;;  %5156 = vmatpush1.msra.mxu1 %v9516_v4 }
0x1401   :  { %5086 = vmatprep.subr.mxu0 %v9519_v1  ;;  %5157 = vmatprep.subr.mxu1 %v9522_v61 }
0x1402   :  { %5087 = vmatpush1.msra.mxu0 %v9525_v47  ;;  %5158 = vmatpush1.msra.mxu1 %v9528_v62 }
0x1403   :  { %5088 = vmatprep.subr.mxu0 %v9531_v36  ;;  %5159 = vmatprep.subr.mxu1 %v9534_v0  ;;  %v10820_v0 = vld [vmem:[#allocation23_spill] sm:$0xff] }
0x1404   :  { %5089 = vmatpush1.msra.mxu0 %v9537_v43  ;;  %5160 = vmatpush1.msra.mxu1 %v9540_v32 }
0x1405   :  { %5090 = vmatprep.subr.mxu0 %v9543_v35  ;;  %5161 = vmatprep.subr.mxu1 %v9546_v31 }
0x1406   :  { %5091 = vmatpush1.msra.mxu0 %v9549_v8  ;;  %5162 = vmatpush1.msra.mxu1 %v9552_v39 }
0x1407   :  { %5092 = vmatprep.subr.mxu0 %v9555_v6  ;;  %5163 = vmatprep.subr.mxu1 %v9558_v9  ;;  %v9573_v6 = vld [vmem:[#allocation11 + $0x20] sm:$0xff]  ;;  %v9576_v9 = vld [vmem:[#allocation11 + $0x30] sm:$0xff] }
0x1408   :  { %5093 = vmatpush1.msra.mxu0 %v9561_v14  ;;  %5164 = vmatpush1.msra.mxu1 %v9564_v18  ;;  %10811 = vst [vmem:[#allocation33_spill] sm:$0xff] %v9573_v6  ;;  %10812 = vst [vmem:[#allocation68_spill] sm:$0xff] %v9576_v9  ;;  %v9579_v14 = vld [vmem:[#allocation11 + $0x8] sm:$0xff]  ;;  %v9582_v18 = vld [vmem:[#allocation11 + $0x18] sm:$0xff] }
0x1409   :  { %5094 = vmatprep.subr.mxu0 %v9567_v7  ;;  %5165 = vmatprep.subr.mxu1 %v9570_v17  ;;  %10813 = vst [vmem:[#allocation54_spill] sm:$0xff] %v9579_v14  ;;  %10814 = vst [vmem:[#allocation69_spill] sm:$0xff] %v9582_v18  ;;  %v9585_v7 = vld [vmem:[#allocation11] sm:$0xff]  ;;  %v9589_v17 = vld [vmem:[#allocation11 + $0x10] sm:$0xff] }
0x140a   :  { %5095 = vmatpush1.msra.mxu0 %v9573_v6  ;;  %5166 = vmatpush1.msra.mxu1 %v9576_v9  ;;  %10815 = vst [vmem:[#allocation51_spill] sm:$0xff] %v9585_v7  ;;  %10816 = vst [vmem:[#allocation67_spill] sm:$0xff] %v9589_v17  ;;  %v10818_v6 = vld [vmem:[#allocation47_spill] sm:$0xff] }
0x140b   :  { %5096 = vmatprep.subr.mxu0 %v9579_v14  ;;  %5167 = vmatprep.subr.mxu1 %v9582_v18  ;;  %v10817_v14 = vld [vmem:[#allocation34_spill] sm:$0xff]  ;;  %v3953_v39 = vadd.f32 %v10818_v6, %v9130_v27 }
0x140c   :  { %5097 = vmatpush1.msra.mxu0 %v9585_v7  ;;  %5130 = vmatprep.mubr.f32.mxu0 %v10786_v22  ;;  %v3951_v9 = vadd.f32 %v10817_v14, %v10790_v28  ;;  %v4064_v14 = vadd.f32 %v10820_v0, %v9145_v50  ;;  %v10824_v0 = vld [vmem:[#allocation46_spill] sm:$0xff] }
0x140d   :  { %5168 = vmatpush1.msra.mxu1 %v9589_v17  ;;  %5201 = vmatprep.mubr.f32.mxu1 %v10786_v22 }
0x140e   :  { %5242 = vmatprep.subr.mxu0 %v9415_v48  ;;  %5313 = vmatprep.subr.mxu1 %v9418_v46  ;;  %v10819_v48 = vld [vmem:[#allocation31_spill] sm:$0xff] }
0x140f   :  { %v4066_v43 = vadd.f32 %v10819_v48, %v10748_v20 }
0x14ad   :  { %v4956_v18 = vpop.f32.mrf.mxu0  ;;  %v5027_v32 = vpop.f32.mrf.mxu1 }
0x14ae   :  { %v5032_v7 = vadd.f32 %v4956_v18, %v3951_v9  ;;  %v5034_v28 = vadd.f32 %v5027_v32, %v4064_v14  ;;  %v10825_v32 = vld [vmem:[#allocation62_spill] sm:$0xff]  ;;  %v10827_v14 = vld [vmem:[#allocation32_spill] sm:$0xff] }
0x14af   :  { %v4958_v8 = vpop.f32.mrf.mxu0  ;;  %v5029_v22 = vpop.f32.mrf.mxu1  ;;  %v10826_v18 = vld [vmem:[#allocation50_spill] sm:$0xff] }
0x14b0   :  { %v5829_v31 = vmul.f32 -1.442695, %v5032_v7  ;;  %v5033_v35 = vadd.f32 %v4958_v8, %v3953_v39  ;;  %v5035_v46 = vadd.f32 %v5029_v22, %v4066_v43 }
0x14b2   :  { %6238 = vpow2.f32 %v5829_v31  ;;  %v5830_v17 = vmul.f32 -1.442695, %v5033_v35  ;;  %v5831_v36 = vmul.f32 -1.442695, %v5035_v46 }
0x14b4   :  { %6240 = vpow2.f32 %v5830_v17 }
0x14b5   :  { %6242 = vtanh.f32 %v5034_v28 }
0x14b6   :  { %6244 = vpow2.f32 %v5831_v36  ;;  %v10823_v36 = vld [vmem:[#allocation16_spill] sm:$0xff] }
0x14bf   :  { %v6239_v62 = vpop.eup %6238 }
0x14c0   :  { %v5039_v6 = vadd.f32 1.0, %v6239_v62 }
0x14c1   :  { %v6241_v9 = vpop.eup %6240 }
0x14c2   :  { %6246 = vrcp.f32 %v5039_v6  ;;  %v5045_v7 = vadd.f32 1.0, %v6241_v9  ;;  %v6243_v35 = vpop.eup %6242  ;;  %v10828_v6 = vld [vmem:[#allocation29_spill] sm:$0xff]  ;;  %v10829_v9 = vld [vmem:[#allocation19_spill] sm:$0xff] }
0x14c3   :  { %v6245_v17 = vpop.eup %6244 }
0x14c4   :  { %6248 = vrcp.f32 %v5045_v7  ;;  %v5052_v48 = vadd.f32 1.0, %v6245_v17  ;;  %v10830_v7 = vld [vmem:[#allocation35_spill] sm:$0xff]  ;;  %v10832_v17 = vld [vmem:[#allocation30_spill] sm:$0xff] }
0x14c6   :  { %6250 = vrcp.f32 %v5052_v48  ;;  %v10836_v48 = vld [vmem:[#allocation56_spill] sm:$0xff] }
0x14cf   :  { %v6247_v31 = vpop.eup %6246 }
0x14d0   :  { %v5056_v8 = vmul.f32 %v6247_v31, %v6243_v35  ;;  %v10831_v35 = vld [vmem:[#allocation24_spill] sm:$0xff] }
0x14d1   :  { %v6249_v39 = vpop.eup %6248  ;;  %v10833_v31 = vld [vmem:[#allocation20_spill] sm:$0xff] }
0x14d2   :  { %v5055_v22 = vmul.f32 %v6249_v39, %v9430_v11  ;;  %v10822_v11 = vld [vmem:[#allocation63_spill] sm:$0xff]  ;;  %v10835_v39 = vld [vmem:[#allocation25_spill] sm:$0xff] }
0x14d3   :  { %v6251_v46 = vpop.eup %6250 }
0x14d4   :  { %v9604_v43 = vadd.f32 %v5056_v8, %v5055_v22  ;;  %v10834_v8 = vld [vmem:[#allocation36_spill] sm:$0xff]  ;;  %v10837_v22 = vld [vmem:[#allocation33_spill] sm:$0xff] }
0x14d6   :  { %6252 = vtanh.f32 %v9604_v43 }
0x14e3   :  { %v6253_v28 = vpop.eup %6252 }
0x14e4   :  { %v9607_v62 = vmul.f32 %v6253_v28, %v6251_v46  ;;  %v10838_v46 = vld [vmem:[#allocation68_spill] sm:$0xff]  ;;  %v10839_v28 = vld [vmem:[#allocation54_spill] sm:$0xff] }
0x14e6   :  { %10821 = vst [vmem:[#allocation66_spill] sm:$0xff] %v9607_v62  ;;  %5131 = vmatmul.mubr.f32.vlgmr.msra.gmra.mxu0 %v9607_v62  ;;  %5202 = vmatmul.mubr.f32.vlgmr.msra.gmra.mxu1 %v9607_v62  ;;  %v10840_v62 = vld [vmem:[#allocation69_spill] sm:$0xff] }
0x14e7   :  { %5243 = vmatpush1.msra.mxu0 %v9319_v10  ;;  %5314 = vmatpush1.msra.mxu1 %v9322_v30 }
0x14e8   :  { %5244 = vmatprep.subr.mxu0 %v9325_v56  ;;  %5315 = vmatprep.subr.mxu1 %v9328_v25 }
0x14e9   :  { %5245 = vmatpush1.msra.mxu0 %v9331_v55  ;;  %5316 = vmatpush1.msra.mxu1 %v9334_v37 }
0x14ea   :  { %5246 = vmatprep.subr.mxu0 %v9337_v57  ;;  %5317 = vmatprep.subr.mxu1 %v9340_v60 }
0x14eb   :  { %5247 = vmatpush1.msra.mxu0 %v9343_v34  ;;  %5318 = vmatpush1.msra.mxu1 %v9346_v5 }
0x14ec   :  { %5248 = vmatprep.subr.mxu0 %v9349_v12  ;;  %5319 = vmatprep.subr.mxu1 %v9352_v24 }
0x14ed   :  { %5249 = vmatpush1.msra.mxu0 %v9355_v21  ;;  %5320 = vmatpush1.msra.mxu1 %v9358_v13 }
0x14ee   :  { %5250 = vmatprep.subr.mxu0 %v9361_v15  ;;  %5321 = vmatprep.subr.mxu1 %v9364_v59 }
0x14ef   :  { %5251 = vmatpush1.msra.mxu0 %v9453_v58  ;;  %5322 = vmatpush1.msra.mxu1 %v9456_v16 }
0x14f0   :  { %5252 = vmatprep.subr.mxu0 %v9459_v19  ;;  %5323 = vmatprep.subr.mxu1 %v9462_v23 }
0x14f1   :  { %5253 = vmatpush1.msra.mxu0 %v9465_v29  ;;  %5324 = vmatpush1.msra.mxu1 %v9468_v33 }
0x14f2   :  { %5254 = vmatprep.subr.mxu0 %v9471_v52  ;;  %5325 = vmatprep.subr.mxu1 %v9474_v53 }
0x14f3   :  { %5255 = vmatpush1.msra.mxu0 %v9477_v63  ;;  %5326 = vmatpush1.msra.mxu1 %v9480_v41 }
0x14f4   :  { %5256 = vmatprep.subr.mxu0 %v9483_v51  ;;  %5327 = vmatprep.subr.mxu1 %v9486_v44 }
0x14f5   :  { %5257 = vmatpush1.msra.mxu0 %v9489_v45  ;;  %5328 = vmatpush1.msra.mxu1 %v9492_v54 }
0x14f6   :  { %5258 = vmatprep.subr.mxu0 %v9495_v26  ;;  %5329 = vmatprep.subr.mxu1 %v9498_v2 }
0x14f7   :  { %5259 = vmatpush1.msra.mxu0 %v9501_v3  ;;  %5330 = vmatpush1.msra.mxu1 %v9504_v49 }
0x14f8   :  { %5260 = vmatprep.subr.mxu0 %v9507_v40  ;;  %5331 = vmatprep.subr.mxu1 %v9510_v38 }
0x14f9   :  { %5261 = vmatpush1.msra.mxu0 %v9513_v42  ;;  %5332 = vmatpush1.msra.mxu1 %v9516_v4 }
0x14fa   :  { %5262 = vmatprep.subr.mxu0 %v9519_v1  ;;  %5333 = vmatprep.subr.mxu1 %v9522_v61 }
0x14fb   :  { %5263 = vmatpush1.msra.mxu0 %v9525_v47  ;;  %5334 = vmatpush1.msra.mxu1 %v10822_v11 }
0x14fc   :  { %5264 = vmatprep.subr.mxu0 %v10823_v36  ;;  %5335 = vmatprep.subr.mxu1 %v10824_v0  ;;  %v10850_v0 = vld [vmem:[#allocation71_spill] sm:$0xff] }
0x14fd   :  { %5265 = vmatpush1.msra.mxu0 %v10825_v32  ;;  %5336 = vmatpush1.msra.mxu1 %v10826_v18 }
0x14fe   :  { %5266 = vmatprep.subr.mxu0 %v10827_v14  ;;  %5337 = vmatprep.subr.mxu1 %v10828_v6 }
0x14ff   :  { %5267 = vmatpush1.msra.mxu0 %v10829_v9  ;;  %5338 = vmatpush1.msra.mxu1 %v10830_v7  ;;  %v10841_v7 = vld [vmem:[#allocation51_spill] sm:$0xff] }
0x1500   :  { %5268 = vmatprep.subr.mxu0 %v10831_v35  ;;  %5339 = vmatprep.subr.mxu1 %v10832_v17  ;;  %v10842_v35 = vmov 0.0   ;;  %v10843_v17 = vld [vmem:[#allocation67_spill] sm:$0xff] }
0x1501   :  { %5269 = vmatpush1.msra.mxu0 %v10833_v31  ;;  %5340 = vmatpush1.msra.mxu1 %v10834_v8  ;;  %v10844_v8 = vld [vmem:[#allocation40_spill] sm:$0xff] }
0x1502   :  { %5270 = vmatprep.subr.mxu0 %v10835_v39  ;;  %5341 = vmatprep.subr.mxu1 %v10836_v48  ;;  %v10845_v39 = vld [vmem:[#allocation39_spill] sm:$0xff] }
0x1503   :  { %5271 = vmatpush1.msra.mxu0 %v10837_v22  ;;  %5342 = vmatpush1.msra.mxu1 %v10838_v46  ;;  %v10846_v48 = vld [vmem:[#allocation59_spill] sm:$0xff]  ;;  %v10847_v22 = vld [vmem:[#allocation21_spill] sm:$0xff] }
0x1504   :  { %5272 = vmatprep.subr.mxu0 %v10839_v28  ;;  %5343 = vmatprep.subr.mxu1 %v10840_v62  ;;  %v3957_v31 = vadd.f32 %v10847_v22, %v10846_v48  ;;  %v10848_v28 = vld [vmem:[#allocation15_spill] sm:$0xff]  ;;  %v4070_v22 = vadd.f32 %v10850_v0, %v9145_v50 }
0x1505   :  { %5273 = vmatpush1.msra.mxu0 %v10841_v7  ;;  %5306 = vmatprep.mubr.f32.mxu0 %v10842_v35  ;;  %v3959_v9 = vadd.f32 %v10848_v28, %v9130_v27 }
0x1506   :  { %5344 = vmatpush1.msra.mxu1 %v10843_v17  ;;  %5377 = vmatprep.mubr.f32.mxu1 %v10842_v35 }
0x1507   :  { %5418 = vmatprep.subr.mxu0 %v10844_v8  ;;  %5489 = vmatprep.subr.mxu1 %v10845_v39  ;;  %v10849_v8 = vld [vmem:[#allocation26_spill] sm:$0xff] }
0x1508   :  { %v4072_v32 = vadd.f32 %v10849_v8, %v10748_v20 }
0x15a6   :  { %v5132_v46 = vpop.f32.mrf.mxu0  ;;  %v5203_v18 = vpop.f32.mrf.mxu1 }
0x15a7   :  { %v5208_v62 = vadd.f32 %v5132_v46, %v3957_v31  ;;  %v5210_v48 = vadd.f32 %v5203_v18, %v4070_v22 }
0x15a8   :  { %v5134_v6 = vpop.f32.mrf.mxu0  ;;  %v5205_v35 = vpop.f32.mrf.mxu1 }
0x15a9   :  { %v5832_v7 = vmul.f32 -1.442695, %v5208_v62  ;;  %v5209_v14 = vadd.f32 %v5134_v6, %v3959_v9  ;;  %v5211_v39 = vadd.f32 %v5205_v35, %v4072_v32 }
0x15ab   :  { %6254 = vpow2.f32 %v5832_v7  ;;  %v5833_v17 = vmul.f32 -1.442695, %v5209_v14  ;;  %v5834_v36 = vmul.f32 -1.442695, %v5211_v39 }
0x15ad   :  { %6256 = vpow2.f32 %v5833_v17 }
0x15ae   :  { %6258 = vtanh.f32 %v5210_v48 }
0x15af   :  { %6260 = vpow2.f32 %v5834_v36 }
0x15b8   :  { %v6255_v11 = vpop.eup %6254 }
0x15b9   :  { %v5215_v28 = vadd.f32 1.0, %v6255_v11 }
0x15ba   :  { %v6257_v31 = vpop.eup %6256 }
0x15bb   :  { %6262 = vrcp.f32 %v5215_v28  ;;  %v5221_v62 = vadd.f32 1.0, %v6257_v31  ;;  %v6259_v14 = vpop.eup %6258 }
0x15bc   :  { %v6261_v6 = vpop.eup %6260 }
0x15bd   :  { %6264 = vrcp.f32 %v5221_v62  ;;  %v5228_v46 = vadd.f32 1.0, %v6261_v6 }
0x15bf   :  { %6266 = vrcp.f32 %v5228_v46 }
0x15c8   :  { %v6263_v9 = vpop.eup %6262 }
0x15c9   :  { %v5232_v7 = vmul.f32 %v6263_v9, %v6259_v14 }
0x15ca   :  { %v6265_v17 = vpop.eup %6264 }
0x15cb   :  { %v5231_v32 = vmul.f32 %v6265_v17, %v9604_v43 }
0x15cc   :  { %v6267_v11 = vpop.eup %6266 }
0x15cd   :  { %v9686_v35 = vadd.f32 %v5232_v7, %v5231_v32 }
0x15cf   :  { %6268 = vtanh.f32 %v9686_v35 }
0x15dc   :  { %v6269_v0 = vpop.eup %6268 }
0x15dd   :  { %v9689_v18 = vmul.f32 %v6269_v0, %v6267_v11  ;;  %v5612_v0 = vld [vmem:[%s9877_s10 + $0x70] sm:$0xff] }
0x15df   :  { %5307 = vmatmul.mubr.f32.vlgmr.msra.gmra.mxu0 %v9689_v18  ;;  %5378 = vmatmul.mubr.f32.vlgmr.msra.gmra.mxu1 %v9689_v18 }
0x15e0   :  { %5419 = vmatpush1.msra.mxu0 %v9319_v10  ;;  %5490 = vmatpush1.msra.mxu1 %v9322_v30  ;;  %v10851_v10 = vld [vmem:[#allocation63_spill] sm:$0xff]  ;;  %v10852_v30 = vld [vmem:[#allocation16_spill] sm:$0xff] }
0x15e1   :  { %5420 = vmatprep.subr.mxu0 %v9325_v56  ;;  %5491 = vmatprep.subr.mxu1 %v9328_v25  ;;  %v10853_v56 = vld [vmem:[#allocation46_spill] sm:$0xff] }
0x15e2   :  { %5421 = vmatpush1.msra.mxu0 %v9331_v55  ;;  %5492 = vmatpush1.msra.mxu1 %v9334_v37  ;;  %v10854_v25 = vld [vmem:[#allocation62_spill] sm:$0xff]  ;;  %v10856_v37 = vld [vmem:[#allocation32_spill] sm:$0xff] }
0x15e3   :  { %5422 = vmatprep.subr.mxu0 %v9337_v57  ;;  %5493 = vmatprep.subr.mxu1 %v9340_v60  ;;  %v10855_v55 = vld [vmem:[#allocation50_spill] sm:$0xff]  ;;  %v10857_v57 = vld [vmem:[#allocation29_spill] sm:$0xff]  ;;  %v10858_v60 = vld [vmem:[#allocation19_spill] sm:$0xff] }
0x15e4   :  { %5423 = vmatpush1.msra.mxu0 %v9343_v34  ;;  %5494 = vmatpush1.msra.mxu1 %v9346_v5  ;;  %v10859_v34 = vld [vmem:[#allocation35_spill] sm:$0xff]  ;;  %v10860_v5 = vld [vmem:[#allocation24_spill] sm:$0xff] }
0x15e5   :  { %5424 = vmatprep.subr.mxu0 %v9349_v12  ;;  %5495 = vmatprep.subr.mxu1 %v9352_v24  ;;  %v10861_v12 = vld [vmem:[#allocation30_spill] sm:$0xff]  ;;  %v10862_v24 = vld [vmem:[#allocation20_spill] sm:$0xff] }
0x15e6   :  { %5425 = vmatpush1.msra.mxu0 %v9355_v21  ;;  %5496 = vmatpush1.msra.mxu1 %v9358_v13  ;;  %v10863_v21 = vld [vmem:[#allocation36_spill] sm:$0xff]  ;;  %v10864_v13 = vld [vmem:[#allocation25_spill] sm:$0xff] }
0x15e7   :  { %5426 = vmatprep.subr.mxu0 %v9361_v15  ;;  %5497 = vmatprep.subr.mxu1 %v9364_v59  ;;  %v10865_v15 = vld [vmem:[#allocation56_spill] sm:$0xff]  ;;  %v10866_v59 = vld [vmem:[#allocation33_spill] sm:$0xff] }
0x15e8   :  { %5427 = vmatpush1.msra.mxu0 %v9453_v58  ;;  %5498 = vmatpush1.msra.mxu1 %v9456_v16  ;;  %v10867_v58 = vld [vmem:[#allocation68_spill] sm:$0xff]  ;;  %v10868_v16 = vld [vmem:[#allocation54_spill] sm:$0xff] }
0x15e9   :  { %5428 = vmatprep.subr.mxu0 %v9459_v19  ;;  %5499 = vmatprep.subr.mxu1 %v9462_v23  ;;  %v10869_v19 = vld [vmem:[#allocation69_spill] sm:$0xff]  ;;  %v10870_v23 = vld [vmem:[#allocation51_spill] sm:$0xff] }
0x15ea   :  { %5429 = vmatpush1.msra.mxu0 %v9465_v29  ;;  %5500 = vmatpush1.msra.mxu1 %v9468_v33  ;;  %v10871_v29 = vmov 0.0   ;;  %v10872_v33 = vld [vmem:[#allocation67_spill] sm:$0xff] }
0x15eb   :  { %5430 = vmatprep.subr.mxu0 %v9471_v52  ;;  %5501 = vmatprep.subr.mxu1 %v9474_v53  ;;  %v5613_v52 = vld [vmem:[%s9877_s10 + $0x78] sm:$0xff]  ;;  %v10873_v53 = vld [vmem:[#allocation59_spill] sm:$0xff] }
0x15ec   :  { %5431 = vmatpush1.msra.mxu0 %v9477_v63  ;;  %5502 = vmatpush1.msra.mxu1 %v9480_v41  ;;  %v10874_v63 = vld [vmem:[#allocation17_spill] sm:$0xff] }
0x15ed   :  { %5432 = vmatprep.subr.mxu0 %v9483_v51  ;;  %5503 = vmatprep.subr.mxu1 %v9486_v44  ;;  %v3963_v41 = vadd.f32 %v10874_v63, %v10873_v53  ;;  %v10875_v44 = vld [vmem:[#allocation55_spill] sm:$0xff]  ;;  %v5236_v63 = vmax.f32 %v9689_v18, 0.0  ;;  %v10885_v18 = vld [vmem:[#allocation58_spill] sm:$0xff] }
0x15ee   :  { %5433 = vmatpush1.msra.mxu0 %v9489_v45  ;;  %5504 = vmatpush1.msra.mxu1 %v9492_v54  ;;  %v3965_v45 = vadd.f32 %v10875_v44, %v9130_v27 }
0x15ef   :  { %5434 = vmatprep.subr.mxu0 %v9495_v26  ;;  %5505 = vmatprep.subr.mxu1 %v9498_v2 }
0x15f0   :  { %5435 = vmatpush1.msra.mxu0 %v9501_v3  ;;  %5506 = vmatpush1.msra.mxu1 %v9504_v49 }
0x15f1   :  { %5436 = vmatprep.subr.mxu0 %v9507_v40  ;;  %5507 = vmatprep.subr.mxu1 %v9510_v38 }
0x15f2   :  { %5437 = vmatpush1.msra.mxu0 %v9513_v42  ;;  %5508 = vmatpush1.msra.mxu1 %v9516_v4  ;;  %v10876_v42 = vld [vmem:[#allocation22_spill] sm:$0xff] }
0x15f3   :  { %5438 = vmatprep.subr.mxu0 %v9519_v1  ;;  %5509 = vmatprep.subr.mxu1 %v9522_v61  ;;  %v4078_v4 = vadd.f32 %v10876_v42, %v10748_v20  ;;  %v10877_v61 = vld [vmem:[#allocation72_spill] sm:$0xff] }
0x15f4   :  { %5439 = vmatpush1.msra.mxu0 %v9525_v47  ;;  %5510 = vmatpush1.msra.mxu1 %v10851_v10  ;;  %v4076_v47 = vadd.f32 %v10877_v61, %v9145_v50  ;;  %v10878_v10 = vld [vmem:[#allocation49_spill] sm:$0xff] }
0x15f5   :  { %5440 = vmatprep.subr.mxu0 %v10852_v30  ;;  %5511 = vmatprep.subr.mxu1 %v10853_v56  ;;  %v4356_v30 = vmax.f32 %v10878_v10, 0.0  ;;  %v5610_v56 = vld [vmem:[%s9877_s10 + $0x60] sm:$0xff] }
0x15f6   :  { %5441 = vmatpush1.msra.mxu0 %v10854_v25  ;;  %5512 = vmatpush1.msra.mxu1 %v10855_v55  ;;  %v5609_v25 = vld [vmem:[%s9877_s10 + $0x58] sm:$0xff]  ;;  %v5608_v55 = vld [vmem:[%s9877_s10 + $0x50] sm:$0xff] }
0x15f7   :  { %5442 = vmatprep.subr.mxu0 %v10856_v37  ;;  %5513 = vmatprep.subr.mxu1 %v10857_v57  ;;  %v5607_v37 = vld [vmem:[%s9877_s10 + $0x48] sm:$0xff]  ;;  %v5606_v57 = vld [vmem:[%s9877_s10 + $0x40] sm:$0xff] }
0x15f8   :  { %5443 = vmatpush1.msra.mxu0 %v10858_v60  ;;  %5514 = vmatpush1.msra.mxu1 %v10859_v34  ;;  %v5605_v60 = vld [vmem:[%s9877_s10 + $0x38] sm:$0xff]  ;;  %v5604_v34 = vld [vmem:[%s9877_s10 + $0x30] sm:$0xff] }
0x15f9   :  { %5444 = vmatprep.subr.mxu0 %v10860_v5  ;;  %5515 = vmatprep.subr.mxu1 %v10861_v12  ;;  %v5603_v5 = vld [vmem:[%s9877_s10 + $0x28] sm:$0xff]  ;;  %v5602_v12 = vld [vmem:[%s9877_s10 + $0x20] sm:$0xff] }
0x15fa   :  { %5445 = vmatpush1.msra.mxu0 %v10862_v24  ;;  %5516 = vmatpush1.msra.mxu1 %v10863_v21  ;;  %v5601_v24 = vld [vmem:[%s9877_s10 + $0x18] sm:$0xff]  ;;  %v5600_v21 = vld [vmem:[%s9877_s10 + $0x10] sm:$0xff] }
0x15fb   :  { %5446 = vmatprep.subr.mxu0 %v10864_v13  ;;  %5517 = vmatprep.subr.mxu1 %v10865_v15  ;;  %v5599_v13 = vld [vmem:[%s9877_s10 + $0x8] sm:$0xff]  ;;  %v5598_v15 = vld [vmem:[%s9877_s10] sm:$0xff] }
0x15fc   :  { %5447 = vmatpush1.msra.mxu0 %v10866_v59  ;;  %5518 = vmatpush1.msra.mxu1 %v10867_v58  ;;  %v10879_v59 = vld [vmem:[#allocation53_spill] sm:$0xff] }
0x15fd   :  { %5448 = vmatprep.subr.mxu0 %v10868_v16  ;;  %5519 = vmatprep.subr.mxu1 %v10869_v19  ;;  %v4532_v58 = vmax.f32 %v10879_v59, 0.0  ;;  %v10880_v16 = vld [vmem:[#allocation52_spill] sm:$0xff] }
0x15fe   :  { %5449 = vmatpush1.msra.mxu0 %v10870_v23  ;;  %5482 = vmatprep.mubr.f32.mxu0 %v10871_v29  ;;  %v4708_v19 = vmax.f32 %v10880_v16, 0.0  ;;  %v10881_v23 = vld [vmem:[#allocation43_spill] sm:$0xff] }
0x15ff   :  { %5520 = vmatpush1.msra.mxu1 %v10872_v33  ;;  %5553 = vmatprep.mubr.f32.mxu1 %v10871_v29  ;;  %v4884_v29 = vmax.f32 %v10881_v23, 0.0  ;;  %v10882_v33 = vld [vmem:[#allocation66_spill] sm:$0xff] }
0x1600   :  { %5866 = vmatprep.subr.mxu0 %v5613_v52 }
0x169f   :  { %v5308_v51 = vpop.f32.mrf.mxu0  ;;  %v5379_v49 = vpop.f32.mrf.mxu1 }
0x16a0   :  { %v5384_v54 = vadd.f32 %v5308_v51, %v3963_v41  ;;  %v5386_v43 = vadd.f32 %v5379_v49, %v4076_v47  ;;  %v10883_v51 = vld [vmem:[#allocation18_spill] sm:$0xff]  ;;  %v10886_v47 = vld [vmem:[#allocation57_spill] sm:$0xff] }
0x16a1   :  { %v5310_v26 = vpop.f32.mrf.mxu0  ;;  %v5381_v38 = vpop.f32.mrf.mxu1  ;;  %v3969_v44 = vadd.f32 %v10883_v51, %v10873_v53  ;;  %v4082_v53 = vadd.f32 %v10886_v47, %v9145_v50 }
0x16a2   :  { %v5835_v2 = vmul.f32 -1.442695, %v5384_v54  ;;  %v5385_v3 = vadd.f32 %v5310_v26, %v3965_v45  ;;  %v5387_v1 = vadd.f32 %v5381_v38, %v4078_v4  ;;  %v10884_v54 = vld [vmem:[#allocation70_spill] sm:$0xff] }
0x16a3   :  { %v3971_v26 = vadd.f32 %v10884_v54, %v9130_v27 }
0x16a4   :  { %6270 = vpow2.f32 %v5835_v2  ;;  %v5836_v40 = vmul.f32 -1.442695, %v5385_v3  ;;  %v5837_v36 = vmul.f32 -1.442695, %v5387_v1  ;;  %v4084_v1 = vadd.f32 %v10885_v18, %v10748_v20 }
0x16a6   :  { %6272 = vpow2.f32 %v5836_v40 }
0x16a7   :  { %6274 = vtanh.f32 %v5386_v43 }
0x16a8   :  { %6276 = vpow2.f32 %v5837_v36 }
0x16b1   :  { %v6271_v48 = vpop.eup %6270 }
0x16b2   :  { %v5391_v8 = vadd.f32 1.0, %v6271_v48 }
0x16b3   :  { %v6273_v39 = vpop.eup %6272 }
0x16b4   :  { %6278 = vrcp.f32 %v5391_v8  ;;  %v5397_v22 = vadd.f32 1.0, %v6273_v39  ;;  %v6275_v28 = vpop.eup %6274 }
0x16b5   :  { %v6277_v31 = vpop.eup %6276 }
0x16b6   :  { %6280 = vrcp.f32 %v5397_v22  ;;  %v5404_v9 = vadd.f32 1.0, %v6277_v31  ;;  %v5841_v22 = vld [vmem:[%s9878_s11] ss:$0 sm:$0xff] }
0x16b8   :  { %6282 = vrcp.f32 %v5404_v9 }
0x16c1   :  { %v6279_v62 = vpop.eup %6278 }
0x16c2   :  { %v5408_v14 = vmul.f32 %v6279_v62, %v6275_v28 }
0x16c3   :  { %v6281_v6 = vpop.eup %6280 }
0x16c4   :  { %v5407_v7 = vmul.f32 %v6281_v6, %v9686_v35  ;;  %v5611_v35 = vld [vmem:[%s9877_s10 + $0x68] sm:$0xff] }
0x16c5   :  { %v6283_v46 = vpop.eup %6282 }
0x16c6   :  { %v9769_v17 = vadd.f32 %v5408_v14, %v5407_v7 }
0x16c8   :  { %6284 = vtanh.f32 %v9769_v17 }
0x16d5   :  { %v6285_v32 = vpop.eup %6284 }
0x16d6   :  { %v5411_v11 = vmul.f32 %v6285_v32, %v6283_v46 }
0x16d8   :  { %5483 = vmatmul.mubr.f32.vlgmr.msra.gmra.mxu0 %v5411_v11  ;;  %5554 = vmatmul.mubr.f32.vlgmr.msra.gmra.mxu1 %v5411_v11  ;;  %v5412_v41 = vmax.f32 %v5411_v11, 0.0 }
0x16d9   :  { %5867 = vmatpush3.msra.mxu0 %v5613_v52  ;;  %5898 = vmatprep.mubr.f32.mxu0 %v4356_v30  ;;  %v5060_v52 = vmax.f32 %v10882_v33, 0.0 }
0x16da   :  { %5868 = vmatprep.subr.mxu0 %v5612_v0 }
0x16db   :  { %5869 = vmatpush3.msra.mxu0 %v5612_v0 }
0x16dc   :  { %5870 = vmatprep.subr.mxu0 %v5611_v35 }
0x16dd   :  { %5871 = vmatpush3.msra.mxu0 %v5611_v35 }
0x16de   :  { %5872 = vmatprep.subr.mxu0 %v5610_v56 }
0x16df   :  { %5873 = vmatpush3.msra.mxu0 %v5610_v56 }
0x16e0   :  { %5874 = vmatprep.subr.mxu0 %v5609_v25 }
0x16e1   :  { %5875 = vmatpush3.msra.mxu0 %v5609_v25 }
0x16e2   :  { %5876 = vmatprep.subr.mxu0 %v5608_v55 }
0x16e3   :  { %5877 = vmatpush3.msra.mxu0 %v5608_v55 }
0x16e4   :  { %5878 = vmatprep.subr.mxu0 %v5607_v37 }
0x16e5   :  { %5879 = vmatpush3.msra.mxu0 %v5607_v37 }
0x16e6   :  { %5880 = vmatprep.subr.mxu0 %v5606_v57 }
0x16e7   :  { %5881 = vmatpush3.msra.mxu0 %v5606_v57 }
0x16e8   :  { %5882 = vmatprep.subr.mxu0 %v5605_v60 }
0x16e9   :  { %5883 = vmatpush3.msra.mxu0 %v5605_v60 }
0x16ea   :  { %5884 = vmatprep.subr.mxu0 %v5604_v34 }
0x16eb   :  { %5885 = vmatpush3.msra.mxu0 %v5604_v34 }
0x16ec   :  { %5886 = vmatprep.subr.mxu0 %v5603_v5 }
0x16ed   :  { %5887 = vmatpush3.msra.mxu0 %v5603_v5 }
0x16ee   :  { %5888 = vmatprep.subr.mxu0 %v5602_v12 }
0x16ef   :  { %5889 = vmatpush3.msra.mxu0 %v5602_v12 }
0x16f0   :  { %5890 = vmatprep.subr.mxu0 %v5601_v24 }
0x16f1   :  { %5891 = vmatpush3.msra.mxu0 %v5601_v24 }
0x16f2   :  { %5892 = vmatprep.subr.mxu0 %v5600_v21 }
0x16f3   :  { %5893 = vmatpush3.msra.mxu0 %v5600_v21 }
0x16f4   :  { %5894 = vmatprep.subr.mxu0 %v5599_v13 }
0x16f5   :  { %5895 = vmatpush3.msra.mxu0 %v5599_v13 }
0x16f6   :  { %5896 = vmatprep.subr.mxu0 %v5598_v15 }
0x16f7   :  { %5897 = vmatpush3.msra.mxu0 %v5598_v15 }
0x16f8   :  { %5899 = vmatmul.mubr.f32.vlgmr.msra.gmra.mxu0 %v4532_v58 }
0x16f9   :  { %5901 = vmatprep.mubr.f32.mxu0 %v4708_v19 }
0x16fc   :  { %5902 = vmatmul.mubr.f32.gmra.mxu0 %v4884_v29 }
0x16fd   :  { %5904 = vmatprep.mubr.f32.mxu0 %v5060_v52 }
0x1700   :  { %5905 = vmatmul.mubr.f32.gmra.mxu0 %v5236_v63 }
0x1701   :  { %5907 = vmatprep.mubr.f32.mxu0 %v5412_v41 }
0x1798   :  { %v5484_v45 = vpop.f32.mrf.mxu0  ;;  %v5555_v38 = vpop.f32.mrf.mxu1 }
0x1799   :  { %v5560_v2 = vadd.f32 %v5484_v45, %v3969_v44  ;;  %v5562_v43 = vadd.f32 %v5555_v38, %v4082_v53 }
0x179a   :  { %v5486_v3 = vpop.f32.mrf.mxu0  ;;  %v5557_v4 = vpop.f32.mrf.mxu1 }
0x179b   :  { %v5838_v49 = vmul.f32 -1.442695, %v5560_v2  ;;  %v5561_v40 = vadd.f32 %v5486_v3, %v3971_v26  ;;  %v5563_v61 = vadd.f32 %v5557_v4, %v4084_v1 }
0x179d   :  { %6286 = vpow2.f32 %v5838_v49  ;;  %v5839_v42 = vmul.f32 -1.442695, %v5561_v40  ;;  %v5840_v36 = vmul.f32 -1.442695, %v5563_v61 }
0x179f   :  { %6288 = vpow2.f32 %v5839_v42 }
0x17a0   :  { %6290 = vtanh.f32 %v5562_v43 }
0x17a1   :  { %6292 = vpow2.f32 %v5840_v36 }
0x17aa   :  { %v6287_v48 = vpop.eup %6286 }
0x17ab   :  { %v5567_v27 = vadd.f32 1.0, %v6287_v48 }
0x17ac   :  { %v6289_v8 = vpop.eup %6288 }
0x17ad   :  { %6294 = vrcp.f32 %v5567_v27  ;;  %v5573_v39 = vadd.f32 1.0, %v6289_v8  ;;  %v6291_v28 = vpop.eup %6290 }
0x17ae   :  { %v6293_v31 = vpop.eup %6292 }
0x17af   :  { %6296 = vrcp.f32 %v5573_v39  ;;  %v5580_v46 = vadd.f32 1.0, %v6293_v31 }
0x17b1   :  { %6298 = vrcp.f32 %v5580_v46 }
0x17b8   :  { %v5900_v20 = vpop.f32.mrf.mxu0 }
0x17b9   :  { %v5693_v62 = vadd.f32 %v5900_v20, %v5841_v22 }
0x17ba   :  { %v6295_v50 = vpop.eup %6294  ;;  %v5687_v14 = vpop.f32.mrf.mxu0 }
0x17bb   :  { %v5584_v6 = vmul.f32 %v6295_v50, %v6291_v28  ;;  %5728 = vst.msk [vmem:[%s9879_s12 + $0x8] sm:$0xff] %vm5726_vm2, %v5693_v62  ;;  %v5688_v9 = vadd.f32 %v5841_v22, %v5687_v14 }
0x17bc   :  { %v6297_v7 = vpop.eup %6296  ;;  %v5903_v32 = vpop.f32.mrf.mxu0 }
0x17bd   :  { %v5583_v11 = vmul.f32 %v6297_v7, %v9769_v17  ;;  %5727 = vst.msk [vmem:[%s9879_s12] sm:$0xff] %vm5726_vm2, %v5688_v9  ;;  %v5703_v0 = vadd.f32 %v5903_v32, %v5841_v22 }
0x17be   :  { %v5697_v10 = vpop.f32.mrf.mxu0  ;;  %v6299_v37 = vpop.eup %6298 }
0x17bf   :  { %5730 = vst.msk [vmem:[%s9879_s12 + $0x18] sm:$0xff] %vm5726_vm2, %v5703_v0  ;;  %v5698_v30 = vadd.f32 %v5841_v22, %v5697_v10  ;;  %v5585_v35 = vadd.f32 %v5584_v6, %v5583_v11 }
0x17c0   :  { %v5906_v56 = vpop.f32.mrf.mxu0 }
0x17c1   :  { %5729 = vst.msk [vmem:[%s9879_s12 + $0x10] sm:$0xff] %vm5726_vm2, %v5698_v30  ;;  %v5713_v17 = vadd.f32 %v5906_v56, %v5841_v22  ;;  %6300 = vtanh.f32 %v5585_v35 }
0x17c2   :  { %v5707_v25 = vpop.f32.mrf.mxu0 }
0x17c3   :  { %5732 = vst.msk [vmem:[%s9879_s12 + $0x28] sm:$0xff] %vm5726_vm2, %v5713_v17  ;;  %v5708_v55 = vadd.f32 %v5841_v22, %v5707_v25 }
0x17c5   :  { %5731 = vst.msk [vmem:[%s9879_s12 + $0x20] sm:$0xff] %vm5726_vm2, %v5708_v55 }
0x17ce   :  { %v6301_v57 = vpop.eup %6300 }
0x17cf   :  { %v5587_v60 = vmul.f32 %v6301_v57, %v6299_v37 }
0x17d1   :  { %v5588_v34 = vmax.f32 %v5587_v60, 0.0 }
0x17d3   :  { %5908 = vmatmul.mubr.f32.gmra.mxu0 %v5588_v34 }
0x1893   :  { %v5909_v5 = vpop.f32.mrf.mxu0 }
0x1894   :  { %v5723_v12 = vadd.f32 %v5909_v5, %v5841_v22 }
0x1895   :  { %v5717_v24 = vpop.f32.mrf.mxu0 }
0x1896   :  { %5734 = vst.msk [vmem:[%s9879_s12 + $0x38] sm:$0xff] %vm5726_vm2, %v5723_v12  ;;  %v5718_v21 = vadd.f32 %v5841_v22, %v5717_v24 }
0x1898   :  { %5733 = vst.msk [vmem:[%s9879_s12 + $0x30] sm:$0xff] %vm5726_vm2, %v5718_v21 }
0x1899   :  { %5739 = vsyncpa [#allocation5], 1 }
0x189a   :  { %5740 = vsyncpa [#allocation7], 1 }
0x189b   :  { %5741 = vsyncpa [#allocation10], 1 }

</bundles_post_ra>
